<compile_context>
chip_gen: v7x
topology: tpu7x:2x2x1
jax: 0.10.0
libtpu: 0.0.40
codegen_flags: <defaults>
</compile_context>

<pallas_src>
import functools

import jax
import jax.numpy as jnp
from jax import lax
from jax.experimental import pallas as pl
from jax.experimental.pallas import tpu as pltpu

_BS = 8             # sublanes per problem sub-tile
_BL = 128           # lanes per problem sub-tile
_SUB = _BS * _BL    # problems per (8, 128) sub-tile
_T_MAX = 8          # max sub-tiles per grid step (~2 MiB sim block at N=8)
_MAX_UNROLL_N = 10  # above this, use the VMEM-resident (looped) path
_STEP_COST = 0.3    # per-grid-step overhead, in units of per-sub-tile compute


def _cdiv(a, b):
  return -(-a // b)


def _tree_sum(xs):
  """Balanced-tree sum of a list of arrays (short dependency chain)."""
  xs = list(xs)
  while len(xs) > 1:
    nxt = [xs[i] + xs[i + 1] for i in range(0, len(xs) - 1, 2)]
    if len(xs) % 2:
      nxt.append(xs[-1])
    xs = nxt
  return xs[0]


def _pair_dot(a_list, b_list):
  """sum_j a[j] * b[j] using two accumulation chains (low vreg pressure)."""
  n = len(a_list)
  acc0 = a_list[0] * b_list[0]
  if n == 1:
    return acc0
  acc1 = a_list[1] * b_list[1]
  for j in range(2, n):
    p = a_list[j] * b_list[j]
    if j % 2 == 0:
      acc0 = acc0 + p
    else:
      acc1 = acc1 + p
  return acc0 + acc1


def _newton_recip(x):
  """EUP approximate reciprocal + one Newton step (rel. error ~1e-7)."""
  r = pl.reciprocal(x, approx=True)
  return r * (2.0 - x * r)


def _emd_kernel_small_n(sim_ref, w1_ref, w2_ref, out_ref, k_ref, ks_ref, *,
                        n_nodes, n_subtiles, temperature, n_iters, eps):
  """Fully node-unrolled path (n_nodes <= _MAX_UNROLL_N).

  Block shapes:
    sim_ref: (1, n*n, T, 8, 128)   w1_ref / w2_ref: (1, n, T, 8, 128)
    out_ref: (1, T, 8, 128)
    k_ref / ks_ref (VMEM scratch): (n*n, 8, 128), rebuilt per sub-tile.
  """
  n = n_nodes
  f32 = jnp.float32
  inv_eps = 1.0 / eps
  ones = jnp.ones((_BS, _BL), f32)
  zero = jnp.zeros((_BS, _BL), f32)

  def process(t):
    # ---- weight normalization (matches OpenCVSolver.forward) ----
    w1 = [jnp.maximum(w1_ref[0, i, t].astype(f32), 0.0) + 1e-5
          for i in range(n)]
    w2 = [jnp.maximum(w2_ref[0, i, t].astype(f32), 0.0) + 1e-5
          for i in range(n)]
    s1 = _tree_sum(w1)
    s2 = _tree_sum(w2)
    w1 = tuple(w1[i] * (n / s1) for i in range(n))   # exact divide: one-time
    w2 = tuple(w2[i] * (n / s2) for i in range(n))

    # ---- Gibbs kernel K = exp(-(1 - sim)/eps) and KS = K * sim, built once --
    for i in range(n):
      for j in range(n):
        s = sim_ref[0, i * n + j, t].astype(f32)
        k = jnp.exp((s - 1.0) * inv_eps)
        k_ref[i * n + j] = k
        ks_ref[i * n + j] = k * s

    # ---- Sinkhorn iterations; u- and v-pass fused so each K row is read
    #      from VMEM exactly once per iteration ----
    def body(_, carry):
      _, v = carry
      ktu = [zero] * n
      new_u = []
      for i in range(n):
        row = [k_ref[i * n + j] for j in range(n)]       # K[i, :] loaded once
        kv = _pair_dot(row, v)
        u_i = w1[i] * _newton_recip(kv + 1e-12)
        new_u.append(u_i)
        for j in range(n):                               # K^T u on the fly
          ktu[j] = ktu[j] + row[j] * u_i
      new_v = tuple(w2[j] * _newton_recip(ktu[j] + 1e-12) for j in range(n))
      return tuple(new_u), new_v

    init = (tuple(ones for _ in range(n)), tuple(ones for _ in range(n)))
    u, v = lax.fori_loop(0, n_iters, body, init)

    # ---- scores = sum(flow * sim) * temperature / N (lane-dense store) ----
    acc = zero
    for i in range(n):
      ks_row = [ks_ref[i * n + j] for j in range(n)]
      acc = acc + u[i] * _pair_dot(ks_row, v)
    out_ref[0, t] = (acc * (temperature / n)).astype(out_ref.dtype)

  if n_subtiles == 1:
    process(0)                     # fully static indexing (common case)
  else:
    def subtile(t, carry):
      process(t)
      return carry
    lax.fori_loop(0, n_subtiles, subtile, 0)


def _emd_kernel_large_n(sim_ref, w1_ref, w2_ref, out_ref,
                        k_ref, ks_ref, u_ref, v_ref, w1n_ref, w2n_ref, *,
                        n_nodes, temperature, n_iters, eps):
  """VMEM-resident path for large node counts (e.g. DeepEMD's N=25).

  Per-node state (u, v, normalized weights) lives in (n, 8, 128) VMEM scratch
  and the node loops are real loops, so vreg pressure stays flat in n.
  Always runs with one sub-tile per grid step (T == 1).
  """
  n = n_nodes
  f32 = jnp.float32
  inv_eps = 1.0 / eps
  zero = jnp.zeros((_BS, _BL), f32)
  ones = jnp.ones((_BS, _BL), f32)

  # ---- weight normalization: relu + 1e-5, then rescale to sum == n ----
  def relu_store(i, sums):
    a = jnp.maximum(w1_ref[0, i, 0].astype(f32), 0.0) + 1e-5
    c = jnp.maximum(w2_ref[0, i, 0].astype(f32), 0.0) + 1e-5
    w1n_ref[i] = a
    w2n_ref[i] = c
    return sums[0] + a, sums[1] + c

  s1, s2 = lax.fori_loop(0, n, relu_store, (zero, zero))
  scale1 = n / s1
  scale2 = n / s2

  def scale_init(i, carry):
    w1n_ref[i] = w1n_ref[i] * scale1
    w2n_ref[i] = w2n_ref[i] * scale2
    u_ref[i] = ones
    v_ref[i] = ones
    return carry

  lax.fori_loop(0, n, scale_init, 0)

  # ---- K = exp(-(1 - sim)/eps) and KS = K * sim, built once into VMEM ----
  def build(idx, carry):
    s = sim_ref[0, idx, 0].astype(f32)
    k = jnp.exp((s - 1.0) * inv_eps)
    k_ref[idx] = k
    ks_ref[idx] = k * s
    return carry

  lax.fori_loop(0, n * n, build, 0)

  # ---- Sinkhorn with VMEM-resident u, v ----
  def sink(_, carry):
    def u_row(i, c):
      def dot_v(j, acc):
        return acc + k_ref[i * n + j] * v_ref[j]
      kv = lax.fori_loop(0, n, dot_v, zero, unroll=4)
      u_ref[i] = w1n_ref[i] * _newton_recip(kv + 1e-12)
      return c
    lax.fori_loop(0, n, u_row, 0)

    def v_col(j, c):
      def dot_u(i, acc):
        return acc + k_ref[i * n + j] * u_ref[i]
      ktu = lax.fori_loop(0, n, dot_u, zero, unroll=4)
      v_ref[j] = w2n_ref[j] * _newton_recip(ktu + 1e-12)
      return c
    lax.fori_loop(0, n, v_col, 0)
    return carry

  lax.fori_loop(0, n_iters, sink, 0)

  # ---- scores = sum(flow * sim) * temperature / N ----
  def score_row(i, acc):
    def dot_ks(j, a):
      return a + ks_ref[i * n + j] * v_ref[j]
    row = lax.fori_loop(0, n, dot_ks, zero, unroll=4)
    return acc + u_ref[i] * row

  acc = lax.fori_loop(0, n, score_row, zero)
  out_ref[0, 0] = (acc * (temperature / n)).astype(out_ref.dtype)


def _choose_tiling(batch, n):
  """Pick (grid steps g, sub-tiles per step T) for `batch` EMD problems."""
  s = max(1, _cdiv(batch, _SUB))          # number of (8, 128) sub-tiles
  if n > _MAX_UNROLL_N:
    return s, 1                            # per-step work is already large
  if s == 1:
    return 1, 1
  # Keep at least two grid steps so v7x's two TensorCores both get work, and
  # pick T to balance padded-sub-tile waste against the ~600-cycle step cost.
  t_cap = min(_T_MAX, _cdiv(s, 2))
  best_cost, best = None, (s, 1)
  for t in range(1, t_cap + 1):
    g = _cdiv(s, t)
    cost = g * t + _STEP_COST * g
    if best_cost is None or cost < best_cost:
      best_cost, best = cost, (g, t)
  return best


@functools.partial(jax.jit, static_argnames=("temperature", "n_iters", "eps"))
def emd_layer_forward(similarity_map, weight_1, weight_2,
                      temperature=12.5, n_iters=30, eps=0.05):
  """Pallas implementation of EMDLayer.forward.

  Args:
    similarity_map: [episode, num_query, way, N, N]
    weight_1:       [episode, num_query, way, N]
    weight_2:       [episode, way, num_query, N]
  Returns:
    scores: [episode, num_query, way] float32

  Note: n_iters is the single biggest performance knob (cost is linear in
  it); 15-20 iterations are typically indistinguishable from the default 30.
  """
  episode, num_query, way, n, n2 = similarity_map.shape
  assert n == n2
  b = episode * num_query * way

  sim_b = similarity_map.reshape(b, n, n).astype(jnp.float32)
  w1_b = weight_1.reshape(b, n).astype(jnp.float32)
  # weight_2: [E, way, query, N] -> [E, query, way, N] -> [B, N]
  w2_b = jnp.transpose(weight_2, (0, 2, 1, 3)).reshape(b, n).astype(jnp.float32)

  g, t_sub = _choose_tiling(b, n)
  b_pad = g * t_sub * _SUB
  pad = b_pad - b
  if pad:
    # Benign padding: sim=1 (cost 0), weights=1 -> well-conditioned problems.
    sim_b = jnp.pad(sim_b, ((0, pad), (0, 0), (0, 0)), constant_values=1.0)
    w1_b = jnp.pad(w1_b, ((0, pad), (0, 0)), constant_values=1.0)
    w2_b = jnp.pad(w2_b, ((0, pad), (0, 0)), constant_values=1.0)

  # Batch -> (grid, sub-tile, sublane, lane); node pairs flattened in front so
  # every (i, j) slab is a dense (8, 128) tile in VMEM / vregs.
  # TODO(synk): this relayout is an extra HBM read+write of the sim tensor
  #             outside the kernel; when wiring into the full DeepEMD model,
  #             have the upstream producer emit this layout directly (or
  #             enable allow_input_fusion on the call).
  sim_l = (sim_b.reshape(g, t_sub, _BS, _BL, n, n)
           .transpose(0, 4, 5, 1, 2, 3)
           .reshape(g, n * n, t_sub, _BS, _BL))
  w1_l = w1_b.reshape(g, t_sub, _BS, _BL, n).transpose(0, 4, 1, 2, 3)
  w2_l = w2_b.reshape(g, t_sub, _BS, _BL, n).transpose(0, 4, 1, 2, 3)

  if n <= _MAX_UNROLL_N:
    kernel = functools.partial(
        _emd_kernel_small_n, n_nodes=n, n_subtiles=t_sub,
        temperature=float(temperature), n_iters=int(n_iters), eps=float(eps))
    scratch = [pltpu.VMEM((n * n, _BS, _BL), jnp.float32)] * 2
  else:
    kernel = functools.partial(
        _emd_kernel_large_n, n_nodes=n,
        temperature=float(temperature), n_iters=int(n_iters), eps=float(eps))
    scratch = ([pltpu.VMEM((n * n, _BS, _BL), jnp.float32)] * 2 +
               [pltpu.VMEM((n, _BS, _BL), jnp.float32)] * 4)

  out = pl.pallas_call(
      kernel,
      out_shape=jax.ShapeDtypeStruct((g, t_sub, _BS, _BL), jnp.float32),
      grid_spec=pltpu.PrefetchScalarGridSpec(
          num_scalar_prefetch=0,
          grid=(g,),
          in_specs=[
              pl.BlockSpec((1, n * n, t_sub, _BS, _BL),
                           lambda i: (i, 0, 0, 0, 0)),
              pl.BlockSpec((1, n, t_sub, _BS, _BL),
                           lambda i: (i, 0, 0, 0, 0)),
              pl.BlockSpec((1, n, t_sub, _BS, _BL),
                           lambda i: (i, 0, 0, 0, 0)),
          ],
          out_specs=pl.BlockSpec((1, t_sub, _BS, _BL), lambda i: (i, 0, 0, 0)),
          scratch_shapes=scratch,
      ),
      compiler_params=pltpu.CompilerParams(
          dimension_semantics=("parallel",)),
  )(sim_l, w1_l, w2_l)

  return out.reshape(b_pad)[:b].reshape(episode, num_query, way)


def _reference_scores(similarity_map, weight_1, weight_2,
                      temperature, n_iters, eps):
  """Pure-JAX Sinkhorn reference (exact divides, f32 sums) for checking."""
  e, q, w, n, _ = similarity_map.shape
  b = e * q * w
  sim = similarity_map.reshape(b, n, n).astype(jnp.float32)
  w1 = weight_1.reshape(b, n).astype(jnp.float32)
  w2 = jnp.transpose(weight_2, (0, 2, 1, 3)).reshape(b, n).astype(jnp.float32)
  w1 = jnp.maximum(w1, 0.0) + 1e-5
  w2 = jnp.maximum(w2, 0.0) + 1e-5
  w1 = w1 * (n / jnp.sum(w1, axis=1, keepdims=True))
  w2 = w2 * (n / jnp.sum(w2, axis=1, keepdims=True))
  K = jnp.exp(-(1.0 - sim) / eps)

  def body(_, uv):
    u, v = uv
    u = w1 / (jnp.sum(K * v[:, None, :], axis=2) + 1e-12)
    v = w2 / (jnp.sum(K * u[:, :, None], axis=1) + 1e-12)
    return u, v

  u, v = lax.fori_loop(0, n_iters, body,
                       (jnp.ones_like(w1), jnp.ones_like(w2)))
  flow = u[:, :, None] * K * v[:, None, :]
  scores = jnp.sum(flow * sim, axis=(-1, -2)) * (temperature / n)
  return scores.reshape(e, q, w)


if __name__ == "__main__":
  key = jax.random.PRNGKey(0)

  def _run_case(episode, num_query, way, n, case_id):
    k1, k2, k3 = jax.random.split(jax.random.fold_in(key, case_id), 3)
    # similarity in (0, 1), positive weights (as produced by DeepEMD upstream)
    sim = jax.nn.sigmoid(jax.random.normal(
        k1, (episode, num_query, way, n, n), jnp.float32))
    w1 = jax.random.uniform(k2, (episode, num_query, way, n),
                            jnp.float32, minval=0.1, maxval=1.0)
    w2 = jax.random.uniform(k3, (episode, way, num_query, n),
                            jnp.float32, minval=0.1, maxval=1.0)

    scores = jax.block_until_ready(emd_layer_forward(sim, w1, w2))
    assert scores.shape == (episode, num_query, way)
    assert bool(jnp.all(jnp.isfinite(scores)))

    ref = jax.block_until_ready(
        _reference_scores(sim, w1, w2, 12.5, 30, 0.05))
    assert bool(jnp.allclose(scores, ref, rtol=2e-3, atol=2e-3)), (scores, ref)

  # 1) small-N fast path, single (8,128) sub-tile, grid of 1
  _run_case(episode=1, num_query=4, way=4, n=8, case_id=0)
  # 2) small-N fast path, multi-sub-tile blocks (T=2) on a 2-step parallel grid
  _run_case(episode=2, num_query=40, way=40, n=8, case_id=1)
  # 3) large-N (DeepEMD-style N=25) VMEM-resident path
  _run_case(episode=1, num_query=3, way=3, n=25, case_id=2)

  print("KERNEL_OK")
</pallas_src>

<mosaic_0001>
module attributes {stable_mosaic.version = 11 : i64} {
  func.func @_emd_kernel_small_n(%arg0: i32, %arg1: memref<1x64x1x8x128xf32, #tpu.memory_space<vmem>>, %arg2: memref<1x8x1x8x128xf32, #tpu.memory_space<vmem>>, %arg3: memref<1x8x1x8x128xf32, #tpu.memory_space<vmem>>, %arg4: memref<1x1x8x128xf32, #tpu.memory_space<vmem>>, %arg5: memref<64x8x128xf32, #tpu.memory_space<vmem>>, %arg6: memref<64x8x128xf32, #tpu.memory_space<vmem>>) attributes {dimension_semantics = [#tpu.dimension_semantics<parallel>], iteration_bounds = array<i64: 1>, scalar_prefetch = 0 : i64, scratch_operands = 2 : i64, tpu.core_type = #tpu.core_type<tc>, window_params = [{transform_indices = @transform_0, window_bounds = array<i64: 1, 64, 1, 8, 128>}, {transform_indices = @transform_1, window_bounds = array<i64: 1, 8, 1, 8, 128>}, {transform_indices = @transform_2, window_bounds = array<i64: 1, 8, 1, 8, 128>}, {transform_indices = @transform_3, window_bounds = array<i64: 1, 1, 8, 128>}]} {
    %cst = arith.constant 1.000000e+00 : f32
    %0 = vector.broadcast %cst : f32 to vector<8x128xf32>
    %cst_0 = arith.constant 0.000000e+00 : f32
    %1 = vector.broadcast %cst_0 : f32 to vector<8x128xf32>
    %c0 = arith.constant 0 : index
    %c0_1 = arith.constant 0 : index
    %c0_2 = arith.constant 0 : index
    %c0_3 = arith.constant 0 : index
    %c0_4 = arith.constant 0 : index
    %2 = vector.load %arg2[%c0, %c0_1, %c0_2, %c0_3, %c0_4] : memref<1x8x1x8x128xf32, #tpu.memory_space<vmem>>, vector<1x1x1x8x128xf32>
    %3 = vector.shape_cast %2 : vector<1x1x1x8x128xf32> to vector<8x128xf32>
    %cst_5 = arith.constant 0.000000e+00 : f32
    %4 = vector.broadcast %cst_5 : f32 to vector<8x128xf32>
    %5 = arith.maximumf %3, %4 : vector<8x128xf32>
    %cst_6 = arith.constant 9.99999974E-6 : f32
    %6 = vector.broadcast %cst_6 : f32 to vector<8x128xf32>
    %7 = arith.addf %5, %6 : vector<8x128xf32>
    %c0_7 = arith.constant 0 : index
    %c1 = arith.constant 1 : index
    %c0_8 = arith.constant 0 : index
    %c0_9 = arith.constant 0 : index
    %c0_10 = arith.constant 0 : index
    %8 = vector.load %arg2[%c0_7, %c1, %c0_8, %c0_9, %c0_10] : memref<1x8x1x8x128xf32, #tpu.memory_space<vmem>>, vector<1x1x1x8x128xf32>
    %9 = vector.shape_cast %8 : vector<1x1x1x8x128xf32> to vector<8x128xf32>
    %cst_11 = arith.constant 0.000000e+00 : f32
    %10 = vector.broadcast %cst_11 : f32 to vector<8x128xf32>
    %11 = arith.maximumf %9, %10 : vector<8x128xf32>
    %cst_12 = arith.constant 9.99999974E-6 : f32
    %12 = vector.broadcast %cst_12 : f32 to vector<8x128xf32>
    %13 = arith.addf %11, %12 : vector<8x128xf32>
    %c0_13 = arith.constant 0 : index
    %c2 = arith.constant 2 : index
    %c0_14 = arith.constant 0 : index
    %c0_15 = arith.constant 0 : index
    %c0_16 = arith.constant 0 : index
    %14 = vector.load %arg2[%c0_13, %c2, %c0_14, %c0_15, %c0_16] : memref<1x8x1x8x128xf32, #tpu.memory_space<vmem>>, vector<1x1x1x8x128xf32>
    %15 = vector.shape_cast %14 : vector<1x1x1x8x128xf32> to vector<8x128xf32>
    %cst_17 = arith.constant 0.000000e+00 : f32
    %16 = vector.broadcast %cst_17 : f32 to vector<8x128xf32>
    %17 = arith.maximumf %15, %16 : vector<8x128xf32>
    %cst_18 = arith.constant 9.99999974E-6 : f32
    %18 = vector.broadcast %cst_18 : f32 to vector<8x128xf32>
    %19 = arith.addf %17, %18 : vector<8x128xf32>
    %c0_19 = arith.constant 0 : index
    %c3 = arith.constant 3 : index
    %c0_20 = arith.constant 0 : index
    %c0_21 = arith.constant 0 : index
    %c0_22 = arith.constant 0 : index
    %20 = vector.load %arg2[%c0_19, %c3, %c0_20, %c0_21, %c0_22] : memref<1x8x1x8x128xf32, #tpu.memory_space<vmem>>, vector<1x1x1x8x128xf32>
    %21 = vector.shape_cast %20 : vector<1x1x1x8x128xf32> to vector<8x128xf32>
    %cst_23 = arith.constant 0.000000e+00 : f32
    %22 = vector.broadcast %cst_23 : f32 to vector<8x128xf32>
    %23 = arith.maximumf %21, %22 : vector<8x128xf32>
    %cst_24 = arith.constant 9.99999974E-6 : f32
    %24 = vector.broadcast %cst_24 : f32 to vector<8x128xf32>
    %25 = arith.addf %23, %24 : vector<8x128xf32>
    %c0_25 = arith.constant 0 : index
    %c4 = arith.constant 4 : index
    %c0_26 = arith.constant 0 : index
    %c0_27 = arith.constant 0 : index
    %c0_28 = arith.constant 0 : index
    %26 = vector.load %arg2[%c0_25, %c4, %c0_26, %c0_27, %c0_28] : memref<1x8x1x8x128xf32, #tpu.memory_space<vmem>>, vector<1x1x1x8x128xf32>
    %27 = vector.shape_cast %26 : vector<1x1x1x8x128xf32> to vector<8x128xf32>
    %cst_29 = arith.constant 0.000000e+00 : f32
    %28 = vector.broadcast %cst_29 : f32 to vector<8x128xf32>
    %29 = arith.maximumf %27, %28 : vector<8x128xf32>
    %cst_30 = arith.constant 9.99999974E-6 : f32
    %30 = vector.broadcast %cst_30 : f32 to vector<8x128xf32>
    %31 = arith.addf %29, %30 : vector<8x128xf32>
    %c0_31 = arith.constant 0 : index
    %c5 = arith.constant 5 : index
    %c0_32 = arith.constant 0 : index
    %c0_33 = arith.constant 0 : index
    %c0_34 = arith.constant 0 : index
    %32 = vector.load %arg2[%c0_31, %c5, %c0_32, %c0_33, %c0_34] : memref<1x8x1x8x128xf32, #tpu.memory_space<vmem>>, vector<1x1x1x8x128xf32>
    %33 = vector.shape_cast %32 : vector<1x1x1x8x128xf32> to vector<8x128xf32>
    %cst_35 = arith.constant 0.000000e+00 : f32
    %34 = vector.broadcast %cst_35 : f32 to vector<8x128xf32>
    %35 = arith.maximumf %33, %34 : vector<8x128xf32>
    %cst_36 = arith.constant 9.99999974E-6 : f32
    %36 = vector.broadcast %cst_36 : f32 to vector<8x128xf32>
    %37 = arith.addf %35, %36 : vector<8x128xf32>
    %c0_37 = arith.constant 0 : index
    %c6 = arith.constant 6 : index
    %c0_38 = arith.constant 0 : index
    %c0_39 = arith.constant 0 : index
    %c0_40 = arith.constant 0 : index
    %38 = vector.load %arg2[%c0_37, %c6, %c0_38, %c0_39, %c0_40] : memref<1x8x1x8x128xf32, #tpu.memory_space<vmem>>, vector<1x1x1x8x128xf32>
    %39 = vector.shape_cast %38 : vector<1x1x1x8x128xf32> to vector<8x128xf32>
    %cst_41 = arith.constant 0.000000e+00 : f32
    %40 = vector.broadcast %cst_41 : f32 to vector<8x128xf32>
    %41 = arith.maximumf %39, %40 : vector<8x128xf32>
    %cst_42 = arith.constant 9.99999974E-6 : f32
    %42 = vector.broadcast %cst_42 : f32 to vector<8x128xf32>
    %43 = arith.addf %41, %42 : vector<8x128xf32>
    %c0_43 = arith.constant 0 : index
    %c7 = arith.constant 7 : index
    %c0_44 = arith.constant 0 : index
    %c0_45 = arith.constant 0 : index
    %c0_46 = arith.constant 0 : index
    %44 = vector.load %arg2[%c0_43, %c7, %c0_44, %c0_45, %c0_46] : memref<1x8x1x8x128xf32, #tpu.memory_space<vmem>>, vector<1x1x1x8x128xf32>
    %45 = vector.shape_cast %44 : vector<1x1x1x8x128xf32> to vector<8x128xf32>
    %cst_47 = arith.constant 0.000000e+00 : f32
    %46 = vector.broadcast %cst_47 : f32 to vector<8x128xf32>
    %47 = arith.maximumf %45, %46 : vector<8x128xf32>
    %cst_48 = arith.constant 9.99999974E-6 : f32
    %48 = vector.broadcast %cst_48 : f32 to vector<8x128xf32>
    %49 = arith.addf %47, %48 : vector<8x128xf32>
    %c0_49 = arith.constant 0 : index
    %c0_50 = arith.constant 0 : index
    %c0_51 = arith.constant 0 : index
    %c0_52 = arith.constant 0 : index
    %c0_53 = arith.constant 0 : index
    %50 = vector.load %arg3[%c0_49, %c0_50, %c0_51, %c0_52, %c0_53] : memref<1x8x1x8x128xf32, #tpu.memory_space<vmem>>, vector<1x1x1x8x128xf32>
    %51 = vector.shape_cast %50 : vector<1x1x1x8x128xf32> to vector<8x128xf32>
    %cst_54 = arith.constant 0.000000e+00 : f32
    %52 = vector.broadcast %cst_54 : f32 to vector<8x128xf32>
    %53 = arith.maximumf %51, %52 : vector<8x128xf32>
    %cst_55 = arith.constant 9.99999974E-6 : f32
    %54 = vector.broadcast %cst_55 : f32 to vector<8x128xf32>
    %55 = arith.addf %53, %54 : vector<8x128xf32>
    %c0_56 = arith.constant 0 : index
    %c1_57 = arith.constant 1 : index
    %c0_58 = arith.constant 0 : index
    %c0_59 = arith.constant 0 : index
    %c0_60 = arith.constant 0 : index
    %56 = vector.load %arg3[%c0_56, %c1_57, %c0_58, %c0_59, %c0_60] : memref<1x8x1x8x128xf32, #tpu.memory_space<vmem>>, vector<1x1x1x8x128xf32>
    %57 = vector.shape_cast %56 : vector<1x1x1x8x128xf32> to vector<8x128xf32>
    %cst_61 = arith.constant 0.000000e+00 : f32
    %58 = vector.broadcast %cst_61 : f32 to vector<8x128xf32>
    %59 = arith.maximumf %57, %58 : vector<8x128xf32>
    %cst_62 = arith.constant 9.99999974E-6 : f32
    %60 = vector.broadcast %cst_62 : f32 to vector<8x128xf32>
    %61 = arith.addf %59, %60 : vector<8x128xf32>
    %c0_63 = arith.constant 0 : index
    %c2_64 = arith.constant 2 : index
    %c0_65 = arith.constant 0 : index
    %c0_66 = arith.constant 0 : index
    %c0_67 = arith.constant 0 : index
    %62 = vector.load %arg3[%c0_63, %c2_64, %c0_65, %c0_66, %c0_67] : memref<1x8x1x8x128xf32, #tpu.memory_space<vmem>>, vector<1x1x1x8x128xf32>
    %63 = vector.shape_cast %62 : vector<1x1x1x8x128xf32> to vector<8x128xf32>
    %cst_68 = arith.constant 0.000000e+00 : f32
    %64 = vector.broadcast %cst_68 : f32 to vector<8x128xf32>
    %65 = arith.maximumf %63, %64 : vector<8x128xf32>
    %cst_69 = arith.constant 9.99999974E-6 : f32
    %66 = vector.broadcast %cst_69 : f32 to vector<8x128xf32>
    %67 = arith.addf %65, %66 : vector<8x128xf32>
    %c0_70 = arith.constant 0 : index
    %c3_71 = arith.constant 3 : index
    %c0_72 = arith.constant 0 : index
    %c0_73 = arith.constant 0 : index
    %c0_74 = arith.constant 0 : index
    %68 = vector.load %arg3[%c0_70, %c3_71, %c0_72, %c0_73, %c0_74] : memref<1x8x1x8x128xf32, #tpu.memory_space<vmem>>, vector<1x1x1x8x128xf32>
    %69 = vector.shape_cast %68 : vector<1x1x1x8x128xf32> to vector<8x128xf32>
    %cst_75 = arith.constant 0.000000e+00 : f32
    %70 = vector.broadcast %cst_75 : f32 to vector<8x128xf32>
    %71 = arith.maximumf %69, %70 : vector<8x128xf32>
    %cst_76 = arith.constant 9.99999974E-6 : f32
    %72 = vector.broadcast %cst_76 : f32 to vector<8x128xf32>
    %73 = arith.addf %71, %72 : vector<8x128xf32>
    %c0_77 = arith.constant 0 : index
    %c4_78 = arith.constant 4 : index
    %c0_79 = arith.constant 0 : index
    %c0_80 = arith.constant 0 : index
    %c0_81 = arith.constant 0 : index
    %74 = vector.load %arg3[%c0_77, %c4_78, %c0_79, %c0_80, %c0_81] : memref<1x8x1x8x128xf32, #tpu.memory_space<vmem>>, vector<1x1x1x8x128xf32>
    %75 = vector.shape_cast %74 : vector<1x1x1x8x128xf32> to vector<8x128xf32>
    %cst_82 = arith.constant 0.000000e+00 : f32
    %76 = vector.broadcast %cst_82 : f32 to vector<8x128xf32>
    %77 = arith.maximumf %75, %76 : vector<8x128xf32>
    %cst_83 = arith.constant 9.99999974E-6 : f32
    %78 = vector.broadcast %cst_83 : f32 to vector<8x128xf32>
    %79 = arith.addf %77, %78 : vector<8x128xf32>
    %c0_84 = arith.constant 0 : index
    %c5_85 = arith.constant 5 : index
    %c0_86 = arith.constant 0 : index
    %c0_87 = arith.constant 0 : index
    %c0_88 = arith.constant 0 : index
    %80 = vector.load %arg3[%c0_84, %c5_85, %c0_86, %c0_87, %c0_88] : memref<1x8x1x8x128xf32, #tpu.memory_space<vmem>>, vector<1x1x1x8x128xf32>
    %81 = vector.shape_cast %80 : vector<1x1x1x8x128xf32> to vector<8x128xf32>
    %cst_89 = arith.constant 0.000000e+00 : f32
    %82 = vector.broadcast %cst_89 : f32 to vector<8x128xf32>
    %83 = arith.maximumf %81, %82 : vector<8x128xf32>
    %cst_90 = arith.constant 9.99999974E-6 : f32
    %84 = vector.broadcast %cst_90 : f32 to vector<8x128xf32>
    %85 = arith.addf %83, %84 : vector<8x128xf32>
    %c0_91 = arith.constant 0 : index
    %c6_92 = arith.constant 6 : index
    %c0_93 = arith.constant 0 : index
    %c0_94 = arith.constant 0 : index
    %c0_95 = arith.constant 0 : index
    %86 = vector.load %arg3[%c0_91, %c6_92, %c0_93, %c0_94, %c0_95] : memref<1x8x1x8x128xf32, #tpu.memory_space<vmem>>, vector<1x1x1x8x128xf32>
    %87 = vector.shape_cast %86 : vector<1x1x1x8x128xf32> to vector<8x128xf32>
    %cst_96 = arith.constant 0.000000e+00 : f32
    %88 = vector.broadcast %cst_96 : f32 to vector<8x128xf32>
    %89 = arith.maximumf %87, %88 : vector<8x128xf32>
    %cst_97 = arith.constant 9.99999974E-6 : f32
    %90 = vector.broadcast %cst_97 : f32 to vector<8x128xf32>
    %91 = arith.addf %89, %90 : vector<8x128xf32>
    %c0_98 = arith.constant 0 : index
    %c7_99 = arith.constant 7 : index
    %c0_100 = arith.constant 0 : index
    %c0_101 = arith.constant 0 : index
    %c0_102 = arith.constant 0 : index
    %92 = vector.load %arg3[%c0_98, %c7_99, %c0_100, %c0_101, %c0_102] : memref<1x8x1x8x128xf32, #tpu.memory_space<vmem>>, vector<1x1x1x8x128xf32>
    %93 = vector.shape_cast %92 : vector<1x1x1x8x128xf32> to vector<8x128xf32>
    %cst_103 = arith.constant 0.000000e+00 : f32
    %94 = vector.broadcast %cst_103 : f32 to vector<8x128xf32>
    %95 = arith.maximumf %93, %94 : vector<8x128xf32>
    %cst_104 = arith.constant 9.99999974E-6 : f32
    %96 = vector.broadcast %cst_104 : f32 to vector<8x128xf32>
    %97 = arith.addf %95, %96 : vector<8x128xf32>
    %98 = arith.addf %7, %13 : vector<8x128xf32>
    %99 = arith.addf %19, %25 : vector<8x128xf32>
    %100 = arith.addf %31, %37 : vector<8x128xf32>
    %101 = arith.addf %43, %49 : vector<8x128xf32>
    %102 = arith.addf %98, %99 : vector<8x128xf32>
    %103 = arith.addf %100, %101 : vector<8x128xf32>
    %104 = arith.addf %102, %103 : vector<8x128xf32>
    %105 = arith.addf %55, %61 : vector<8x128xf32>
    %106 = arith.addf %67, %73 : vector<8x128xf32>
    %107 = arith.addf %79, %85 : vector<8x128xf32>
    %108 = arith.addf %91, %97 : vector<8x128xf32>
    %109 = arith.addf %105, %106 : vector<8x128xf32>
    %110 = arith.addf %107, %108 : vector<8x128xf32>
    %111 = arith.addf %109, %110 : vector<8x128xf32>
    %cst_105 = arith.constant 8.000000e+00 : f32
    %112 = vector.broadcast %cst_105 : f32 to vector<8x128xf32>
    %113 = arith.divf %112, %104 : vector<8x128xf32>
    %114 = arith.mulf %7, %113 : vector<8x128xf32>
    %cst_106 = arith.constant 8.000000e+00 : f32
    %115 = vector.broadcast %cst_106 : f32 to vector<8x128xf32>
    %116 = arith.divf %115, %104 : vector<8x128xf32>
    %117 = arith.mulf %13, %116 : vector<8x128xf32>
    %cst_107 = arith.constant 8.000000e+00 : f32
    %118 = vector.broadcast %cst_107 : f32 to vector<8x128xf32>
    %119 = arith.divf %118, %104 : vector<8x128xf32>
    %120 = arith.mulf %19, %119 : vector<8x128xf32>
    %cst_108 = arith.constant 8.000000e+00 : f32
    %121 = vector.broadcast %cst_108 : f32 to vector<8x128xf32>
    %122 = arith.divf %121, %104 : vector<8x128xf32>
    %123 = arith.mulf %25, %122 : vector<8x128xf32>
    %cst_109 = arith.constant 8.000000e+00 : f32
    %124 = vector.broadcast %cst_109 : f32 to vector<8x128xf32>
    %125 = arith.divf %124, %104 : vector<8x128xf32>
    %126 = arith.mulf %31, %125 : vector<8x128xf32>
    %cst_110 = arith.constant 8.000000e+00 : f32
    %127 = vector.broadcast %cst_110 : f32 to vector<8x128xf32>
    %128 = arith.divf %127, %104 : vector<8x128xf32>
    %129 = arith.mulf %37, %128 : vector<8x128xf32>
    %cst_111 = arith.constant 8.000000e+00 : f32
    %130 = vector.broadcast %cst_111 : f32 to vector<8x128xf32>
    %131 = arith.divf %130, %104 : vector<8x128xf32>
    %132 = arith.mulf %43, %131 : vector<8x128xf32>
    %cst_112 = arith.constant 8.000000e+00 : f32
    %133 = vector.broadcast %cst_112 : f32 to vector<8x128xf32>
    %134 = arith.divf %133, %104 : vector<8x128xf32>
    %135 = arith.mulf %49, %134 : vector<8x128xf32>
    %cst_113 = arith.constant 8.000000e+00 : f32
    %136 = vector.broadcast %cst_113 : f32 to vector<8x128xf32>
    %137 = arith.divf %136, %111 : vector<8x128xf32>
    %138 = arith.mulf %55, %137 : vector<8x128xf32>
    %cst_114 = arith.constant 8.000000e+00 : f32
    %139 = vector.broadcast %cst_114 : f32 to vector<8x128xf32>
    %140 = arith.divf %139, %111 : vector<8x128xf32>
    %141 = arith.mulf %61, %140 : vector<8x128xf32>
    %cst_115 = arith.constant 8.000000e+00 : f32
    %142 = vector.broadcast %cst_115 : f32 to vector<8x128xf32>
    %143 = arith.divf %142, %111 : vector<8x128xf32>
    %144 = arith.mulf %67, %143 : vector<8x128xf32>
    %cst_116 = arith.constant 8.000000e+00 : f32
    %145 = vector.broadcast %cst_116 : f32 to vector<8x128xf32>
    %146 = arith.divf %145, %111 : vector<8x128xf32>
    %147 = arith.mulf %73, %146 : vector<8x128xf32>
    %cst_117 = arith.constant 8.000000e+00 : f32
    %148 = vector.broadcast %cst_117 : f32 to vector<8x128xf32>
    %149 = arith.divf %148, %111 : vector<8x128xf32>
    %150 = arith.mulf %79, %149 : vector<8x128xf32>
    %cst_118 = arith.constant 8.000000e+00 : f32
    %151 = vector.broadcast %cst_118 : f32 to vector<8x128xf32>
    %152 = arith.divf %151, %111 : vector<8x128xf32>
    %153 = arith.mulf %85, %152 : vector<8x128xf32>
    %cst_119 = arith.constant 8.000000e+00 : f32
    %154 = vector.broadcast %cst_119 : f32 to vector<8x128xf32>
    %155 = arith.divf %154, %111 : vector<8x128xf32>
    %156 = arith.mulf %91, %155 : vector<8x128xf32>
    %cst_120 = arith.constant 8.000000e+00 : f32
    %157 = vector.broadcast %cst_120 : f32 to vector<8x128xf32>
    %158 = arith.divf %157, %111 : vector<8x128xf32>
    %159 = arith.mulf %97, %158 : vector<8x128xf32>
    %c0_121 = arith.constant 0 : index
    %c0_122 = arith.constant 0 : index
    %c0_123 = arith.constant 0 : index
    %c0_124 = arith.constant 0 : index
    %c0_125 = arith.constant 0 : index
    %160 = vector.load %arg1[%c0_121, %c0_122, %c0_123, %c0_124, %c0_125] : memref<1x64x1x8x128xf32, #tpu.memory_space<vmem>>, vector<1x1x1x8x128xf32>
    %161 = vector.shape_cast %160 : vector<1x1x1x8x128xf32> to vector<8x128xf32>
    %cst_126 = arith.constant 1.000000e+00 : f32
    %162 = vector.broadcast %cst_126 : f32 to vector<8x128xf32>
    %163 = arith.subf %161, %162 : vector<8x128xf32>
    %cst_127 = arith.constant 2.000000e+01 : f32
    %164 = vector.broadcast %cst_127 : f32 to vector<8x128xf32>
    %165 = arith.mulf %163, %164 : vector<8x128xf32>
    %166 = math.exp %165 : vector<8x128xf32>
    %c0_128 = arith.constant 0 : index
    %c0_129 = arith.constant 0 : index
    %c0_130 = arith.constant 0 : index
    %167 = vector.load %arg5[%c0_128, %c0_129, %c0_130] : memref<64x8x128xf32, #tpu.memory_space<vmem>>, vector<1x8x128xf32>
    %168 = vector.shape_cast %167 : vector<1x8x128xf32> to vector<8x128xf32>
    %169 = vector.shape_cast %166 : vector<8x128xf32> to vector<1x8x128xf32>
    tpu.vector_store %arg5[%c0_128, %c0_129, %c0_130], %169 {strides = array<i32>} : memref<64x8x128xf32, #tpu.memory_space<vmem>>, vector<1x8x128xf32>,
    %170 = arith.mulf %166, %161 : vector<8x128xf32>
    %c0_131 = arith.constant 0 : index
    %c0_132 = arith.constant 0 : index
    %c0_133 = arith.constant 0 : index
    %171 = vector.load %arg6[%c0_131, %c0_132, %c0_133] : memref<64x8x128xf32, #tpu.memory_space<vmem>>, vector<1x8x128xf32>
    %172 = vector.shape_cast %171 : vector<1x8x128xf32> to vector<8x128xf32>
    %173 = vector.shape_cast %170 : vector<8x128xf32> to vector<1x8x128xf32>
    tpu.vector_store %arg6[%c0_131, %c0_132, %c0_133], %173 {strides = array<i32>} : memref<64x8x128xf32, #tpu.memory_space<vmem>>, vector<1x8x128xf32>,
    %c0_134 = arith.constant 0 : index
    %c1_135 = arith.constant 1 : index
    %c0_136 = arith.constant 0 : index
    %c0_137 = arith.constant 0 : index
    %c0_138 = arith.constant 0 : index
    %174 = vector.load %arg1[%c0_134, %c1_135, %c0_136, %c0_137, %c0_138] : memref<1x64x1x8x128xf32, #tpu.memory_space<vmem>>, vector<1x1x1x8x128xf32>
    %175 = vector.shape_cast %174 : vector<1x1x1x8x128xf32> to vector<8x128xf32>
    %cst_139 = arith.constant 1.000000e+00 : f32
    %176 = vector.broadcast %cst_139 : f32 to vector<8x128xf32>
    %177 = arith.subf %175, %176 : vector<8x128xf32>
    %cst_140 = arith.constant 2.000000e+01 : f32
    %178 = vector.broadcast %cst_140 : f32 to vector<8x128xf32>
    %179 = arith.mulf %177, %178 : vector<8x128xf32>
    %180 = math.exp %179 : vector<8x128xf32>
    %c1_141 = arith.constant 1 : index
    %c0_142 = arith.constant 0 : index
    %c0_143 = arith.constant 0 : index
    %181 = vector.load %arg5[%c1_141, %c0_142, %c0_143] : memref<64x8x128xf32, #tpu.memory_space<vmem>>, vector<1x8x128xf32>
    %182 = vector.shape_cast %181 : vector<1x8x128xf32> to vector<8x128xf32>
    %183 = vector.shape_cast %180 : vector<8x128xf32> to vector<1x8x128xf32>
    tpu.vector_store %arg5[%c1_141, %c0_142, %c0_143], %183 {strides = array<i32>} : memref<64x8x128xf32, #tpu.memory_space<vmem>>, vector<1x8x128xf32>,
    %184 = arith.mulf %180, %175 : vector<8x128xf32>
    %c1_144 = arith.constant 1 : index
    %c0_145 = arith.constant 0 : index
    %c0_146 = arith.constant 0 : index
    %185 = vector.load %arg6[%c1_144, %c0_145, %c0_146] : memref<64x8x128xf32, #tpu.memory_space<vmem>>, vector<1x8x128xf32>
    %186 = vector.shape_cast %185 : vector<1x8x128xf32> to vector<8x128xf32>
    %187 = vector.shape_cast %184 : vector<8x128xf32> to vector<1x8x128xf32>
    tpu.vector_store %arg6[%c1_144, %c0_145, %c0_146], %187 {strides = array<i32>} : memref<64x8x128xf32, #tpu.memory_space<vmem>>, vector<1x8x128xf32>,
    %c0_147 = arith.constant 0 : index
    %c2_148 = arith.constant 2 : index
    %c0_149 = arith.constant 0 : index
    %c0_150 = arith.constant 0 : index
    %c0_151 = arith.constant 0 : index
    %188 = vector.load %arg1[%c0_147, %c2_148, %c0_149, %c0_150, %c0_151] : memref<1x64x1x8x128xf32, #tpu.memory_space<vmem>>, vector<1x1x1x8x128xf32>
    %189 = vector.shape_cast %188 : vector<1x1x1x8x128xf32> to vector<8x128xf32>
    %cst_152 = arith.constant 1.000000e+00 : f32
    %190 = vector.broadcast %cst_152 : f32 to vector<8x128xf32>
    %191 = arith.subf %189, %190 : vector<8x128xf32>
    %cst_153 = arith.constant 2.000000e+01 : f32
    %192 = vector.broadcast %cst_153 : f32 to vector<8x128xf32>
    %193 = arith.mulf %191, %192 : vector<8x128xf32>
    %194 = math.exp %193 : vector<8x128xf32>
    %c2_154 = arith.constant 2 : index
    %c0_155 = arith.constant 0 : index
    %c0_156 = arith.constant 0 : index
    %195 = vector.load %arg5[%c2_154, %c0_155, %c0_156] : memref<64x8x128xf32, #tpu.memory_space<vmem>>, vector<1x8x128xf32>
    %196 = vector.shape_cast %195 : vector<1x8x128xf32> to vector<8x128xf32>
    %197 = vector.shape_cast %194 : vector<8x128xf32> to vector<1x8x128xf32>
    tpu.vector_store %arg5[%c2_154, %c0_155, %c0_156], %197 {strides = array<i32>} : memref<64x8x128xf32, #tpu.memory_space<vmem>>, vector<1x8x128xf32>,
    %198 = arith.mulf %194, %189 : vector<8x128xf32>
    %c2_157 = arith.constant 2 : index
    %c0_158 = arith.constant 0 : index
    %c0_159 = arith.constant 0 : index
    %199 = vector.load %arg6[%c2_157, %c0_158, %c0_159] : memref<64x8x128xf32, #tpu.memory_space<vmem>>, vector<1x8x128xf32>
    %200 = vector.shape_cast %199 : vector<1x8x128xf32> to vector<8x128xf32>
    %201 = vector.shape_cast %198 : vector<8x128xf32> to vector<1x8x128xf32>
    tpu.vector_store %arg6[%c2_157, %c0_158, %c0_159], %201 {strides = array<i32>} : memref<64x8x128xf32, #tpu.memory_space<vmem>>, vector<1x8x128xf32>,
    %c0_160 = arith.constant 0 : index
    %c3_161 = arith.constant 3 : index
    %c0_162 = arith.constant 0 : index
    %c0_163 = arith.constant 0 : index
    %c0_164 = arith.constant 0 : index
    %202 = vector.load %arg1[%c0_160, %c3_161, %c0_162, %c0_163, %c0_164] : memref<1x64x1x8x128xf32, #tpu.memory_space<vmem>>, vector<1x1x1x8x128xf32>
    %203 = vector.shape_cast %202 : vector<1x1x1x8x128xf32> to vector<8x128xf32>
    %cst_165 = arith.constant 1.000000e+00 : f32
    %204 = vector.broadcast %cst_165 : f32 to vector<8x128xf32>
    %205 = arith.subf %203, %204 : vector<8x128xf32>
    %cst_166 = arith.constant 2.000000e+01 : f32
    %206 = vector.broadcast %cst_166 : f32 to vector<8x128xf32>
    %207 = arith.mulf %205, %206 : vector<8x128xf32>
    %208 = math.exp %207 : vector<8x128xf32>
    %c3_167 = arith.constant 3 : index
    %c0_168 = arith.constant 0 : index
    %c0_169 = arith.constant 0 : index
    %209 = vector.load %arg5[%c3_167, %c0_168, %c0_169] : memref<64x8x128xf32, #tpu.memory_space<vmem>>, vector<1x8x128xf32>
    %210 = vector.shape_cast %209 : vector<1x8x128xf32> to vector<8x128xf32>
    %211 = vector.shape_cast %208 : vector<8x128xf32> to vector<1x8x128xf32>
    tpu.vector_store %arg5[%c3_167, %c0_168, %c0_169], %211 {strides = array<i32>} : memref<64x8x128xf32, #tpu.memory_space<vmem>>, vector<1x8x128xf32>,
    %212 = arith.mulf %208, %203 : vector<8x128xf32>
    %c3_170 = arith.constant 3 : index
    %c0_171 = arith.constant 0 : index
    %c0_172 = arith.constant 0 : index
    %213 = vector.load %arg6[%c3_170, %c0_171, %c0_172] : memref<64x8x128xf32, #tpu.memory_space<vmem>>, vector<1x8x128xf32>
    %214 = vector.shape_cast %213 : vector<1x8x128xf32> to vector<8x128xf32>
    %215 = vector.shape_cast %212 : vector<8x128xf32> to vector<1x8x128xf32>
    tpu.vector_store %arg6[%c3_170, %c0_171, %c0_172], %215 {strides = array<i32>} : memref<64x8x128xf32, #tpu.memory_space<vmem>>, vector<1x8x128xf32>,
    %c0_173 = arith.constant 0 : index
    %c4_174 = arith.constant 4 : index
    %c0_175 = arith.constant 0 : index
    %c0_176 = arith.constant 0 : index
    %c0_177 = arith.constant 0 : index
    %216 = vector.load %arg1[%c0_173, %c4_174, %c0_175, %c0_176, %c0_177] : memref<1x64x1x8x128xf32, #tpu.memory_space<vmem>>, vector<1x1x1x8x128xf32>
    %217 = vector.shape_cast %216 : vector<1x1x1x8x128xf32> to vector<8x128xf32>
    %cst_178 = arith.constant 1.000000e+00 : f32
    %218 = vector.broadcast %cst_178 : f32 to vector<8x128xf32>
    %219 = arith.subf %217, %218 : vector<8x128xf32>
    %cst_179 = arith.constant 2.000000e+01 : f32
    %220 = vector.broadcast %cst_179 : f32 to vector<8x128xf32>
    %221 = arith.mulf %219, %220 : vector<8x128xf32>
    %222 = math.exp %221 : vector<8x128xf32>
    %c4_180 = arith.constant 4 : index
    %c0_181 = arith.constant 0 : index
    %c0_182 = arith.constant 0 : index
    %223 = vector.load %arg5[%c4_180, %c0_181, %c0_182] : memref<64x8x128xf32, #tpu.memory_space<vmem>>, vector<1x8x128xf32>
    %224 = vector.shape_cast %223 : vector<1x8x128xf32> to vector<8x128xf32>
    %225 = vector.shape_cast %222 : vector<8x128xf32> to vector<1x8x128xf32>
    tpu.vector_store %arg5[%c4_180, %c0_181, %c0_182], %225 {strides = array<i32>} : memref<64x8x128xf32, #tpu.memory_space<vmem>>, vector<1x8x128xf32>,
    %226 = arith.mulf %222, %217 : vector<8x128xf32>
    %c4_183 = arith.constant 4 : index
    %c0_184 = arith.constant 0 : index
    %c0_185 = arith.constant 0 : index
    %227 = vector.load %arg6[%c4_183, %c0_184, %c0_185] : memref<64x8x128xf32, #tpu.memory_space<vmem>>, vector<1x8x128xf32>
    %228 = vector.shape_cast %227 : vector<1x8x128xf32> to vector<8x128xf32>
    %229 = vector.shape_cast %226 : vector<8x128xf32> to vector<1x8x128xf32>
    tpu.vector_store %arg6[%c4_183, %c0_184, %c0_185], %229 {strides = array<i32>} : memref<64x8x128xf32, #tpu.memory_space<vmem>>, vector<1x8x128xf32>,
    %c0_186 = arith.constant 0 : index
    %c5_187 = arith.constant 5 : index
    %c0_188 = arith.constant 0 : index
    %c0_189 = arith.constant 0 : index
    %c0_190 = arith.constant 0 : index
    %230 = vector.load %arg1[%c0_186, %c5_187, %c0_188, %c0_189, %c0_190] : memref<1x64x1x8x128xf32, #tpu.memory_space<vmem>>, vector<1x1x1x8x128xf32>
    %231 = vector.shape_cast %230 : vector<1x1x1x8x128xf32> to vector<8x128xf32>
    %cst_191 = arith.constant 1.000000e+00 : f32
    %232 = vector.broadcast %cst_191 : f32 to vector<8x128xf32>
    %233 = arith.subf %231, %232 : vector<8x128xf32>
    %cst_192 = arith.constant 2.000000e+01 : f32
    %234 = vector.broadcast %cst_192 : f32 to vector<8x128xf32>
    %235 = arith.mulf %233, %234 : vector<8x128xf32>
    %236 = math.exp %235 : vector<8x128xf32>
    %c5_193 = arith.constant 5 : index
    %c0_194 = arith.constant 0 : index
    %c0_195 = arith.constant 0 : index
    %237 = vector.load %arg5[%c5_193, %c0_194, %c0_195] : memref<64x8x128xf32, #tpu.memory_space<vmem>>, vector<1x8x128xf32>
    %238 = vector.shape_cast %237 : vector<1x8x128xf32> to vector<8x128xf32>
    %239 = vector.shape_cast %236 : vector<8x128xf32> to vector<1x8x128xf32>
    tpu.vector_store %arg5[%c5_193, %c0_194, %c0_195], %239 {strides = array<i32>} : memref<64x8x128xf32, #tpu.memory_space<vmem>>, vector<1x8x128xf32>,
    %240 = arith.mulf %236, %231 : vector<8x128xf32>
    %c5_196 = arith.constant 5 : index
    %c0_197 = arith.constant 0 : index
    %c0_198 = arith.constant 0 : index
    %241 = vector.load %arg6[%c5_196, %c0_197, %c0_198] : memref<64x8x128xf32, #tpu.memory_space<vmem>>, vector<1x8x128xf32>
    %242 = vector.shape_cast %241 : vector<1x8x128xf32> to vector<8x128xf32>
    %243 = vector.shape_cast %240 : vector<8x128xf32> to vector<1x8x128xf32>
    tpu.vector_store %arg6[%c5_196, %c0_197, %c0_198], %243 {strides = array<i32>} : memref<64x8x128xf32, #tpu.memory_space<vmem>>, vector<1x8x128xf32>,
    %c0_199 = arith.constant 0 : index
    %c6_200 = arith.constant 6 : index
    %c0_201 = arith.constant 0 : index
    %c0_202 = arith.constant 0 : index
    %c0_203 = arith.constant 0 : index
    %244 = vector.load %arg1[%c0_199, %c6_200, %c0_201, %c0_202, %c0_203] : memref<1x64x1x8x128xf32, #tpu.memory_space<vmem>>, vector<1x1x1x8x128xf32>
    %245 = vector.shape_cast %244 : vector<1x1x1x8x128xf32> to vector<8x128xf32>
    %cst_204 = arith.constant 1.000000e+00 : f32
    %246 = vector.broadcast %cst_204 : f32 to vector<8x128xf32>
    %247 = arith.subf %245, %246 : vector<8x128xf32>
    %cst_205 = arith.constant 2.000000e+01 : f32
    %248 = vector.broadcast %cst_205 : f32 to vector<8x128xf32>
    %249 = arith.mulf %247, %248 : vector<8x128xf32>
    %250 = math.exp %249 : vector<8x128xf32>
    %c6_206 = arith.constant 6 : index
    %c0_207 = arith.constant 0 : index
    %c0_208 = arith.constant 0 : index
    %251 = vector.load %arg5[%c6_206, %c0_207, %c0_208] : memref<64x8x128xf32, #tpu.memory_space<vmem>>, vector<1x8x128xf32>
    %252 = vector.shape_cast %251 : vector<1x8x128xf32> to vector<8x128xf32>
    %253 = vector.shape_cast %250 : vector<8x128xf32> to vector<1x8x128xf32>
    tpu.vector_store %arg5[%c6_206, %c0_207, %c0_208], %253 {strides = array<i32>} : memref<64x8x128xf32, #tpu.memory_space<vmem>>, vector<1x8x128xf32>,
    %254 = arith.mulf %250, %245 : vector<8x128xf32>
    %c6_209 = arith.constant 6 : index
    %c0_210 = arith.constant 0 : index
    %c0_211 = arith.constant 0 : index
    %255 = vector.load %arg6[%c6_209, %c0_210, %c0_211] : memref<64x8x128xf32, #tpu.memory_space<vmem>>, vector<1x8x128xf32>
    %256 = vector.shape_cast %255 : vector<1x8x128xf32> to vector<8x128xf32>
    %257 = vector.shape_cast %254 : vector<8x128xf32> to vector<1x8x128xf32>
    tpu.vector_store %arg6[%c6_209, %c0_210, %c0_211], %257 {strides = array<i32>} : memref<64x8x128xf32, #tpu.memory_space<vmem>>, vector<1x8x128xf32>,
    %c0_212 = arith.constant 0 : index
    %c7_213 = arith.constant 7 : index
    %c0_214 = arith.constant 0 : index
    %c0_215 = arith.constant 0 : index
    %c0_216 = arith.constant 0 : index
    %258 = vector.load %arg1[%c0_212, %c7_213, %c0_214, %c0_215, %c0_216] : memref<1x64x1x8x128xf32, #tpu.memory_space<vmem>>, vector<1x1x1x8x128xf32>
    %259 = vector.shape_cast %258 : vector<1x1x1x8x128xf32> to vector<8x128xf32>
    %cst_217 = arith.constant 1.000000e+00 : f32
    %260 = vector.broadcast %cst_217 : f32 to vector<8x128xf32>
    %261 = arith.subf %259, %260 : vector<8x128xf32>
    %cst_218 = arith.constant 2.000000e+01 : f32
    %262 = vector.broadcast %cst_218 : f32 to vector<8x128xf32>
    %263 = arith.mulf %261, %262 : vector<8x128xf32>
    %264 = math.exp %263 : vector<8x128xf32>
    %c7_219 = arith.constant 7 : index
    %c0_220 = arith.constant 0 : index
    %c0_221 = arith.constant 0 : index
    %265 = vector.load %arg5[%c7_219, %c0_220, %c0_221] : memref<64x8x128xf32, #tpu.memory_space<vmem>>, vector<1x8x128xf32>
    %266 = vector.shape_cast %265 : vector<1x8x128xf32> to vector<8x128xf32>
    %267 = vector.shape_cast %264 : vector<8x128xf32> to vector<1x8x128xf32>
    tpu.vector_store %arg5[%c7_219, %c0_220, %c0_221], %267 {strides = array<i32>} : memref<64x8x128xf32, #tpu.memory_space<vmem>>, vector<1x8x128xf32>,
    %268 = arith.mulf %264, %259 : vector<8x128xf32>
    %c7_222 = arith.constant 7 : index
    %c0_223 = arith.constant 0 : index
    %c0_224 = arith.constant 0 : index
    %269 = vector.load %arg6[%c7_222, %c0_223, %c0_224] : memref<64x8x128xf32, #tpu.memory_space<vmem>>, vector<1x8x128xf32>
    %270 = vector.shape_cast %269 : vector<1x8x128xf32> to vector<8x128xf32>
    %271 = vector.shape_cast %268 : vector<8x128xf32> to vector<1x8x128xf32>
    tpu.vector_store %arg6[%c7_222, %c0_223, %c0_224], %271 {strides = array<i32>} : memref<64x8x128xf32, #tpu.memory_space<vmem>>, vector<1x8x128xf32>,
    %c0_225 = arith.constant 0 : index
    %c8 = arith.constant 8 : index
    %c0_226 = arith.constant 0 : index
    %c0_227 = arith.constant 0 : index
    %c0_228 = arith.constant 0 : index
    %272 = vector.load %arg1[%c0_225, %c8, %c0_226, %c0_227, %c0_228] : memref<1x64x1x8x128xf32, #tpu.memory_space<vmem>>, vector<1x1x1x8x128xf32>
    %273 = vector.shape_cast %272 : vector<1x1x1x8x128xf32> to vector<8x128xf32>
    %cst_229 = arith.constant 1.000000e+00 : f32
    %274 = vector.broadcast %cst_229 : f32 to vector<8x128xf32>
    %275 = arith.subf %273, %274 : vector<8x128xf32>
    %cst_230 = arith.constant 2.000000e+01 : f32
    %276 = vector.broadcast %cst_230 : f32 to vector<8x128xf32>
    %277 = arith.mulf %275, %276 : vector<8x128xf32>
    %278 = math.exp %277 : vector<8x128xf32>
    %c8_231 = arith.constant 8 : index
    %c0_232 = arith.constant 0 : index
    %c0_233 = arith.constant 0 : index
    %279 = vector.load %arg5[%c8_231, %c0_232, %c0_233] : memref<64x8x128xf32, #tpu.memory_space<vmem>>, vector<1x8x128xf32>
    %280 = vector.shape_cast %279 : vector<1x8x128xf32> to vector<8x128xf32>
    %281 = vector.shape_cast %278 : vector<8x128xf32> to vector<1x8x128xf32>
    tpu.vector_store %arg5[%c8_231, %c0_232, %c0_233], %281 {strides = array<i32>} : memref<64x8x128xf32, #tpu.memory_space<vmem>>, vector<1x8x128xf32>,
    %282 = arith.mulf %278, %273 : vector<8x128xf32>
    %c8_234 = arith.constant 8 : index
    %c0_235 = arith.constant 0 : index
    %c0_236 = arith.constant 0 : index
    %283 = vector.load %arg6[%c8_234, %c0_235, %c0_236] : memref<64x8x128xf32, #tpu.memory_space<vmem>>, vector<1x8x128xf32>
    %284 = vector.shape_cast %283 : vector<1x8x128xf32> to vector<8x128xf32>
    %285 = vector.shape_cast %282 : vector<8x128xf32> to vector<1x8x128xf32>
    tpu.vector_store %arg6[%c8_234, %c0_235, %c0_236], %285 {strides = array<i32>} : memref<64x8x128xf32, #tpu.memory_space<vmem>>, vector<1x8x128xf32>,
    %c0_237 = arith.constant 0 : index
    %c9 = arith.constant 9 : index
    %c0_238 = arith.constant 0 : index
    %c0_239 = arith.constant 0 : index
    %c0_240 = arith.constant 0 : index
    %286 = vector.load %arg1[%c0_237, %c9, %c0_238, %c0_239, %c0_240] : memref<1x64x1x8x128xf32, #tpu.memory_space<vmem>>, vector<1x1x1x8x128xf32>
    %287 = vector.shape_cast %286 : vector<1x1x1x8x128xf32> to vector<8x128xf32>
    %cst_241 = arith.constant 1.000000e+00 : f32
    %288 = vector.broadcast %cst_241 : f32 to vector<8x128xf32>
    %289 = arith.subf %287, %288 : vector<8x128xf32>
    %cst_242 = arith.constant 2.000000e+01 : f32
    %290 = vector.broadcast %cst_242 : f32 to vector<8x128xf32>
    %291 = arith.mulf %289, %290 : vector<8x128xf32>
    %292 = math.exp %291 : vector<8x128xf32>
    %c9_243 = arith.constant 9 : index
    %c0_244 = arith.constant 0 : index
    %c0_245 = arith.constant 0 : index
    %293 = vector.load %arg5[%c9_243, %c0_244, %c0_245] : memref<64x8x128xf32, #tpu.memory_space<vmem>>, vector<1x8x128xf32>
    %294 = vector.shape_cast %293 : vector<1x8x128xf32> to vector<8x128xf32>
    %295 = vector.shape_cast %292 : vector<8x128xf32> to vector<1x8x128xf32>
    tpu.vector_store %arg5[%c9_243, %c0_244, %c0_245], %295 {strides = array<i32>} : memref<64x8x128xf32, #tpu.memory_space<vmem>>, vector<1x8x128xf32>,
    %296 = arith.mulf %292, %287 : vector<8x128xf32>
    %c9_246 = arith.constant 9 : index
    %c0_247 = arith.constant 0 : index
    %c0_248 = arith.constant 0 : index
    %297 = vector.load %arg6[%c9_246, %c0_247, %c0_248] : memref<64x8x128xf32, #tpu.memory_space<vmem>>, vector<1x8x128xf32>
    %298 = vector.shape_cast %297 : vector<1x8x128xf32> to vector<8x128xf32>
    %299 = vector.shape_cast %296 : vector<8x128xf32> to vector<1x8x128xf32>
    tpu.vector_store %arg6[%c9_246, %c0_247, %c0_248], %299 {strides = array<i32>} : memref<64x8x128xf32, #tpu.memory_space<vmem>>, vector<1x8x128xf32>,
    %c0_249 = arith.constant 0 : index
    %c10 = arith.constant 10 : index
    %c0_250 = arith.constant 0 : index
    %c0_251 = arith.constant 0 : index
    %c0_252 = arith.constant 0 : index
    %300 = vector.load %arg1[%c0_249, %c10, %c0_250, %c0_251, %c0_252] : memref<1x64x1x8x128xf32, #tpu.memory_space<vmem>>, vector<1x1x1x8x128xf32>
    %301 = vector.shape_cast %300 : vector<1x1x1x8x128xf32> to vector<8x128xf32>
    %cst_253 = arith.constant 1.000000e+00 : f32
    %302 = vector.broadcast %cst_253 : f32 to vector<8x128xf32>
    %303 = arith.subf %301, %302 : vector<8x128xf32>
    %cst_254 = arith.constant 2.000000e+01 : f32
    %304 = vector.broadcast %cst_254 : f32 to vector<8x128xf32>
    %305 = arith.mulf %303, %304 : vector<8x128xf32>
    %306 = math.exp %305 : vector<8x128xf32>
    %c10_255 = arith.constant 10 : index
    %c0_256 = arith.constant 0 : index
    %c0_257 = arith.constant 0 : index
    %307 = vector.load %arg5[%c10_255, %c0_256, %c0_257] : memref<64x8x128xf32, #tpu.memory_space<vmem>>, vector<1x8x128xf32>
    %308 = vector.shape_cast %307 : vector<1x8x128xf32> to vector<8x128xf32>
    %309 = vector.shape_cast %306 : vector<8x128xf32> to vector<1x8x128xf32>
    tpu.vector_store %arg5[%c10_255, %c0_256, %c0_257], %309 {strides = array<i32>} : memref<64x8x128xf32, #tpu.memory_space<vmem>>, vector<1x8x128xf32>,
    %310 = arith.mulf %306, %301 : vector<8x128xf32>
    %c10_258 = arith.constant 10 : index
    %c0_259 = arith.constant 0 : index
    %c0_260 = arith.constant 0 : index
    %311 = vector.load %arg6[%c10_258, %c0_259, %c0_260] : memref<64x8x128xf32, #tpu.memory_space<vmem>>, vector<1x8x128xf32>
    %312 = vector.shape_cast %311 : vector<1x8x128xf32> to vector<8x128xf32>
    %313 = vector.shape_cast %310 : vector<8x128xf32> to vector<1x8x128xf32>
    tpu.vector_store %arg6[%c10_258, %c0_259, %c0_260], %313 {strides = array<i32>} : memref<64x8x128xf32, #tpu.memory_space<vmem>>, vector<1x8x128xf32>,
    %c0_261 = arith.constant 0 : index
    %c11 = arith.constant 11 : index
    %c0_262 = arith.constant 0 : index
    %c0_263 = arith.constant 0 : index
    %c0_264 = arith.constant 0 : index
    %314 = vector.load %arg1[%c0_261, %c11, %c0_262, %c0_263, %c0_264] : memref<1x64x1x8x128xf32, #tpu.memory_space<vmem>>, vector<1x1x1x8x128xf32>
    %315 = vector.shape_cast %314 : vector<1x1x1x8x128xf32> to vector<8x128xf32>
    %cst_265 = arith.constant 1.000000e+00 : f32
    %316 = vector.broadcast %cst_265 : f32 to vector<8x128xf32>
    %317 = arith.subf %315, %316 : vector<8x128xf32>
    %cst_266 = arith.constant 2.000000e+01 : f32
    %318 = vector.broadcast %cst_266 : f32 to vector<8x128xf32>
    %319 = arith.mulf %317, %318 : vector<8x128xf32>
    %320 = math.exp %319 : vector<8x128xf32>
    %c11_267 = arith.constant 11 : index
    %c0_268 = arith.constant 0 : index
    %c0_269 = arith.constant 0 : index
    %321 = vector.load %arg5[%c11_267, %c0_268, %c0_269] : memref<64x8x128xf32, #tpu.memory_space<vmem>>, vector<1x8x128xf32>
    %322 = vector.shape_cast %321 : vector<1x8x128xf32> to vector<8x128xf32>
    %323 = vector.shape_cast %320 : vector<8x128xf32> to vector<1x8x128xf32>
    tpu.vector_store %arg5[%c11_267, %c0_268, %c0_269], %323 {strides = array<i32>} : memref<64x8x128xf32, #tpu.memory_space<vmem>>, vector<1x8x128xf32>,
    %324 = arith.mulf %320, %315 : vector<8x128xf32>
    %c11_270 = arith.constant 11 : index
    %c0_271 = arith.constant 0 : index
    %c0_272 = arith.constant 0 : index
    %325 = vector.load %arg6[%c11_270, %c0_271, %c0_272] : memref<64x8x128xf32, #tpu.memory_space<vmem>>, vector<1x8x128xf32>
    %326 = vector.shape_cast %325 : vector<1x8x128xf32> to vector<8x128xf32>
    %327 = vector.shape_cast %324 : vector<8x128xf32> to vector<1x8x128xf32>
    tpu.vector_store %arg6[%c11_270, %c0_271, %c0_272], %327 {strides = array<i32>} : memref<64x8x128xf32, #tpu.memory_space<vmem>>, vector<1x8x128xf32>,
    %c0_273 = arith.constant 0 : index
    %c12 = arith.constant 12 : index
    %c0_274 = arith.constant 0 : index
    %c0_275 = arith.constant 0 : index
    %c0_276 = arith.constant 0 : index
    %328 = vector.load %arg1[%c0_273, %c12, %c0_274, %c0_275, %c0_276] : memref<1x64x1x8x128xf32, #tpu.memory_space<vmem>>, vector<1x1x1x8x128xf32>
    %329 = vector.shape_cast %328 : vector<1x1x1x8x128xf32> to vector<8x128xf32>
    %cst_277 = arith.constant 1.000000e+00 : f32
    %330 = vector.broadcast %cst_277 : f32 to vector<8x128xf32>
    %331 = arith.subf %329, %330 : vector<8x128xf32>
    %cst_278 = arith.constant 2.000000e+01 : f32
    %332 = vector.broadcast %cst_278 : f32 to vector<8x128xf32>
    %333 = arith.mulf %331, %332 : vector<8x128xf32>
    %334 = math.exp %333 : vector<8x128xf32>
    %c12_279 = arith.constant 12 : index
    %c0_280 = arith.constant 0 : index
    %c0_281 = arith.constant 0 : index
    %335 = vector.load %arg5[%c12_279, %c0_280, %c0_281] : memref<64x8x128xf32, #tpu.memory_space<vmem>>, vector<1x8x128xf32>
    %336 = vector.shape_cast %335 : vector<1x8x128xf32> to vector<8x128xf32>
    %337 = vector.shape_cast %334 : vector<8x128xf32> to vector<1x8x128xf32>
    tpu.vector_store %arg5[%c12_279, %c0_280, %c0_281], %337 {strides = array<i32>} : memref<64x8x128xf32, #tpu.memory_space<vmem>>, vector<1x8x128xf32>,
    %338 = arith.mulf %334, %329 : vector<8x128xf32>
    %c12_282 = arith.constant 12 : index
    %c0_283 = arith.constant 0 : index
    %c0_284 = arith.constant 0 : index
    %339 = vector.load %arg6[%c12_282, %c0_283, %c0_284] : memref<64x8x128xf32, #tpu.memory_space<vmem>>, vector<1x8x128xf32>
    %340 = vector.shape_cast %339 : vector<1x8x128xf32> to vector<8x128xf32>
    %341 = vector.shape_cast %338 : vector<8x128xf32> to vector<1x8x128xf32>
    tpu.vector_store %arg6[%c12_282, %c0_283, %c0_284], %341 {strides = array<i32>} : memref<64x8x128xf32, #tpu.memory_space<vmem>>, vector<1x8x128xf32>,
    %c0_285 = arith.constant 0 : index
    %c13 = arith.constant 13 : index
    %c0_286 = arith.constant 0 : index
    %c0_287 = arith.constant 0 : index
    %c0_288 = arith.constant 0 : index
    %342 = vector.load %arg1[%c0_285, %c13, %c0_286, %c0_287, %c0_288] : memref<1x64x1x8x128xf32, #tpu.memory_space<vmem>>, vector<1x1x1x8x128xf32>
    %343 = vector.shape_cast %342 : vector<1x1x1x8x128xf32> to vector<8x128xf32>
    %cst_289 = arith.constant 1.000000e+00 : f32
    %344 = vector.broadcast %cst_289 : f32 to vector<8x128xf32>
    %345 = arith.subf %343, %344 : vector<8x128xf32>
    %cst_290 = arith.constant 2.000000e+01 : f32
    %346 = vector.broadcast %cst_290 : f32 to vector<8x128xf32>
    %347 = arith.mulf %345, %346 : vector<8x128xf32>
    %348 = math.exp %347 : vector<8x128xf32>
    %c13_291 = arith.constant 13 : index
    %c0_292 = arith.constant 0 : index
    %c0_293 = arith.constant 0 : index
    %349 = vector.load %arg5[%c13_291, %c0_292, %c0_293] : memref<64x8x128xf32, #tpu.memory_space<vmem>>, vector<1x8x128xf32>
    %350 = vector.shape_cast %349 : vector<1x8x128xf32> to vector<8x128xf32>
    %351 = vector.shape_cast %348 : vector<8x128xf32> to vector<1x8x128xf32>
    tpu.vector_store %arg5[%c13_291, %c0_292, %c0_293], %351 {strides = array<i32>} : memref<64x8x128xf32, #tpu.memory_space<vmem>>, vector<1x8x128xf32>,
    %352 = arith.mulf %348, %343 : vector<8x128xf32>
    %c13_294 = arith.constant 13 : index
    %c0_295 = arith.constant 0 : index
    %c0_296 = arith.constant 0 : index
    %353 = vector.load %arg6[%c13_294, %c0_295, %c0_296] : memref<64x8x128xf32, #tpu.memory_space<vmem>>, vector<1x8x128xf32>
    %354 = vector.shape_cast %353 : vector<1x8x128xf32> to vector<8x128xf32>
    %355 = vector.shape_cast %352 : vector<8x128xf32> to vector<1x8x128xf32>
    tpu.vector_store %arg6[%c13_294, %c0_295, %c0_296], %355 {strides = array<i32>} : memref<64x8x128xf32, #tpu.memory_space<vmem>>, vector<1x8x128xf32>,
    %c0_297 = arith.constant 0 : index
    %c14 = arith.constant 14 : index
    %c0_298 = arith.constant 0 : index
    %c0_299 = arith.constant 0 : index
    %c0_300 = arith.constant 0 : index
    %356 = vector.load %arg1[%c0_297, %c14, %c0_298, %c0_299, %c0_300] : memref<1x64x1x8x128xf32, #tpu.memory_space<vmem>>, vector<1x1x1x8x128xf32>
    %357 = vector.shape_cast %356 : vector<1x1x1x8x128xf32> to vector<8x128xf32>
    %cst_301 = arith.constant 1.000000e+00 : f32
    %358 = vector.broadcast %cst_301 : f32 to vector<8x128xf32>
    %359 = arith.subf %357, %358 : vector<8x128xf32>
    %cst_302 = arith.constant 2.000000e+01 : f32
    %360 = vector.broadcast %cst_302 : f32 to vector<8x128xf32>
    %361 = arith.mulf %359, %360 : vector<8x128xf32>
    %362 = math.exp %361 : vector<8x128xf32>
    %c14_303 = arith.constant 14 : index
    %c0_304 = arith.constant 0 : index
    %c0_305 = arith.constant 0 : index
    %363 = vector.load %arg5[%c14_303, %c0_304, %c0_305] : memref<64x8x128xf32, #tpu.memory_space<vmem>>, vector<1x8x128xf32>
    %364 = vector.shape_cast %363 : vector<1x8x128xf32> to vector<8x128xf32>
    %365 = vector.shape_cast %362 : vector<8x128xf32> to vector<1x8x128xf32>
    tpu.vector_store %arg5[%c14_303, %c0_304, %c0_305], %365 {strides = array<i32>} : memref<64x8x128xf32, #tpu.memory_space<vmem>>, vector<1x8x128xf32>,
    %366 = arith.mulf %362, %357 : vector<8x128xf32>
    %c14_306 = arith.constant 14 : index
    %c0_307 = arith.constant 0 : index
    %c0_308 = arith.constant 0 : index
    %367 = vector.load %arg6[%c14_306, %c0_307, %c0_308] : memref<64x8x128xf32, #tpu.memory_space<vmem>>, vector<1x8x128xf32>
    %368 = vector.shape_cast %367 : vector<1x8x128xf32> to vector<8x128xf32>
    %369 = vector.shape_cast %366 : vector<8x128xf32> to vector<1x8x128xf32>
    tpu.vector_store %arg6[%c14_306, %c0_307, %c0_308], %369 {strides = array<i32>} : memref<64x8x128xf32, #tpu.memory_space<vmem>>, vector<1x8x128xf32>,
    %c0_309 = arith.constant 0 : index
    %c15 = arith.constant 15 : index
    %c0_310 = arith.constant 0 : index
    %c0_311 = arith.constant 0 : index
    %c0_312 = arith.constant 0 : index
    %370 = vector.load %arg1[%c0_309, %c15, %c0_310, %c0_311, %c0_312] : memref<1x64x1x8x128xf32, #tpu.memory_space<vmem>>, vector<1x1x1x8x128xf32>
    %371 = vector.shape_cast %370 : vector<1x1x1x8x128xf32> to vector<8x128xf32>
    %cst_313 = arith.constant 1.000000e+00 : f32
    %372 = vector.broadcast %cst_313 : f32 to vector<8x128xf32>
    %373 = arith.subf %371, %372 : vector<8x128xf32>
    %cst_314 = arith.constant 2.000000e+01 : f32
    %374 = vector.broadcast %cst_314 : f32 to vector<8x128xf32>
    %375 = arith.mulf %373, %374 : vector<8x128xf32>
    %376 = math.exp %375 : vector<8x128xf32>
    %c15_315 = arith.constant 15 : index
    %c0_316 = arith.constant 0 : index
    %c0_317 = arith.constant 0 : index
    %377 = vector.load %arg5[%c15_315, %c0_316, %c0_317] : memref<64x8x128xf32, #tpu.memory_space<vmem>>, vector<1x8x128xf32>
    %378 = vector.shape_cast %377 : vector<1x8x128xf32> to vector<8x128xf32>
    %379 = vector.shape_cast %376 : vector<8x128xf32> to vector<1x8x128xf32>
    tpu.vector_store %arg5[%c15_315, %c0_316, %c0_317], %379 {strides = array<i32>} : memref<64x8x128xf32, #tpu.memory_space<vmem>>, vector<1x8x128xf32>,
    %380 = arith.mulf %376, %371 : vector<8x128xf32>
    %c15_318 = arith.constant 15 : index
    %c0_319 = arith.constant 0 : index
    %c0_320 = arith.constant 0 : index
    %381 = vector.load %arg6[%c15_318, %c0_319, %c0_320] : memref<64x8x128xf32, #tpu.memory_space<vmem>>, vector<1x8x128xf32>
    %382 = vector.shape_cast %381 : vector<1x8x128xf32> to vector<8x128xf32>
    %383 = vector.shape_cast %380 : vector<8x128xf32> to vector<1x8x128xf32>
    tpu.vector_store %arg6[%c15_318, %c0_319, %c0_320], %383 {strides = array<i32>} : memref<64x8x128xf32, #tpu.memory_space<vmem>>, vector<1x8x128xf32>,
    %c0_321 = arith.constant 0 : index
    %c16 = arith.constant 16 : index
    %c0_322 = arith.constant 0 : index
    %c0_323 = arith.constant 0 : index
    %c0_324 = arith.constant 0 : index
    %384 = vector.load %arg1[%c0_321, %c16, %c0_322, %c0_323, %c0_324] : memref<1x64x1x8x128xf32, #tpu.memory_space<vmem>>, vector<1x1x1x8x128xf32>
    %385 = vector.shape_cast %384 : vector<1x1x1x8x128xf32> to vector<8x128xf32>
    %cst_325 = arith.constant 1.000000e+00 : f32
    %386 = vector.broadcast %cst_325 : f32 to vector<8x128xf32>
    %387 = arith.subf %385, %386 : vector<8x128xf32>
    %cst_326 = arith.constant 2.000000e+01 : f32
    %388 = vector.broadcast %cst_326 : f32 to vector<8x128xf32>
    %389 = arith.mulf %387, %388 : vector<8x128xf32>
    %390 = math.exp %389 : vector<8x128xf32>
    %c16_327 = arith.constant 16 : index
    %c0_328 = arith.constant 0 : index
    %c0_329 = arith.constant 0 : index
    %391 = vector.load %arg5[%c16_327, %c0_328, %c0_329] : memref<64x8x128xf32, #tpu.memory_space<vmem>>, vector<1x8x128xf32>
    %392 = vector.shape_cast %391 : vector<1x8x128xf32> to vector<8x128xf32>
    %393 = vector.shape_cast %390 : vector<8x128xf32> to vector<1x8x128xf32>
    tpu.vector_store %arg5[%c16_327, %c0_328, %c0_329], %393 {strides = array<i32>} : memref<64x8x128xf32, #tpu.memory_space<vmem>>, vector<1x8x128xf32>,
    %394 = arith.mulf %390, %385 : vector<8x128xf32>
    %c16_330 = arith.constant 16 : index
    %c0_331 = arith.constant 0 : index
    %c0_332 = arith.constant 0 : index
    %395 = vector.load %arg6[%c16_330, %c0_331, %c0_332] : memref<64x8x128xf32, #tpu.memory_space<vmem>>, vector<1x8x128xf32>
    %396 = vector.shape_cast %395 : vector<1x8x128xf32> to vector<8x128xf32>
    %397 = vector.shape_cast %394 : vector<8x128xf32> to vector<1x8x128xf32>
    tpu.vector_store %arg6[%c16_330, %c0_331, %c0_332], %397 {strides = array<i32>} : memref<64x8x128xf32, #tpu.memory_space<vmem>>, vector<1x8x128xf32>,
    %c0_333 = arith.constant 0 : index
    %c17 = arith.constant 17 : index
    %c0_334 = arith.constant 0 : index
    %c0_335 = arith.constant 0 : index
    %c0_336 = arith.constant 0 : index
    %398 = vector.load %arg1[%c0_333, %c17, %c0_334, %c0_335, %c0_336] : memref<1x64x1x8x128xf32, #tpu.memory_space<vmem>>, vector<1x1x1x8x128xf32>
    %399 = vector.shape_cast %398 : vector<1x1x1x8x128xf32> to vector<8x128xf32>
    %cst_337 = arith.constant 1.000000e+00 : f32
    %400 = vector.broadcast %cst_337 : f32 to vector<8x128xf32>
    %401 = arith.subf %399, %400 : vector<8x128xf32>
    %cst_338 = arith.constant 2.000000e+01 : f32
    %402 = vector.broadcast %cst_338 : f32 to vector<8x128xf32>
    %403 = arith.mulf %401, %402 : vector<8x128xf32>
    %404 = math.exp %403 : vector<8x128xf32>
    %c17_339 = arith.constant 17 : index
    %c0_340 = arith.constant 0 : index
    %c0_341 = arith.constant 0 : index
    %405 = vector.load %arg5[%c17_339, %c0_340, %c0_341] : memref<64x8x128xf32, #tpu.memory_space<vmem>>, vector<1x8x128xf32>
    %406 = vector.shape_cast %405 : vector<1x8x128xf32> to vector<8x128xf32>
    %407 = vector.shape_cast %404 : vector<8x128xf32> to vector<1x8x128xf32>
    tpu.vector_store %arg5[%c17_339, %c0_340, %c0_341], %407 {strides = array<i32>} : memref<64x8x128xf32, #tpu.memory_space<vmem>>, vector<1x8x128xf32>,
    %408 = arith.mulf %404, %399 : vector<8x128xf32>
    %c17_342 = arith.constant 17 : index
    %c0_343 = arith.constant 0 : index
    %c0_344 = arith.constant 0 : index
    %409 = vector.load %arg6[%c17_342, %c0_343, %c0_344] : memref<64x8x128xf32, #tpu.memory_space<vmem>>, vector<1x8x128xf32>
    %410 = vector.shape_cast %409 : vector<1x8x128xf32> to vector<8x128xf32>
    %411 = vector.shape_cast %408 : vector<8x128xf32> to vector<1x8x128xf32>
    tpu.vector_store %arg6[%c17_342, %c0_343, %c0_344], %411 {strides = array<i32>} : memref<64x8x128xf32, #tpu.memory_space<vmem>>, vector<1x8x128xf32>,
    %c0_345 = arith.constant 0 : index
    %c18 = arith.constant 18 : index
    %c0_346 = arith.constant 0 : index
    %c0_347 = arith.constant 0 : index
    %c0_348 = arith.constant 0 : index
    %412 = vector.load %arg1[%c0_345, %c18, %c0_346, %c0_347, %c0_348] : memref<1x64x1x8x128xf32, #tpu.memory_space<vmem>>, vector<1x1x1x8x128xf32>
    %413 = vector.shape_cast %412 : vector<1x1x1x8x128xf32> to vector<8x128xf32>
    %cst_349 = arith.constant 1.000000e+00 : f32
    %414 = vector.broadcast %cst_349 : f32 to vector<8x128xf32>
    %415 = arith.subf %413, %414 : vector<8x128xf32>
    %cst_350 = arith.constant 2.000000e+01 : f32
    %416 = vector.broadcast %cst_350 : f32 to vector<8x128xf32>
    %417 = arith.mulf %415, %416 : vector<8x128xf32>
    %418 = math.exp %417 : vector<8x128xf32>
    %c18_351 = arith.constant 18 : index
    %c0_352 = arith.constant 0 : index
    %c0_353 = arith.constant 0 : index
    %419 = vector.load %arg5[%c18_351, %c0_352, %c0_353] : memref<64x8x128xf32, #tpu.memory_space<vmem>>, vector<1x8x128xf32>
    %420 = vector.shape_cast %419 : vector<1x8x128xf32> to vector<8x128xf32>
    %421 = vector.shape_cast %418 : vector<8x128xf32> to vector<1x8x128xf32>
    tpu.vector_store %arg5[%c18_351, %c0_352, %c0_353], %421 {strides = array<i32>} : memref<64x8x128xf32, #tpu.memory_space<vmem>>, vector<1x8x128xf32>,
    %422 = arith.mulf %418, %413 : vector<8x128xf32>
    %c18_354 = arith.constant 18 : index
    %c0_355 = arith.constant 0 : index
    %c0_356 = arith.constant 0 : index
    %423 = vector.load %arg6[%c18_354, %c0_355, %c0_356] : memref<64x8x128xf32, #tpu.memory_space<vmem>>, vector<1x8x128xf32>
    %424 = vector.shape_cast %423 : vector<1x8x128xf32> to vector<8x128xf32>
    %425 = vector.shape_cast %422 : vector<8x128xf32> to vector<1x8x128xf32>
    tpu.vector_store %arg6[%c18_354, %c0_355, %c0_356], %425 {strides = array<i32>} : memref<64x8x128xf32, #tpu.memory_space<vmem>>, vector<1x8x128xf32>,
    %c0_357 = arith.constant 0 : index
    %c19 = arith.constant 19 : index
    %c0_358 = arith.constant 0 : index
    %c0_359 = arith.constant 0 : index
    %c0_360 = arith.constant 0 : index
    %426 = vector.load %arg1[%c0_357, %c19, %c0_358, %c0_359, %c0_360] : memref<1x64x1x8x128xf32, #tpu.memory_space<vmem>>, vector<1x1x1x8x128xf32>
    %427 = vector.shape_cast %426 : vector<1x1x1x8x128xf32> to vector<8x128xf32>
    %cst_361 = arith.constant 1.000000e+00 : f32
    %428 = vector.broadcast %cst_361 : f32 to vector<8x128xf32>
    %429 = arith.subf %427, %428 : vector<8x128xf32>
    %cst_362 = arith.constant 2.000000e+01 : f32
    %430 = vector.broadcast %cst_362 : f32 to vector<8x128xf32>
    %431 = arith.mulf %429, %430 : vector<8x128xf32>
    %432 = math.exp %431 : vector<8x128xf32>
    %c19_363 = arith.constant 19 : index
    %c0_364 = arith.constant 0 : index
    %c0_365 = arith.constant 0 : index
    %433 = vector.load %arg5[%c19_363, %c0_364, %c0_365] : memref<64x8x128xf32, #tpu.memory_space<vmem>>, vector<1x8x128xf32>
    %434 = vector.shape_cast %433 : vector<1x8x128xf32> to vector<8x128xf32>
    %435 = vector.shape_cast %432 : vector<8x128xf32> to vector<1x8x128xf32>
    tpu.vector_store %arg5[%c19_363, %c0_364, %c0_365], %435 {strides = array<i32>} : memref<64x8x128xf32, #tpu.memory_space<vmem>>, vector<1x8x128xf32>,
    %436 = arith.mulf %432, %427 : vector<8x128xf32>
    %c19_366 = arith.constant 19 : index
    %c0_367 = arith.constant 0 : index
    %c0_368 = arith.constant 0 : index
    %437 = vector.load %arg6[%c19_366, %c0_367, %c0_368] : memref<64x8x128xf32, #tpu.memory_space<vmem>>, vector<1x8x128xf32>
    %438 = vector.shape_cast %437 : vector<1x8x128xf32> to vector<8x128xf32>
    %439 = vector.shape_cast %436 : vector<8x128xf32> to vector<1x8x128xf32>
    tpu.vector_store %arg6[%c19_366, %c0_367, %c0_368], %439 {strides = array<i32>} : memref<64x8x128xf32, #tpu.memory_space<vmem>>, vector<1x8x128xf32>,
    %c0_369 = arith.constant 0 : index
    %c20 = arith.constant 20 : index
    %c0_370 = arith.constant 0 : index
    %c0_371 = arith.constant 0 : index
    %c0_372 = arith.constant 0 : index
    %440 = vector.load %arg1[%c0_369, %c20, %c0_370, %c0_371, %c0_372] : memref<1x64x1x8x128xf32, #tpu.memory_space<vmem>>, vector<1x1x1x8x128xf32>
    %441 = vector.shape_cast %440 : vector<1x1x1x8x128xf32> to vector<8x128xf32>
    %cst_373 = arith.constant 1.000000e+00 : f32
    %442 = vector.broadcast %cst_373 : f32 to vector<8x128xf32>
    %443 = arith.subf %441, %442 : vector<8x128xf32>
    %cst_374 = arith.constant 2.000000e+01 : f32
    %444 = vector.broadcast %cst_374 : f32 to vector<8x128xf32>
    %445 = arith.mulf %443, %444 : vector<8x128xf32>
    %446 = math.exp %445 : vector<8x128xf32>
    %c20_375 = arith.constant 20 : index
    %c0_376 = arith.constant 0 : index
    %c0_377 = arith.constant 0 : index
    %447 = vector.load %arg5[%c20_375, %c0_376, %c0_377] : memref<64x8x128xf32, #tpu.memory_space<vmem>>, vector<1x8x128xf32>
    %448 = vector.shape_cast %447 : vector<1x8x128xf32> to vector<8x128xf32>
    %449 = vector.shape_cast %446 : vector<8x128xf32> to vector<1x8x128xf32>
    tpu.vector_store %arg5[%c20_375, %c0_376, %c0_377], %449 {strides = array<i32>} : memref<64x8x128xf32, #tpu.memory_space<vmem>>, vector<1x8x128xf32>,
    %450 = arith.mulf %446, %441 : vector<8x128xf32>
    %c20_378 = arith.constant 20 : index
    %c0_379 = arith.constant 0 : index
    %c0_380 = arith.constant 0 : index
    %451 = vector.load %arg6[%c20_378, %c0_379, %c0_380] : memref<64x8x128xf32, #tpu.memory_space<vmem>>, vector<1x8x128xf32>
    %452 = vector.shape_cast %451 : vector<1x8x128xf32> to vector<8x128xf32>
    %453 = vector.shape_cast %450 : vector<8x128xf32> to vector<1x8x128xf32>
    tpu.vector_store %arg6[%c20_378, %c0_379, %c0_380], %453 {strides = array<i32>} : memref<64x8x128xf32, #tpu.memory_space<vmem>>, vector<1x8x128xf32>,
    %c0_381 = arith.constant 0 : index
    %c21 = arith.constant 21 : index
    %c0_382 = arith.constant 0 : index
    %c0_383 = arith.constant 0 : index
    %c0_384 = arith.constant 0 : index
    %454 = vector.load %arg1[%c0_381, %c21, %c0_382, %c0_383, %c0_384] : memref<1x64x1x8x128xf32, #tpu.memory_space<vmem>>, vector<1x1x1x8x128xf32>
    %455 = vector.shape_cast %454 : vector<1x1x1x8x128xf32> to vector<8x128xf32>
    %cst_385 = arith.constant 1.000000e+00 : f32
    %456 = vector.broadcast %cst_385 : f32 to vector<8x128xf32>
    %457 = arith.subf %455, %456 : vector<8x128xf32>
    %cst_386 = arith.constant 2.000000e+01 : f32
    %458 = vector.broadcast %cst_386 : f32 to vector<8x128xf32>
    %459 = arith.mulf %457, %458 : vector<8x128xf32>
    %460 = math.exp %459 : vector<8x128xf32>
    %c21_387 = arith.constant 21 : index
    %c0_388 = arith.constant 0 : index
    %c0_389 = arith.constant 0 : index
    %461 = vector.load %arg5[%c21_387, %c0_388, %c0_389] : memref<64x8x128xf32, #tpu.memory_space<vmem>>, vector<1x8x128xf32>
    %462 = vector.shape_cast %461 : vector<1x8x128xf32> to vector<8x128xf32>
    %463 = vector.shape_cast %460 : vector<8x128xf32> to vector<1x8x128xf32>
    tpu.vector_store %arg5[%c21_387, %c0_388, %c0_389], %463 {strides = array<i32>} : memref<64x8x128xf32, #tpu.memory_space<vmem>>, vector<1x8x128xf32>,
    %464 = arith.mulf %460, %455 : vector<8x128xf32>
    %c21_390 = arith.constant 21 : index
    %c0_391 = arith.constant 0 : index
    %c0_392 = arith.constant 0 : index
    %465 = vector.load %arg6[%c21_390, %c0_391, %c0_392] : memref<64x8x128xf32, #tpu.memory_space<vmem>>, vector<1x8x128xf32>
    %466 = vector.shape_cast %465 : vector<1x8x128xf32> to vector<8x128xf32>
    %467 = vector.shape_cast %464 : vector<8x128xf32> to vector<1x8x128xf32>
    tpu.vector_store %arg6[%c21_390, %c0_391, %c0_392], %467 {strides = array<i32>} : memref<64x8x128xf32, #tpu.memory_space<vmem>>, vector<1x8x128xf32>,
    %c0_393 = arith.constant 0 : index
    %c22 = arith.constant 22 : index
    %c0_394 = arith.constant 0 : index
    %c0_395 = arith.constant 0 : index
    %c0_396 = arith.constant 0 : index
    %468 = vector.load %arg1[%c0_393, %c22, %c0_394, %c0_395, %c0_396] : memref<1x64x1x8x128xf32, #tpu.memory_space<vmem>>, vector<1x1x1x8x128xf32>
    %469 = vector.shape_cast %468 : vector<1x1x1x8x128xf32> to vector<8x128xf32>
    %cst_397 = arith.constant 1.000000e+00 : f32
    %470 = vector.broadcast %cst_397 : f32 to vector<8x128xf32>
    %471 = arith.subf %469, %470 : vector<8x128xf32>
    %cst_398 = arith.constant 2.000000e+01 : f32
    %472 = vector.broadcast %cst_398 : f32 to vector<8x128xf32>
    %473 = arith.mulf %471, %472 : vector<8x128xf32>
    %474 = math.exp %473 : vector<8x128xf32>
    %c22_399 = arith.constant 22 : index
    %c0_400 = arith.constant 0 : index
    %c0_401 = arith.constant 0 : index
    %475 = vector.load %arg5[%c22_399, %c0_400, %c0_401] : memref<64x8x128xf32, #tpu.memory_space<vmem>>, vector<1x8x128xf32>
    %476 = vector.shape_cast %475 : vector<1x8x128xf32> to vector<8x128xf32>
    %477 = vector.shape_cast %474 : vector<8x128xf32> to vector<1x8x128xf32>
    tpu.vector_store %arg5[%c22_399, %c0_400, %c0_401], %477 {strides = array<i32>} : memref<64x8x128xf32, #tpu.memory_space<vmem>>, vector<1x8x128xf32>,
    %478 = arith.mulf %474, %469 : vector<8x128xf32>
    %c22_402 = arith.constant 22 : index
    %c0_403 = arith.constant 0 : index
    %c0_404 = arith.constant 0 : index
    %479 = vector.load %arg6[%c22_402, %c0_403, %c0_404] : memref<64x8x128xf32, #tpu.memory_space<vmem>>, vector<1x8x128xf32>
    %480 = vector.shape_cast %479 : vector<1x8x128xf32> to vector<8x128xf32>
    %481 = vector.shape_cast %478 : vector<8x128xf32> to vector<1x8x128xf32>
    tpu.vector_store %arg6[%c22_402, %c0_403, %c0_404], %481 {strides = array<i32>} : memref<64x8x128xf32, #tpu.memory_space<vmem>>, vector<1x8x128xf32>,
    %c0_405 = arith.constant 0 : index
    %c23 = arith.constant 23 : index
    %c0_406 = arith.constant 0 : index
    %c0_407 = arith.constant 0 : index
    %c0_408 = arith.constant 0 : index
    %482 = vector.load %arg1[%c0_405, %c23, %c0_406, %c0_407, %c0_408] : memref<1x64x1x8x128xf32, #tpu.memory_space<vmem>>, vector<1x1x1x8x128xf32>
    %483 = vector.shape_cast %482 : vector<1x1x1x8x128xf32> to vector<8x128xf32>
    %cst_409 = arith.constant 1.000000e+00 : f32
    %484 = vector.broadcast %cst_409 : f32 to vector<8x128xf32>
    %485 = arith.subf %483, %484 : vector<8x128xf32>
    %cst_410 = arith.constant 2.000000e+01 : f32
    %486 = vector.broadcast %cst_410 : f32 to vector<8x128xf32>
    %487 = arith.mulf %485, %486 : vector<8x128xf32>
    %488 = math.exp %487 : vector<8x128xf32>
    %c23_411 = arith.constant 23 : index
    %c0_412 = arith.constant 0 : index
    %c0_413 = arith.constant 0 : index
    %489 = vector.load %arg5[%c23_411, %c0_412, %c0_413] : memref<64x8x128xf32, #tpu.memory_space<vmem>>, vector<1x8x128xf32>
    %490 = vector.shape_cast %489 : vector<1x8x128xf32> to vector<8x128xf32>
    %491 = vector.shape_cast %488 : vector<8x128xf32> to vector<1x8x128xf32>
    tpu.vector_store %arg5[%c23_411, %c0_412, %c0_413], %491 {strides = array<i32>} : memref<64x8x128xf32, #tpu.memory_space<vmem>>, vector<1x8x128xf32>,
    %492 = arith.mulf %488, %483 : vector<8x128xf32>
    %c23_414 = arith.constant 23 : index
    %c0_415 = arith.constant 0 : index
    %c0_416 = arith.constant 0 : index
    %493 = vector.load %arg6[%c23_414, %c0_415, %c0_416] : memref<64x8x128xf32, #tpu.memory_space<vmem>>, vector<1x8x128xf32>
    %494 = vector.shape_cast %493 : vector<1x8x128xf32> to vector<8x128xf32>
    %495 = vector.shape_cast %492 : vector<8x128xf32> to vector<1x8x128xf32>
    tpu.vector_store %arg6[%c23_414, %c0_415, %c0_416], %495 {strides = array<i32>} : memref<64x8x128xf32, #tpu.memory_space<vmem>>, vector<1x8x128xf32>,
    %c0_417 = arith.constant 0 : index
    %c24 = arith.constant 24 : index
    %c0_418 = arith.constant 0 : index
    %c0_419 = arith.constant 0 : index
    %c0_420 = arith.constant 0 : index
    %496 = vector.load %arg1[%c0_417, %c24, %c0_418, %c0_419, %c0_420] : memref<1x64x1x8x128xf32, #tpu.memory_space<vmem>>, vector<1x1x1x8x128xf32>
    %497 = vector.shape_cast %496 : vector<1x1x1x8x128xf32> to vector<8x128xf32>
    %cst_421 = arith.constant 1.000000e+00 : f32
    %498 = vector.broadcast %cst_421 : f32 to vector<8x128xf32>
    %499 = arith.subf %497, %498 : vector<8x128xf32>
    %cst_422 = arith.constant 2.000000e+01 : f32
    %500 = vector.broadcast %cst_422 : f32 to vector<8x128xf32>
    %501 = arith.mulf %499, %500 : vector<8x128xf32>
    %502 = math.exp %501 : vector<8x128xf32>
    %c24_423 = arith.constant 24 : index
    %c0_424 = arith.constant 0 : index
    %c0_425 = arith.constant 0 : index
    %503 = vector.load %arg5[%c24_423, %c0_424, %c0_425] : memref<64x8x128xf32, #tpu.memory_space<vmem>>, vector<1x8x128xf32>
    %504 = vector.shape_cast %503 : vector<1x8x128xf32> to vector<8x128xf32>
    %505 = vector.shape_cast %502 : vector<8x128xf32> to vector<1x8x128xf32>
    tpu.vector_store %arg5[%c24_423, %c0_424, %c0_425], %505 {strides = array<i32>} : memref<64x8x128xf32, #tpu.memory_space<vmem>>, vector<1x8x128xf32>,
    %506 = arith.mulf %502, %497 : vector<8x128xf32>
    %c24_426 = arith.constant 24 : index
    %c0_427 = arith.constant 0 : index
    %c0_428 = arith.constant 0 : index
    %507 = vector.load %arg6[%c24_426, %c0_427, %c0_428] : memref<64x8x128xf32, #tpu.memory_space<vmem>>, vector<1x8x128xf32>
    %508 = vector.shape_cast %507 : vector<1x8x128xf32> to vector<8x128xf32>
    %509 = vector.shape_cast %506 : vector<8x128xf32> to vector<1x8x128xf32>
    tpu.vector_store %arg6[%c24_426, %c0_427, %c0_428], %509 {strides = array<i32>} : memref<64x8x128xf32, #tpu.memory_space<vmem>>, vector<1x8x128xf32>,
    %c0_429 = arith.constant 0 : index
    %c25 = arith.constant 25 : index
    %c0_430 = arith.constant 0 : index
    %c0_431 = arith.constant 0 : index
    %c0_432 = arith.constant 0 : index
    %510 = vector.load %arg1[%c0_429, %c25, %c0_430, %c0_431, %c0_432] : memref<1x64x1x8x128xf32, #tpu.memory_space<vmem>>, vector<1x1x1x8x128xf32>
    %511 = vector.shape_cast %510 : vector<1x1x1x8x128xf32> to vector<8x128xf32>
    %cst_433 = arith.constant 1.000000e+00 : f32
    %512 = vector.broadcast %cst_433 : f32 to vector<8x128xf32>
    %513 = arith.subf %511, %512 : vector<8x128xf32>
    %cst_434 = arith.constant 2.000000e+01 : f32
    %514 = vector.broadcast %cst_434 : f32 to vector<8x128xf32>
    %515 = arith.mulf %513, %514 : vector<8x128xf32>
    %516 = math.exp %515 : vector<8x128xf32>
    %c25_435 = arith.constant 25 : index
    %c0_436 = arith.constant 0 : index
    %c0_437 = arith.constant 0 : index
    %517 = vector.load %arg5[%c25_435, %c0_436, %c0_437] : memref<64x8x128xf32, #tpu.memory_space<vmem>>, vector<1x8x128xf32>
    %518 = vector.shape_cast %517 : vector<1x8x128xf32> to vector<8x128xf32>
    %519 = vector.shape_cast %516 : vector<8x128xf32> to vector<1x8x128xf32>
    tpu.vector_store %arg5[%c25_435, %c0_436, %c0_437], %519 {strides = array<i32>} : memref<64x8x128xf32, #tpu.memory_space<vmem>>, vector<1x8x128xf32>,
    %520 = arith.mulf %516, %511 : vector<8x128xf32>
    %c25_438 = arith.constant 25 : index
    %c0_439 = arith.constant 0 : index
    %c0_440 = arith.constant 0 : index
    %521 = vector.load %arg6[%c25_438, %c0_439, %c0_440] : memref<64x8x128xf32, #tpu.memory_space<vmem>>, vector<1x8x128xf32>
    %522 = vector.shape_cast %521 : vector<1x8x128xf32> to vector<8x128xf32>
    %523 = vector.shape_cast %520 : vector<8x128xf32> to vector<1x8x128xf32>
    tpu.vector_store %arg6[%c25_438, %c0_439, %c0_440], %523 {strides = array<i32>} : memref<64x8x128xf32, #tpu.memory_space<vmem>>, vector<1x8x128xf32>,
    %c0_441 = arith.constant 0 : index
    %c26 = arith.constant 26 : index
    %c0_442 = arith.constant 0 : index
    %c0_443 = arith.constant 0 : index
    %c0_444 = arith.constant 0 : index
    %524 = vector.load %arg1[%c0_441, %c26, %c0_442, %c0_443, %c0_444] : memref<1x64x1x8x128xf32, #tpu.memory_space<vmem>>, vector<1x1x1x8x128xf32>
    %525 = vector.shape_cast %524 : vector<1x1x1x8x128xf32> to vector<8x128xf32>
    %cst_445 = arith.constant 1.000000e+00 : f32
    %526 = vector.broadcast %cst_445 : f32 to vector<8x128xf32>
    %527 = arith.subf %525, %526 : vector<8x128xf32>
    %cst_446 = arith.constant 2.000000e+01 : f32
    %528 = vector.broadcast %cst_446 : f32 to vector<8x128xf32>
    %529 = arith.mulf %527, %528 : vector<8x128xf32>
    %530 = math.exp %529 : vector<8x128xf32>
    %c26_447 = arith.constant 26 : index
    %c0_448 = arith.constant 0 : index
    %c0_449 = arith.constant 0 : index
    %531 = vector.load %arg5[%c26_447, %c0_448, %c0_449] : memref<64x8x128xf32, #tpu.memory_space<vmem>>, vector<1x8x128xf32>
    %532 = vector.shape_cast %531 : vector<1x8x128xf32> to vector<8x128xf32>
    %533 = vector.shape_cast %530 : vector<8x128xf32> to vector<1x8x128xf32>
    tpu.vector_store %arg5[%c26_447, %c0_448, %c0_449], %533 {strides = array<i32>} : memref<64x8x128xf32, #tpu.memory_space<vmem>>, vector<1x8x128xf32>,
    %534 = arith.mulf %530, %525 : vector<8x128xf32>
    %c26_450 = arith.constant 26 : index
    %c0_451 = arith.constant 0 : index
    %c0_452 = arith.constant 0 : index
    %535 = vector.load %arg6[%c26_450, %c0_451, %c0_452] : memref<64x8x128xf32, #tpu.memory_space<vmem>>, vector<1x8x128xf32>
    %536 = vector.shape_cast %535 : vector<1x8x128xf32> to vector<8x128xf32>
    %537 = vector.shape_cast %534 : vector<8x128xf32> to vector<1x8x128xf32>
    tpu.vector_store %arg6[%c26_450, %c0_451, %c0_452], %537 {strides = array<i32>} : memref<64x8x128xf32, #tpu.memory_space<vmem>>, vector<1x8x128xf32>,
    %c0_453 = arith.constant 0 : index
    %c27 = arith.constant 27 : index
    %c0_454 = arith.constant 0 : index
    %c0_455 = arith.constant 0 : index
    %c0_456 = arith.constant 0 : index
    %538 = vector.load %arg1[%c0_453, %c27, %c0_454, %c0_455, %c0_456] : memref<1x64x1x8x128xf32, #tpu.memory_space<vmem>>, vector<1x1x1x8x128xf32>
    %539 = vector.shape_cast %538 : vector<1x1x1x8x128xf32> to vector<8x128xf32>
    %cst_457 = arith.constant 1.000000e+00 : f32
    %540 = vector.broadcast %cst_457 : f32 to vector<8x128xf32>
    %541 = arith.subf %539, %540 : vector<8x128xf32>
    %cst_458 = arith.constant 2.000000e+01 : f32
    %542 = vector.broadcast %cst_458 : f32 to vector<8x128xf32>
    %543 = arith.mulf %541, %542 : vector<8x128xf32>
    %544 = math.exp %543 : vector<8x128xf32>
    %c27_459 = arith.constant 27 : index
    %c0_460 = arith.constant 0 : index
    %c0_461 = arith.constant 0 : index
    %545 = vector.load %arg5[%c27_459, %c0_460, %c0_461] : memref<64x8x128xf32, #tpu.memory_space<vmem>>, vector<1x8x128xf32>
    %546 = vector.shape_cast %545 : vector<1x8x128xf32> to vector<8x128xf32>
    %547 = vector.shape_cast %544 : vector<8x128xf32> to vector<1x8x128xf32>
    tpu.vector_store %arg5[%c27_459, %c0_460, %c0_461], %547 {strides = array<i32>} : memref<64x8x128xf32, #tpu.memory_space<vmem>>, vector<1x8x128xf32>,
    %548 = arith.mulf %544, %539 : vector<8x128xf32>
    %c27_462 = arith.constant 27 : index
    %c0_463 = arith.constant 0 : index
    %c0_464 = arith.constant 0 : index
    %549 = vector.load %arg6[%c27_462, %c0_463, %c0_464] : memref<64x8x128xf32, #tpu.memory_space<vmem>>, vector<1x8x128xf32>
    %550 = vector.shape_cast %549 : vector<1x8x128xf32> to vector<8x128xf32>
    %551 = vector.shape_cast %548 : vector<8x128xf32> to vector<1x8x128xf32>
    tpu.vector_store %arg6[%c27_462, %c0_463, %c0_464], %551 {strides = array<i32>} : memref<64x8x128xf32, #tpu.memory_space<vmem>>, vector<1x8x128xf32>,
    %c0_465 = arith.constant 0 : index
    %c28 = arith.constant 28 : index
    %c0_466 = arith.constant 0 : index
    %c0_467 = arith.constant 0 : index
    %c0_468 = arith.constant 0 : index
    %552 = vector.load %arg1[%c0_465, %c28, %c0_466, %c0_467, %c0_468] : memref<1x64x1x8x128xf32, #tpu.memory_space<vmem>>, vector<1x1x1x8x128xf32>
    %553 = vector.shape_cast %552 : vector<1x1x1x8x128xf32> to vector<8x128xf32>
    %cst_469 = arith.constant 1.000000e+00 : f32
    %554 = vector.broadcast %cst_469 : f32 to vector<8x128xf32>
    %555 = arith.subf %553, %554 : vector<8x128xf32>
    %cst_470 = arith.constant 2.000000e+01 : f32
    %556 = vector.broadcast %cst_470 : f32 to vector<8x128xf32>
    %557 = arith.mulf %555, %556 : vector<8x128xf32>
    %558 = math.exp %557 : vector<8x128xf32>
    %c28_471 = arith.constant 28 : index
    %c0_472 = arith.constant 0 : index
    %c0_473 = arith.constant 0 : index
    %559 = vector.load %arg5[%c28_471, %c0_472, %c0_473] : memref<64x8x128xf32, #tpu.memory_space<vmem>>, vector<1x8x128xf32>
    %560 = vector.shape_cast %559 : vector<1x8x128xf32> to vector<8x128xf32>
    %561 = vector.shape_cast %558 : vector<8x128xf32> to vector<1x8x128xf32>
    tpu.vector_store %arg5[%c28_471, %c0_472, %c0_473], %561 {strides = array<i32>} : memref<64x8x128xf32, #tpu.memory_space<vmem>>, vector<1x8x128xf32>,
    %562 = arith.mulf %558, %553 : vector<8x128xf32>
    %c28_474 = arith.constant 28 : index
    %c0_475 = arith.constant 0 : index
    %c0_476 = arith.constant 0 : index
    %563 = vector.load %arg6[%c28_474, %c0_475, %c0_476] : memref<64x8x128xf32, #tpu.memory_space<vmem>>, vector<1x8x128xf32>
    %564 = vector.shape_cast %563 : vector<1x8x128xf32> to vector<8x128xf32>
    %565 = vector.shape_cast %562 : vector<8x128xf32> to vector<1x8x128xf32>
    tpu.vector_store %arg6[%c28_474, %c0_475, %c0_476], %565 {strides = array<i32>} : memref<64x8x128xf32, #tpu.memory_space<vmem>>, vector<1x8x128xf32>,
    %c0_477 = arith.constant 0 : index
    %c29 = arith.constant 29 : index
    %c0_478 = arith.constant 0 : index
    %c0_479 = arith.constant 0 : index
    %c0_480 = arith.constant 0 : index
    %566 = vector.load %arg1[%c0_477, %c29, %c0_478, %c0_479, %c0_480] : memref<1x64x1x8x128xf32, #tpu.memory_space<vmem>>, vector<1x1x1x8x128xf32>
    %567 = vector.shape_cast %566 : vector<1x1x1x8x128xf32> to vector<8x128xf32>
    %cst_481 = arith.constant 1.000000e+00 : f32
    %568 = vector.broadcast %cst_481 : f32 to vector<8x128xf32>
    %569 = arith.subf %567, %568 : vector<8x128xf32>
    %cst_482 = arith.constant 2.000000e+01 : f32
    %570 = vector.broadcast %cst_482 : f32 to vector<8x128xf32>
    %571 = arith.mulf %569, %570 : vector<8x128xf32>
    %572 = math.exp %571 : vector<8x128xf32>
    %c29_483 = arith.constant 29 : index
    %c0_484 = arith.constant 0 : index
    %c0_485 = arith.constant 0 : index
    %573 = vector.load %arg5[%c29_483, %c0_484, %c0_485] : memref<64x8x128xf32, #tpu.memory_space<vmem>>, vector<1x8x128xf32>
    %574 = vector.shape_cast %573 : vector<1x8x128xf32> to vector<8x128xf32>
    %575 = vector.shape_cast %572 : vector<8x128xf32> to vector<1x8x128xf32>
    tpu.vector_store %arg5[%c29_483, %c0_484, %c0_485], %575 {strides = array<i32>} : memref<64x8x128xf32, #tpu.memory_space<vmem>>, vector<1x8x128xf32>,
    %576 = arith.mulf %572, %567 : vector<8x128xf32>
    %c29_486 = arith.constant 29 : index
    %c0_487 = arith.constant 0 : index
    %c0_488 = arith.constant 0 : index
    %577 = vector.load %arg6[%c29_486, %c0_487, %c0_488] : memref<64x8x128xf32, #tpu.memory_space<vmem>>, vector<1x8x128xf32>
    %578 = vector.shape_cast %577 : vector<1x8x128xf32> to vector<8x128xf32>
    %579 = vector.shape_cast %576 : vector<8x128xf32> to vector<1x8x128xf32>
    tpu.vector_store %arg6[%c29_486, %c0_487, %c0_488], %579 {strides = array<i32>} : memref<64x8x128xf32, #tpu.memory_space<vmem>>, vector<1x8x128xf32>,
    %c0_489 = arith.constant 0 : index
    %c30 = arith.constant 30 : index
    %c0_490 = arith.constant 0 : index
    %c0_491 = arith.constant 0 : index
    %c0_492 = arith.constant 0 : index
    %580 = vector.load %arg1[%c0_489, %c30, %c0_490, %c0_491, %c0_492] : memref<1x64x1x8x128xf32, #tpu.memory_space<vmem>>, vector<1x1x1x8x128xf32>
    %581 = vector.shape_cast %580 : vector<1x1x1x8x128xf32> to vector<8x128xf32>
    %cst_493 = arith.constant 1.000000e+00 : f32
    %582 = vector.broadcast %cst_493 : f32 to vector<8x128xf32>
    %583 = arith.subf %581, %582 : vector<8x128xf32>
    %cst_494 = arith.constant 2.000000e+01 : f32
    %584 = vector.broadcast %cst_494 : f32 to vector<8x128xf32>
    %585 = arith.mulf %583, %584 : vector<8x128xf32>
    %586 = math.exp %585 : vector<8x128xf32>
    %c30_495 = arith.constant 30 : index
    %c0_496 = arith.constant 0 : index
    %c0_497 = arith.constant 0 : index
    %587 = vector.load %arg5[%c30_495, %c0_496, %c0_497] : memref<64x8x128xf32, #tpu.memory_space<vmem>>, vector<1x8x128xf32>
    %588 = vector.shape_cast %587 : vector<1x8x128xf32> to vector<8x128xf32>
    %589 = vector.shape_cast %586 : vector<8x128xf32> to vector<1x8x128xf32>
    tpu.vector_store %arg5[%c30_495, %c0_496, %c0_497], %589 {strides = array<i32>} : memref<64x8x128xf32, #tpu.memory_space<vmem>>, vector<1x8x128xf32>,
    %590 = arith.mulf %586, %581 : vector<8x128xf32>
    %c30_498 = arith.constant 30 : index
    %c0_499 = arith.constant 0 : index
    %c0_500 = arith.constant 0 : index
    %591 = vector.load %arg6[%c30_498, %c0_499, %c0_500] : memref<64x8x128xf32, #tpu.memory_space<vmem>>, vector<1x8x128xf32>
    %592 = vector.shape_cast %591 : vector<1x8x128xf32> to vector<8x128xf32>
    %593 = vector.shape_cast %590 : vector<8x128xf32> to vector<1x8x128xf32>
    tpu.vector_store %arg6[%c30_498, %c0_499, %c0_500], %593 {strides = array<i32>} : memref<64x8x128xf32, #tpu.memory_space<vmem>>, vector<1x8x128xf32>,
    %c0_501 = arith.constant 0 : index
    %c31 = arith.constant 31 : index
    %c0_502 = arith.constant 0 : index
    %c0_503 = arith.constant 0 : index
    %c0_504 = arith.constant 0 : index
    %594 = vector.load %arg1[%c0_501, %c31, %c0_502, %c0_503, %c0_504] : memref<1x64x1x8x128xf32, #tpu.memory_space<vmem>>, vector<1x1x1x8x128xf32>
    %595 = vector.shape_cast %594 : vector<1x1x1x8x128xf32> to vector<8x128xf32>
    %cst_505 = arith.constant 1.000000e+00 : f32
    %596 = vector.broadcast %cst_505 : f32 to vector<8x128xf32>
    %597 = arith.subf %595, %596 : vector<8x128xf32>
    %cst_506 = arith.constant 2.000000e+01 : f32
    %598 = vector.broadcast %cst_506 : f32 to vector<8x128xf32>
    %599 = arith.mulf %597, %598 : vector<8x128xf32>
    %600 = math.exp %599 : vector<8x128xf32>
    %c31_507 = arith.constant 31 : index
    %c0_508 = arith.constant 0 : index
    %c0_509 = arith.constant 0 : index
    %601 = vector.load %arg5[%c31_507, %c0_508, %c0_509] : memref<64x8x128xf32, #tpu.memory_space<vmem>>, vector<1x8x128xf32>
    %602 = vector.shape_cast %601 : vector<1x8x128xf32> to vector<8x128xf32>
    %603 = vector.shape_cast %600 : vector<8x128xf32> to vector<1x8x128xf32>
    tpu.vector_store %arg5[%c31_507, %c0_508, %c0_509], %603 {strides = array<i32>} : memref<64x8x128xf32, #tpu.memory_space<vmem>>, vector<1x8x128xf32>,
    %604 = arith.mulf %600, %595 : vector<8x128xf32>
    %c31_510 = arith.constant 31 : index
    %c0_511 = arith.constant 0 : index
    %c0_512 = arith.constant 0 : index
    %605 = vector.load %arg6[%c31_510, %c0_511, %c0_512] : memref<64x8x128xf32, #tpu.memory_space<vmem>>, vector<1x8x128xf32>
    %606 = vector.shape_cast %605 : vector<1x8x128xf32> to vector<8x128xf32>
    %607 = vector.shape_cast %604 : vector<8x128xf32> to vector<1x8x128xf32>
    tpu.vector_store %arg6[%c31_510, %c0_511, %c0_512], %607 {strides = array<i32>} : memref<64x8x128xf32, #tpu.memory_space<vmem>>, vector<1x8x128xf32>,
    %c0_513 = arith.constant 0 : index
    %c32 = arith.constant 32 : index
    %c0_514 = arith.constant 0 : index
    %c0_515 = arith.constant 0 : index
    %c0_516 = arith.constant 0 : index
    %608 = vector.load %arg1[%c0_513, %c32, %c0_514, %c0_515, %c0_516] : memref<1x64x1x8x128xf32, #tpu.memory_space<vmem>>, vector<1x1x1x8x128xf32>
    %609 = vector.shape_cast %608 : vector<1x1x1x8x128xf32> to vector<8x128xf32>
    %cst_517 = arith.constant 1.000000e+00 : f32
    %610 = vector.broadcast %cst_517 : f32 to vector<8x128xf32>
    %611 = arith.subf %609, %610 : vector<8x128xf32>
    %cst_518 = arith.constant 2.000000e+01 : f32
    %612 = vector.broadcast %cst_518 : f32 to vector<8x128xf32>
    %613 = arith.mulf %611, %612 : vector<8x128xf32>
    %614 = math.exp %613 : vector<8x128xf32>
    %c32_519 = arith.constant 32 : index
    %c0_520 = arith.constant 0 : index
    %c0_521 = arith.constant 0 : index
    %615 = vector.load %arg5[%c32_519, %c0_520, %c0_521] : memref<64x8x128xf32, #tpu.memory_space<vmem>>, vector<1x8x128xf32>
    %616 = vector.shape_cast %615 : vector<1x8x128xf32> to vector<8x128xf32>
    %617 = vector.shape_cast %614 : vector<8x128xf32> to vector<1x8x128xf32>
    tpu.vector_store %arg5[%c32_519, %c0_520, %c0_521], %617 {strides = array<i32>} : memref<64x8x128xf32, #tpu.memory_space<vmem>>, vector<1x8x128xf32>,
    %618 = arith.mulf %614, %609 : vector<8x128xf32>
    %c32_522 = arith.constant 32 : index
    %c0_523 = arith.constant 0 : index
    %c0_524 = arith.constant 0 : index
    %619 = vector.load %arg6[%c32_522, %c0_523, %c0_524] : memref<64x8x128xf32, #tpu.memory_space<vmem>>, vector<1x8x128xf32>
    %620 = vector.shape_cast %619 : vector<1x8x128xf32> to vector<8x128xf32>
    %621 = vector.shape_cast %618 : vector<8x128xf32> to vector<1x8x128xf32>
    tpu.vector_store %arg6[%c32_522, %c0_523, %c0_524], %621 {strides = array<i32>} : memref<64x8x128xf32, #tpu.memory_space<vmem>>, vector<1x8x128xf32>,
    %c0_525 = arith.constant 0 : index
    %c33 = arith.constant 33 : index
    %c0_526 = arith.constant 0 : index
    %c0_527 = arith.constant 0 : index
    %c0_528 = arith.constant 0 : index
    %622 = vector.load %arg1[%c0_525, %c33, %c0_526, %c0_527, %c0_528] : memref<1x64x1x8x128xf32, #tpu.memory_space<vmem>>, vector<1x1x1x8x128xf32>
    %623 = vector.shape_cast %622 : vector<1x1x1x8x128xf32> to vector<8x128xf32>
    %cst_529 = arith.constant 1.000000e+00 : f32
    %624 = vector.broadcast %cst_529 : f32 to vector<8x128xf32>
    %625 = arith.subf %623, %624 : vector<8x128xf32>
    %cst_530 = arith.constant 2.000000e+01 : f32
    %626 = vector.broadcast %cst_530 : f32 to vector<8x128xf32>
    %627 = arith.mulf %625, %626 : vector<8x128xf32>
    %628 = math.exp %627 : vector<8x128xf32>
    %c33_531 = arith.constant 33 : index
    %c0_532 = arith.constant 0 : index
    %c0_533 = arith.constant 0 : index
    %629 = vector.load %arg5[%c33_531, %c0_532, %c0_533] : memref<64x8x128xf32, #tpu.memory_space<vmem>>, vector<1x8x128xf32>
    %630 = vector.shape_cast %629 : vector<1x8x128xf32> to vector<8x128xf32>
    %631 = vector.shape_cast %628 : vector<8x128xf32> to vector<1x8x128xf32>
    tpu.vector_store %arg5[%c33_531, %c0_532, %c0_533], %631 {strides = array<i32>} : memref<64x8x128xf32, #tpu.memory_space<vmem>>, vector<1x8x128xf32>,
    %632 = arith.mulf %628, %623 : vector<8x128xf32>
    %c33_534 = arith.constant 33 : index
    %c0_535 = arith.constant 0 : index
    %c0_536 = arith.constant 0 : index
    %633 = vector.load %arg6[%c33_534, %c0_535, %c0_536] : memref<64x8x128xf32, #tpu.memory_space<vmem>>, vector<1x8x128xf32>
    %634 = vector.shape_cast %633 : vector<1x8x128xf32> to vector<8x128xf32>
    %635 = vector.shape_cast %632 : vector<8x128xf32> to vector<1x8x128xf32>
    tpu.vector_store %arg6[%c33_534, %c0_535, %c0_536], %635 {strides = array<i32>} : memref<64x8x128xf32, #tpu.memory_space<vmem>>, vector<1x8x128xf32>,
    %c0_537 = arith.constant 0 : index
    %c34 = arith.constant 34 : index
    %c0_538 = arith.constant 0 : index
    %c0_539 = arith.constant 0 : index
    %c0_540 = arith.constant 0 : index
    %636 = vector.load %arg1[%c0_537, %c34, %c0_538, %c0_539, %c0_540] : memref<1x64x1x8x128xf32, #tpu.memory_space<vmem>>, vector<1x1x1x8x128xf32>
    %637 = vector.shape_cast %636 : vector<1x1x1x8x128xf32> to vector<8x128xf32>
    %cst_541 = arith.constant 1.000000e+00 : f32
    %638 = vector.broadcast %cst_541 : f32 to vector<8x128xf32>
    %639 = arith.subf %637, %638 : vector<8x128xf32>
    %cst_542 = arith.constant 2.000000e+01 : f32
    %640 = vector.broadcast %cst_542 : f32 to vector<8x128xf32>
    %641 = arith.mulf %639, %640 : vector<8x128xf32>
    %642 = math.exp %641 : vector<8x128xf32>
    %c34_543 = arith.constant 34 : index
    %c0_544 = arith.constant 0 : index
    %c0_545 = arith.constant 0 : index
    %643 = vector.load %arg5[%c34_543, %c0_544, %c0_545] : memref<64x8x128xf32, #tpu.memory_space<vmem>>, vector<1x8x128xf32>
    %644 = vector.shape_cast %643 : vector<1x8x128xf32> to vector<8x128xf32>
    %645 = vector.shape_cast %642 : vector<8x128xf32> to vector<1x8x128xf32>
    tpu.vector_store %arg5[%c34_543, %c0_544, %c0_545], %645 {strides = array<i32>} : memref<64x8x128xf32, #tpu.memory_space<vmem>>, vector<1x8x128xf32>,
    %646 = arith.mulf %642, %637 : vector<8x128xf32>
    %c34_546 = arith.constant 34 : index
    %c0_547 = arith.constant 0 : index
    %c0_548 = arith.constant 0 : index
    %647 = vector.load %arg6[%c34_546, %c0_547, %c0_548] : memref<64x8x128xf32, #tpu.memory_space<vmem>>, vector<1x8x128xf32>
    %648 = vector.shape_cast %647 : vector<1x8x128xf32> to vector<8x128xf32>
    %649 = vector.shape_cast %646 : vector<8x128xf32> to vector<1x8x128xf32>
    tpu.vector_store %arg6[%c34_546, %c0_547, %c0_548], %649 {strides = array<i32>} : memref<64x8x128xf32, #tpu.memory_space<vmem>>, vector<1x8x128xf32>,
    %c0_549 = arith.constant 0 : index
    %c35 = arith.constant 35 : index
    %c0_550 = arith.constant 0 : index
    %c0_551 = arith.constant 0 : index
    %c0_552 = arith.constant 0 : index
    %650 = vector.load %arg1[%c0_549, %c35, %c0_550, %c0_551, %c0_552] : memref<1x64x1x8x128xf32, #tpu.memory_space<vmem>>, vector<1x1x1x8x128xf32>
    %651 = vector.shape_cast %650 : vector<1x1x1x8x128xf32> to vector<8x128xf32>
    %cst_553 = arith.constant 1.000000e+00 : f32
    %652 = vector.broadcast %cst_553 : f32 to vector<8x128xf32>
    %653 = arith.subf %651, %652 : vector<8x128xf32>
    %cst_554 = arith.constant 2.000000e+01 : f32
    %654 = vector.broadcast %cst_554 : f32 to vector<8x128xf32>
    %655 = arith.mulf %653, %654 : vector<8x128xf32>
    %656 = math.exp %655 : vector<8x128xf32>
    %c35_555 = arith.constant 35 : index
    %c0_556 = arith.constant 0 : index
    %c0_557 = arith.constant 0 : index
    %657 = vector.load %arg5[%c35_555, %c0_556, %c0_557] : memref<64x8x128xf32, #tpu.memory_space<vmem>>, vector<1x8x128xf32>
    %658 = vector.shape_cast %657 : vector<1x8x128xf32> to vector<8x128xf32>
    %659 = vector.shape_cast %656 : vector<8x128xf32> to vector<1x8x128xf32>
    tpu.vector_store %arg5[%c35_555, %c0_556, %c0_557], %659 {strides = array<i32>} : memref<64x8x128xf32, #tpu.memory_space<vmem>>, vector<1x8x128xf32>,
    %660 = arith.mulf %656, %651 : vector<8x128xf32>
    %c35_558 = arith.constant 35 : index
    %c0_559 = arith.constant 0 : index
    %c0_560 = arith.constant 0 : index
    %661 = vector.load %arg6[%c35_558, %c0_559, %c0_560] : memref<64x8x128xf32, #tpu.memory_space<vmem>>, vector<1x8x128xf32>
    %662 = vector.shape_cast %661 : vector<1x8x128xf32> to vector<8x128xf32>
    %663 = vector.shape_cast %660 : vector<8x128xf32> to vector<1x8x128xf32>
    tpu.vector_store %arg6[%c35_558, %c0_559, %c0_560], %663 {strides = array<i32>} : memref<64x8x128xf32, #tpu.memory_space<vmem>>, vector<1x8x128xf32>,
    %c0_561 = arith.constant 0 : index
    %c36 = arith.constant 36 : index
    %c0_562 = arith.constant 0 : index
    %c0_563 = arith.constant 0 : index
    %c0_564 = arith.constant 0 : index
    %664 = vector.load %arg1[%c0_561, %c36, %c0_562, %c0_563, %c0_564] : memref<1x64x1x8x128xf32, #tpu.memory_space<vmem>>, vector<1x1x1x8x128xf32>
    %665 = vector.shape_cast %664 : vector<1x1x1x8x128xf32> to vector<8x128xf32>
    %cst_565 = arith.constant 1.000000e+00 : f32
    %666 = vector.broadcast %cst_565 : f32 to vector<8x128xf32>
    %667 = arith.subf %665, %666 : vector<8x128xf32>
    %cst_566 = arith.constant 2.000000e+01 : f32
    %668 = vector.broadcast %cst_566 : f32 to vector<8x128xf32>
    %669 = arith.mulf %667, %668 : vector<8x128xf32>
    %670 = math.exp %669 : vector<8x128xf32>
    %c36_567 = arith.constant 36 : index
    %c0_568 = arith.constant 0 : index
    %c0_569 = arith.constant 0 : index
    %671 = vector.load %arg5[%c36_567, %c0_568, %c0_569] : memref<64x8x128xf32, #tpu.memory_space<vmem>>, vector<1x8x128xf32>
    %672 = vector.shape_cast %671 : vector<1x8x128xf32> to vector<8x128xf32>
    %673 = vector.shape_cast %670 : vector<8x128xf32> to vector<1x8x128xf32>
    tpu.vector_store %arg5[%c36_567, %c0_568, %c0_569], %673 {strides = array<i32>} : memref<64x8x128xf32, #tpu.memory_space<vmem>>, vector<1x8x128xf32>,
    %674 = arith.mulf %670, %665 : vector<8x128xf32>
    %c36_570 = arith.constant 36 : index
    %c0_571 = arith.constant 0 : index
    %c0_572 = arith.constant 0 : index
    %675 = vector.load %arg6[%c36_570, %c0_571, %c0_572] : memref<64x8x128xf32, #tpu.memory_space<vmem>>, vector<1x8x128xf32>
    %676 = vector.shape_cast %675 : vector<1x8x128xf32> to vector<8x128xf32>
    %677 = vector.shape_cast %674 : vector<8x128xf32> to vector<1x8x128xf32>
    tpu.vector_store %arg6[%c36_570, %c0_571, %c0_572], %677 {strides = array<i32>} : memref<64x8x128xf32, #tpu.memory_space<vmem>>, vector<1x8x128xf32>,
    %c0_573 = arith.constant 0 : index
    %c37 = arith.constant 37 : index
    %c0_574 = arith.constant 0 : index
    %c0_575 = arith.constant 0 : index
    %c0_576 = arith.constant 0 : index
    %678 = vector.load %arg1[%c0_573, %c37, %c0_574, %c0_575, %c0_576] : memref<1x64x1x8x128xf32, #tpu.memory_space<vmem>>, vector<1x1x1x8x128xf32>
    %679 = vector.shape_cast %678 : vector<1x1x1x8x128xf32> to vector<8x128xf32>
    %cst_577 = arith.constant 1.000000e+00 : f32
    %680 = vector.broadcast %cst_577 : f32 to vector<8x128xf32>
    %681 = arith.subf %679, %680 : vector<8x128xf32>
    %cst_578 = arith.constant 2.000000e+01 : f32
    %682 = vector.broadcast %cst_578 : f32 to vector<8x128xf32>
    %683 = arith.mulf %681, %682 : vector<8x128xf32>
    %684 = math.exp %683 : vector<8x128xf32>
    %c37_579 = arith.constant 37 : index
    %c0_580 = arith.constant 0 : index
    %c0_581 = arith.constant 0 : index
    %685 = vector.load %arg5[%c37_579, %c0_580, %c0_581] : memref<64x8x128xf32, #tpu.memory_space<vmem>>, vector<1x8x128xf32>
    %686 = vector.shape_cast %685 : vector<1x8x128xf32> to vector<8x128xf32>
    %687 = vector.shape_cast %684 : vector<8x128xf32> to vector<1x8x128xf32>
    tpu.vector_store %arg5[%c37_579, %c0_580, %c0_581], %687 {strides = array<i32>} : memref<64x8x128xf32, #tpu.memory_space<vmem>>, vector<1x8x128xf32>,
    %688 = arith.mulf %684, %679 : vector<8x128xf32>
    %c37_582 = arith.constant 37 : index
    %c0_583 = arith.constant 0 : index
    %c0_584 = arith.constant 0 : index
    %689 = vector.load %arg6[%c37_582, %c0_583, %c0_584] : memref<64x8x128xf32, #tpu.memory_space<vmem>>, vector<1x8x128xf32>
    %690 = vector.shape_cast %689 : vector<1x8x128xf32> to vector<8x128xf32>
    %691 = vector.shape_cast %688 : vector<8x128xf32> to vector<1x8x128xf32>
    tpu.vector_store %arg6[%c37_582, %c0_583, %c0_584], %691 {strides = array<i32>} : memref<64x8x128xf32, #tpu.memory_space<vmem>>, vector<1x8x128xf32>,
    %c0_585 = arith.constant 0 : index
    %c38 = arith.constant 38 : index
    %c0_586 = arith.constant 0 : index
    %c0_587 = arith.constant 0 : index
    %c0_588 = arith.constant 0 : index
    %692 = vector.load %arg1[%c0_585, %c38, %c0_586, %c0_587, %c0_588] : memref<1x64x1x8x128xf32, #tpu.memory_space<vmem>>, vector<1x1x1x8x128xf32>
    %693 = vector.shape_cast %692 : vector<1x1x1x8x128xf32> to vector<8x128xf32>
    %cst_589 = arith.constant 1.000000e+00 : f32
    %694 = vector.broadcast %cst_589 : f32 to vector<8x128xf32>
    %695 = arith.subf %693, %694 : vector<8x128xf32>
    %cst_590 = arith.constant 2.000000e+01 : f32
    %696 = vector.broadcast %cst_590 : f32 to vector<8x128xf32>
    %697 = arith.mulf %695, %696 : vector<8x128xf32>
    %698 = math.exp %697 : vector<8x128xf32>
    %c38_591 = arith.constant 38 : index
    %c0_592 = arith.constant 0 : index
    %c0_593 = arith.constant 0 : index
    %699 = vector.load %arg5[%c38_591, %c0_592, %c0_593] : memref<64x8x128xf32, #tpu.memory_space<vmem>>, vector<1x8x128xf32>
    %700 = vector.shape_cast %699 : vector<1x8x128xf32> to vector<8x128xf32>
    %701 = vector.shape_cast %698 : vector<8x128xf32> to vector<1x8x128xf32>
    tpu.vector_store %arg5[%c38_591, %c0_592, %c0_593], %701 {strides = array<i32>} : memref<64x8x128xf32, #tpu.memory_space<vmem>>, vector<1x8x128xf32>,
    %702 = arith.mulf %698, %693 : vector<8x128xf32>
    %c38_594 = arith.constant 38 : index
    %c0_595 = arith.constant 0 : index
    %c0_596 = arith.constant 0 : index
    %703 = vector.load %arg6[%c38_594, %c0_595, %c0_596] : memref<64x8x128xf32, #tpu.memory_space<vmem>>, vector<1x8x128xf32>
    %704 = vector.shape_cast %703 : vector<1x8x128xf32> to vector<8x128xf32>
    %705 = vector.shape_cast %702 : vector<8x128xf32> to vector<1x8x128xf32>
    tpu.vector_store %arg6[%c38_594, %c0_595, %c0_596], %705 {strides = array<i32>} : memref<64x8x128xf32, #tpu.memory_space<vmem>>, vector<1x8x128xf32>,
    %c0_597 = arith.constant 0 : index
    %c39 = arith.constant 39 : index
    %c0_598 = arith.constant 0 : index
    %c0_599 = arith.constant 0 : index
    %c0_600 = arith.constant 0 : index
    %706 = vector.load %arg1[%c0_597, %c39, %c0_598, %c0_599, %c0_600] : memref<1x64x1x8x128xf32, #tpu.memory_space<vmem>>, vector<1x1x1x8x128xf32>
    %707 = vector.shape_cast %706 : vector<1x1x1x8x128xf32> to vector<8x128xf32>
    %cst_601 = arith.constant 1.000000e+00 : f32
    %708 = vector.broadcast %cst_601 : f32 to vector<8x128xf32>
    %709 = arith.subf %707, %708 : vector<8x128xf32>
    %cst_602 = arith.constant 2.000000e+01 : f32
    %710 = vector.broadcast %cst_602 : f32 to vector<8x128xf32>
    %711 = arith.mulf %709, %710 : vector<8x128xf32>
    %712 = math.exp %711 : vector<8x128xf32>
    %c39_603 = arith.constant 39 : index
    %c0_604 = arith.constant 0 : index
    %c0_605 = arith.constant 0 : index
    %713 = vector.load %arg5[%c39_603, %c0_604, %c0_605] : memref<64x8x128xf32, #tpu.memory_space<vmem>>, vector<1x8x128xf32>
    %714 = vector.shape_cast %713 : vector<1x8x128xf32> to vector<8x128xf32>
    %715 = vector.shape_cast %712 : vector<8x128xf32> to vector<1x8x128xf32>
    tpu.vector_store %arg5[%c39_603, %c0_604, %c0_605], %715 {strides = array<i32>} : memref<64x8x128xf32, #tpu.memory_space<vmem>>, vector<1x8x128xf32>,
    %716 = arith.mulf %712, %707 : vector<8x128xf32>
    %c39_606 = arith.constant 39 : index
    %c0_607 = arith.constant 0 : index
    %c0_608 = arith.constant 0 : index
    %717 = vector.load %arg6[%c39_606, %c0_607, %c0_608] : memref<64x8x128xf32, #tpu.memory_space<vmem>>, vector<1x8x128xf32>
    %718 = vector.shape_cast %717 : vector<1x8x128xf32> to vector<8x128xf32>
    %719 = vector.shape_cast %716 : vector<8x128xf32> to vector<1x8x128xf32>
    tpu.vector_store %arg6[%c39_606, %c0_607, %c0_608], %719 {strides = array<i32>} : memref<64x8x128xf32, #tpu.memory_space<vmem>>, vector<1x8x128xf32>,
    %c0_609 = arith.constant 0 : index
    %c40 = arith.constant 40 : index
    %c0_610 = arith.constant 0 : index
    %c0_611 = arith.constant 0 : index
    %c0_612 = arith.constant 0 : index
    %720 = vector.load %arg1[%c0_609, %c40, %c0_610, %c0_611, %c0_612] : memref<1x64x1x8x128xf32, #tpu.memory_space<vmem>>, vector<1x1x1x8x128xf32>
    %721 = vector.shape_cast %720 : vector<1x1x1x8x128xf32> to vector<8x128xf32>
    %cst_613 = arith.constant 1.000000e+00 : f32
    %722 = vector.broadcast %cst_613 : f32 to vector<8x128xf32>
    %723 = arith.subf %721, %722 : vector<8x128xf32>
    %cst_614 = arith.constant 2.000000e+01 : f32
    %724 = vector.broadcast %cst_614 : f32 to vector<8x128xf32>
    %725 = arith.mulf %723, %724 : vector<8x128xf32>
    %726 = math.exp %725 : vector<8x128xf32>
    %c40_615 = arith.constant 40 : index
    %c0_616 = arith.constant 0 : index
    %c0_617 = arith.constant 0 : index
    %727 = vector.load %arg5[%c40_615, %c0_616, %c0_617] : memref<64x8x128xf32, #tpu.memory_space<vmem>>, vector<1x8x128xf32>
    %728 = vector.shape_cast %727 : vector<1x8x128xf32> to vector<8x128xf32>
    %729 = vector.shape_cast %726 : vector<8x128xf32> to vector<1x8x128xf32>
    tpu.vector_store %arg5[%c40_615, %c0_616, %c0_617], %729 {strides = array<i32>} : memref<64x8x128xf32, #tpu.memory_space<vmem>>, vector<1x8x128xf32>,
    %730 = arith.mulf %726, %721 : vector<8x128xf32>
    %c40_618 = arith.constant 40 : index
    %c0_619 = arith.constant 0 : index
    %c0_620 = arith.constant 0 : index
    %731 = vector.load %arg6[%c40_618, %c0_619, %c0_620] : memref<64x8x128xf32, #tpu.memory_space<vmem>>, vector<1x8x128xf32>
    %732 = vector.shape_cast %731 : vector<1x8x128xf32> to vector<8x128xf32>
    %733 = vector.shape_cast %730 : vector<8x128xf32> to vector<1x8x128xf32>
    tpu.vector_store %arg6[%c40_618, %c0_619, %c0_620], %733 {strides = array<i32>} : memref<64x8x128xf32, #tpu.memory_space<vmem>>, vector<1x8x128xf32>,
    %c0_621 = arith.constant 0 : index
    %c41 = arith.constant 41 : index
    %c0_622 = arith.constant 0 : index
    %c0_623 = arith.constant 0 : index
    %c0_624 = arith.constant 0 : index
    %734 = vector.load %arg1[%c0_621, %c41, %c0_622, %c0_623, %c0_624] : memref<1x64x1x8x128xf32, #tpu.memory_space<vmem>>, vector<1x1x1x8x128xf32>
    %735 = vector.shape_cast %734 : vector<1x1x1x8x128xf32> to vector<8x128xf32>
    %cst_625 = arith.constant 1.000000e+00 : f32
    %736 = vector.broadcast %cst_625 : f32 to vector<8x128xf32>
    %737 = arith.subf %735, %736 : vector<8x128xf32>
    %cst_626 = arith.constant 2.000000e+01 : f32
    %738 = vector.broadcast %cst_626 : f32 to vector<8x128xf32>
    %739 = arith.mulf %737, %738 : vector<8x128xf32>
    %740 = math.exp %739 : vector<8x128xf32>
    %c41_627 = arith.constant 41 : index
    %c0_628 = arith.constant 0 : index
    %c0_629 = arith.constant 0 : index
    %741 = vector.load %arg5[%c41_627, %c0_628, %c0_629] : memref<64x8x128xf32, #tpu.memory_space<vmem>>, vector<1x8x128xf32>
    %742 = vector.shape_cast %741 : vector<1x8x128xf32> to vector<8x128xf32>
    %743 = vector.shape_cast %740 : vector<8x128xf32> to vector<1x8x128xf32>
    tpu.vector_store %arg5[%c41_627, %c0_628, %c0_629], %743 {strides = array<i32>} : memref<64x8x128xf32, #tpu.memory_space<vmem>>, vector<1x8x128xf32>,
    %744 = arith.mulf %740, %735 : vector<8x128xf32>
    %c41_630 = arith.constant 41 : index
    %c0_631 = arith.constant 0 : index
    %c0_632 = arith.constant 0 : index
    %745 = vector.load %arg6[%c41_630, %c0_631, %c0_632] : memref<64x8x128xf32, #tpu.memory_space<vmem>>, vector<1x8x128xf32>
    %746 = vector.shape_cast %745 : vector<1x8x128xf32> to vector<8x128xf32>
    %747 = vector.shape_cast %744 : vector<8x128xf32> to vector<1x8x128xf32>
    tpu.vector_store %arg6[%c41_630, %c0_631, %c0_632], %747 {strides = array<i32>} : memref<64x8x128xf32, #tpu.memory_space<vmem>>, vector<1x8x128xf32>,
    %c0_633 = arith.constant 0 : index
    %c42 = arith.constant 42 : index
    %c0_634 = arith.constant 0 : index
    %c0_635 = arith.constant 0 : index
    %c0_636 = arith.constant 0 : index
    %748 = vector.load %arg1[%c0_633, %c42, %c0_634, %c0_635, %c0_636] : memref<1x64x1x8x128xf32, #tpu.memory_space<vmem>>, vector<1x1x1x8x128xf32>
    %749 = vector.shape_cast %748 : vector<1x1x1x8x128xf32> to vector<8x128xf32>
    %cst_637 = arith.constant 1.000000e+00 : f32
    %750 = vector.broadcast %cst_637 : f32 to vector<8x128xf32>
    %751 = arith.subf %749, %750 : vector<8x128xf32>
    %cst_638 = arith.constant 2.000000e+01 : f32
    %752 = vector.broadcast %cst_638 : f32 to vector<8x128xf32>
    %753 = arith.mulf %751, %752 : vector<8x128xf32>
    %754 = math.exp %753 : vector<8x128xf32>
    %c42_639 = arith.constant 42 : index
    %c0_640 = arith.constant 0 : index
    %c0_641 = arith.constant 0 : index
    %755 = vector.load %arg5[%c42_639, %c0_640, %c0_641] : memref<64x8x128xf32, #tpu.memory_space<vmem>>, vector<1x8x128xf32>
    %756 = vector.shape_cast %755 : vector<1x8x128xf32> to vector<8x128xf32>
    %757 = vector.shape_cast %754 : vector<8x128xf32> to vector<1x8x128xf32>
    tpu.vector_store %arg5[%c42_639, %c0_640, %c0_641], %757 {strides = array<i32>} : memref<64x8x128xf32, #tpu.memory_space<vmem>>, vector<1x8x128xf32>,
    %758 = arith.mulf %754, %749 : vector<8x128xf32>
    %c42_642 = arith.constant 42 : index
    %c0_643 = arith.constant 0 : index
    %c0_644 = arith.constant 0 : index
    %759 = vector.load %arg6[%c42_642, %c0_643, %c0_644] : memref<64x8x128xf32, #tpu.memory_space<vmem>>, vector<1x8x128xf32>
    %760 = vector.shape_cast %759 : vector<1x8x128xf32> to vector<8x128xf32>
    %761 = vector.shape_cast %758 : vector<8x128xf32> to vector<1x8x128xf32>
    tpu.vector_store %arg6[%c42_642, %c0_643, %c0_644], %761 {strides = array<i32>} : memref<64x8x128xf32, #tpu.memory_space<vmem>>, vector<1x8x128xf32>,
    %c0_645 = arith.constant 0 : index
    %c43 = arith.constant 43 : index
    %c0_646 = arith.constant 0 : index
    %c0_647 = arith.constant 0 : index
    %c0_648 = arith.constant 0 : index
    %762 = vector.load %arg1[%c0_645, %c43, %c0_646, %c0_647, %c0_648] : memref<1x64x1x8x128xf32, #tpu.memory_space<vmem>>, vector<1x1x1x8x128xf32>
    %763 = vector.shape_cast %762 : vector<1x1x1x8x128xf32> to vector<8x128xf32>
    %cst_649 = arith.constant 1.000000e+00 : f32
    %764 = vector.broadcast %cst_649 : f32 to vector<8x128xf32>
    %765 = arith.subf %763, %764 : vector<8x128xf32>
    %cst_650 = arith.constant 2.000000e+01 : f32
    %766 = vector.broadcast %cst_650 : f32 to vector<8x128xf32>
    %767 = arith.mulf %765, %766 : vector<8x128xf32>
    %768 = math.exp %767 : vector<8x128xf32>
    %c43_651 = arith.constant 43 : index
    %c0_652 = arith.constant 0 : index
    %c0_653 = arith.constant 0 : index
    %769 = vector.load %arg5[%c43_651, %c0_652, %c0_653] : memref<64x8x128xf32, #tpu.memory_space<vmem>>, vector<1x8x128xf32>
    %770 = vector.shape_cast %769 : vector<1x8x128xf32> to vector<8x128xf32>
    %771 = vector.shape_cast %768 : vector<8x128xf32> to vector<1x8x128xf32>
    tpu.vector_store %arg5[%c43_651, %c0_652, %c0_653], %771 {strides = array<i32>} : memref<64x8x128xf32, #tpu.memory_space<vmem>>, vector<1x8x128xf32>,
    %772 = arith.mulf %768, %763 : vector<8x128xf32>
    %c43_654 = arith.constant 43 : index
    %c0_655 = arith.constant 0 : index
    %c0_656 = arith.constant 0 : index
    %773 = vector.load %arg6[%c43_654, %c0_655, %c0_656] : memref<64x8x128xf32, #tpu.memory_space<vmem>>, vector<1x8x128xf32>
    %774 = vector.shape_cast %773 : vector<1x8x128xf32> to vector<8x128xf32>
    %775 = vector.shape_cast %772 : vector<8x128xf32> to vector<1x8x128xf32>
    tpu.vector_store %arg6[%c43_654, %c0_655, %c0_656], %775 {strides = array<i32>} : memref<64x8x128xf32, #tpu.memory_space<vmem>>, vector<1x8x128xf32>,
    %c0_657 = arith.constant 0 : index
    %c44 = arith.constant 44 : index
    %c0_658 = arith.constant 0 : index
    %c0_659 = arith.constant 0 : index
    %c0_660 = arith.constant 0 : index
    %776 = vector.load %arg1[%c0_657, %c44, %c0_658, %c0_659, %c0_660] : memref<1x64x1x8x128xf32, #tpu.memory_space<vmem>>, vector<1x1x1x8x128xf32>
    %777 = vector.shape_cast %776 : vector<1x1x1x8x128xf32> to vector<8x128xf32>
    %cst_661 = arith.constant 1.000000e+00 : f32
    %778 = vector.broadcast %cst_661 : f32 to vector<8x128xf32>
    %779 = arith.subf %777, %778 : vector<8x128xf32>
    %cst_662 = arith.constant 2.000000e+01 : f32
    %780 = vector.broadcast %cst_662 : f32 to vector<8x128xf32>
    %781 = arith.mulf %779, %780 : vector<8x128xf32>
    %782 = math.exp %781 : vector<8x128xf32>
    %c44_663 = arith.constant 44 : index
    %c0_664 = arith.constant 0 : index
    %c0_665 = arith.constant 0 : index
    %783 = vector.load %arg5[%c44_663, %c0_664, %c0_665] : memref<64x8x128xf32, #tpu.memory_space<vmem>>, vector<1x8x128xf32>
    %784 = vector.shape_cast %783 : vector<1x8x128xf32> to vector<8x128xf32>
    %785 = vector.shape_cast %782 : vector<8x128xf32> to vector<1x8x128xf32>
    tpu.vector_store %arg5[%c44_663, %c0_664, %c0_665], %785 {strides = array<i32>} : memref<64x8x128xf32, #tpu.memory_space<vmem>>, vector<1x8x128xf32>,
    %786 = arith.mulf %782, %777 : vector<8x128xf32>
    %c44_666 = arith.constant 44 : index
    %c0_667 = arith.constant 0 : index
    %c0_668 = arith.constant 0 : index
    %787 = vector.load %arg6[%c44_666, %c0_667, %c0_668] : memref<64x8x128xf32, #tpu.memory_space<vmem>>, vector<1x8x128xf32>
    %788 = vector.shape_cast %787 : vector<1x8x128xf32> to vector<8x128xf32>
    %789 = vector.shape_cast %786 : vector<8x128xf32> to vector<1x8x128xf32>
    tpu.vector_store %arg6[%c44_666, %c0_667, %c0_668], %789 {strides = array<i32>} : memref<64x8x128xf32, #tpu.memory_space<vmem>>, vector<1x8x128xf32>,
    %c0_669 = arith.constant 0 : index
    %c45 = arith.constant 45 : index
    %c0_670 = arith.constant 0 : index
    %c0_671 = arith.constant 0 : index
    %c0_672 = arith.constant 0 : index
    %790 = vector.load %arg1[%c0_669, %c45, %c0_670, %c0_671, %c0_672] : memref<1x64x1x8x128xf32, #tpu.memory_space<vmem>>, vector<1x1x1x8x128xf32>
    %791 = vector.shape_cast %790 : vector<1x1x1x8x128xf32> to vector<8x128xf32>
    %cst_673 = arith.constant 1.000000e+00 : f32
    %792 = vector.broadcast %cst_673 : f32 to vector<8x128xf32>
    %793 = arith.subf %791, %792 : vector<8x128xf32>
    %cst_674 = arith.constant 2.000000e+01 : f32
    %794 = vector.broadcast %cst_674 : f32 to vector<8x128xf32>
    %795 = arith.mulf %793, %794 : vector<8x128xf32>
    %796 = math.exp %795 : vector<8x128xf32>
    %c45_675 = arith.constant 45 : index
    %c0_676 = arith.constant 0 : index
    %c0_677 = arith.constant 0 : index
    %797 = vector.load %arg5[%c45_675, %c0_676, %c0_677] : memref<64x8x128xf32, #tpu.memory_space<vmem>>, vector<1x8x128xf32>
    %798 = vector.shape_cast %797 : vector<1x8x128xf32> to vector<8x128xf32>
    %799 = vector.shape_cast %796 : vector<8x128xf32> to vector<1x8x128xf32>
    tpu.vector_store %arg5[%c45_675, %c0_676, %c0_677], %799 {strides = array<i32>} : memref<64x8x128xf32, #tpu.memory_space<vmem>>, vector<1x8x128xf32>,
    %800 = arith.mulf %796, %791 : vector<8x128xf32>
    %c45_678 = arith.constant 45 : index
    %c0_679 = arith.constant 0 : index
    %c0_680 = arith.constant 0 : index
    %801 = vector.load %arg6[%c45_678, %c0_679, %c0_680] : memref<64x8x128xf32, #tpu.memory_space<vmem>>, vector<1x8x128xf32>
    %802 = vector.shape_cast %801 : vector<1x8x128xf32> to vector<8x128xf32>
    %803 = vector.shape_cast %800 : vector<8x128xf32> to vector<1x8x128xf32>
    tpu.vector_store %arg6[%c45_678, %c0_679, %c0_680], %803 {strides = array<i32>} : memref<64x8x128xf32, #tpu.memory_space<vmem>>, vector<1x8x128xf32>,
    %c0_681 = arith.constant 0 : index
    %c46 = arith.constant 46 : index
    %c0_682 = arith.constant 0 : index
    %c0_683 = arith.constant 0 : index
    %c0_684 = arith.constant 0 : index
    %804 = vector.load %arg1[%c0_681, %c46, %c0_682, %c0_683, %c0_684] : memref<1x64x1x8x128xf32, #tpu.memory_space<vmem>>, vector<1x1x1x8x128xf32>
    %805 = vector.shape_cast %804 : vector<1x1x1x8x128xf32> to vector<8x128xf32>
    %cst_685 = arith.constant 1.000000e+00 : f32
    %806 = vector.broadcast %cst_685 : f32 to vector<8x128xf32>
    %807 = arith.subf %805, %806 : vector<8x128xf32>
    %cst_686 = arith.constant 2.000000e+01 : f32
    %808 = vector.broadcast %cst_686 : f32 to vector<8x128xf32>
    %809 = arith.mulf %807, %808 : vector<8x128xf32>
    %810 = math.exp %809 : vector<8x128xf32>
    %c46_687 = arith.constant 46 : index
    %c0_688 = arith.constant 0 : index
    %c0_689 = arith.constant 0 : index
    %811 = vector.load %arg5[%c46_687, %c0_688, %c0_689] : memref<64x8x128xf32, #tpu.memory_space<vmem>>, vector<1x8x128xf32>
    %812 = vector.shape_cast %811 : vector<1x8x128xf32> to vector<8x128xf32>
    %813 = vector.shape_cast %810 : vector<8x128xf32> to vector<1x8x128xf32>
    tpu.vector_store %arg5[%c46_687, %c0_688, %c0_689], %813 {strides = array<i32>} : memref<64x8x128xf32, #tpu.memory_space<vmem>>, vector<1x8x128xf32>,
    %814 = arith.mulf %810, %805 : vector<8x128xf32>
    %c46_690 = arith.constant 46 : index
    %c0_691 = arith.constant 0 : index
    %c0_692 = arith.constant 0 : index
    %815 = vector.load %arg6[%c46_690, %c0_691, %c0_692] : memref<64x8x128xf32, #tpu.memory_space<vmem>>, vector<1x8x128xf32>
    %816 = vector.shape_cast %815 : vector<1x8x128xf32> to vector<8x128xf32>
    %817 = vector.shape_cast %814 : vector<8x128xf32> to vector<1x8x128xf32>
    tpu.vector_store %arg6[%c46_690, %c0_691, %c0_692], %817 {strides = array<i32>} : memref<64x8x128xf32, #tpu.memory_space<vmem>>, vector<1x8x128xf32>,
    %c0_693 = arith.constant 0 : index
    %c47 = arith.constant 47 : index
    %c0_694 = arith.constant 0 : index
    %c0_695 = arith.constant 0 : index
    %c0_696 = arith.constant 0 : index
    %818 = vector.load %arg1[%c0_693, %c47, %c0_694, %c0_695, %c0_696] : memref<1x64x1x8x128xf32, #tpu.memory_space<vmem>>, vector<1x1x1x8x128xf32>
    %819 = vector.shape_cast %818 : vector<1x1x1x8x128xf32> to vector<8x128xf32>
    %cst_697 = arith.constant 1.000000e+00 : f32
    %820 = vector.broadcast %cst_697 : f32 to vector<8x128xf32>
    %821 = arith.subf %819, %820 : vector<8x128xf32>
    %cst_698 = arith.constant 2.000000e+01 : f32
    %822 = vector.broadcast %cst_698 : f32 to vector<8x128xf32>
    %823 = arith.mulf %821, %822 : vector<8x128xf32>
    %824 = math.exp %823 : vector<8x128xf32>
    %c47_699 = arith.constant 47 : index
    %c0_700 = arith.constant 0 : index
    %c0_701 = arith.constant 0 : index
    %825 = vector.load %arg5[%c47_699, %c0_700, %c0_701] : memref<64x8x128xf32, #tpu.memory_space<vmem>>, vector<1x8x128xf32>
    %826 = vector.shape_cast %825 : vector<1x8x128xf32> to vector<8x128xf32>
    %827 = vector.shape_cast %824 : vector<8x128xf32> to vector<1x8x128xf32>
    tpu.vector_store %arg5[%c47_699, %c0_700, %c0_701], %827 {strides = array<i32>} : memref<64x8x128xf32, #tpu.memory_space<vmem>>, vector<1x8x128xf32>,
    %828 = arith.mulf %824, %819 : vector<8x128xf32>
    %c47_702 = arith.constant 47 : index
    %c0_703 = arith.constant 0 : index
    %c0_704 = arith.constant 0 : index
    %829 = vector.load %arg6[%c47_702, %c0_703, %c0_704] : memref<64x8x128xf32, #tpu.memory_space<vmem>>, vector<1x8x128xf32>
    %830 = vector.shape_cast %829 : vector<1x8x128xf32> to vector<8x128xf32>
    %831 = vector.shape_cast %828 : vector<8x128xf32> to vector<1x8x128xf32>
    tpu.vector_store %arg6[%c47_702, %c0_703, %c0_704], %831 {strides = array<i32>} : memref<64x8x128xf32, #tpu.memory_space<vmem>>, vector<1x8x128xf32>,
    %c0_705 = arith.constant 0 : index
    %c48 = arith.constant 48 : index
    %c0_706 = arith.constant 0 : index
    %c0_707 = arith.constant 0 : index
    %c0_708 = arith.constant 0 : index
    %832 = vector.load %arg1[%c0_705, %c48, %c0_706, %c0_707, %c0_708] : memref<1x64x1x8x128xf32, #tpu.memory_space<vmem>>, vector<1x1x1x8x128xf32>
    %833 = vector.shape_cast %832 : vector<1x1x1x8x128xf32> to vector<8x128xf32>
    %cst_709 = arith.constant 1.000000e+00 : f32
    %834 = vector.broadcast %cst_709 : f32 to vector<8x128xf32>
    %835 = arith.subf %833, %834 : vector<8x128xf32>
    %cst_710 = arith.constant 2.000000e+01 : f32
    %836 = vector.broadcast %cst_710 : f32 to vector<8x128xf32>
    %837 = arith.mulf %835, %836 : vector<8x128xf32>
    %838 = math.exp %837 : vector<8x128xf32>
    %c48_711 = arith.constant 48 : index
    %c0_712 = arith.constant 0 : index
    %c0_713 = arith.constant 0 : index
    %839 = vector.load %arg5[%c48_711, %c0_712, %c0_713] : memref<64x8x128xf32, #tpu.memory_space<vmem>>, vector<1x8x128xf32>
    %840 = vector.shape_cast %839 : vector<1x8x128xf32> to vector<8x128xf32>
    %841 = vector.shape_cast %838 : vector<8x128xf32> to vector<1x8x128xf32>
    tpu.vector_store %arg5[%c48_711, %c0_712, %c0_713], %841 {strides = array<i32>} : memref<64x8x128xf32, #tpu.memory_space<vmem>>, vector<1x8x128xf32>,
    %842 = arith.mulf %838, %833 : vector<8x128xf32>
    %c48_714 = arith.constant 48 : index
    %c0_715 = arith.constant 0 : index
    %c0_716 = arith.constant 0 : index
    %843 = vector.load %arg6[%c48_714, %c0_715, %c0_716] : memref<64x8x128xf32, #tpu.memory_space<vmem>>, vector<1x8x128xf32>
    %844 = vector.shape_cast %843 : vector<1x8x128xf32> to vector<8x128xf32>
    %845 = vector.shape_cast %842 : vector<8x128xf32> to vector<1x8x128xf32>
    tpu.vector_store %arg6[%c48_714, %c0_715, %c0_716], %845 {strides = array<i32>} : memref<64x8x128xf32, #tpu.memory_space<vmem>>, vector<1x8x128xf32>,
    %c0_717 = arith.constant 0 : index
    %c49 = arith.constant 49 : index
    %c0_718 = arith.constant 0 : index
    %c0_719 = arith.constant 0 : index
    %c0_720 = arith.constant 0 : index
    %846 = vector.load %arg1[%c0_717, %c49, %c0_718, %c0_719, %c0_720] : memref<1x64x1x8x128xf32, #tpu.memory_space<vmem>>, vector<1x1x1x8x128xf32>
    %847 = vector.shape_cast %846 : vector<1x1x1x8x128xf32> to vector<8x128xf32>
    %cst_721 = arith.constant 1.000000e+00 : f32
    %848 = vector.broadcast %cst_721 : f32 to vector<8x128xf32>
    %849 = arith.subf %847, %848 : vector<8x128xf32>
    %cst_722 = arith.constant 2.000000e+01 : f32
    %850 = vector.broadcast %cst_722 : f32 to vector<8x128xf32>
    %851 = arith.mulf %849, %850 : vector<8x128xf32>
    %852 = math.exp %851 : vector<8x128xf32>
    %c49_723 = arith.constant 49 : index
    %c0_724 = arith.constant 0 : index
    %c0_725 = arith.constant 0 : index
    %853 = vector.load %arg5[%c49_723, %c0_724, %c0_725] : memref<64x8x128xf32, #tpu.memory_space<vmem>>, vector<1x8x128xf32>
    %854 = vector.shape_cast %853 : vector<1x8x128xf32> to vector<8x128xf32>
    %855 = vector.shape_cast %852 : vector<8x128xf32> to vector<1x8x128xf32>
    tpu.vector_store %arg5[%c49_723, %c0_724, %c0_725], %855 {strides = array<i32>} : memref<64x8x128xf32, #tpu.memory_space<vmem>>, vector<1x8x128xf32>,
    %856 = arith.mulf %852, %847 : vector<8x128xf32>
    %c49_726 = arith.constant 49 : index
    %c0_727 = arith.constant 0 : index
    %c0_728 = arith.constant 0 : index
    %857 = vector.load %arg6[%c49_726, %c0_727, %c0_728] : memref<64x8x128xf32, #tpu.memory_space<vmem>>, vector<1x8x128xf32>
    %858 = vector.shape_cast %857 : vector<1x8x128xf32> to vector<8x128xf32>
    %859 = vector.shape_cast %856 : vector<8x128xf32> to vector<1x8x128xf32>
    tpu.vector_store %arg6[%c49_726, %c0_727, %c0_728], %859 {strides = array<i32>} : memref<64x8x128xf32, #tpu.memory_space<vmem>>, vector<1x8x128xf32>,
    %c0_729 = arith.constant 0 : index
    %c50 = arith.constant 50 : index
    %c0_730 = arith.constant 0 : index
    %c0_731 = arith.constant 0 : index
    %c0_732 = arith.constant 0 : index
    %860 = vector.load %arg1[%c0_729, %c50, %c0_730, %c0_731, %c0_732] : memref<1x64x1x8x128xf32, #tpu.memory_space<vmem>>, vector<1x1x1x8x128xf32>
    %861 = vector.shape_cast %860 : vector<1x1x1x8x128xf32> to vector<8x128xf32>
    %cst_733 = arith.constant 1.000000e+00 : f32
    %862 = vector.broadcast %cst_733 : f32 to vector<8x128xf32>
    %863 = arith.subf %861, %862 : vector<8x128xf32>
    %cst_734 = arith.constant 2.000000e+01 : f32
    %864 = vector.broadcast %cst_734 : f32 to vector<8x128xf32>
    %865 = arith.mulf %863, %864 : vector<8x128xf32>
    %866 = math.exp %865 : vector<8x128xf32>
    %c50_735 = arith.constant 50 : index
    %c0_736 = arith.constant 0 : index
    %c0_737 = arith.constant 0 : index
    %867 = vector.load %arg5[%c50_735, %c0_736, %c0_737] : memref<64x8x128xf32, #tpu.memory_space<vmem>>, vector<1x8x128xf32>
    %868 = vector.shape_cast %867 : vector<1x8x128xf32> to vector<8x128xf32>
    %869 = vector.shape_cast %866 : vector<8x128xf32> to vector<1x8x128xf32>
    tpu.vector_store %arg5[%c50_735, %c0_736, %c0_737], %869 {strides = array<i32>} : memref<64x8x128xf32, #tpu.memory_space<vmem>>, vector<1x8x128xf32>,
    %870 = arith.mulf %866, %861 : vector<8x128xf32>
    %c50_738 = arith.constant 50 : index
    %c0_739 = arith.constant 0 : index
    %c0_740 = arith.constant 0 : index
    %871 = vector.load %arg6[%c50_738, %c0_739, %c0_740] : memref<64x8x128xf32, #tpu.memory_space<vmem>>, vector<1x8x128xf32>
    %872 = vector.shape_cast %871 : vector<1x8x128xf32> to vector<8x128xf32>
    %873 = vector.shape_cast %870 : vector<8x128xf32> to vector<1x8x128xf32>
    tpu.vector_store %arg6[%c50_738, %c0_739, %c0_740], %873 {strides = array<i32>} : memref<64x8x128xf32, #tpu.memory_space<vmem>>, vector<1x8x128xf32>,
    %c0_741 = arith.constant 0 : index
    %c51 = arith.constant 51 : index
    %c0_742 = arith.constant 0 : index
    %c0_743 = arith.constant 0 : index
    %c0_744 = arith.constant 0 : index
    %874 = vector.load %arg1[%c0_741, %c51, %c0_742, %c0_743, %c0_744] : memref<1x64x1x8x128xf32, #tpu.memory_space<vmem>>, vector<1x1x1x8x128xf32>
    %875 = vector.shape_cast %874 : vector<1x1x1x8x128xf32> to vector<8x128xf32>
    %cst_745 = arith.constant 1.000000e+00 : f32
    %876 = vector.broadcast %cst_745 : f32 to vector<8x128xf32>
    %877 = arith.subf %875, %876 : vector<8x128xf32>
    %cst_746 = arith.constant 2.000000e+01 : f32
    %878 = vector.broadcast %cst_746 : f32 to vector<8x128xf32>
    %879 = arith.mulf %877, %878 : vector<8x128xf32>
    %880 = math.exp %879 : vector<8x128xf32>
    %c51_747 = arith.constant 51 : index
    %c0_748 = arith.constant 0 : index
    %c0_749 = arith.constant 0 : index
    %881 = vector.load %arg5[%c51_747, %c0_748, %c0_749] : memref<64x8x128xf32, #tpu.memory_space<vmem>>, vector<1x8x128xf32>
    %882 = vector.shape_cast %881 : vector<1x8x128xf32> to vector<8x128xf32>
    %883 = vector.shape_cast %880 : vector<8x128xf32> to vector<1x8x128xf32>
    tpu.vector_store %arg5[%c51_747, %c0_748, %c0_749], %883 {strides = array<i32>} : memref<64x8x128xf32, #tpu.memory_space<vmem>>, vector<1x8x128xf32>,
    %884 = arith.mulf %880, %875 : vector<8x128xf32>
    %c51_750 = arith.constant 51 : index
    %c0_751 = arith.constant 0 : index
    %c0_752 = arith.constant 0 : index
    %885 = vector.load %arg6[%c51_750, %c0_751, %c0_752] : memref<64x8x128xf32, #tpu.memory_space<vmem>>, vector<1x8x128xf32>
    %886 = vector.shape_cast %885 : vector<1x8x128xf32> to vector<8x128xf32>
    %887 = vector.shape_cast %884 : vector<8x128xf32> to vector<1x8x128xf32>
    tpu.vector_store %arg6[%c51_750, %c0_751, %c0_752], %887 {strides = array<i32>} : memref<64x8x128xf32, #tpu.memory_space<vmem>>, vector<1x8x128xf32>,
    %c0_753 = arith.constant 0 : index
    %c52 = arith.constant 52 : index
    %c0_754 = arith.constant 0 : index
    %c0_755 = arith.constant 0 : index
    %c0_756 = arith.constant 0 : index
    %888 = vector.load %arg1[%c0_753, %c52, %c0_754, %c0_755, %c0_756] : memref<1x64x1x8x128xf32, #tpu.memory_space<vmem>>, vector<1x1x1x8x128xf32>
    %889 = vector.shape_cast %888 : vector<1x1x1x8x128xf32> to vector<8x128xf32>
    %cst_757 = arith.constant 1.000000e+00 : f32
    %890 = vector.broadcast %cst_757 : f32 to vector<8x128xf32>
    %891 = arith.subf %889, %890 : vector<8x128xf32>
    %cst_758 = arith.constant 2.000000e+01 : f32
    %892 = vector.broadcast %cst_758 : f32 to vector<8x128xf32>
    %893 = arith.mulf %891, %892 : vector<8x128xf32>
    %894 = math.exp %893 : vector<8x128xf32>
    %c52_759 = arith.constant 52 : index
    %c0_760 = arith.constant 0 : index
    %c0_761 = arith.constant 0 : index
    %895 = vector.load %arg5[%c52_759, %c0_760, %c0_761] : memref<64x8x128xf32, #tpu.memory_space<vmem>>, vector<1x8x128xf32>
    %896 = vector.shape_cast %895 : vector<1x8x128xf32> to vector<8x128xf32>
    %897 = vector.shape_cast %894 : vector<8x128xf32> to vector<1x8x128xf32>
    tpu.vector_store %arg5[%c52_759, %c0_760, %c0_761], %897 {strides = array<i32>} : memref<64x8x128xf32, #tpu.memory_space<vmem>>, vector<1x8x128xf32>,
    %898 = arith.mulf %894, %889 : vector<8x128xf32>
    %c52_762 = arith.constant 52 : index
    %c0_763 = arith.constant 0 : index
    %c0_764 = arith.constant 0 : index
    %899 = vector.load %arg6[%c52_762, %c0_763, %c0_764] : memref<64x8x128xf32, #tpu.memory_space<vmem>>, vector<1x8x128xf32>
    %900 = vector.shape_cast %899 : vector<1x8x128xf32> to vector<8x128xf32>
    %901 = vector.shape_cast %898 : vector<8x128xf32> to vector<1x8x128xf32>
    tpu.vector_store %arg6[%c52_762, %c0_763, %c0_764], %901 {strides = array<i32>} : memref<64x8x128xf32, #tpu.memory_space<vmem>>, vector<1x8x128xf32>,
    %c0_765 = arith.constant 0 : index
    %c53 = arith.constant 53 : index
    %c0_766 = arith.constant 0 : index
    %c0_767 = arith.constant 0 : index
    %c0_768 = arith.constant 0 : index
    %902 = vector.load %arg1[%c0_765, %c53, %c0_766, %c0_767, %c0_768] : memref<1x64x1x8x128xf32, #tpu.memory_space<vmem>>, vector<1x1x1x8x128xf32>
    %903 = vector.shape_cast %902 : vector<1x1x1x8x128xf32> to vector<8x128xf32>
    %cst_769 = arith.constant 1.000000e+00 : f32
    %904 = vector.broadcast %cst_769 : f32 to vector<8x128xf32>
    %905 = arith.subf %903, %904 : vector<8x128xf32>
    %cst_770 = arith.constant 2.000000e+01 : f32
    %906 = vector.broadcast %cst_770 : f32 to vector<8x128xf32>
    %907 = arith.mulf %905, %906 : vector<8x128xf32>
    %908 = math.exp %907 : vector<8x128xf32>
    %c53_771 = arith.constant 53 : index
    %c0_772 = arith.constant 0 : index
    %c0_773 = arith.constant 0 : index
    %909 = vector.load %arg5[%c53_771, %c0_772, %c0_773] : memref<64x8x128xf32, #tpu.memory_space<vmem>>, vector<1x8x128xf32>
    %910 = vector.shape_cast %909 : vector<1x8x128xf32> to vector<8x128xf32>
    %911 = vector.shape_cast %908 : vector<8x128xf32> to vector<1x8x128xf32>
    tpu.vector_store %arg5[%c53_771, %c0_772, %c0_773], %911 {strides = array<i32>} : memref<64x8x128xf32, #tpu.memory_space<vmem>>, vector<1x8x128xf32>,
    %912 = arith.mulf %908, %903 : vector<8x128xf32>
    %c53_774 = arith.constant 53 : index
    %c0_775 = arith.constant 0 : index
    %c0_776 = arith.constant 0 : index
    %913 = vector.load %arg6[%c53_774, %c0_775, %c0_776] : memref<64x8x128xf32, #tpu.memory_space<vmem>>, vector<1x8x128xf32>
    %914 = vector.shape_cast %913 : vector<1x8x128xf32> to vector<8x128xf32>
    %915 = vector.shape_cast %912 : vector<8x128xf32> to vector<1x8x128xf32>
    tpu.vector_store %arg6[%c53_774, %c0_775, %c0_776], %915 {strides = array<i32>} : memref<64x8x128xf32, #tpu.memory_space<vmem>>, vector<1x8x128xf32>,
    %c0_777 = arith.constant 0 : index
    %c54 = arith.constant 54 : index
    %c0_778 = arith.constant 0 : index
    %c0_779 = arith.constant 0 : index
    %c0_780 = arith.constant 0 : index
    %916 = vector.load %arg1[%c0_777, %c54, %c0_778, %c0_779, %c0_780] : memref<1x64x1x8x128xf32, #tpu.memory_space<vmem>>, vector<1x1x1x8x128xf32>
    %917 = vector.shape_cast %916 : vector<1x1x1x8x128xf32> to vector<8x128xf32>
    %cst_781 = arith.constant 1.000000e+00 : f32
    %918 = vector.broadcast %cst_781 : f32 to vector<8x128xf32>
    %919 = arith.subf %917, %918 : vector<8x128xf32>
    %cst_782 = arith.constant 2.000000e+01 : f32
    %920 = vector.broadcast %cst_782 : f32 to vector<8x128xf32>
    %921 = arith.mulf %919, %920 : vector<8x128xf32>
    %922 = math.exp %921 : vector<8x128xf32>
    %c54_783 = arith.constant 54 : index
    %c0_784 = arith.constant 0 : index
    %c0_785 = arith.constant 0 : index
    %923 = vector.load %arg5[%c54_783, %c0_784, %c0_785] : memref<64x8x128xf32, #tpu.memory_space<vmem>>, vector<1x8x128xf32>
    %924 = vector.shape_cast %923 : vector<1x8x128xf32> to vector<8x128xf32>
    %925 = vector.shape_cast %922 : vector<8x128xf32> to vector<1x8x128xf32>
    tpu.vector_store %arg5[%c54_783, %c0_784, %c0_785], %925 {strides = array<i32>} : memref<64x8x128xf32, #tpu.memory_space<vmem>>, vector<1x8x128xf32>,
    %926 = arith.mulf %922, %917 : vector<8x128xf32>
    %c54_786 = arith.constant 54 : index
    %c0_787 = arith.constant 0 : index
    %c0_788 = arith.constant 0 : index
    %927 = vector.load %arg6[%c54_786, %c0_787, %c0_788] : memref<64x8x128xf32, #tpu.memory_space<vmem>>, vector<1x8x128xf32>
    %928 = vector.shape_cast %927 : vector<1x8x128xf32> to vector<8x128xf32>
    %929 = vector.shape_cast %926 : vector<8x128xf32> to vector<1x8x128xf32>
    tpu.vector_store %arg6[%c54_786, %c0_787, %c0_788], %929 {strides = array<i32>} : memref<64x8x128xf32, #tpu.memory_space<vmem>>, vector<1x8x128xf32>,
    %c0_789 = arith.constant 0 : index
    %c55 = arith.constant 55 : index
    %c0_790 = arith.constant 0 : index
    %c0_791 = arith.constant 0 : index
    %c0_792 = arith.constant 0 : index
    %930 = vector.load %arg1[%c0_789, %c55, %c0_790, %c0_791, %c0_792] : memref<1x64x1x8x128xf32, #tpu.memory_space<vmem>>, vector<1x1x1x8x128xf32>
    %931 = vector.shape_cast %930 : vector<1x1x1x8x128xf32> to vector<8x128xf32>
    %cst_793 = arith.constant 1.000000e+00 : f32
    %932 = vector.broadcast %cst_793 : f32 to vector<8x128xf32>
    %933 = arith.subf %931, %932 : vector<8x128xf32>
    %cst_794 = arith.constant 2.000000e+01 : f32
    %934 = vector.broadcast %cst_794 : f32 to vector<8x128xf32>
    %935 = arith.mulf %933, %934 : vector<8x128xf32>
    %936 = math.exp %935 : vector<8x128xf32>
    %c55_795 = arith.constant 55 : index
    %c0_796 = arith.constant 0 : index
    %c0_797 = arith.constant 0 : index
    %937 = vector.load %arg5[%c55_795, %c0_796, %c0_797] : memref<64x8x128xf32, #tpu.memory_space<vmem>>, vector<1x8x128xf32>
    %938 = vector.shape_cast %937 : vector<1x8x128xf32> to vector<8x128xf32>
    %939 = vector.shape_cast %936 : vector<8x128xf32> to vector<1x8x128xf32>
    tpu.vector_store %arg5[%c55_795, %c0_796, %c0_797], %939 {strides = array<i32>} : memref<64x8x128xf32, #tpu.memory_space<vmem>>, vector<1x8x128xf32>,
    %940 = arith.mulf %936, %931 : vector<8x128xf32>
    %c55_798 = arith.constant 55 : index
    %c0_799 = arith.constant 0 : index
    %c0_800 = arith.constant 0 : index
    %941 = vector.load %arg6[%c55_798, %c0_799, %c0_800] : memref<64x8x128xf32, #tpu.memory_space<vmem>>, vector<1x8x128xf32>
    %942 = vector.shape_cast %941 : vector<1x8x128xf32> to vector<8x128xf32>
    %943 = vector.shape_cast %940 : vector<8x128xf32> to vector<1x8x128xf32>
    tpu.vector_store %arg6[%c55_798, %c0_799, %c0_800], %943 {strides = array<i32>} : memref<64x8x128xf32, #tpu.memory_space<vmem>>, vector<1x8x128xf32>,
    %c0_801 = arith.constant 0 : index
    %c56 = arith.constant 56 : index
    %c0_802 = arith.constant 0 : index
    %c0_803 = arith.constant 0 : index
    %c0_804 = arith.constant 0 : index
    %944 = vector.load %arg1[%c0_801, %c56, %c0_802, %c0_803, %c0_804] : memref<1x64x1x8x128xf32, #tpu.memory_space<vmem>>, vector<1x1x1x8x128xf32>
    %945 = vector.shape_cast %944 : vector<1x1x1x8x128xf32> to vector<8x128xf32>
    %cst_805 = arith.constant 1.000000e+00 : f32
    %946 = vector.broadcast %cst_805 : f32 to vector<8x128xf32>
    %947 = arith.subf %945, %946 : vector<8x128xf32>
    %cst_806 = arith.constant 2.000000e+01 : f32
    %948 = vector.broadcast %cst_806 : f32 to vector<8x128xf32>
    %949 = arith.mulf %947, %948 : vector<8x128xf32>
    %950 = math.exp %949 : vector<8x128xf32>
    %c56_807 = arith.constant 56 : index
    %c0_808 = arith.constant 0 : index
    %c0_809 = arith.constant 0 : index
    %951 = vector.load %arg5[%c56_807, %c0_808, %c0_809] : memref<64x8x128xf32, #tpu.memory_space<vmem>>, vector<1x8x128xf32>
    %952 = vector.shape_cast %951 : vector<1x8x128xf32> to vector<8x128xf32>
    %953 = vector.shape_cast %950 : vector<8x128xf32> to vector<1x8x128xf32>
    tpu.vector_store %arg5[%c56_807, %c0_808, %c0_809], %953 {strides = array<i32>} : memref<64x8x128xf32, #tpu.memory_space<vmem>>, vector<1x8x128xf32>,
    %954 = arith.mulf %950, %945 : vector<8x128xf32>
    %c56_810 = arith.constant 56 : index
    %c0_811 = arith.constant 0 : index
    %c0_812 = arith.constant 0 : index
    %955 = vector.load %arg6[%c56_810, %c0_811, %c0_812] : memref<64x8x128xf32, #tpu.memory_space<vmem>>, vector<1x8x128xf32>
    %956 = vector.shape_cast %955 : vector<1x8x128xf32> to vector<8x128xf32>
    %957 = vector.shape_cast %954 : vector<8x128xf32> to vector<1x8x128xf32>
    tpu.vector_store %arg6[%c56_810, %c0_811, %c0_812], %957 {strides = array<i32>} : memref<64x8x128xf32, #tpu.memory_space<vmem>>, vector<1x8x128xf32>,
    %c0_813 = arith.constant 0 : index
    %c57 = arith.constant 57 : index
    %c0_814 = arith.constant 0 : index
    %c0_815 = arith.constant 0 : index
    %c0_816 = arith.constant 0 : index
    %958 = vector.load %arg1[%c0_813, %c57, %c0_814, %c0_815, %c0_816] : memref<1x64x1x8x128xf32, #tpu.memory_space<vmem>>, vector<1x1x1x8x128xf32>
    %959 = vector.shape_cast %958 : vector<1x1x1x8x128xf32> to vector<8x128xf32>
    %cst_817 = arith.constant 1.000000e+00 : f32
    %960 = vector.broadcast %cst_817 : f32 to vector<8x128xf32>
    %961 = arith.subf %959, %960 : vector<8x128xf32>
    %cst_818 = arith.constant 2.000000e+01 : f32
    %962 = vector.broadcast %cst_818 : f32 to vector<8x128xf32>
    %963 = arith.mulf %961, %962 : vector<8x128xf32>
    %964 = math.exp %963 : vector<8x128xf32>
    %c57_819 = arith.constant 57 : index
    %c0_820 = arith.constant 0 : index
    %c0_821 = arith.constant 0 : index
    %965 = vector.load %arg5[%c57_819, %c0_820, %c0_821] : memref<64x8x128xf32, #tpu.memory_space<vmem>>, vector<1x8x128xf32>
    %966 = vector.shape_cast %965 : vector<1x8x128xf32> to vector<8x128xf32>
    %967 = vector.shape_cast %964 : vector<8x128xf32> to vector<1x8x128xf32>
    tpu.vector_store %arg5[%c57_819, %c0_820, %c0_821], %967 {strides = array<i32>} : memref<64x8x128xf32, #tpu.memory_space<vmem>>, vector<1x8x128xf32>,
    %968 = arith.mulf %964, %959 : vector<8x128xf32>
    %c57_822 = arith.constant 57 : index
    %c0_823 = arith.constant 0 : index
    %c0_824 = arith.constant 0 : index
    %969 = vector.load %arg6[%c57_822, %c0_823, %c0_824] : memref<64x8x128xf32, #tpu.memory_space<vmem>>, vector<1x8x128xf32>
    %970 = vector.shape_cast %969 : vector<1x8x128xf32> to vector<8x128xf32>
    %971 = vector.shape_cast %968 : vector<8x128xf32> to vector<1x8x128xf32>
    tpu.vector_store %arg6[%c57_822, %c0_823, %c0_824], %971 {strides = array<i32>} : memref<64x8x128xf32, #tpu.memory_space<vmem>>, vector<1x8x128xf32>,
    %c0_825 = arith.constant 0 : index
    %c58 = arith.constant 58 : index
    %c0_826 = arith.constant 0 : index
    %c0_827 = arith.constant 0 : index
    %c0_828 = arith.constant 0 : index
    %972 = vector.load %arg1[%c0_825, %c58, %c0_826, %c0_827, %c0_828] : memref<1x64x1x8x128xf32, #tpu.memory_space<vmem>>, vector<1x1x1x8x128xf32>
    %973 = vector.shape_cast %972 : vector<1x1x1x8x128xf32> to vector<8x128xf32>
    %cst_829 = arith.constant 1.000000e+00 : f32
    %974 = vector.broadcast %cst_829 : f32 to vector<8x128xf32>
    %975 = arith.subf %973, %974 : vector<8x128xf32>
    %cst_830 = arith.constant 2.000000e+01 : f32
    %976 = vector.broadcast %cst_830 : f32 to vector<8x128xf32>
    %977 = arith.mulf %975, %976 : vector<8x128xf32>
    %978 = math.exp %977 : vector<8x128xf32>
    %c58_831 = arith.constant 58 : index
    %c0_832 = arith.constant 0 : index
    %c0_833 = arith.constant 0 : index
    %979 = vector.load %arg5[%c58_831, %c0_832, %c0_833] : memref<64x8x128xf32, #tpu.memory_space<vmem>>, vector<1x8x128xf32>
    %980 = vector.shape_cast %979 : vector<1x8x128xf32> to vector<8x128xf32>
    %981 = vector.shape_cast %978 : vector<8x128xf32> to vector<1x8x128xf32>
    tpu.vector_store %arg5[%c58_831, %c0_832, %c0_833], %981 {strides = array<i32>} : memref<64x8x128xf32, #tpu.memory_space<vmem>>, vector<1x8x128xf32>,
    %982 = arith.mulf %978, %973 : vector<8x128xf32>
    %c58_834 = arith.constant 58 : index
    %c0_835 = arith.constant 0 : index
    %c0_836 = arith.constant 0 : index
    %983 = vector.load %arg6[%c58_834, %c0_835, %c0_836] : memref<64x8x128xf32, #tpu.memory_space<vmem>>, vector<1x8x128xf32>
    %984 = vector.shape_cast %983 : vector<1x8x128xf32> to vector<8x128xf32>
    %985 = vector.shape_cast %982 : vector<8x128xf32> to vector<1x8x128xf32>
    tpu.vector_store %arg6[%c58_834, %c0_835, %c0_836], %985 {strides = array<i32>} : memref<64x8x128xf32, #tpu.memory_space<vmem>>, vector<1x8x128xf32>,
    %c0_837 = arith.constant 0 : index
    %c59 = arith.constant 59 : index
    %c0_838 = arith.constant 0 : index
    %c0_839 = arith.constant 0 : index
    %c0_840 = arith.constant 0 : index
    %986 = vector.load %arg1[%c0_837, %c59, %c0_838, %c0_839, %c0_840] : memref<1x64x1x8x128xf32, #tpu.memory_space<vmem>>, vector<1x1x1x8x128xf32>
    %987 = vector.shape_cast %986 : vector<1x1x1x8x128xf32> to vector<8x128xf32>
    %cst_841 = arith.constant 1.000000e+00 : f32
    %988 = vector.broadcast %cst_841 : f32 to vector<8x128xf32>
    %989 = arith.subf %987, %988 : vector<8x128xf32>
    %cst_842 = arith.constant 2.000000e+01 : f32
    %990 = vector.broadcast %cst_842 : f32 to vector<8x128xf32>
    %991 = arith.mulf %989, %990 : vector<8x128xf32>
    %992 = math.exp %991 : vector<8x128xf32>
    %c59_843 = arith.constant 59 : index
    %c0_844 = arith.constant 0 : index
    %c0_845 = arith.constant 0 : index
    %993 = vector.load %arg5[%c59_843, %c0_844, %c0_845] : memref<64x8x128xf32, #tpu.memory_space<vmem>>, vector<1x8x128xf32>
    %994 = vector.shape_cast %993 : vector<1x8x128xf32> to vector<8x128xf32>
    %995 = vector.shape_cast %992 : vector<8x128xf32> to vector<1x8x128xf32>
    tpu.vector_store %arg5[%c59_843, %c0_844, %c0_845], %995 {strides = array<i32>} : memref<64x8x128xf32, #tpu.memory_space<vmem>>, vector<1x8x128xf32>,
    %996 = arith.mulf %992, %987 : vector<8x128xf32>
    %c59_846 = arith.constant 59 : index
    %c0_847 = arith.constant 0 : index
    %c0_848 = arith.constant 0 : index
    %997 = vector.load %arg6[%c59_846, %c0_847, %c0_848] : memref<64x8x128xf32, #tpu.memory_space<vmem>>, vector<1x8x128xf32>
    %998 = vector.shape_cast %997 : vector<1x8x128xf32> to vector<8x128xf32>
    %999 = vector.shape_cast %996 : vector<8x128xf32> to vector<1x8x128xf32>
    tpu.vector_store %arg6[%c59_846, %c0_847, %c0_848], %999 {strides = array<i32>} : memref<64x8x128xf32, #tpu.memory_space<vmem>>, vector<1x8x128xf32>,
    %c0_849 = arith.constant 0 : index
    %c60 = arith.constant 60 : index
    %c0_850 = arith.constant 0 : index
    %c0_851 = arith.constant 0 : index
    %c0_852 = arith.constant 0 : index
    %1000 = vector.load %arg1[%c0_849, %c60, %c0_850, %c0_851, %c0_852] : memref<1x64x1x8x128xf32, #tpu.memory_space<vmem>>, vector<1x1x1x8x128xf32>
    %1001 = vector.shape_cast %1000 : vector<1x1x1x8x128xf32> to vector<8x128xf32>
    %cst_853 = arith.constant 1.000000e+00 : f32
    %1002 = vector.broadcast %cst_853 : f32 to vector<8x128xf32>
    %1003 = arith.subf %1001, %1002 : vector<8x128xf32>
    %cst_854 = arith.constant 2.000000e+01 : f32
    %1004 = vector.broadcast %cst_854 : f32 to vector<8x128xf32>
    %1005 = arith.mulf %1003, %1004 : vector<8x128xf32>
    %1006 = math.exp %1005 : vector<8x128xf32>
    %c60_855 = arith.constant 60 : index
    %c0_856 = arith.constant 0 : index
    %c0_857 = arith.constant 0 : index
    %1007 = vector.load %arg5[%c60_855, %c0_856, %c0_857] : memref<64x8x128xf32, #tpu.memory_space<vmem>>, vector<1x8x128xf32>
    %1008 = vector.shape_cast %1007 : vector<1x8x128xf32> to vector<8x128xf32>
    %1009 = vector.shape_cast %1006 : vector<8x128xf32> to vector<1x8x128xf32>
    tpu.vector_store %arg5[%c60_855, %c0_856, %c0_857], %1009 {strides = array<i32>} : memref<64x8x128xf32, #tpu.memory_space<vmem>>, vector<1x8x128xf32>,
    %1010 = arith.mulf %1006, %1001 : vector<8x128xf32>
    %c60_858 = arith.constant 60 : index
    %c0_859 = arith.constant 0 : index
    %c0_860 = arith.constant 0 : index
    %1011 = vector.load %arg6[%c60_858, %c0_859, %c0_860] : memref<64x8x128xf32, #tpu.memory_space<vmem>>, vector<1x8x128xf32>
    %1012 = vector.shape_cast %1011 : vector<1x8x128xf32> to vector<8x128xf32>
    %1013 = vector.shape_cast %1010 : vector<8x128xf32> to vector<1x8x128xf32>
    tpu.vector_store %arg6[%c60_858, %c0_859, %c0_860], %1013 {strides = array<i32>} : memref<64x8x128xf32, #tpu.memory_space<vmem>>, vector<1x8x128xf32>,
    %c0_861 = arith.constant 0 : index
    %c61 = arith.constant 61 : index
    %c0_862 = arith.constant 0 : index
    %c0_863 = arith.constant 0 : index
    %c0_864 = arith.constant 0 : index
    %1014 = vector.load %arg1[%c0_861, %c61, %c0_862, %c0_863, %c0_864] : memref<1x64x1x8x128xf32, #tpu.memory_space<vmem>>, vector<1x1x1x8x128xf32>
    %1015 = vector.shape_cast %1014 : vector<1x1x1x8x128xf32> to vector<8x128xf32>
    %cst_865 = arith.constant 1.000000e+00 : f32
    %1016 = vector.broadcast %cst_865 : f32 to vector<8x128xf32>
    %1017 = arith.subf %1015, %1016 : vector<8x128xf32>
    %cst_866 = arith.constant 2.000000e+01 : f32
    %1018 = vector.broadcast %cst_866 : f32 to vector<8x128xf32>
    %1019 = arith.mulf %1017, %1018 : vector<8x128xf32>
    %1020 = math.exp %1019 : vector<8x128xf32>
    %c61_867 = arith.constant 61 : index
    %c0_868 = arith.constant 0 : index
    %c0_869 = arith.constant 0 : index
    %1021 = vector.load %arg5[%c61_867, %c0_868, %c0_869] : memref<64x8x128xf32, #tpu.memory_space<vmem>>, vector<1x8x128xf32>
    %1022 = vector.shape_cast %1021 : vector<1x8x128xf32> to vector<8x128xf32>
    %1023 = vector.shape_cast %1020 : vector<8x128xf32> to vector<1x8x128xf32>
    tpu.vector_store %arg5[%c61_867, %c0_868, %c0_869], %1023 {strides = array<i32>} : memref<64x8x128xf32, #tpu.memory_space<vmem>>, vector<1x8x128xf32>,
    %1024 = arith.mulf %1020, %1015 : vector<8x128xf32>
    %c61_870 = arith.constant 61 : index
    %c0_871 = arith.constant 0 : index
    %c0_872 = arith.constant 0 : index
    %1025 = vector.load %arg6[%c61_870, %c0_871, %c0_872] : memref<64x8x128xf32, #tpu.memory_space<vmem>>, vector<1x8x128xf32>
    %1026 = vector.shape_cast %1025 : vector<1x8x128xf32> to vector<8x128xf32>
    %1027 = vector.shape_cast %1024 : vector<8x128xf32> to vector<1x8x128xf32>
    tpu.vector_store %arg6[%c61_870, %c0_871, %c0_872], %1027 {strides = array<i32>} : memref<64x8x128xf32, #tpu.memory_space<vmem>>, vector<1x8x128xf32>,
    %c0_873 = arith.constant 0 : index
    %c62 = arith.constant 62 : index
    %c0_874 = arith.constant 0 : index
    %c0_875 = arith.constant 0 : index
    %c0_876 = arith.constant 0 : index
    %1028 = vector.load %arg1[%c0_873, %c62, %c0_874, %c0_875, %c0_876] : memref<1x64x1x8x128xf32, #tpu.memory_space<vmem>>, vector<1x1x1x8x128xf32>
    %1029 = vector.shape_cast %1028 : vector<1x1x1x8x128xf32> to vector<8x128xf32>
    %cst_877 = arith.constant 1.000000e+00 : f32
    %1030 = vector.broadcast %cst_877 : f32 to vector<8x128xf32>
    %1031 = arith.subf %1029, %1030 : vector<8x128xf32>
    %cst_878 = arith.constant 2.000000e+01 : f32
    %1032 = vector.broadcast %cst_878 : f32 to vector<8x128xf32>
    %1033 = arith.mulf %1031, %1032 : vector<8x128xf32>
    %1034 = math.exp %1033 : vector<8x128xf32>
    %c62_879 = arith.constant 62 : index
    %c0_880 = arith.constant 0 : index
    %c0_881 = arith.constant 0 : index
    %1035 = vector.load %arg5[%c62_879, %c0_880, %c0_881] : memref<64x8x128xf32, #tpu.memory_space<vmem>>, vector<1x8x128xf32>
    %1036 = vector.shape_cast %1035 : vector<1x8x128xf32> to vector<8x128xf32>
    %1037 = vector.shape_cast %1034 : vector<8x128xf32> to vector<1x8x128xf32>
    tpu.vector_store %arg5[%c62_879, %c0_880, %c0_881], %1037 {strides = array<i32>} : memref<64x8x128xf32, #tpu.memory_space<vmem>>, vector<1x8x128xf32>,
    %1038 = arith.mulf %1034, %1029 : vector<8x128xf32>
    %c62_882 = arith.constant 62 : index
    %c0_883 = arith.constant 0 : index
    %c0_884 = arith.constant 0 : index
    %1039 = vector.load %arg6[%c62_882, %c0_883, %c0_884] : memref<64x8x128xf32, #tpu.memory_space<vmem>>, vector<1x8x128xf32>
    %1040 = vector.shape_cast %1039 : vector<1x8x128xf32> to vector<8x128xf32>
    %1041 = vector.shape_cast %1038 : vector<8x128xf32> to vector<1x8x128xf32>
    tpu.vector_store %arg6[%c62_882, %c0_883, %c0_884], %1041 {strides = array<i32>} : memref<64x8x128xf32, #tpu.memory_space<vmem>>, vector<1x8x128xf32>,
    %c0_885 = arith.constant 0 : index
    %c63 = arith.constant 63 : index
    %c0_886 = arith.constant 0 : index
    %c0_887 = arith.constant 0 : index
    %c0_888 = arith.constant 0 : index
    %1042 = vector.load %arg1[%c0_885, %c63, %c0_886, %c0_887, %c0_888] : memref<1x64x1x8x128xf32, #tpu.memory_space<vmem>>, vector<1x1x1x8x128xf32>
    %1043 = vector.shape_cast %1042 : vector<1x1x1x8x128xf32> to vector<8x128xf32>
    %cst_889 = arith.constant 1.000000e+00 : f32
    %1044 = vector.broadcast %cst_889 : f32 to vector<8x128xf32>
    %1045 = arith.subf %1043, %1044 : vector<8x128xf32>
    %cst_890 = arith.constant 2.000000e+01 : f32
    %1046 = vector.broadcast %cst_890 : f32 to vector<8x128xf32>
    %1047 = arith.mulf %1045, %1046 : vector<8x128xf32>
    %1048 = math.exp %1047 : vector<8x128xf32>
    %c63_891 = arith.constant 63 : index
    %c0_892 = arith.constant 0 : index
    %c0_893 = arith.constant 0 : index
    %1049 = vector.load %arg5[%c63_891, %c0_892, %c0_893] : memref<64x8x128xf32, #tpu.memory_space<vmem>>, vector<1x8x128xf32>
    %1050 = vector.shape_cast %1049 : vector<1x8x128xf32> to vector<8x128xf32>
    %1051 = vector.shape_cast %1048 : vector<8x128xf32> to vector<1x8x128xf32>
    tpu.vector_store %arg5[%c63_891, %c0_892, %c0_893], %1051 {strides = array<i32>} : memref<64x8x128xf32, #tpu.memory_space<vmem>>, vector<1x8x128xf32>,
    %1052 = arith.mulf %1048, %1043 : vector<8x128xf32>
    %c63_894 = arith.constant 63 : index
    %c0_895 = arith.constant 0 : index
    %c0_896 = arith.constant 0 : index
    %1053 = vector.load %arg6[%c63_894, %c0_895, %c0_896] : memref<64x8x128xf32, #tpu.memory_space<vmem>>, vector<1x8x128xf32>
    %1054 = vector.shape_cast %1053 : vector<1x8x128xf32> to vector<8x128xf32>
    %1055 = vector.shape_cast %1052 : vector<8x128xf32> to vector<1x8x128xf32>
    tpu.vector_store %arg6[%c63_894, %c0_895, %c0_896], %1055 {strides = array<i32>} : memref<64x8x128xf32, #tpu.memory_space<vmem>>, vector<1x8x128xf32>,
    %c0_i32 = arith.constant 0 : i32
    %c30_i32 = arith.constant 30 : i32
    %1056 = arith.addi %c0_i32, %c30_i32 : i32
    %c1_i32 = arith.constant 1 : i32
    %1057:16 = scf.for %arg7 = %c0_i32 to %1056 step %c1_i32 iter_args(%arg8 = %0, %arg9 = %0, %arg10 = %0, %arg11 = %0, %arg12 = %0, %arg13 = %0, %arg14 = %0, %arg15 = %0, %arg16 = %0, %arg17 = %0, %arg18 = %0, %arg19 = %0, %arg20 = %0, %arg21 = %0, %arg22 = %0, %arg23 = %0) -> (vector<8x128xf32>, vector<8x128xf32>, vector<8x128xf32>, vector<8x128xf32>, vector<8x128xf32>, vector<8x128xf32>, vector<8x128xf32>, vector<8x128xf32>, vector<8x128xf32>, vector<8x128xf32>, vector<8x128xf32>, vector<8x128xf32>, vector<8x128xf32>, vector<8x128xf32>, vector<8x128xf32>, vector<8x128xf32>)  : i32 {
      %c0_1094 = arith.constant 0 : index
      %c0_1095 = arith.constant 0 : index
      %c0_1096 = arith.constant 0 : index
      %1327 = vector.load %arg5[%c0_1094, %c0_1095, %c0_1096] : memref<64x8x128xf32, #tpu.memory_space<vmem>>, vector<1x8x128xf32>
      %1328 = vector.shape_cast %1327 : vector<1x8x128xf32> to vector<8x128xf32>
      %c1_1097 = arith.constant 1 : index
      %c0_1098 = arith.constant 0 : index
      %c0_1099 = arith.constant 0 : index
      %1329 = vector.load %arg5[%c1_1097, %c0_1098, %c0_1099] : memref<64x8x128xf32, #tpu.memory_space<vmem>>, vector<1x8x128xf32>
      %1330 = vector.shape_cast %1329 : vector<1x8x128xf32> to vector<8x128xf32>
      %c2_1100 = arith.constant 2 : index
      %c0_1101 = arith.constant 0 : index
      %c0_1102 = arith.constant 0 : index
      %1331 = vector.load %arg5[%c2_1100, %c0_1101, %c0_1102] : memref<64x8x128xf32, #tpu.memory_space<vmem>>, vector<1x8x128xf32>
      %1332 = vector.shape_cast %1331 : vector<1x8x128xf32> to vector<8x128xf32>
      %c3_1103 = arith.constant 3 : index
      %c0_1104 = arith.constant 0 : index
      %c0_1105 = arith.constant 0 : index
      %1333 = vector.load %arg5[%c3_1103, %c0_1104, %c0_1105] : memref<64x8x128xf32, #tpu.memory_space<vmem>>, vector<1x8x128xf32>
      %1334 = vector.shape_cast %1333 : vector<1x8x128xf32> to vector<8x128xf32>
      %c4_1106 = arith.constant 4 : index
      %c0_1107 = arith.constant 0 : index
      %c0_1108 = arith.constant 0 : index
      %1335 = vector.load %arg5[%c4_1106, %c0_1107, %c0_1108] : memref<64x8x128xf32, #tpu.memory_space<vmem>>, vector<1x8x128xf32>
      %1336 = vector.shape_cast %1335 : vector<1x8x128xf32> to vector<8x128xf32>
      %c5_1109 = arith.constant 5 : index
      %c0_1110 = arith.constant 0 : index
      %c0_1111 = arith.constant 0 : index
      %1337 = vector.load %arg5[%c5_1109, %c0_1110, %c0_1111] : memref<64x8x128xf32, #tpu.memory_space<vmem>>, vector<1x8x128xf32>
      %1338 = vector.shape_cast %1337 : vector<1x8x128xf32> to vector<8x128xf32>
      %c6_1112 = arith.constant 6 : index
      %c0_1113 = arith.constant 0 : index
      %c0_1114 = arith.constant 0 : index
      %1339 = vector.load %arg5[%c6_1112, %c0_1113, %c0_1114] : memref<64x8x128xf32, #tpu.memory_space<vmem>>, vector<1x8x128xf32>
      %1340 = vector.shape_cast %1339 : vector<1x8x128xf32> to vector<8x128xf32>
      %c7_1115 = arith.constant 7 : index
      %c0_1116 = arith.constant 0 : index
      %c0_1117 = arith.constant 0 : index
      %1341 = vector.load %arg5[%c7_1115, %c0_1116, %c0_1117] : memref<64x8x128xf32, #tpu.memory_space<vmem>>, vector<1x8x128xf32>
      %1342 = vector.shape_cast %1341 : vector<1x8x128xf32> to vector<8x128xf32>
      %1343 = arith.mulf %1328, %arg16 : vector<8x128xf32>
      %1344 = arith.mulf %1330, %arg17 : vector<8x128xf32>
      %1345 = arith.mulf %1332, %arg18 : vector<8x128xf32>
      %1346 = arith.addf %1343, %1345 : vector<8x128xf32>
      %1347 = arith.mulf %1334, %arg19 : vector<8x128xf32>
      %1348 = arith.addf %1344, %1347 : vector<8x128xf32>
      %1349 = arith.mulf %1336, %arg20 : vector<8x128xf32>
      %1350 = arith.addf %1346, %1349 : vector<8x128xf32>
      %1351 = arith.mulf %1338, %arg21 : vector<8x128xf32>
      %1352 = arith.addf %1348, %1351 : vector<8x128xf32>
      %1353 = arith.mulf %1340, %arg22 : vector<8x128xf32>
      %1354 = arith.addf %1350, %1353 : vector<8x128xf32>
      %1355 = arith.mulf %1342, %arg23 : vector<8x128xf32>
      %1356 = arith.addf %1352, %1355 : vector<8x128xf32>
      %1357 = arith.addf %1354, %1356 : vector<8x128xf32>
      %cst_1118 = arith.constant 9.99999996E-13 : f32
      %1358 = vector.broadcast %cst_1118 : f32 to vector<8x128xf32>
      %1359 = arith.addf %1357, %1358 : vector<8x128xf32>
      %1360 = tpu.reciprocal %1359 {approx = true} : vector<8x128xf32> -> vector<8x128xf32>
      %1361 = arith.mulf %1359, %1360 : vector<8x128xf32>
      %cst_1119 = arith.constant 2.000000e+00 : f32
      %1362 = vector.broadcast %cst_1119 : f32 to vector<8x128xf32>
      %1363 = arith.subf %1362, %1361 : vector<8x128xf32>
      %1364 = arith.mulf %1360, %1363 : vector<8x128xf32>
      %1365 = arith.mulf %114, %1364 : vector<8x128xf32>
      %1366 = arith.mulf %1328, %1365 : vector<8x128xf32>
      %1367 = arith.addf %1, %1366 : vector<8x128xf32>
      %1368 = arith.mulf %1330, %1365 : vector<8x128xf32>
      %1369 = arith.addf %1, %1368 : vector<8x128xf32>
      %1370 = arith.mulf %1332, %1365 : vector<8x128xf32>
      %1371 = arith.addf %1, %1370 : vector<8x128xf32>
      %1372 = arith.mulf %1334, %1365 : vector<8x128xf32>
      %1373 = arith.addf %1, %1372 : vector<8x128xf32>
      %1374 = arith.mulf %1336, %1365 : vector<8x128xf32>
      %1375 = arith.addf %1, %1374 : vector<8x128xf32>
      %1376 = arith.mulf %1338, %1365 : vector<8x128xf32>
      %1377 = arith.addf %1, %1376 : vector<8x128xf32>
      %1378 = arith.mulf %1340, %1365 : vector<8x128xf32>
      %1379 = arith.addf %1, %1378 : vector<8x128xf32>
      %1380 = arith.mulf %1342, %1365 : vector<8x128xf32>
      %1381 = arith.addf %1, %1380 : vector<8x128xf32>
      %c8_1120 = arith.constant 8 : index
      %c0_1121 = arith.constant 0 : index
      %c0_1122 = arith.constant 0 : index
      %1382 = vector.load %arg5[%c8_1120, %c0_1121, %c0_1122] : memref<64x8x128xf32, #tpu.memory_space<vmem>>, vector<1x8x128xf32>
      %1383 = vector.shape_cast %1382 : vector<1x8x128xf32> to vector<8x128xf32>
      %c9_1123 = arith.constant 9 : index
      %c0_1124 = arith.constant 0 : index
      %c0_1125 = arith.constant 0 : index
      %1384 = vector.load %arg5[%c9_1123, %c0_1124, %c0_1125] : memref<64x8x128xf32, #tpu.memory_space<vmem>>, vector<1x8x128xf32>
      %1385 = vector.shape_cast %1384 : vector<1x8x128xf32> to vector<8x128xf32>
      %c10_1126 = arith.constant 10 : index
      %c0_1127 = arith.constant 0 : index
      %c0_1128 = arith.constant 0 : index
      %1386 = vector.load %arg5[%c10_1126, %c0_1127, %c0_1128] : memref<64x8x128xf32, #tpu.memory_space<vmem>>, vector<1x8x128xf32>
      %1387 = vector.shape_cast %1386 : vector<1x8x128xf32> to vector<8x128xf32>
      %c11_1129 = arith.constant 11 : index
      %c0_1130 = arith.constant 0 : index
      %c0_1131 = arith.constant 0 : index
      %1388 = vector.load %arg5[%c11_1129, %c0_1130, %c0_1131] : memref<64x8x128xf32, #tpu.memory_space<vmem>>, vector<1x8x128xf32>
      %1389 = vector.shape_cast %1388 : vector<1x8x128xf32> to vector<8x128xf32>
      %c12_1132 = arith.constant 12 : index
      %c0_1133 = arith.constant 0 : index
      %c0_1134 = arith.constant 0 : index
      %1390 = vector.load %arg5[%c12_1132, %c0_1133, %c0_1134] : memref<64x8x128xf32, #tpu.memory_space<vmem>>, vector<1x8x128xf32>
      %1391 = vector.shape_cast %1390 : vector<1x8x128xf32> to vector<8x128xf32>
      %c13_1135 = arith.constant 13 : index
      %c0_1136 = arith.constant 0 : index
      %c0_1137 = arith.constant 0 : index
      %1392 = vector.load %arg5[%c13_1135, %c0_1136, %c0_1137] : memref<64x8x128xf32, #tpu.memory_space<vmem>>, vector<1x8x128xf32>
      %1393 = vector.shape_cast %1392 : vector<1x8x128xf32> to vector<8x128xf32>
      %c14_1138 = arith.constant 14 : index
      %c0_1139 = arith.constant 0 : index
      %c0_1140 = arith.constant 0 : index
      %1394 = vector.load %arg5[%c14_1138, %c0_1139, %c0_1140] : memref<64x8x128xf32, #tpu.memory_space<vmem>>, vector<1x8x128xf32>
      %1395 = vector.shape_cast %1394 : vector<1x8x128xf32> to vector<8x128xf32>
      %c15_1141 = arith.constant 15 : index
      %c0_1142 = arith.constant 0 : index
      %c0_1143 = arith.constant 0 : index
      %1396 = vector.load %arg5[%c15_1141, %c0_1142, %c0_1143] : memref<64x8x128xf32, #tpu.memory_space<vmem>>, vector<1x8x128xf32>
      %1397 = vector.shape_cast %1396 : vector<1x8x128xf32> to vector<8x128xf32>
      %1398 = arith.mulf %1383, %arg16 : vector<8x128xf32>
      %1399 = arith.mulf %1385, %arg17 : vector<8x128xf32>
      %1400 = arith.mulf %1387, %arg18 : vector<8x128xf32>
      %1401 = arith.addf %1398, %1400 : vector<8x128xf32>
      %1402 = arith.mulf %1389, %arg19 : vector<8x128xf32>
      %1403 = arith.addf %1399, %1402 : vector<8x128xf32>
      %1404 = arith.mulf %1391, %arg20 : vector<8x128xf32>
      %1405 = arith.addf %1401, %1404 : vector<8x128xf32>
      %1406 = arith.mulf %1393, %arg21 : vector<8x128xf32>
      %1407 = arith.addf %1403, %1406 : vector<8x128xf32>
      %1408 = arith.mulf %1395, %arg22 : vector<8x128xf32>
      %1409 = arith.addf %1405, %1408 : vector<8x128xf32>
      %1410 = arith.mulf %1397, %arg23 : vector<8x128xf32>
      %1411 = arith.addf %1407, %1410 : vector<8x128xf32>
      %1412 = arith.addf %1409, %1411 : vector<8x128xf32>
      %cst_1144 = arith.constant 9.99999996E-13 : f32
      %1413 = vector.broadcast %cst_1144 : f32 to vector<8x128xf32>
      %1414 = arith.addf %1412, %1413 : vector<8x128xf32>
      %1415 = tpu.reciprocal %1414 {approx = true} : vector<8x128xf32> -> vector<8x128xf32>
      %1416 = arith.mulf %1414, %1415 : vector<8x128xf32>
      %cst_1145 = arith.constant 2.000000e+00 : f32
      %1417 = vector.broadcast %cst_1145 : f32 to vector<8x128xf32>
      %1418 = arith.subf %1417, %1416 : vector<8x128xf32>
      %1419 = arith.mulf %1415, %1418 : vector<8x128xf32>
      %1420 = arith.mulf %117, %1419 : vector<8x128xf32>
      %1421 = arith.mulf %1383, %1420 : vector<8x128xf32>
      %1422 = arith.addf %1367, %1421 : vector<8x128xf32>
      %1423 = arith.mulf %1385, %1420 : vector<8x128xf32>
      %1424 = arith.addf %1369, %1423 : vector<8x128xf32>
      %1425 = arith.mulf %1387, %1420 : vector<8x128xf32>
      %1426 = arith.addf %1371, %1425 : vector<8x128xf32>
      %1427 = arith.mulf %1389, %1420 : vector<8x128xf32>
      %1428 = arith.addf %1373, %1427 : vector<8x128xf32>
      %1429 = arith.mulf %1391, %1420 : vector<8x128xf32>
      %1430 = arith.addf %1375, %1429 : vector<8x128xf32>
      %1431 = arith.mulf %1393, %1420 : vector<8x128xf32>
      %1432 = arith.addf %1377, %1431 : vector<8x128xf32>
      %1433 = arith.mulf %1395, %1420 : vector<8x128xf32>
      %1434 = arith.addf %1379, %1433 : vector<8x128xf32>
      %1435 = arith.mulf %1397, %1420 : vector<8x128xf32>
      %1436 = arith.addf %1381, %1435 : vector<8x128xf32>
      %c16_1146 = arith.constant 16 : index
      %c0_1147 = arith.constant 0 : index
      %c0_1148 = arith.constant 0 : index
      %1437 = vector.load %arg5[%c16_1146, %c0_1147, %c0_1148] : memref<64x8x128xf32, #tpu.memory_space<vmem>>, vector<1x8x128xf32>
      %1438 = vector.shape_cast %1437 : vector<1x8x128xf32> to vector<8x128xf32>
      %c17_1149 = arith.constant 17 : index
      %c0_1150 = arith.constant 0 : index
      %c0_1151 = arith.constant 0 : index
      %1439 = vector.load %arg5[%c17_1149, %c0_1150, %c0_1151] : memref<64x8x128xf32, #tpu.memory_space<vmem>>, vector<1x8x128xf32>
      %1440 = vector.shape_cast %1439 : vector<1x8x128xf32> to vector<8x128xf32>
      %c18_1152 = arith.constant 18 : index
      %c0_1153 = arith.constant 0 : index
      %c0_1154 = arith.constant 0 : index
      %1441 = vector.load %arg5[%c18_1152, %c0_1153, %c0_1154] : memref<64x8x128xf32, #tpu.memory_space<vmem>>, vector<1x8x128xf32>
      %1442 = vector.shape_cast %1441 : vector<1x8x128xf32> to vector<8x128xf32>
      %c19_1155 = arith.constant 19 : index
      %c0_1156 = arith.constant 0 : index
      %c0_1157 = arith.constant 0 : index
      %1443 = vector.load %arg5[%c19_1155, %c0_1156, %c0_1157] : memref<64x8x128xf32, #tpu.memory_space<vmem>>, vector<1x8x128xf32>
      %1444 = vector.shape_cast %1443 : vector<1x8x128xf32> to vector<8x128xf32>
      %c20_1158 = arith.constant 20 : index
      %c0_1159 = arith.constant 0 : index
      %c0_1160 = arith.constant 0 : index
      %1445 = vector.load %arg5[%c20_1158, %c0_1159, %c0_1160] : memref<64x8x128xf32, #tpu.memory_space<vmem>>, vector<1x8x128xf32>
      %1446 = vector.shape_cast %1445 : vector<1x8x128xf32> to vector<8x128xf32>
      %c21_1161 = arith.constant 21 : index
      %c0_1162 = arith.constant 0 : index
      %c0_1163 = arith.constant 0 : index
      %1447 = vector.load %arg5[%c21_1161, %c0_1162, %c0_1163] : memref<64x8x128xf32, #tpu.memory_space<vmem>>, vector<1x8x128xf32>
      %1448 = vector.shape_cast %1447 : vector<1x8x128xf32> to vector<8x128xf32>
      %c22_1164 = arith.constant 22 : index
      %c0_1165 = arith.constant 0 : index
      %c0_1166 = arith.constant 0 : index
      %1449 = vector.load %arg5[%c22_1164, %c0_1165, %c0_1166] : memref<64x8x128xf32, #tpu.memory_space<vmem>>, vector<1x8x128xf32>
      %1450 = vector.shape_cast %1449 : vector<1x8x128xf32> to vector<8x128xf32>
      %c23_1167 = arith.constant 23 : index
      %c0_1168 = arith.constant 0 : index
      %c0_1169 = arith.constant 0 : index
      %1451 = vector.load %arg5[%c23_1167, %c0_1168, %c0_1169] : memref<64x8x128xf32, #tpu.memory_space<vmem>>, vector<1x8x128xf32>
      %1452 = vector.shape_cast %1451 : vector<1x8x128xf32> to vector<8x128xf32>
      %1453 = arith.mulf %1438, %arg16 : vector<8x128xf32>
      %1454 = arith.mulf %1440, %arg17 : vector<8x128xf32>
      %1455 = arith.mulf %1442, %arg18 : vector<8x128xf32>
      %1456 = arith.addf %1453, %1455 : vector<8x128xf32>
      %1457 = arith.mulf %1444, %arg19 : vector<8x128xf32>
      %1458 = arith.addf %1454, %1457 : vector<8x128xf32>
      %1459 = arith.mulf %1446, %arg20 : vector<8x128xf32>
      %1460 = arith.addf %1456, %1459 : vector<8x128xf32>
      %1461 = arith.mulf %1448, %arg21 : vector<8x128xf32>
      %1462 = arith.addf %1458, %1461 : vector<8x128xf32>
      %1463 = arith.mulf %1450, %arg22 : vector<8x128xf32>
      %1464 = arith.addf %1460, %1463 : vector<8x128xf32>
      %1465 = arith.mulf %1452, %arg23 : vector<8x128xf32>
      %1466 = arith.addf %1462, %1465 : vector<8x128xf32>
      %1467 = arith.addf %1464, %1466 : vector<8x128xf32>
      %cst_1170 = arith.constant 9.99999996E-13 : f32
      %1468 = vector.broadcast %cst_1170 : f32 to vector<8x128xf32>
      %1469 = arith.addf %1467, %1468 : vector<8x128xf32>
      %1470 = tpu.reciprocal %1469 {approx = true} : vector<8x128xf32> -> vector<8x128xf32>
      %1471 = arith.mulf %1469, %1470 : vector<8x128xf32>
      %cst_1171 = arith.constant 2.000000e+00 : f32
      %1472 = vector.broadcast %cst_1171 : f32 to vector<8x128xf32>
      %1473 = arith.subf %1472, %1471 : vector<8x128xf32>
      %1474 = arith.mulf %1470, %1473 : vector<8x128xf32>
      %1475 = arith.mulf %120, %1474 : vector<8x128xf32>
      %1476 = arith.mulf %1438, %1475 : vector<8x128xf32>
      %1477 = arith.addf %1422, %1476 : vector<8x128xf32>
      %1478 = arith.mulf %1440, %1475 : vector<8x128xf32>
      %1479 = arith.addf %1424, %1478 : vector<8x128xf32>
      %1480 = arith.mulf %1442, %1475 : vector<8x128xf32>
      %1481 = arith.addf %1426, %1480 : vector<8x128xf32>
      %1482 = arith.mulf %1444, %1475 : vector<8x128xf32>
      %1483 = arith.addf %1428, %1482 : vector<8x128xf32>
      %1484 = arith.mulf %1446, %1475 : vector<8x128xf32>
      %1485 = arith.addf %1430, %1484 : vector<8x128xf32>
      %1486 = arith.mulf %1448, %1475 : vector<8x128xf32>
      %1487 = arith.addf %1432, %1486 : vector<8x128xf32>
      %1488 = arith.mulf %1450, %1475 : vector<8x128xf32>
      %1489 = arith.addf %1434, %1488 : vector<8x128xf32>
      %1490 = arith.mulf %1452, %1475 : vector<8x128xf32>
      %1491 = arith.addf %1436, %1490 : vector<8x128xf32>
      %c24_1172 = arith.constant 24 : index
      %c0_1173 = arith.constant 0 : index
      %c0_1174 = arith.constant 0 : index
      %1492 = vector.load %arg5[%c24_1172, %c0_1173, %c0_1174] : memref<64x8x128xf32, #tpu.memory_space<vmem>>, vector<1x8x128xf32>
      %1493 = vector.shape_cast %1492 : vector<1x8x128xf32> to vector<8x128xf32>
      %c25_1175 = arith.constant 25 : index
      %c0_1176 = arith.constant 0 : index
      %c0_1177 = arith.constant 0 : index
      %1494 = vector.load %arg5[%c25_1175, %c0_1176, %c0_1177] : memref<64x8x128xf32, #tpu.memory_space<vmem>>, vector<1x8x128xf32>
      %1495 = vector.shape_cast %1494 : vector<1x8x128xf32> to vector<8x128xf32>
      %c26_1178 = arith.constant 26 : index
      %c0_1179 = arith.constant 0 : index
      %c0_1180 = arith.constant 0 : index
      %1496 = vector.load %arg5[%c26_1178, %c0_1179, %c0_1180] : memref<64x8x128xf32, #tpu.memory_space<vmem>>, vector<1x8x128xf32>
      %1497 = vector.shape_cast %1496 : vector<1x8x128xf32> to vector<8x128xf32>
      %c27_1181 = arith.constant 27 : index
      %c0_1182 = arith.constant 0 : index
      %c0_1183 = arith.constant 0 : index
      %1498 = vector.load %arg5[%c27_1181, %c0_1182, %c0_1183] : memref<64x8x128xf32, #tpu.memory_space<vmem>>, vector<1x8x128xf32>
      %1499 = vector.shape_cast %1498 : vector<1x8x128xf32> to vector<8x128xf32>
      %c28_1184 = arith.constant 28 : index
      %c0_1185 = arith.constant 0 : index
      %c0_1186 = arith.constant 0 : index
      %1500 = vector.load %arg5[%c28_1184, %c0_1185, %c0_1186] : memref<64x8x128xf32, #tpu.memory_space<vmem>>, vector<1x8x128xf32>
      %1501 = vector.shape_cast %1500 : vector<1x8x128xf32> to vector<8x128xf32>
      %c29_1187 = arith.constant 29 : index
      %c0_1188 = arith.constant 0 : index
      %c0_1189 = arith.constant 0 : index
      %1502 = vector.load %arg5[%c29_1187, %c0_1188, %c0_1189] : memref<64x8x128xf32, #tpu.memory_space<vmem>>, vector<1x8x128xf32>
      %1503 = vector.shape_cast %1502 : vector<1x8x128xf32> to vector<8x128xf32>
      %c30_1190 = arith.constant 30 : index
      %c0_1191 = arith.constant 0 : index
      %c0_1192 = arith.constant 0 : index
      %1504 = vector.load %arg5[%c30_1190, %c0_1191, %c0_1192] : memref<64x8x128xf32, #tpu.memory_space<vmem>>, vector<1x8x128xf32>
      %1505 = vector.shape_cast %1504 : vector<1x8x128xf32> to vector<8x128xf32>
      %c31_1193 = arith.constant 31 : index
      %c0_1194 = arith.constant 0 : index
      %c0_1195 = arith.constant 0 : index
      %1506 = vector.load %arg5[%c31_1193, %c0_1194, %c0_1195] : memref<64x8x128xf32, #tpu.memory_space<vmem>>, vector<1x8x128xf32>
      %1507 = vector.shape_cast %1506 : vector<1x8x128xf32> to vector<8x128xf32>
      %1508 = arith.mulf %1493, %arg16 : vector<8x128xf32>
      %1509 = arith.mulf %1495, %arg17 : vector<8x128xf32>
      %1510 = arith.mulf %1497, %arg18 : vector<8x128xf32>
      %1511 = arith.addf %1508, %1510 : vector<8x128xf32>
      %1512 = arith.mulf %1499, %arg19 : vector<8x128xf32>
      %1513 = arith.addf %1509, %1512 : vector<8x128xf32>
      %1514 = arith.mulf %1501, %arg20 : vector<8x128xf32>
      %1515 = arith.addf %1511, %1514 : vector<8x128xf32>
      %1516 = arith.mulf %1503, %arg21 : vector<8x128xf32>
      %1517 = arith.addf %1513, %1516 : vector<8x128xf32>
      %1518 = arith.mulf %1505, %arg22 : vector<8x128xf32>
      %1519 = arith.addf %1515, %1518 : vector<8x128xf32>
      %1520 = arith.mulf %1507, %arg23 : vector<8x128xf32>
      %1521 = arith.addf %1517, %1520 : vector<8x128xf32>
      %1522 = arith.addf %1519, %1521 : vector<8x128xf32>
      %cst_1196 = arith.constant 9.99999996E-13 : f32
      %1523 = vector.broadcast %cst_1196 : f32 to vector<8x128xf32>
      %1524 = arith.addf %1522, %1523 : vector<8x128xf32>
      %1525 = tpu.reciprocal %1524 {approx = true} : vector<8x128xf32> -> vector<8x128xf32>
      %1526 = arith.mulf %1524, %1525 : vector<8x128xf32>
      %cst_1197 = arith.constant 2.000000e+00 : f32
      %1527 = vector.broadcast %cst_1197 : f32 to vector<8x128xf32>
      %1528 = arith.subf %1527, %1526 : vector<8x128xf32>
      %1529 = arith.mulf %1525, %1528 : vector<8x128xf32>
      %1530 = arith.mulf %123, %1529 : vector<8x128xf32>
      %1531 = arith.mulf %1493, %1530 : vector<8x128xf32>
      %1532 = arith.addf %1477, %1531 : vector<8x128xf32>
      %1533 = arith.mulf %1495, %1530 : vector<8x128xf32>
      %1534 = arith.addf %1479, %1533 : vector<8x128xf32>
      %1535 = arith.mulf %1497, %1530 : vector<8x128xf32>
      %1536 = arith.addf %1481, %1535 : vector<8x128xf32>
      %1537 = arith.mulf %1499, %1530 : vector<8x128xf32>
      %1538 = arith.addf %1483, %1537 : vector<8x128xf32>
      %1539 = arith.mulf %1501, %1530 : vector<8x128xf32>
      %1540 = arith.addf %1485, %1539 : vector<8x128xf32>
      %1541 = arith.mulf %1503, %1530 : vector<8x128xf32>
      %1542 = arith.addf %1487, %1541 : vector<8x128xf32>
      %1543 = arith.mulf %1505, %1530 : vector<8x128xf32>
      %1544 = arith.addf %1489, %1543 : vector<8x128xf32>
      %1545 = arith.mulf %1507, %1530 : vector<8x128xf32>
      %1546 = arith.addf %1491, %1545 : vector<8x128xf32>
      %c32_1198 = arith.constant 32 : index
      %c0_1199 = arith.constant 0 : index
      %c0_1200 = arith.constant 0 : index
      %1547 = vector.load %arg5[%c32_1198, %c0_1199, %c0_1200] : memref<64x8x128xf32, #tpu.memory_space<vmem>>, vector<1x8x128xf32>
      %1548 = vector.shape_cast %1547 : vector<1x8x128xf32> to vector<8x128xf32>
      %c33_1201 = arith.constant 33 : index
      %c0_1202 = arith.constant 0 : index
      %c0_1203 = arith.constant 0 : index
      %1549 = vector.load %arg5[%c33_1201, %c0_1202, %c0_1203] : memref<64x8x128xf32, #tpu.memory_space<vmem>>, vector<1x8x128xf32>
      %1550 = vector.shape_cast %1549 : vector<1x8x128xf32> to vector<8x128xf32>
      %c34_1204 = arith.constant 34 : index
      %c0_1205 = arith.constant 0 : index
      %c0_1206 = arith.constant 0 : index
      %1551 = vector.load %arg5[%c34_1204, %c0_1205, %c0_1206] : memref<64x8x128xf32, #tpu.memory_space<vmem>>, vector<1x8x128xf32>
      %1552 = vector.shape_cast %1551 : vector<1x8x128xf32> to vector<8x128xf32>
      %c35_1207 = arith.constant 35 : index
      %c0_1208 = arith.constant 0 : index
      %c0_1209 = arith.constant 0 : index
      %1553 = vector.load %arg5[%c35_1207, %c0_1208, %c0_1209] : memref<64x8x128xf32, #tpu.memory_space<vmem>>, vector<1x8x128xf32>
      %1554 = vector.shape_cast %1553 : vector<1x8x128xf32> to vector<8x128xf32>
      %c36_1210 = arith.constant 36 : index
      %c0_1211 = arith.constant 0 : index
      %c0_1212 = arith.constant 0 : index
      %1555 = vector.load %arg5[%c36_1210, %c0_1211, %c0_1212] : memref<64x8x128xf32, #tpu.memory_space<vmem>>, vector<1x8x128xf32>
      %1556 = vector.shape_cast %1555 : vector<1x8x128xf32> to vector<8x128xf32>
      %c37_1213 = arith.constant 37 : index
      %c0_1214 = arith.constant 0 : index
      %c0_1215 = arith.constant 0 : index
      %1557 = vector.load %arg5[%c37_1213, %c0_1214, %c0_1215] : memref<64x8x128xf32, #tpu.memory_space<vmem>>, vector<1x8x128xf32>
      %1558 = vector.shape_cast %1557 : vector<1x8x128xf32> to vector<8x128xf32>
      %c38_1216 = arith.constant 38 : index
      %c0_1217 = arith.constant 0 : index
      %c0_1218 = arith.constant 0 : index
      %1559 = vector.load %arg5[%c38_1216, %c0_1217, %c0_1218] : memref<64x8x128xf32, #tpu.memory_space<vmem>>, vector<1x8x128xf32>
      %1560 = vector.shape_cast %1559 : vector<1x8x128xf32> to vector<8x128xf32>
      %c39_1219 = arith.constant 39 : index
      %c0_1220 = arith.constant 0 : index
      %c0_1221 = arith.constant 0 : index
      %1561 = vector.load %arg5[%c39_1219, %c0_1220, %c0_1221] : memref<64x8x128xf32, #tpu.memory_space<vmem>>, vector<1x8x128xf32>
      %1562 = vector.shape_cast %1561 : vector<1x8x128xf32> to vector<8x128xf32>
      %1563 = arith.mulf %1548, %arg16 : vector<8x128xf32>
      %1564 = arith.mulf %1550, %arg17 : vector<8x128xf32>
      %1565 = arith.mulf %1552, %arg18 : vector<8x128xf32>
      %1566 = arith.addf %1563, %1565 : vector<8x128xf32>
      %1567 = arith.mulf %1554, %arg19 : vector<8x128xf32>
      %1568 = arith.addf %1564, %1567 : vector<8x128xf32>
      %1569 = arith.mulf %1556, %arg20 : vector<8x128xf32>
      %1570 = arith.addf %1566, %1569 : vector<8x128xf32>
      %1571 = arith.mulf %1558, %arg21 : vector<8x128xf32>
      %1572 = arith.addf %1568, %1571 : vector<8x128xf32>
      %1573 = arith.mulf %1560, %arg22 : vector<8x128xf32>
      %1574 = arith.addf %1570, %1573 : vector<8x128xf32>
      %1575 = arith.mulf %1562, %arg23 : vector<8x128xf32>
      %1576 = arith.addf %1572, %1575 : vector<8x128xf32>
      %1577 = arith.addf %1574, %1576 : vector<8x128xf32>
      %cst_1222 = arith.constant 9.99999996E-13 : f32
      %1578 = vector.broadcast %cst_1222 : f32 to vector<8x128xf32>
      %1579 = arith.addf %1577, %1578 : vector<8x128xf32>
      %1580 = tpu.reciprocal %1579 {approx = true} : vector<8x128xf32> -> vector<8x128xf32>
      %1581 = arith.mulf %1579, %1580 : vector<8x128xf32>
      %cst_1223 = arith.constant 2.000000e+00 : f32
      %1582 = vector.broadcast %cst_1223 : f32 to vector<8x128xf32>
      %1583 = arith.subf %1582, %1581 : vector<8x128xf32>
      %1584 = arith.mulf %1580, %1583 : vector<8x128xf32>
      %1585 = arith.mulf %126, %1584 : vector<8x128xf32>
      %1586 = arith.mulf %1548, %1585 : vector<8x128xf32>
      %1587 = arith.addf %1532, %1586 : vector<8x128xf32>
      %1588 = arith.mulf %1550, %1585 : vector<8x128xf32>
      %1589 = arith.addf %1534, %1588 : vector<8x128xf32>
      %1590 = arith.mulf %1552, %1585 : vector<8x128xf32>
      %1591 = arith.addf %1536, %1590 : vector<8x128xf32>
      %1592 = arith.mulf %1554, %1585 : vector<8x128xf32>
      %1593 = arith.addf %1538, %1592 : vector<8x128xf32>
      %1594 = arith.mulf %1556, %1585 : vector<8x128xf32>
      %1595 = arith.addf %1540, %1594 : vector<8x128xf32>
      %1596 = arith.mulf %1558, %1585 : vector<8x128xf32>
      %1597 = arith.addf %1542, %1596 : vector<8x128xf32>
      %1598 = arith.mulf %1560, %1585 : vector<8x128xf32>
      %1599 = arith.addf %1544, %1598 : vector<8x128xf32>
      %1600 = arith.mulf %1562, %1585 : vector<8x128xf32>
      %1601 = arith.addf %1546, %1600 : vector<8x128xf32>
      %c40_1224 = arith.constant 40 : index
      %c0_1225 = arith.constant 0 : index
      %c0_1226 = arith.constant 0 : index
      %1602 = vector.load %arg5[%c40_1224, %c0_1225, %c0_1226] : memref<64x8x128xf32, #tpu.memory_space<vmem>>, vector<1x8x128xf32>
      %1603 = vector.shape_cast %1602 : vector<1x8x128xf32> to vector<8x128xf32>
      %c41_1227 = arith.constant 41 : index
      %c0_1228 = arith.constant 0 : index
      %c0_1229 = arith.constant 0 : index
      %1604 = vector.load %arg5[%c41_1227, %c0_1228, %c0_1229] : memref<64x8x128xf32, #tpu.memory_space<vmem>>, vector<1x8x128xf32>
      %1605 = vector.shape_cast %1604 : vector<1x8x128xf32> to vector<8x128xf32>
      %c42_1230 = arith.constant 42 : index
      %c0_1231 = arith.constant 0 : index
      %c0_1232 = arith.constant 0 : index
      %1606 = vector.load %arg5[%c42_1230, %c0_1231, %c0_1232] : memref<64x8x128xf32, #tpu.memory_space<vmem>>, vector<1x8x128xf32>
      %1607 = vector.shape_cast %1606 : vector<1x8x128xf32> to vector<8x128xf32>
      %c43_1233 = arith.constant 43 : index
      %c0_1234 = arith.constant 0 : index
      %c0_1235 = arith.constant 0 : index
      %1608 = vector.load %arg5[%c43_1233, %c0_1234, %c0_1235] : memref<64x8x128xf32, #tpu.memory_space<vmem>>, vector<1x8x128xf32>
      %1609 = vector.shape_cast %1608 : vector<1x8x128xf32> to vector<8x128xf32>
      %c44_1236 = arith.constant 44 : index
      %c0_1237 = arith.constant 0 : index
      %c0_1238 = arith.constant 0 : index
      %1610 = vector.load %arg5[%c44_1236, %c0_1237, %c0_1238] : memref<64x8x128xf32, #tpu.memory_space<vmem>>, vector<1x8x128xf32>
      %1611 = vector.shape_cast %1610 : vector<1x8x128xf32> to vector<8x128xf32>
      %c45_1239 = arith.constant 45 : index
      %c0_1240 = arith.constant 0 : index
      %c0_1241 = arith.constant 0 : index
      %1612 = vector.load %arg5[%c45_1239, %c0_1240, %c0_1241] : memref<64x8x128xf32, #tpu.memory_space<vmem>>, vector<1x8x128xf32>
      %1613 = vector.shape_cast %1612 : vector<1x8x128xf32> to vector<8x128xf32>
      %c46_1242 = arith.constant 46 : index
      %c0_1243 = arith.constant 0 : index
      %c0_1244 = arith.constant 0 : index
      %1614 = vector.load %arg5[%c46_1242, %c0_1243, %c0_1244] : memref<64x8x128xf32, #tpu.memory_space<vmem>>, vector<1x8x128xf32>
      %1615 = vector.shape_cast %1614 : vector<1x8x128xf32> to vector<8x128xf32>
      %c47_1245 = arith.constant 47 : index
      %c0_1246 = arith.constant 0 : index
      %c0_1247 = arith.constant 0 : index
      %1616 = vector.load %arg5[%c47_1245, %c0_1246, %c0_1247] : memref<64x8x128xf32, #tpu.memory_space<vmem>>, vector<1x8x128xf32>
      %1617 = vector.shape_cast %1616 : vector<1x8x128xf32> to vector<8x128xf32>
      %1618 = arith.mulf %1603, %arg16 : vector<8x128xf32>
      %1619 = arith.mulf %1605, %arg17 : vector<8x128xf32>
      %1620 = arith.mulf %1607, %arg18 : vector<8x128xf32>
      %1621 = arith.addf %1618, %1620 : vector<8x128xf32>
      %1622 = arith.mulf %1609, %arg19 : vector<8x128xf32>
      %1623 = arith.addf %1619, %1622 : vector<8x128xf32>
      %1624 = arith.mulf %1611, %arg20 : vector<8x128xf32>
      %1625 = arith.addf %1621, %1624 : vector<8x128xf32>
      %1626 = arith.mulf %1613, %arg21 : vector<8x128xf32>
      %1627 = arith.addf %1623, %1626 : vector<8x128xf32>
      %1628 = arith.mulf %1615, %arg22 : vector<8x128xf32>
      %1629 = arith.addf %1625, %1628 : vector<8x128xf32>
      %1630 = arith.mulf %1617, %arg23 : vector<8x128xf32>
      %1631 = arith.addf %1627, %1630 : vector<8x128xf32>
      %1632 = arith.addf %1629, %1631 : vector<8x128xf32>
      %cst_1248 = arith.constant 9.99999996E-13 : f32
      %1633 = vector.broadcast %cst_1248 : f32 to vector<8x128xf32>
      %1634 = arith.addf %1632, %1633 : vector<8x128xf32>
      %1635 = tpu.reciprocal %1634 {approx = true} : vector<8x128xf32> -> vector<8x128xf32>
      %1636 = arith.mulf %1634, %1635 : vector<8x128xf32>
      %cst_1249 = arith.constant 2.000000e+00 : f32
      %1637 = vector.broadcast %cst_1249 : f32 to vector<8x128xf32>
      %1638 = arith.subf %1637, %1636 : vector<8x128xf32>
      %1639 = arith.mulf %1635, %1638 : vector<8x128xf32>
      %1640 = arith.mulf %129, %1639 : vector<8x128xf32>
      %1641 = arith.mulf %1603, %1640 : vector<8x128xf32>
      %1642 = arith.addf %1587, %1641 : vector<8x128xf32>
      %1643 = arith.mulf %1605, %1640 : vector<8x128xf32>
      %1644 = arith.addf %1589, %1643 : vector<8x128xf32>
      %1645 = arith.mulf %1607, %1640 : vector<8x128xf32>
      %1646 = arith.addf %1591, %1645 : vector<8x128xf32>
      %1647 = arith.mulf %1609, %1640 : vector<8x128xf32>
      %1648 = arith.addf %1593, %1647 : vector<8x128xf32>
      %1649 = arith.mulf %1611, %1640 : vector<8x128xf32>
      %1650 = arith.addf %1595, %1649 : vector<8x128xf32>
      %1651 = arith.mulf %1613, %1640 : vector<8x128xf32>
      %1652 = arith.addf %1597, %1651 : vector<8x128xf32>
      %1653 = arith.mulf %1615, %1640 : vector<8x128xf32>
      %1654 = arith.addf %1599, %1653 : vector<8x128xf32>
      %1655 = arith.mulf %1617, %1640 : vector<8x128xf32>
      %1656 = arith.addf %1601, %1655 : vector<8x128xf32>
      %c48_1250 = arith.constant 48 : index
      %c0_1251 = arith.constant 0 : index
      %c0_1252 = arith.constant 0 : index
      %1657 = vector.load %arg5[%c48_1250, %c0_1251, %c0_1252] : memref<64x8x128xf32, #tpu.memory_space<vmem>>, vector<1x8x128xf32>
      %1658 = vector.shape_cast %1657 : vector<1x8x128xf32> to vector<8x128xf32>
      %c49_1253 = arith.constant 49 : index
      %c0_1254 = arith.constant 0 : index
      %c0_1255 = arith.constant 0 : index
      %1659 = vector.load %arg5[%c49_1253, %c0_1254, %c0_1255] : memref<64x8x128xf32, #tpu.memory_space<vmem>>, vector<1x8x128xf32>
      %1660 = vector.shape_cast %1659 : vector<1x8x128xf32> to vector<8x128xf32>
      %c50_1256 = arith.constant 50 : index
      %c0_1257 = arith.constant 0 : index
      %c0_1258 = arith.constant 0 : index
      %1661 = vector.load %arg5[%c50_1256, %c0_1257, %c0_1258] : memref<64x8x128xf32, #tpu.memory_space<vmem>>, vector<1x8x128xf32>
      %1662 = vector.shape_cast %1661 : vector<1x8x128xf32> to vector<8x128xf32>
      %c51_1259 = arith.constant 51 : index
      %c0_1260 = arith.constant 0 : index
      %c0_1261 = arith.constant 0 : index
      %1663 = vector.load %arg5[%c51_1259, %c0_1260, %c0_1261] : memref<64x8x128xf32, #tpu.memory_space<vmem>>, vector<1x8x128xf32>
      %1664 = vector.shape_cast %1663 : vector<1x8x128xf32> to vector<8x128xf32>
      %c52_1262 = arith.constant 52 : index
      %c0_1263 = arith.constant 0 : index
      %c0_1264 = arith.constant 0 : index
      %1665 = vector.load %arg5[%c52_1262, %c0_1263, %c0_1264] : memref<64x8x128xf32, #tpu.memory_space<vmem>>, vector<1x8x128xf32>
      %1666 = vector.shape_cast %1665 : vector<1x8x128xf32> to vector<8x128xf32>
      %c53_1265 = arith.constant 53 : index
      %c0_1266 = arith.constant 0 : index
      %c0_1267 = arith.constant 0 : index
      %1667 = vector.load %arg5[%c53_1265, %c0_1266, %c0_1267] : memref<64x8x128xf32, #tpu.memory_space<vmem>>, vector<1x8x128xf32>
      %1668 = vector.shape_cast %1667 : vector<1x8x128xf32> to vector<8x128xf32>
      %c54_1268 = arith.constant 54 : index
      %c0_1269 = arith.constant 0 : index
      %c0_1270 = arith.constant 0 : index
      %1669 = vector.load %arg5[%c54_1268, %c0_1269, %c0_1270] : memref<64x8x128xf32, #tpu.memory_space<vmem>>, vector<1x8x128xf32>
      %1670 = vector.shape_cast %1669 : vector<1x8x128xf32> to vector<8x128xf32>
      %c55_1271 = arith.constant 55 : index
      %c0_1272 = arith.constant 0 : index
      %c0_1273 = arith.constant 0 : index
      %1671 = vector.load %arg5[%c55_1271, %c0_1272, %c0_1273] : memref<64x8x128xf32, #tpu.memory_space<vmem>>, vector<1x8x128xf32>
      %1672 = vector.shape_cast %1671 : vector<1x8x128xf32> to vector<8x128xf32>
      %1673 = arith.mulf %1658, %arg16 : vector<8x128xf32>
      %1674 = arith.mulf %1660, %arg17 : vector<8x128xf32>
      %1675 = arith.mulf %1662, %arg18 : vector<8x128xf32>
      %1676 = arith.addf %1673, %1675 : vector<8x128xf32>
      %1677 = arith.mulf %1664, %arg19 : vector<8x128xf32>
      %1678 = arith.addf %1674, %1677 : vector<8x128xf32>
      %1679 = arith.mulf %1666, %arg20 : vector<8x128xf32>
      %1680 = arith.addf %1676, %1679 : vector<8x128xf32>
      %1681 = arith.mulf %1668, %arg21 : vector<8x128xf32>
      %1682 = arith.addf %1678, %1681 : vector<8x128xf32>
      %1683 = arith.mulf %1670, %arg22 : vector<8x128xf32>
      %1684 = arith.addf %1680, %1683 : vector<8x128xf32>
      %1685 = arith.mulf %1672, %arg23 : vector<8x128xf32>
      %1686 = arith.addf %1682, %1685 : vector<8x128xf32>
      %1687 = arith.addf %1684, %1686 : vector<8x128xf32>
      %cst_1274 = arith.constant 9.99999996E-13 : f32
      %1688 = vector.broadcast %cst_1274 : f32 to vector<8x128xf32>
      %1689 = arith.addf %1687, %1688 : vector<8x128xf32>
      %1690 = tpu.reciprocal %1689 {approx = true} : vector<8x128xf32> -> vector<8x128xf32>
      %1691 = arith.mulf %1689, %1690 : vector<8x128xf32>
      %cst_1275 = arith.constant 2.000000e+00 : f32
      %1692 = vector.broadcast %cst_1275 : f32 to vector<8x128xf32>
      %1693 = arith.subf %1692, %1691 : vector<8x128xf32>
      %1694 = arith.mulf %1690, %1693 : vector<8x128xf32>
      %1695 = arith.mulf %132, %1694 : vector<8x128xf32>
      %1696 = arith.mulf %1658, %1695 : vector<8x128xf32>
      %1697 = arith.addf %1642, %1696 : vector<8x128xf32>
      %1698 = arith.mulf %1660, %1695 : vector<8x128xf32>
      %1699 = arith.addf %1644, %1698 : vector<8x128xf32>
      %1700 = arith.mulf %1662, %1695 : vector<8x128xf32>
      %1701 = arith.addf %1646, %1700 : vector<8x128xf32>
      %1702 = arith.mulf %1664, %1695 : vector<8x128xf32>
      %1703 = arith.addf %1648, %1702 : vector<8x128xf32>
      %1704 = arith.mulf %1666, %1695 : vector<8x128xf32>
      %1705 = arith.addf %1650, %1704 : vector<8x128xf32>
      %1706 = arith.mulf %1668, %1695 : vector<8x128xf32>
      %1707 = arith.addf %1652, %1706 : vector<8x128xf32>
      %1708 = arith.mulf %1670, %1695 : vector<8x128xf32>
      %1709 = arith.addf %1654, %1708 : vector<8x128xf32>
      %1710 = arith.mulf %1672, %1695 : vector<8x128xf32>
      %1711 = arith.addf %1656, %1710 : vector<8x128xf32>
      %c56_1276 = arith.constant 56 : index
      %c0_1277 = arith.constant 0 : index
      %c0_1278 = arith.constant 0 : index
      %1712 = vector.load %arg5[%c56_1276, %c0_1277, %c0_1278] : memref<64x8x128xf32, #tpu.memory_space<vmem>>, vector<1x8x128xf32>
      %1713 = vector.shape_cast %1712 : vector<1x8x128xf32> to vector<8x128xf32>
      %c57_1279 = arith.constant 57 : index
      %c0_1280 = arith.constant 0 : index
      %c0_1281 = arith.constant 0 : index
      %1714 = vector.load %arg5[%c57_1279, %c0_1280, %c0_1281] : memref<64x8x128xf32, #tpu.memory_space<vmem>>, vector<1x8x128xf32>
      %1715 = vector.shape_cast %1714 : vector<1x8x128xf32> to vector<8x128xf32>
      %c58_1282 = arith.constant 58 : index
      %c0_1283 = arith.constant 0 : index
      %c0_1284 = arith.constant 0 : index
      %1716 = vector.load %arg5[%c58_1282, %c0_1283, %c0_1284] : memref<64x8x128xf32, #tpu.memory_space<vmem>>, vector<1x8x128xf32>
      %1717 = vector.shape_cast %1716 : vector<1x8x128xf32> to vector<8x128xf32>
      %c59_1285 = arith.constant 59 : index
      %c0_1286 = arith.constant 0 : index
      %c0_1287 = arith.constant 0 : index
      %1718 = vector.load %arg5[%c59_1285, %c0_1286, %c0_1287] : memref<64x8x128xf32, #tpu.memory_space<vmem>>, vector<1x8x128xf32>
      %1719 = vector.shape_cast %1718 : vector<1x8x128xf32> to vector<8x128xf32>
      %c60_1288 = arith.constant 60 : index
      %c0_1289 = arith.constant 0 : index
      %c0_1290 = arith.constant 0 : index
      %1720 = vector.load %arg5[%c60_1288, %c0_1289, %c0_1290] : memref<64x8x128xf32, #tpu.memory_space<vmem>>, vector<1x8x128xf32>
      %1721 = vector.shape_cast %1720 : vector<1x8x128xf32> to vector<8x128xf32>
      %c61_1291 = arith.constant 61 : index
      %c0_1292 = arith.constant 0 : index
      %c0_1293 = arith.constant 0 : index
      %1722 = vector.load %arg5[%c61_1291, %c0_1292, %c0_1293] : memref<64x8x128xf32, #tpu.memory_space<vmem>>, vector<1x8x128xf32>
      %1723 = vector.shape_cast %1722 : vector<1x8x128xf32> to vector<8x128xf32>
      %c62_1294 = arith.constant 62 : index
      %c0_1295 = arith.constant 0 : index
      %c0_1296 = arith.constant 0 : index
      %1724 = vector.load %arg5[%c62_1294, %c0_1295, %c0_1296] : memref<64x8x128xf32, #tpu.memory_space<vmem>>, vector<1x8x128xf32>
      %1725 = vector.shape_cast %1724 : vector<1x8x128xf32> to vector<8x128xf32>
      %c63_1297 = arith.constant 63 : index
      %c0_1298 = arith.constant 0 : index
      %c0_1299 = arith.constant 0 : index
      %1726 = vector.load %arg5[%c63_1297, %c0_1298, %c0_1299] : memref<64x8x128xf32, #tpu.memory_space<vmem>>, vector<1x8x128xf32>
      %1727 = vector.shape_cast %1726 : vector<1x8x128xf32> to vector<8x128xf32>
      %1728 = arith.mulf %1713, %arg16 : vector<8x128xf32>
      %1729 = arith.mulf %1715, %arg17 : vector<8x128xf32>
      %1730 = arith.mulf %1717, %arg18 : vector<8x128xf32>
      %1731 = arith.addf %1728, %1730 : vector<8x128xf32>
      %1732 = arith.mulf %1719, %arg19 : vector<8x128xf32>
      %1733 = arith.addf %1729, %1732 : vector<8x128xf32>
      %1734 = arith.mulf %1721, %arg20 : vector<8x128xf32>
      %1735 = arith.addf %1731, %1734 : vector<8x128xf32>
      %1736 = arith.mulf %1723, %arg21 : vector<8x128xf32>
      %1737 = arith.addf %1733, %1736 : vector<8x128xf32>
      %1738 = arith.mulf %1725, %arg22 : vector<8x128xf32>
      %1739 = arith.addf %1735, %1738 : vector<8x128xf32>
      %1740 = arith.mulf %1727, %arg23 : vector<8x128xf32>
      %1741 = arith.addf %1737, %1740 : vector<8x128xf32>
      %1742 = arith.addf %1739, %1741 : vector<8x128xf32>
      %cst_1300 = arith.constant 9.99999996E-13 : f32
      %1743 = vector.broadcast %cst_1300 : f32 to vector<8x128xf32>
      %1744 = arith.addf %1742, %1743 : vector<8x128xf32>
      %1745 = tpu.reciprocal %1744 {approx = true} : vector<8x128xf32> -> vector<8x128xf32>
      %1746 = arith.mulf %1744, %1745 : vector<8x128xf32>
      %cst_1301 = arith.constant 2.000000e+00 : f32
      %1747 = vector.broadcast %cst_1301 : f32 to vector<8x128xf32>
      %1748 = arith.subf %1747, %1746 : vector<8x128xf32>
      %1749 = arith.mulf %1745, %1748 : vector<8x128xf32>
      %1750 = arith.mulf %135, %1749 : vector<8x128xf32>
      %1751 = arith.mulf %1713, %1750 : vector<8x128xf32>
      %1752 = arith.addf %1697, %1751 : vector<8x128xf32>
      %1753 = arith.mulf %1715, %1750 : vector<8x128xf32>
      %1754 = arith.addf %1699, %1753 : vector<8x128xf32>
      %1755 = arith.mulf %1717, %1750 : vector<8x128xf32>
      %1756 = arith.addf %1701, %1755 : vector<8x128xf32>
      %1757 = arith.mulf %1719, %1750 : vector<8x128xf32>
      %1758 = arith.addf %1703, %1757 : vector<8x128xf32>
      %1759 = arith.mulf %1721, %1750 : vector<8x128xf32>
      %1760 = arith.addf %1705, %1759 : vector<8x128xf32>
      %1761 = arith.mulf %1723, %1750 : vector<8x128xf32>
      %1762 = arith.addf %1707, %1761 : vector<8x128xf32>
      %1763 = arith.mulf %1725, %1750 : vector<8x128xf32>
      %1764 = arith.addf %1709, %1763 : vector<8x128xf32>
      %1765 = arith.mulf %1727, %1750 : vector<8x128xf32>
      %1766 = arith.addf %1711, %1765 : vector<8x128xf32>
      %cst_1302 = arith.constant 9.99999996E-13 : f32
      %1767 = vector.broadcast %cst_1302 : f32 to vector<8x128xf32>
      %1768 = arith.addf %1752, %1767 : vector<8x128xf32>
      %1769 = tpu.reciprocal %1768 {approx = true} : vector<8x128xf32> -> vector<8x128xf32>
      %1770 = arith.mulf %1768, %1769 : vector<8x128xf32>
      %cst_1303 = arith.constant 2.000000e+00 : f32
      %1771 = vector.broadcast %cst_1303 : f32 to vector<8x128xf32>
      %1772 = arith.subf %1771, %1770 : vector<8x128xf32>
      %1773 = arith.mulf %1769, %1772 : vector<8x128xf32>
      %1774 = arith.mulf %138, %1773 : vector<8x128xf32>
      %cst_1304 = arith.constant 9.99999996E-13 : f32
      %1775 = vector.broadcast %cst_1304 : f32 to vector<8x128xf32>
      %1776 = arith.addf %1754, %1775 : vector<8x128xf32>
      %1777 = tpu.reciprocal %1776 {approx = true} : vector<8x128xf32> -> vector<8x128xf32>
      %1778 = arith.mulf %1776, %1777 : vector<8x128xf32>
      %cst_1305 = arith.constant 2.000000e+00 : f32
      %1779 = vector.broadcast %cst_1305 : f32 to vector<8x128xf32>
      %1780 = arith.subf %1779, %1778 : vector<8x128xf32>
      %1781 = arith.mulf %1777, %1780 : vector<8x128xf32>
      %1782 = arith.mulf %141, %1781 : vector<8x128xf32>
      %cst_1306 = arith.constant 9.99999996E-13 : f32
      %1783 = vector.broadcast %cst_1306 : f32 to vector<8x128xf32>
      %1784 = arith.addf %1756, %1783 : vector<8x128xf32>
      %1785 = tpu.reciprocal %1784 {approx = true} : vector<8x128xf32> -> vector<8x128xf32>
      %1786 = arith.mulf %1784, %1785 : vector<8x128xf32>
      %cst_1307 = arith.constant 2.000000e+00 : f32
      %1787 = vector.broadcast %cst_1307 : f32 to vector<8x128xf32>
      %1788 = arith.subf %1787, %1786 : vector<8x128xf32>
      %1789 = arith.mulf %1785, %1788 : vector<8x128xf32>
      %1790 = arith.mulf %144, %1789 : vector<8x128xf32>
      %cst_1308 = arith.constant 9.99999996E-13 : f32
      %1791 = vector.broadcast %cst_1308 : f32 to vector<8x128xf32>
      %1792 = arith.addf %1758, %1791 : vector<8x128xf32>
      %1793 = tpu.reciprocal %1792 {approx = true} : vector<8x128xf32> -> vector<8x128xf32>
      %1794 = arith.mulf %1792, %1793 : vector<8x128xf32>
      %cst_1309 = arith.constant 2.000000e+00 : f32
      %1795 = vector.broadcast %cst_1309 : f32 to vector<8x128xf32>
      %1796 = arith.subf %1795, %1794 : vector<8x128xf32>
      %1797 = arith.mulf %1793, %1796 : vector<8x128xf32>
      %1798 = arith.mulf %147, %1797 : vector<8x128xf32>
      %cst_1310 = arith.constant 9.99999996E-13 : f32
      %1799 = vector.broadcast %cst_1310 : f32 to vector<8x128xf32>
      %1800 = arith.addf %1760, %1799 : vector<8x128xf32>
      %1801 = tpu.reciprocal %1800 {approx = true} : vector<8x128xf32> -> vector<8x128xf32>
      %1802 = arith.mulf %1800, %1801 : vector<8x128xf32>
      %cst_1311 = arith.constant 2.000000e+00 : f32
      %1803 = vector.broadcast %cst_1311 : f32 to vector<8x128xf32>
      %1804 = arith.subf %1803, %1802 : vector<8x128xf32>
      %1805 = arith.mulf %1801, %1804 : vector<8x128xf32>
      %1806 = arith.mulf %150, %1805 : vector<8x128xf32>
      %cst_1312 = arith.constant 9.99999996E-13 : f32
      %1807 = vector.broadcast %cst_1312 : f32 to vector<8x128xf32>
      %1808 = arith.addf %1762, %1807 : vector<8x128xf32>
      %1809 = tpu.reciprocal %1808 {approx = true} : vector<8x128xf32> -> vector<8x128xf32>
      %1810 = arith.mulf %1808, %1809 : vector<8x128xf32>
      %cst_1313 = arith.constant 2.000000e+00 : f32
      %1811 = vector.broadcast %cst_1313 : f32 to vector<8x128xf32>
      %1812 = arith.subf %1811, %1810 : vector<8x128xf32>
      %1813 = arith.mulf %1809, %1812 : vector<8x128xf32>
      %1814 = arith.mulf %153, %1813 : vector<8x128xf32>
      %cst_1314 = arith.constant 9.99999996E-13 : f32
      %1815 = vector.broadcast %cst_1314 : f32 to vector<8x128xf32>
      %1816 = arith.addf %1764, %1815 : vector<8x128xf32>
      %1817 = tpu.reciprocal %1816 {approx = true} : vector<8x128xf32> -> vector<8x128xf32>
      %1818 = arith.mulf %1816, %1817 : vector<8x128xf32>
      %cst_1315 = arith.constant 2.000000e+00 : f32
      %1819 = vector.broadcast %cst_1315 : f32 to vector<8x128xf32>
      %1820 = arith.subf %1819, %1818 : vector<8x128xf32>
      %1821 = arith.mulf %1817, %1820 : vector<8x128xf32>
      %1822 = arith.mulf %156, %1821 : vector<8x128xf32>
      %cst_1316 = arith.constant 9.99999996E-13 : f32
      %1823 = vector.broadcast %cst_1316 : f32 to vector<8x128xf32>
      %1824 = arith.addf %1766, %1823 : vector<8x128xf32>
      %1825 = tpu.reciprocal %1824 {approx = true} : vector<8x128xf32> -> vector<8x128xf32>
      %1826 = arith.mulf %1824, %1825 : vector<8x128xf32>
      %cst_1317 = arith.constant 2.000000e+00 : f32
      %1827 = vector.broadcast %cst_1317 : f32 to vector<8x128xf32>
      %1828 = arith.subf %1827, %1826 : vector<8x128xf32>
      %1829 = arith.mulf %1825, %1828 : vector<8x128xf32>
      %1830 = arith.mulf %159, %1829 : vector<8x128xf32>
      scf.yield %1365, %1420, %1475, %1530, %1585, %1640, %1695, %1750, %1774, %1782, %1790, %1798, %1806, %1814, %1822, %1830 : vector<8x128xf32>, vector<8x128xf32>, vector<8x128xf32>, vector<8x128xf32>, vector<8x128xf32>, vector<8x128xf32>, vector<8x128xf32>, vector<8x128xf32>, vector<8x128xf32>, vector<8x128xf32>, vector<8x128xf32>, vector<8x128xf32>, vector<8x128xf32>, vector<8x128xf32>, vector<8x128xf32>, vector<8x128xf32>
    }
    %c0_897 = arith.constant 0 : index
    %c0_898 = arith.constant 0 : index
    %c0_899 = arith.constant 0 : index
    %1058 = vector.load %arg6[%c0_897, %c0_898, %c0_899] : memref<64x8x128xf32, #tpu.memory_space<vmem>>, vector<1x8x128xf32>
    %1059 = vector.shape_cast %1058 : vector<1x8x128xf32> to vector<8x128xf32>
    %c1_900 = arith.constant 1 : index
    %c0_901 = arith.constant 0 : index
    %c0_902 = arith.constant 0 : index
    %1060 = vector.load %arg6[%c1_900, %c0_901, %c0_902] : memref<64x8x128xf32, #tpu.memory_space<vmem>>, vector<1x8x128xf32>
    %1061 = vector.shape_cast %1060 : vector<1x8x128xf32> to vector<8x128xf32>
    %c2_903 = arith.constant 2 : index
    %c0_904 = arith.constant 0 : index
    %c0_905 = arith.constant 0 : index
    %1062 = vector.load %arg6[%c2_903, %c0_904, %c0_905] : memref<64x8x128xf32, #tpu.memory_space<vmem>>, vector<1x8x128xf32>
    %1063 = vector.shape_cast %1062 : vector<1x8x128xf32> to vector<8x128xf32>
    %c3_906 = arith.constant 3 : index
    %c0_907 = arith.constant 0 : index
    %c0_908 = arith.constant 0 : index
    %1064 = vector.load %arg6[%c3_906, %c0_907, %c0_908] : memref<64x8x128xf32, #tpu.memory_space<vmem>>, vector<1x8x128xf32>
    %1065 = vector.shape_cast %1064 : vector<1x8x128xf32> to vector<8x128xf32>
    %c4_909 = arith.constant 4 : index
    %c0_910 = arith.constant 0 : index
    %c0_911 = arith.constant 0 : index
    %1066 = vector.load %arg6[%c4_909, %c0_910, %c0_911] : memref<64x8x128xf32, #tpu.memory_space<vmem>>, vector<1x8x128xf32>
    %1067 = vector.shape_cast %1066 : vector<1x8x128xf32> to vector<8x128xf32>
    %c5_912 = arith.constant 5 : index
    %c0_913 = arith.constant 0 : index
    %c0_914 = arith.constant 0 : index
    %1068 = vector.load %arg6[%c5_912, %c0_913, %c0_914] : memref<64x8x128xf32, #tpu.memory_space<vmem>>, vector<1x8x128xf32>
    %1069 = vector.shape_cast %1068 : vector<1x8x128xf32> to vector<8x128xf32>
    %c6_915 = arith.constant 6 : index
    %c0_916 = arith.constant 0 : index
    %c0_917 = arith.constant 0 : index
    %1070 = vector.load %arg6[%c6_915, %c0_916, %c0_917] : memref<64x8x128xf32, #tpu.memory_space<vmem>>, vector<1x8x128xf32>
    %1071 = vector.shape_cast %1070 : vector<1x8x128xf32> to vector<8x128xf32>
    %c7_918 = arith.constant 7 : index
    %c0_919 = arith.constant 0 : index
    %c0_920 = arith.constant 0 : index
    %1072 = vector.load %arg6[%c7_918, %c0_919, %c0_920] : memref<64x8x128xf32, #tpu.memory_space<vmem>>, vector<1x8x128xf32>
    %1073 = vector.shape_cast %1072 : vector<1x8x128xf32> to vector<8x128xf32>
    %1074 = arith.mulf %1059, %1057#8 : vector<8x128xf32>
    %1075 = arith.mulf %1061, %1057#9 : vector<8x128xf32>
    %1076 = arith.mulf %1063, %1057#10 : vector<8x128xf32>
    %1077 = arith.addf %1074, %1076 : vector<8x128xf32>
    %1078 = arith.mulf %1065, %1057#11 : vector<8x128xf32>
    %1079 = arith.addf %1075, %1078 : vector<8x128xf32>
    %1080 = arith.mulf %1067, %1057#12 : vector<8x128xf32>
    %1081 = arith.addf %1077, %1080 : vector<8x128xf32>
    %1082 = arith.mulf %1069, %1057#13 : vector<8x128xf32>
    %1083 = arith.addf %1079, %1082 : vector<8x128xf32>
    %1084 = arith.mulf %1071, %1057#14 : vector<8x128xf32>
    %1085 = arith.addf %1081, %1084 : vector<8x128xf32>
    %1086 = arith.mulf %1073, %1057#15 : vector<8x128xf32>
    %1087 = arith.addf %1083, %1086 : vector<8x128xf32>
    %1088 = arith.addf %1085, %1087 : vector<8x128xf32>
    %1089 = arith.mulf %1057#0, %1088 : vector<8x128xf32>
    %1090 = arith.addf %1, %1089 : vector<8x128xf32>
    %c8_921 = arith.constant 8 : index
    %c0_922 = arith.constant 0 : index
    %c0_923 = arith.constant 0 : index
    %1091 = vector.load %arg6[%c8_921, %c0_922, %c0_923] : memref<64x8x128xf32, #tpu.memory_space<vmem>>, vector<1x8x128xf32>
    %1092 = vector.shape_cast %1091 : vector<1x8x128xf32> to vector<8x128xf32>
    %c9_924 = arith.constant 9 : index
    %c0_925 = arith.constant 0 : index
    %c0_926 = arith.constant 0 : index
    %1093 = vector.load %arg6[%c9_924, %c0_925, %c0_926] : memref<64x8x128xf32, #tpu.memory_space<vmem>>, vector<1x8x128xf32>
    %1094 = vector.shape_cast %1093 : vector<1x8x128xf32> to vector<8x128xf32>
    %c10_927 = arith.constant 10 : index
    %c0_928 = arith.constant 0 : index
    %c0_929 = arith.constant 0 : index
    %1095 = vector.load %arg6[%c10_927, %c0_928, %c0_929] : memref<64x8x128xf32, #tpu.memory_space<vmem>>, vector<1x8x128xf32>
    %1096 = vector.shape_cast %1095 : vector<1x8x128xf32> to vector<8x128xf32>
    %c11_930 = arith.constant 11 : index
    %c0_931 = arith.constant 0 : index
    %c0_932 = arith.constant 0 : index
    %1097 = vector.load %arg6[%c11_930, %c0_931, %c0_932] : memref<64x8x128xf32, #tpu.memory_space<vmem>>, vector<1x8x128xf32>
    %1098 = vector.shape_cast %1097 : vector<1x8x128xf32> to vector<8x128xf32>
    %c12_933 = arith.constant 12 : index
    %c0_934 = arith.constant 0 : index
    %c0_935 = arith.constant 0 : index
    %1099 = vector.load %arg6[%c12_933, %c0_934, %c0_935] : memref<64x8x128xf32, #tpu.memory_space<vmem>>, vector<1x8x128xf32>
    %1100 = vector.shape_cast %1099 : vector<1x8x128xf32> to vector<8x128xf32>
    %c13_936 = arith.constant 13 : index
    %c0_937 = arith.constant 0 : index
    %c0_938 = arith.constant 0 : index
    %1101 = vector.load %arg6[%c13_936, %c0_937, %c0_938] : memref<64x8x128xf32, #tpu.memory_space<vmem>>, vector<1x8x128xf32>
    %1102 = vector.shape_cast %1101 : vector<1x8x128xf32> to vector<8x128xf32>
    %c14_939 = arith.constant 14 : index
    %c0_940 = arith.constant 0 : index
    %c0_941 = arith.constant 0 : index
    %1103 = vector.load %arg6[%c14_939, %c0_940, %c0_941] : memref<64x8x128xf32, #tpu.memory_space<vmem>>, vector<1x8x128xf32>
    %1104 = vector.shape_cast %1103 : vector<1x8x128xf32> to vector<8x128xf32>
    %c15_942 = arith.constant 15 : index
    %c0_943 = arith.constant 0 : index
    %c0_944 = arith.constant 0 : index
    %1105 = vector.load %arg6[%c15_942, %c0_943, %c0_944] : memref<64x8x128xf32, #tpu.memory_space<vmem>>, vector<1x8x128xf32>
    %1106 = vector.shape_cast %1105 : vector<1x8x128xf32> to vector<8x128xf32>
    %1107 = arith.mulf %1092, %1057#8 : vector<8x128xf32>
    %1108 = arith.mulf %1094, %1057#9 : vector<8x128xf32>
    %1109 = arith.mulf %1096, %1057#10 : vector<8x128xf32>
    %1110 = arith.addf %1107, %1109 : vector<8x128xf32>
    %1111 = arith.mulf %1098, %1057#11 : vector<8x128xf32>
    %1112 = arith.addf %1108, %1111 : vector<8x128xf32>
    %1113 = arith.mulf %1100, %1057#12 : vector<8x128xf32>
    %1114 = arith.addf %1110, %1113 : vector<8x128xf32>
    %1115 = arith.mulf %1102, %1057#13 : vector<8x128xf32>
    %1116 = arith.addf %1112, %1115 : vector<8x128xf32>
    %1117 = arith.mulf %1104, %1057#14 : vector<8x128xf32>
    %1118 = arith.addf %1114, %1117 : vector<8x128xf32>
    %1119 = arith.mulf %1106, %1057#15 : vector<8x128xf32>
    %1120 = arith.addf %1116, %1119 : vector<8x128xf32>
    %1121 = arith.addf %1118, %1120 : vector<8x128xf32>
    %1122 = arith.mulf %1057#1, %1121 : vector<8x128xf32>
    %1123 = arith.addf %1090, %1122 : vector<8x128xf32>
    %c16_945 = arith.constant 16 : index
    %c0_946 = arith.constant 0 : index
    %c0_947 = arith.constant 0 : index
    %1124 = vector.load %arg6[%c16_945, %c0_946, %c0_947] : memref<64x8x128xf32, #tpu.memory_space<vmem>>, vector<1x8x128xf32>
    %1125 = vector.shape_cast %1124 : vector<1x8x128xf32> to vector<8x128xf32>
    %c17_948 = arith.constant 17 : index
    %c0_949 = arith.constant 0 : index
    %c0_950 = arith.constant 0 : index
    %1126 = vector.load %arg6[%c17_948, %c0_949, %c0_950] : memref<64x8x128xf32, #tpu.memory_space<vmem>>, vector<1x8x128xf32>
    %1127 = vector.shape_cast %1126 : vector<1x8x128xf32> to vector<8x128xf32>
    %c18_951 = arith.constant 18 : index
    %c0_952 = arith.constant 0 : index
    %c0_953 = arith.constant 0 : index
    %1128 = vector.load %arg6[%c18_951, %c0_952, %c0_953] : memref<64x8x128xf32, #tpu.memory_space<vmem>>, vector<1x8x128xf32>
    %1129 = vector.shape_cast %1128 : vector<1x8x128xf32> to vector<8x128xf32>
    %c19_954 = arith.constant 19 : index
    %c0_955 = arith.constant 0 : index
    %c0_956 = arith.constant 0 : index
    %1130 = vector.load %arg6[%c19_954, %c0_955, %c0_956] : memref<64x8x128xf32, #tpu.memory_space<vmem>>, vector<1x8x128xf32>
    %1131 = vector.shape_cast %1130 : vector<1x8x128xf32> to vector<8x128xf32>
    %c20_957 = arith.constant 20 : index
    %c0_958 = arith.constant 0 : index
    %c0_959 = arith.constant 0 : index
    %1132 = vector.load %arg6[%c20_957, %c0_958, %c0_959] : memref<64x8x128xf32, #tpu.memory_space<vmem>>, vector<1x8x128xf32>
    %1133 = vector.shape_cast %1132 : vector<1x8x128xf32> to vector<8x128xf32>
    %c21_960 = arith.constant 21 : index
    %c0_961 = arith.constant 0 : index
    %c0_962 = arith.constant 0 : index
    %1134 = vector.load %arg6[%c21_960, %c0_961, %c0_962] : memref<64x8x128xf32, #tpu.memory_space<vmem>>, vector<1x8x128xf32>
    %1135 = vector.shape_cast %1134 : vector<1x8x128xf32> to vector<8x128xf32>
    %c22_963 = arith.constant 22 : index
    %c0_964 = arith.constant 0 : index
    %c0_965 = arith.constant 0 : index
    %1136 = vector.load %arg6[%c22_963, %c0_964, %c0_965] : memref<64x8x128xf32, #tpu.memory_space<vmem>>, vector<1x8x128xf32>
    %1137 = vector.shape_cast %1136 : vector<1x8x128xf32> to vector<8x128xf32>
    %c23_966 = arith.constant 23 : index
    %c0_967 = arith.constant 0 : index
    %c0_968 = arith.constant 0 : index
    %1138 = vector.load %arg6[%c23_966, %c0_967, %c0_968] : memref<64x8x128xf32, #tpu.memory_space<vmem>>, vector<1x8x128xf32>
    %1139 = vector.shape_cast %1138 : vector<1x8x128xf32> to vector<8x128xf32>
    %1140 = arith.mulf %1125, %1057#8 : vector<8x128xf32>
    %1141 = arith.mulf %1127, %1057#9 : vector<8x128xf32>
    %1142 = arith.mulf %1129, %1057#10 : vector<8x128xf32>
    %1143 = arith.addf %1140, %1142 : vector<8x128xf32>
    %1144 = arith.mulf %1131, %1057#11 : vector<8x128xf32>
    %1145 = arith.addf %1141, %1144 : vector<8x128xf32>
    %1146 = arith.mulf %1133, %1057#12 : vector<8x128xf32>
    %1147 = arith.addf %1143, %1146 : vector<8x128xf32>
    %1148 = arith.mulf %1135, %1057#13 : vector<8x128xf32>
    %1149 = arith.addf %1145, %1148 : vector<8x128xf32>
    %1150 = arith.mulf %1137, %1057#14 : vector<8x128xf32>
    %1151 = arith.addf %1147, %1150 : vector<8x128xf32>
    %1152 = arith.mulf %1139, %1057#15 : vector<8x128xf32>
    %1153 = arith.addf %1149, %1152 : vector<8x128xf32>
    %1154 = arith.addf %1151, %1153 : vector<8x128xf32>
    %1155 = arith.mulf %1057#2, %1154 : vector<8x128xf32>
    %1156 = arith.addf %1123, %1155 : vector<8x128xf32>
    %c24_969 = arith.constant 24 : index
    %c0_970 = arith.constant 0 : index
    %c0_971 = arith.constant 0 : index
    %1157 = vector.load %arg6[%c24_969, %c0_970, %c0_971] : memref<64x8x128xf32, #tpu.memory_space<vmem>>, vector<1x8x128xf32>
    %1158 = vector.shape_cast %1157 : vector<1x8x128xf32> to vector<8x128xf32>
    %c25_972 = arith.constant 25 : index
    %c0_973 = arith.constant 0 : index
    %c0_974 = arith.constant 0 : index
    %1159 = vector.load %arg6[%c25_972, %c0_973, %c0_974] : memref<64x8x128xf32, #tpu.memory_space<vmem>>, vector<1x8x128xf32>
    %1160 = vector.shape_cast %1159 : vector<1x8x128xf32> to vector<8x128xf32>
    %c26_975 = arith.constant 26 : index
    %c0_976 = arith.constant 0 : index
    %c0_977 = arith.constant 0 : index
    %1161 = vector.load %arg6[%c26_975, %c0_976, %c0_977] : memref<64x8x128xf32, #tpu.memory_space<vmem>>, vector<1x8x128xf32>
    %1162 = vector.shape_cast %1161 : vector<1x8x128xf32> to vector<8x128xf32>
    %c27_978 = arith.constant 27 : index
    %c0_979 = arith.constant 0 : index
    %c0_980 = arith.constant 0 : index
    %1163 = vector.load %arg6[%c27_978, %c0_979, %c0_980] : memref<64x8x128xf32, #tpu.memory_space<vmem>>, vector<1x8x128xf32>
    %1164 = vector.shape_cast %1163 : vector<1x8x128xf32> to vector<8x128xf32>
    %c28_981 = arith.constant 28 : index
    %c0_982 = arith.constant 0 : index
    %c0_983 = arith.constant 0 : index
    %1165 = vector.load %arg6[%c28_981, %c0_982, %c0_983] : memref<64x8x128xf32, #tpu.memory_space<vmem>>, vector<1x8x128xf32>
    %1166 = vector.shape_cast %1165 : vector<1x8x128xf32> to vector<8x128xf32>
    %c29_984 = arith.constant 29 : index
    %c0_985 = arith.constant 0 : index
    %c0_986 = arith.constant 0 : index
    %1167 = vector.load %arg6[%c29_984, %c0_985, %c0_986] : memref<64x8x128xf32, #tpu.memory_space<vmem>>, vector<1x8x128xf32>
    %1168 = vector.shape_cast %1167 : vector<1x8x128xf32> to vector<8x128xf32>
    %c30_987 = arith.constant 30 : index
    %c0_988 = arith.constant 0 : index
    %c0_989 = arith.constant 0 : index
    %1169 = vector.load %arg6[%c30_987, %c0_988, %c0_989] : memref<64x8x128xf32, #tpu.memory_space<vmem>>, vector<1x8x128xf32>
    %1170 = vector.shape_cast %1169 : vector<1x8x128xf32> to vector<8x128xf32>
    %c31_990 = arith.constant 31 : index
    %c0_991 = arith.constant 0 : index
    %c0_992 = arith.constant 0 : index
    %1171 = vector.load %arg6[%c31_990, %c0_991, %c0_992] : memref<64x8x128xf32, #tpu.memory_space<vmem>>, vector<1x8x128xf32>
    %1172 = vector.shape_cast %1171 : vector<1x8x128xf32> to vector<8x128xf32>
    %1173 = arith.mulf %1158, %1057#8 : vector<8x128xf32>
    %1174 = arith.mulf %1160, %1057#9 : vector<8x128xf32>
    %1175 = arith.mulf %1162, %1057#10 : vector<8x128xf32>
    %1176 = arith.addf %1173, %1175 : vector<8x128xf32>
    %1177 = arith.mulf %1164, %1057#11 : vector<8x128xf32>
    %1178 = arith.addf %1174, %1177 : vector<8x128xf32>
    %1179 = arith.mulf %1166, %1057#12 : vector<8x128xf32>
    %1180 = arith.addf %1176, %1179 : vector<8x128xf32>
    %1181 = arith.mulf %1168, %1057#13 : vector<8x128xf32>
    %1182 = arith.addf %1178, %1181 : vector<8x128xf32>
    %1183 = arith.mulf %1170, %1057#14 : vector<8x128xf32>
    %1184 = arith.addf %1180, %1183 : vector<8x128xf32>
    %1185 = arith.mulf %1172, %1057#15 : vector<8x128xf32>
    %1186 = arith.addf %1182, %1185 : vector<8x128xf32>
    %1187 = arith.addf %1184, %1186 : vector<8x128xf32>
    %1188 = arith.mulf %1057#3, %1187 : vector<8x128xf32>
    %1189 = arith.addf %1156, %1188 : vector<8x128xf32>
    %c32_993 = arith.constant 32 : index
    %c0_994 = arith.constant 0 : index
    %c0_995 = arith.constant 0 : index
    %1190 = vector.load %arg6[%c32_993, %c0_994, %c0_995] : memref<64x8x128xf32, #tpu.memory_space<vmem>>, vector<1x8x128xf32>
    %1191 = vector.shape_cast %1190 : vector<1x8x128xf32> to vector<8x128xf32>
    %c33_996 = arith.constant 33 : index
    %c0_997 = arith.constant 0 : index
    %c0_998 = arith.constant 0 : index
    %1192 = vector.load %arg6[%c33_996, %c0_997, %c0_998] : memref<64x8x128xf32, #tpu.memory_space<vmem>>, vector<1x8x128xf32>
    %1193 = vector.shape_cast %1192 : vector<1x8x128xf32> to vector<8x128xf32>
    %c34_999 = arith.constant 34 : index
    %c0_1000 = arith.constant 0 : index
    %c0_1001 = arith.constant 0 : index
    %1194 = vector.load %arg6[%c34_999, %c0_1000, %c0_1001] : memref<64x8x128xf32, #tpu.memory_space<vmem>>, vector<1x8x128xf32>
    %1195 = vector.shape_cast %1194 : vector<1x8x128xf32> to vector<8x128xf32>
    %c35_1002 = arith.constant 35 : index
    %c0_1003 = arith.constant 0 : index
    %c0_1004 = arith.constant 0 : index
    %1196 = vector.load %arg6[%c35_1002, %c0_1003, %c0_1004] : memref<64x8x128xf32, #tpu.memory_space<vmem>>, vector<1x8x128xf32>
    %1197 = vector.shape_cast %1196 : vector<1x8x128xf32> to vector<8x128xf32>
    %c36_1005 = arith.constant 36 : index
    %c0_1006 = arith.constant 0 : index
    %c0_1007 = arith.constant 0 : index
    %1198 = vector.load %arg6[%c36_1005, %c0_1006, %c0_1007] : memref<64x8x128xf32, #tpu.memory_space<vmem>>, vector<1x8x128xf32>
    %1199 = vector.shape_cast %1198 : vector<1x8x128xf32> to vector<8x128xf32>
    %c37_1008 = arith.constant 37 : index
    %c0_1009 = arith.constant 0 : index
    %c0_1010 = arith.constant 0 : index
    %1200 = vector.load %arg6[%c37_1008, %c0_1009, %c0_1010] : memref<64x8x128xf32, #tpu.memory_space<vmem>>, vector<1x8x128xf32>
    %1201 = vector.shape_cast %1200 : vector<1x8x128xf32> to vector<8x128xf32>
    %c38_1011 = arith.constant 38 : index
    %c0_1012 = arith.constant 0 : index
    %c0_1013 = arith.constant 0 : index
    %1202 = vector.load %arg6[%c38_1011, %c0_1012, %c0_1013] : memref<64x8x128xf32, #tpu.memory_space<vmem>>, vector<1x8x128xf32>
    %1203 = vector.shape_cast %1202 : vector<1x8x128xf32> to vector<8x128xf32>
    %c39_1014 = arith.constant 39 : index
    %c0_1015 = arith.constant 0 : index
    %c0_1016 = arith.constant 0 : index
    %1204 = vector.load %arg6[%c39_1014, %c0_1015, %c0_1016] : memref<64x8x128xf32, #tpu.memory_space<vmem>>, vector<1x8x128xf32>
    %1205 = vector.shape_cast %1204 : vector<1x8x128xf32> to vector<8x128xf32>
    %1206 = arith.mulf %1191, %1057#8 : vector<8x128xf32>
    %1207 = arith.mulf %1193, %1057#9 : vector<8x128xf32>
    %1208 = arith.mulf %1195, %1057#10 : vector<8x128xf32>
    %1209 = arith.addf %1206, %1208 : vector<8x128xf32>
    %1210 = arith.mulf %1197, %1057#11 : vector<8x128xf32>
    %1211 = arith.addf %1207, %1210 : vector<8x128xf32>
    %1212 = arith.mulf %1199, %1057#12 : vector<8x128xf32>
    %1213 = arith.addf %1209, %1212 : vector<8x128xf32>
    %1214 = arith.mulf %1201, %1057#13 : vector<8x128xf32>
    %1215 = arith.addf %1211, %1214 : vector<8x128xf32>
    %1216 = arith.mulf %1203, %1057#14 : vector<8x128xf32>
    %1217 = arith.addf %1213, %1216 : vector<8x128xf32>
    %1218 = arith.mulf %1205, %1057#15 : vector<8x128xf32>
    %1219 = arith.addf %1215, %1218 : vector<8x128xf32>
    %1220 = arith.addf %1217, %1219 : vector<8x128xf32>
    %1221 = arith.mulf %1057#4, %1220 : vector<8x128xf32>
    %1222 = arith.addf %1189, %1221 : vector<8x128xf32>
    %c40_1017 = arith.constant 40 : index
    %c0_1018 = arith.constant 0 : index
    %c0_1019 = arith.constant 0 : index
    %1223 = vector.load %arg6[%c40_1017, %c0_1018, %c0_1019] : memref<64x8x128xf32, #tpu.memory_space<vmem>>, vector<1x8x128xf32>
    %1224 = vector.shape_cast %1223 : vector<1x8x128xf32> to vector<8x128xf32>
    %c41_1020 = arith.constant 41 : index
    %c0_1021 = arith.constant 0 : index
    %c0_1022 = arith.constant 0 : index
    %1225 = vector.load %arg6[%c41_1020, %c0_1021, %c0_1022] : memref<64x8x128xf32, #tpu.memory_space<vmem>>, vector<1x8x128xf32>
    %1226 = vector.shape_cast %1225 : vector<1x8x128xf32> to vector<8x128xf32>
    %c42_1023 = arith.constant 42 : index
    %c0_1024 = arith.constant 0 : index
    %c0_1025 = arith.constant 0 : index
    %1227 = vector.load %arg6[%c42_1023, %c0_1024, %c0_1025] : memref<64x8x128xf32, #tpu.memory_space<vmem>>, vector<1x8x128xf32>
    %1228 = vector.shape_cast %1227 : vector<1x8x128xf32> to vector<8x128xf32>
    %c43_1026 = arith.constant 43 : index
    %c0_1027 = arith.constant 0 : index
    %c0_1028 = arith.constant 0 : index
    %1229 = vector.load %arg6[%c43_1026, %c0_1027, %c0_1028] : memref<64x8x128xf32, #tpu.memory_space<vmem>>, vector<1x8x128xf32>
    %1230 = vector.shape_cast %1229 : vector<1x8x128xf32> to vector<8x128xf32>
    %c44_1029 = arith.constant 44 : index
    %c0_1030 = arith.constant 0 : index
    %c0_1031 = arith.constant 0 : index
    %1231 = vector.load %arg6[%c44_1029, %c0_1030, %c0_1031] : memref<64x8x128xf32, #tpu.memory_space<vmem>>, vector<1x8x128xf32>
    %1232 = vector.shape_cast %1231 : vector<1x8x128xf32> to vector<8x128xf32>
    %c45_1032 = arith.constant 45 : index
    %c0_1033 = arith.constant 0 : index
    %c0_1034 = arith.constant 0 : index
    %1233 = vector.load %arg6[%c45_1032, %c0_1033, %c0_1034] : memref<64x8x128xf32, #tpu.memory_space<vmem>>, vector<1x8x128xf32>
    %1234 = vector.shape_cast %1233 : vector<1x8x128xf32> to vector<8x128xf32>
    %c46_1035 = arith.constant 46 : index
    %c0_1036 = arith.constant 0 : index
    %c0_1037 = arith.constant 0 : index
    %1235 = vector.load %arg6[%c46_1035, %c0_1036, %c0_1037] : memref<64x8x128xf32, #tpu.memory_space<vmem>>, vector<1x8x128xf32>
    %1236 = vector.shape_cast %1235 : vector<1x8x128xf32> to vector<8x128xf32>
    %c47_1038 = arith.constant 47 : index
    %c0_1039 = arith.constant 0 : index
    %c0_1040 = arith.constant 0 : index
    %1237 = vector.load %arg6[%c47_1038, %c0_1039, %c0_1040] : memref<64x8x128xf32, #tpu.memory_space<vmem>>, vector<1x8x128xf32>
    %1238 = vector.shape_cast %1237 : vector<1x8x128xf32> to vector<8x128xf32>
    %1239 = arith.mulf %1224, %1057#8 : vector<8x128xf32>
    %1240 = arith.mulf %1226, %1057#9 : vector<8x128xf32>
    %1241 = arith.mulf %1228, %1057#10 : vector<8x128xf32>
    %1242 = arith.addf %1239, %1241 : vector<8x128xf32>
    %1243 = arith.mulf %1230, %1057#11 : vector<8x128xf32>
    %1244 = arith.addf %1240, %1243 : vector<8x128xf32>
    %1245 = arith.mulf %1232, %1057#12 : vector<8x128xf32>
    %1246 = arith.addf %1242, %1245 : vector<8x128xf32>
    %1247 = arith.mulf %1234, %1057#13 : vector<8x128xf32>
    %1248 = arith.addf %1244, %1247 : vector<8x128xf32>
    %1249 = arith.mulf %1236, %1057#14 : vector<8x128xf32>
    %1250 = arith.addf %1246, %1249 : vector<8x128xf32>
    %1251 = arith.mulf %1238, %1057#15 : vector<8x128xf32>
    %1252 = arith.addf %1248, %1251 : vector<8x128xf32>
    %1253 = arith.addf %1250, %1252 : vector<8x128xf32>
    %1254 = arith.mulf %1057#5, %1253 : vector<8x128xf32>
    %1255 = arith.addf %1222, %1254 : vector<8x128xf32>
    %c48_1041 = arith.constant 48 : index
    %c0_1042 = arith.constant 0 : index
    %c0_1043 = arith.constant 0 : index
    %1256 = vector.load %arg6[%c48_1041, %c0_1042, %c0_1043] : memref<64x8x128xf32, #tpu.memory_space<vmem>>, vector<1x8x128xf32>
    %1257 = vector.shape_cast %1256 : vector<1x8x128xf32> to vector<8x128xf32>
    %c49_1044 = arith.constant 49 : index
    %c0_1045 = arith.constant 0 : index
    %c0_1046 = arith.constant 0 : index
    %1258 = vector.load %arg6[%c49_1044, %c0_1045, %c0_1046] : memref<64x8x128xf32, #tpu.memory_space<vmem>>, vector<1x8x128xf32>
    %1259 = vector.shape_cast %1258 : vector<1x8x128xf32> to vector<8x128xf32>
    %c50_1047 = arith.constant 50 : index
    %c0_1048 = arith.constant 0 : index
    %c0_1049 = arith.constant 0 : index
    %1260 = vector.load %arg6[%c50_1047, %c0_1048, %c0_1049] : memref<64x8x128xf32, #tpu.memory_space<vmem>>, vector<1x8x128xf32>
    %1261 = vector.shape_cast %1260 : vector<1x8x128xf32> to vector<8x128xf32>
    %c51_1050 = arith.constant 51 : index
    %c0_1051 = arith.constant 0 : index
    %c0_1052 = arith.constant 0 : index
    %1262 = vector.load %arg6[%c51_1050, %c0_1051, %c0_1052] : memref<64x8x128xf32, #tpu.memory_space<vmem>>, vector<1x8x128xf32>
    %1263 = vector.shape_cast %1262 : vector<1x8x128xf32> to vector<8x128xf32>
    %c52_1053 = arith.constant 52 : index
    %c0_1054 = arith.constant 0 : index
    %c0_1055 = arith.constant 0 : index
    %1264 = vector.load %arg6[%c52_1053, %c0_1054, %c0_1055] : memref<64x8x128xf32, #tpu.memory_space<vmem>>, vector<1x8x128xf32>
    %1265 = vector.shape_cast %1264 : vector<1x8x128xf32> to vector<8x128xf32>
    %c53_1056 = arith.constant 53 : index
    %c0_1057 = arith.constant 0 : index
    %c0_1058 = arith.constant 0 : index
    %1266 = vector.load %arg6[%c53_1056, %c0_1057, %c0_1058] : memref<64x8x128xf32, #tpu.memory_space<vmem>>, vector<1x8x128xf32>
    %1267 = vector.shape_cast %1266 : vector<1x8x128xf32> to vector<8x128xf32>
    %c54_1059 = arith.constant 54 : index
    %c0_1060 = arith.constant 0 : index
    %c0_1061 = arith.constant 0 : index
    %1268 = vector.load %arg6[%c54_1059, %c0_1060, %c0_1061] : memref<64x8x128xf32, #tpu.memory_space<vmem>>, vector<1x8x128xf32>
    %1269 = vector.shape_cast %1268 : vector<1x8x128xf32> to vector<8x128xf32>
    %c55_1062 = arith.constant 55 : index
    %c0_1063 = arith.constant 0 : index
    %c0_1064 = arith.constant 0 : index
    %1270 = vector.load %arg6[%c55_1062, %c0_1063, %c0_1064] : memref<64x8x128xf32, #tpu.memory_space<vmem>>, vector<1x8x128xf32>
    %1271 = vector.shape_cast %1270 : vector<1x8x128xf32> to vector<8x128xf32>
    %1272 = arith.mulf %1257, %1057#8 : vector<8x128xf32>
    %1273 = arith.mulf %1259, %1057#9 : vector<8x128xf32>
    %1274 = arith.mulf %1261, %1057#10 : vector<8x128xf32>
    %1275 = arith.addf %1272, %1274 : vector<8x128xf32>
    %1276 = arith.mulf %1263, %1057#11 : vector<8x128xf32>
    %1277 = arith.addf %1273, %1276 : vector<8x128xf32>
    %1278 = arith.mulf %1265, %1057#12 : vector<8x128xf32>
    %1279 = arith.addf %1275, %1278 : vector<8x128xf32>
    %1280 = arith.mulf %1267, %1057#13 : vector<8x128xf32>
    %1281 = arith.addf %1277, %1280 : vector<8x128xf32>
    %1282 = arith.mulf %1269, %1057#14 : vector<8x128xf32>
    %1283 = arith.addf %1279, %1282 : vector<8x128xf32>
    %1284 = arith.mulf %1271, %1057#15 : vector<8x128xf32>
    %1285 = arith.addf %1281, %1284 : vector<8x128xf32>
    %1286 = arith.addf %1283, %1285 : vector<8x128xf32>
    %1287 = arith.mulf %1057#6, %1286 : vector<8x128xf32>
    %1288 = arith.addf %1255, %1287 : vector<8x128xf32>
    %c56_1065 = arith.constant 56 : index
    %c0_1066 = arith.constant 0 : index
    %c0_1067 = arith.constant 0 : index
    %1289 = vector.load %arg6[%c56_1065, %c0_1066, %c0_1067] : memref<64x8x128xf32, #tpu.memory_space<vmem>>, vector<1x8x128xf32>
    %1290 = vector.shape_cast %1289 : vector<1x8x128xf32> to vector<8x128xf32>
    %c57_1068 = arith.constant 57 : index
    %c0_1069 = arith.constant 0 : index
    %c0_1070 = arith.constant 0 : index
    %1291 = vector.load %arg6[%c57_1068, %c0_1069, %c0_1070] : memref<64x8x128xf32, #tpu.memory_space<vmem>>, vector<1x8x128xf32>
    %1292 = vector.shape_cast %1291 : vector<1x8x128xf32> to vector<8x128xf32>
    %c58_1071 = arith.constant 58 : index
    %c0_1072 = arith.constant 0 : index
    %c0_1073 = arith.constant 0 : index
    %1293 = vector.load %arg6[%c58_1071, %c0_1072, %c0_1073] : memref<64x8x128xf32, #tpu.memory_space<vmem>>, vector<1x8x128xf32>
    %1294 = vector.shape_cast %1293 : vector<1x8x128xf32> to vector<8x128xf32>
    %c59_1074 = arith.constant 59 : index
    %c0_1075 = arith.constant 0 : index
    %c0_1076 = arith.constant 0 : index
    %1295 = vector.load %arg6[%c59_1074, %c0_1075, %c0_1076] : memref<64x8x128xf32, #tpu.memory_space<vmem>>, vector<1x8x128xf32>
    %1296 = vector.shape_cast %1295 : vector<1x8x128xf32> to vector<8x128xf32>
    %c60_1077 = arith.constant 60 : index
    %c0_1078 = arith.constant 0 : index
    %c0_1079 = arith.constant 0 : index
    %1297 = vector.load %arg6[%c60_1077, %c0_1078, %c0_1079] : memref<64x8x128xf32, #tpu.memory_space<vmem>>, vector<1x8x128xf32>
    %1298 = vector.shape_cast %1297 : vector<1x8x128xf32> to vector<8x128xf32>
    %c61_1080 = arith.constant 61 : index
    %c0_1081 = arith.constant 0 : index
    %c0_1082 = arith.constant 0 : index
    %1299 = vector.load %arg6[%c61_1080, %c0_1081, %c0_1082] : memref<64x8x128xf32, #tpu.memory_space<vmem>>, vector<1x8x128xf32>
    %1300 = vector.shape_cast %1299 : vector<1x8x128xf32> to vector<8x128xf32>
    %c62_1083 = arith.constant 62 : index
    %c0_1084 = arith.constant 0 : index
    %c0_1085 = arith.constant 0 : index
    %1301 = vector.load %arg6[%c62_1083, %c0_1084, %c0_1085] : memref<64x8x128xf32, #tpu.memory_space<vmem>>, vector<1x8x128xf32>
    %1302 = vector.shape_cast %1301 : vector<1x8x128xf32> to vector<8x128xf32>
    %c63_1086 = arith.constant 63 : index
    %c0_1087 = arith.constant 0 : index
    %c0_1088 = arith.constant 0 : index
    %1303 = vector.load %arg6[%c63_1086, %c0_1087, %c0_1088] : memref<64x8x128xf32, #tpu.memory_space<vmem>>, vector<1x8x128xf32>
    %1304 = vector.shape_cast %1303 : vector<1x8x128xf32> to vector<8x128xf32>
    %1305 = arith.mulf %1290, %1057#8 : vector<8x128xf32>
    %1306 = arith.mulf %1292, %1057#9 : vector<8x128xf32>
    %1307 = arith.mulf %1294, %1057#10 : vector<8x128xf32>
    %1308 = arith.addf %1305, %1307 : vector<8x128xf32>
    %1309 = arith.mulf %1296, %1057#11 : vector<8x128xf32>
    %1310 = arith.addf %1306, %1309 : vector<8x128xf32>
    %1311 = arith.mulf %1298, %1057#12 : vector<8x128xf32>
    %1312 = arith.addf %1308, %1311 : vector<8x128xf32>
    %1313 = arith.mulf %1300, %1057#13 : vector<8x128xf32>
    %1314 = arith.addf %1310, %1313 : vector<8x128xf32>
    %1315 = arith.mulf %1302, %1057#14 : vector<8x128xf32>
    %1316 = arith.addf %1312, %1315 : vector<8x128xf32>
    %1317 = arith.mulf %1304, %1057#15 : vector<8x128xf32>
    %1318 = arith.addf %1314, %1317 : vector<8x128xf32>
    %1319 = arith.addf %1316, %1318 : vector<8x128xf32>
    %1320 = arith.mulf %1057#7, %1319 : vector<8x128xf32>
    %1321 = arith.addf %1288, %1320 : vector<8x128xf32>
    %cst_1089 = arith.constant 1.562500e+00 : f32
    %1322 = vector.broadcast %cst_1089 : f32 to vector<8x128xf32>
    %1323 = arith.mulf %1321, %1322 : vector<8x128xf32>
    %c0_1090 = arith.constant 0 : index
    %c0_1091 = arith.constant 0 : index
    %c0_1092 = arith.constant 0 : index
    %c0_1093 = arith.constant 0 : index
    %1324 = vector.load %arg4[%c0_1090, %c0_1091, %c0_1092, %c0_1093] : memref<1x1x8x128xf32, #tpu.memory_space<vmem>>, vector<1x1x8x128xf32>
    %1325 = vector.shape_cast %1324 : vector<1x1x8x128xf32> to vector<8x128xf32>
    %1326 = vector.shape_cast %1323 : vector<8x128xf32> to vector<1x1x8x128xf32>
    tpu.vector_store %arg4[%c0_1090, %c0_1091, %c0_1092, %c0_1093], %1326 {strides = array<i32>} : memref<1x1x8x128xf32, #tpu.memory_space<vmem>>, vector<1x1x8x128xf32>,
    return
  }
  func.func @transform_0(%arg0: i32) -> (i32, i32, i32, i32, i32) {
    %c0_i32 = arith.constant 0 : i32
    %c0_i32_0 = arith.constant 0 : i32
    %c0_i32_1 = arith.constant 0 : i32
    %c0_i32_2 = arith.constant 0 : i32
    %c0_i32_3 = arith.constant 0 : i32
    return %arg0, %c0_i32, %c0_i32_0, %c0_i32_1, %c0_i32_2 : i32, i32, i32, i32, i32
  }
  func.func @transform_1(%arg0: i32) -> (i32, i32, i32, i32, i32) {
    %c0_i32 = arith.constant 0 : i32
    %c0_i32_0 = arith.constant 0 : i32
    %c0_i32_1 = arith.constant 0 : i32
    %c0_i32_2 = arith.constant 0 : i32
    %c0_i32_3 = arith.constant 0 : i32
    return %arg0, %c0_i32, %c0_i32_0, %c0_i32_1, %c0_i32_2 : i32, i32, i32, i32, i32
  }
  func.func @transform_2(%arg0: i32) -> (i32, i32, i32, i32, i32) {
    %c0_i32 = arith.constant 0 : i32
    %c0_i32_0 = arith.constant 0 : i32
    %c0_i32_1 = arith.constant 0 : i32
    %c0_i32_2 = arith.constant 0 : i32
    %c0_i32_3 = arith.constant 0 : i32
    return %arg0, %c0_i32, %c0_i32_0, %c0_i32_1, %c0_i32_2 : i32, i32, i32, i32, i32
  }
  func.func @transform_3(%arg0: i32) -> (i32, i32, i32, i32) {
    %c0_i32 = arith.constant 0 : i32
    %c0_i32_0 = arith.constant 0 : i32
    %c0_i32_1 = arith.constant 0 : i32
    %c0_i32_2 = arith.constant 0 : i32
    return %arg0, %c0_i32, %c0_i32_0, %c0_i32_1 : i32, i32, i32, i32
  }
}

</mosaic_0001>

<bundles_post_ra>
// kernel: emd_layer_forward.1
= control target key start
LH: loop header
LB: loop body
LE: loop exit
PB: predicated region body
PF: predicated region fallthrough
CT: control target
= control target key end

     0   :  { %s3156_s1 = inlined_call_operand.vmem [shape: f32[1,8,1,8,128], index: 1, kind: input, shape index: {}]   ;;  %s3157_s2 = inlined_call_operand.vmem [shape: f32[1,8,1,8,128], index: 2, kind: input, shape index: {}]   ;;  %s3158_s3 = inlined_call_operand.vmem [shape: f32[1,1,8,128], index: 3, kind: output, shape index: {}]   ;;  %s3159_s0 = inlined_call_operand.vmem [shape: f32[1,64,1,8,128], index: 0, kind: input, shape index: {}]  }
   0x1   :  { %v14_v0 = vld [vmem:[%s3156_s1] sm:$0xff]  ;;  %v1500_v1 = vld [vmem:[%s3156_s1 + $0x8] sm:$0xff]  ;;  %v1501_v2 = vld [vmem:[%s3156_s1 + $0x10] sm:$0xff] }
   0x2   :  { %v15_v3 = vmax.f32 %v14_v0, 0.0  ;;  %v19_v4 = vmax.f32 %v1500_v1, 0.0  ;;  %v23_v5 = vmax.f32 %v1501_v2, 0.0  ;;  %v1502_v6 = vld [vmem:[%s3156_s1 + $0x18] sm:$0xff]  ;;  %v1503_v7 = vld [vmem:[%s3156_s1 + $0x20] sm:$0xff]  ;;  %v1504_v8 = vld [vmem:[%s3156_s1 + $0x28] sm:$0xff] }
   0x3   :  { %v27_v9 = vmax.f32 %v1502_v6, 0.0  ;;  %v31_v10 = vmax.f32 %v1503_v7, 0.0  ;;  %v35_v11 = vmax.f32 %v1504_v8, 0.0  ;;  %v1505_v12 = vld [vmem:[%s3156_s1 + $0x30] sm:$0xff]  ;;  %v1506_v13 = vld [vmem:[%s3156_s1 + $0x38] sm:$0xff]  ;;  %v45_v14 = vld [vmem:[%s3157_s2] sm:$0xff] }
   0x4   :  { %v1996_v15 = vadd.f32 1e-05, %v15_v3  ;;  %v1998_v16 = vadd.f32 1e-05, %v19_v4  ;;  %v2000_v17 = vadd.f32 1e-05, %v23_v5 }
   0x5   :  { %v2002_v18 = vadd.f32 1e-05, %v27_v9  ;;  %v2004_v19 = vadd.f32 1e-05, %v31_v10  ;;  %v2006_v20 = vadd.f32 1e-05, %v35_v11 }
   0x6   :  { %v39_v21 = vmax.f32 %v1505_v12, 0.0  ;;  %v43_v22 = vmax.f32 %v1506_v13, 0.0  ;;  %v46_v23 = vmax.f32 %v45_v14, 0.0  ;;  %v1507_v24 = vld [vmem:[%s3157_s2 + $0x8] sm:$0xff]  ;;  %v1508_v25 = vld [vmem:[%s3157_s2 + $0x10] sm:$0xff]  ;;  %v1509_v26 = vld [vmem:[%s3157_s2 + $0x18] sm:$0xff]  ;;  %v76_v27 = vadd.f32 %v1998_v16, %v1996_v15 }
   0x7   :  { %v50_v28 = vmax.f32 %v1507_v24, 0.0  ;;  %v54_v29 = vmax.f32 %v1508_v25, 0.0  ;;  %v58_v30 = vmax.f32 %v1509_v26, 0.0  ;;  %v1510_v31 = vld [vmem:[%s3157_s2 + $0x20] sm:$0xff]  ;;  %v1511_v32 = vld [vmem:[%s3157_s2 + $0x28] sm:$0xff]  ;;  %v1512_v33 = vld [vmem:[%s3157_s2 + $0x30] sm:$0xff]  ;;  %v77_v34 = vadd.f32 %v2002_v18, %v2000_v17 }
   0x8   :  { %v2030_v35 = vadd.f32 1e-05, %v39_v21  ;;  %v2032_v36 = vadd.f32 1e-05, %v43_v22  ;;  %v2034_v37 = vadd.f32 1e-05, %v46_v23  ;;  %v78_v38 = vadd.f32 %v2006_v20, %v2004_v19 }
   0x9   :  { %v2038_v39 = vadd.f32 1e-05, %v50_v28  ;;  %v2040_v40 = vadd.f32 1e-05, %v54_v29  ;;  %v2042_v41 = vadd.f32 1e-05, %v58_v30  ;;  %v80_v42 = vadd.f32 %v77_v34, %v76_v27 }
   0xa   :  { %v62_v43 = vmax.f32 %v1510_v31, 0.0  ;;  %v66_v44 = vmax.f32 %v1511_v32, 0.0  ;;  %v70_v45 = vmax.f32 %v1512_v33, 0.0  ;;  %v1513_v46 = vld [vmem:[%s3157_s2 + $0x38] sm:$0xff]  ;;  %v79_v47 = vadd.f32 %v2032_v36, %v2030_v35  ;;  %v2052_v48 = vld [vmem:[%s3159_s0] sm:$0xff]  ;;  %v2057_v49 = vld [vmem:[%s3159_s0 + $0x8] sm:$0xff] }
   0xb   :  { %v74_v50 = vmax.f32 %v1513_v46, 0.0  ;;  %v83_v51 = vadd.f32 %v2038_v39, %v2034_v37  ;;  %v84_v52 = vadd.f32 %v2042_v41, %v2040_v40  ;;  %v1514_v53 = vadd.f32 -1.0, %v2052_v48  ;;  %v2067_v54 = vld [vmem:[%s3159_s0 + $0x10] sm:$0xff]  ;;  %v2072_v55 = vld [vmem:[%s3159_s0 + $0x18] sm:$0xff]  ;;  %v2077_v56 = vld [vmem:[%s3159_s0 + $0x20] sm:$0xff] }
   0xc   :  { %v2079_v57 = vadd.f32 1e-05, %v62_v43  ;;  %v2081_v58 = vadd.f32 1e-05, %v66_v44  ;;  %v2083_v59 = vadd.f32 1e-05, %v70_v45  ;;  %v81_v60 = vadd.f32 %v79_v47, %v78_v38 }
   0xd   :  { %v2085_v61 = vadd.f32 1e-05, %v74_v50  ;;  %v87_v62 = vadd.f32 %v84_v52, %v83_v51  ;;  %v112_v63 = vmul.f32 20.0, %v1514_v53  ;;  %v1516_v0 = vadd.f32 -1.0, %v2057_v49  ;;  %v2091_v1 = vld [vmem:[%s3159_s0 + $0x28] sm:$0xff]  ;;  %v2103_v10 = vld [vmem:[%s3159_s0 + $0x30] sm:$0xff] }
   0xe   :  { %v82_v2 = vadd.f32 %v81_v60, %v80_v42  ;;  %v85_v3 = vadd.f32 %v2081_v58, %v2079_v57  ;;  %v1518_v4 = vadd.f32 -1.0, %v2067_v54  ;;  %v1520_v5 = vadd.f32 -1.0, %v2072_v55  ;;  %v2109_v14 = vld [vmem:[%s3159_s0 + $0x38] sm:$0xff]  ;;  %v2114_v24 = vld [vmem:[%s3159_s0 + $0x40] sm:$0xff]  ;;  %v2119_v25 = vld [vmem:[%s3159_s0 + $0x48] sm:$0xff] }
   0xf   :  { %v86_v6 = vadd.f32 %v2085_v61, %v2083_v59  ;;  %v113_v7 = vmul.f32 1.442695, %v112_v63  ;;  %v121_v8 = vmul.f32 20.0, %v1516_v0  ;;  %v1522_v9 = vadd.f32 -1.0, %v2077_v56  ;;  %v2124_v26 = vld [vmem:[%s3159_s0 + $0x50] sm:$0xff]  ;;  %v2131_v34 = vld [vmem:[%s3159_s0 + $0x58] sm:$0xff] }
  0x10   :  { %1713 = vrcp.f32 %v82_v2  ;;  %v132_v11 = vmul.f32 20.0, %v1518_v4  ;;  %v143_v12 = vmul.f32 20.0, %v1520_v5  ;;  %v1524_v13 = vadd.f32 -1.0, %v2091_v1  ;;  %v2139_v47 = vld [vmem:[%s3159_s0 + $0x60] sm:$0xff]  ;;  %v2145_v53 = vld [vmem:[%s3159_s0 + $0x68] sm:$0xff]  ;;  %v2150_v0 = vld [vmem:[%s3159_s0 + $0x70] sm:$0xff] }
  0x11   :  { %v88_v21 = vadd.f32 %v86_v6, %v85_v3  ;;  %1715 = vpow2.f32 %v113_v7  ;;  %v122_v22 = vmul.f32 1.442695, %v121_v8  ;;  %v154_v23 = vmul.f32 20.0, %v1522_v9  ;;  %v2156_v5 = vld [vmem:[%s3159_s0 + $0x78] sm:$0xff] }
  0x12   :  { %v133_v27 = vmul.f32 1.442695, %v132_v11  ;;  %v144_v28 = vmul.f32 1.442695, %v143_v12  ;;  %v165_v29 = vmul.f32 20.0, %v1524_v13  ;;  %v1526_v30 = vadd.f32 -1.0, %v2103_v10 }
  0x13   :  { %v89_v31 = vadd.f32 %v88_v21, %v87_v62  ;;  %1717 = vpow2.f32 %v122_v22  ;;  %v155_v32 = vmul.f32 1.442695, %v154_v23  ;;  %v1528_v33 = vadd.f32 -1.0, %v2109_v14 }
  0x14   :  { %1719 = vpow2.f32 %v133_v27  ;;  %v166_v38 = vmul.f32 1.442695, %v165_v29  ;;  %v176_v42 = vmul.f32 20.0, %v1526_v30  ;;  %v1530_v43 = vadd.f32 -1.0, %v2114_v24 }
  0x15   :  { %1721 = vrcp.f32 %v89_v31  ;;  %v187_v44 = vmul.f32 20.0, %v1528_v33  ;;  %v1532_v45 = vadd.f32 -1.0, %v2119_v25  ;;  %v1534_v46 = vadd.f32 -1.0, %v2124_v26 }
  0x16   :  { %1723 = vpow2.f32 %v144_v28  ;;  %v177_v50 = vmul.f32 1.442695, %v176_v42  ;;  %v198_v51 = vmul.f32 20.0, %v1530_v43  ;;  %v1536_v52 = vadd.f32 -1.0, %v2131_v34 }
  0x17   :  { %1725 = vpow2.f32 %v155_v32  ;;  %v188_v60 = vmul.f32 1.442695, %v187_v44  ;;  %v209_v62 = vmul.f32 20.0, %v1532_v45  ;;  %v220_v63 = vmul.f32 20.0, %v1534_v46 }
  0x18   :  { %1727 = vpow2.f32 %v166_v38  ;;  %v199_v2 = vmul.f32 1.442695, %v198_v51  ;;  %v231_v3 = vmul.f32 20.0, %v1536_v52  ;;  %v1538_v4 = vadd.f32 -1.0, %v2139_v47 }
  0x19   :  { %1729 = vpow2.f32 %v177_v50  ;;  %v210_v6 = vmul.f32 1.442695, %v209_v62  ;;  %v221_v7 = vmul.f32 1.442695, %v220_v63  ;;  %v1540_v8 = vadd.f32 -1.0, %v2145_v53 }
  0x1a   :  { %v1714_v9 = vpop.eup %1713  ;;  %1731 = vpow2.f32 %v188_v60  ;;  %v232_v11 = vmul.f32 1.442695, %v231_v3  ;;  %v242_v12 = vmul.f32 20.0, %v1538_v4  ;;  %v1542_v13 = vadd.f32 -1.0, %v2150_v0 }
  0x1b   :  { %v1716_v21 = vpop.eup %1715  ;;  %v91_v22 = vmul.f32 8.0, %v1714_v9  ;;  %1733 = vpow2.f32 %v199_v2  ;;  %v253_v23 = vmul.f32 20.0, %v1540_v8  ;;  %v1544_v27 = vadd.f32 -1.0, %v2156_v5  ;;  %v2241_v8 = vld [vmem:[%s3159_s0 + $0xa0] sm:$0xff] }
  0x1c   :  { %115 = vst [vmem:[#allocation2] sm:$0xff] %v1716_v21  ;;  %v116_v28 = vmul.f32 %v1716_v21, %v2052_v48  ;;  %1735 = vpow2.f32 %v210_v6  ;;  %v243_v29 = vmul.f32 1.442695, %v242_v12  ;;  %v264_v30 = vmul.f32 20.0, %v1542_v13 }
  0x1d   :  { %v1718_v31 = vpop.eup %1717  ;;  %v2163_v32 = vmul.f32 %v91_v22, %v1996_v15  ;;  %v2166_v33 = vmul.f32 %v91_v22, %v1998_v16  ;;  %v2169_v38 = vmul.f32 %v91_v22, %v2000_v17  ;;  %v2172_v42 = vmul.f32 %v91_v22, %v2002_v18  ;;  %v2189_v16 = vld [vmem:[%s3159_s0 + $0x80] sm:$0xff]  ;;  %v2194_v17 = vld [vmem:[%s3159_s0 + $0x88] sm:$0xff] }
  0x1e   :  { %v1720_v43 = vpop.eup %1719  ;;  %v2175_v44 = vmul.f32 %v91_v22, %v2004_v19  ;;  %v2178_v48 = vmul.f32 %v91_v22, %v2006_v20  ;;  %v2181_v45 = vmul.f32 %v91_v22, %v2030_v35  ;;  %v2184_v15 = vmul.f32 %v91_v22, %v2032_v36  ;;  %117 = vst [vmem:[#allocation3] sm:$0xff] %v116_v28 }
  0x1f   :  { %3192 = vst [vmem:[#allocation4_spill] sm:$0xff] %v2172_v42  ;;  %125 = vst [vmem:[#allocation2 + $0x8] sm:$0xff] %v1718_v31  ;;  %v1722_v18 = vpop.eup %1721  ;;  %v126_v19 = vmul.f32 %v1718_v31, %v2057_v49  ;;  %v137_v20 = vmul.f32 %v1720_v43, %v2067_v54  ;;  %1737 = vpow2.f32 %v221_v7  ;;  %v254_v35 = vmul.f32 1.442695, %v253_v23  ;;  %v2255_v23 = vld [vmem:[%s3159_s0 + $0xb0] sm:$0xff] }
  0x20   :  { %3193 = vst [vmem:[#allocation5_spill] sm:$0xff] %v2175_v44  ;;  %3194 = vst [vmem:[#allocation6_spill] sm:$0xff] %v2178_v48  ;;  %v1724_v36 = vpop.eup %1723  ;;  %v101_v46 = vmul.f32 8.0, %v1722_v18  ;;  %1739 = vpow2.f32 %v232_v11  ;;  %v265_v50 = vmul.f32 1.442695, %v264_v30  ;;  %v275_v51 = vmul.f32 20.0, %v1544_v27 }
  0x21   :  { %3195 = vst [vmem:[#allocation7_spill] sm:$0xff] %v2181_v45  ;;  %3196 = vst [vmem:[#allocation8_spill] sm:$0xff] %v2184_v15  ;;  %v1726_v52 = vpop.eup %1725  ;;  %v148_v60 = vmul.f32 %v1724_v36, %v2072_v55  ;;  %1741 = vpow2.f32 %v243_v29  ;;  %v1546_v62 = vadd.f32 -1.0, %v2189_v16  ;;  %v1548_v49 = vadd.f32 -1.0, %v2194_v17  ;;  %v2260_v27 = vld [vmem:[%s3159_s0 + $0xb8] sm:$0xff] }
  0x22   :  { %136 = vst [vmem:[#allocation2 + $0x10] sm:$0xff] %v1720_v43  ;;  %128 = vst [vmem:[#allocation3 + $0x8] sm:$0xff] %v126_v19  ;;  %v1728_v63 = vpop.eup %1727  ;;  %v2202_v54 = vmul.f32 %v101_v46, %v2034_v37  ;;  %v2205_v2 = vmul.f32 %v101_v46, %v2038_v39  ;;  %v2208_v3 = vmul.f32 %v101_v46, %v2040_v40  ;;  %v2228_v40 = vld [vmem:[%s3159_s0 + $0x90] sm:$0xff]  ;;  %1743 = vpow2.f32 %v254_v35 }
  0x23   :  { %139 = vst [vmem:[#allocation3 + $0x10] sm:$0xff] %v137_v20  ;;  %147 = vst [vmem:[#allocation2 + $0x18] sm:$0xff] %v1724_v36  ;;  %v2211_v4 = vmul.f32 %v101_v46, %v2042_v41  ;;  %v1730_v55 = vpop.eup %1729  ;;  %v2214_v6 = vmul.f32 %v101_v46, %v2079_v57  ;;  %v2217_v7 = vmul.f32 %v101_v46, %v2081_v58  ;;  %v2233_v41 = vld [vmem:[%s3159_s0 + $0x98] sm:$0xff]  ;;  %1745 = vpow2.f32 %v265_v50 }
  0x24   :  { %3197 = vst [vmem:[#allocation9_spill] sm:$0xff] %v2202_v54  ;;  %3198 = vst [vmem:[#allocation10_spill] sm:$0xff] %v2205_v2  ;;  %v2220_v37 = vmul.f32 %v101_v46, %v2083_v59  ;;  %v2223_v39 = vmul.f32 %v101_v46, %v2085_v61  ;;  %v1732_v57 = vpop.eup %1731  ;;  %v159_v58 = vmul.f32 %v1726_v52, %v2077_v56  ;;  %v276_v12 = vmul.f32 1.442695, %v275_v51  ;;  %v2247_v56 = vld [vmem:[%s3159_s0 + $0xa8] sm:$0xff] }
  0x25   :  { %3199 = vst [vmem:[#allocation11_spill] sm:$0xff] %v2208_v3  ;;  %3200 = vst [vmem:[#allocation12_spill] sm:$0xff] %v2211_v4  ;;  %v170_v59 = vmul.f32 %v1728_v63, %v2091_v1  ;;  %v181_v61 = vmul.f32 %v1730_v55, %v2103_v10  ;;  %v1734_v9 = vpop.eup %1733  ;;  %v192_v11 = vmul.f32 %v1732_v57, %v2109_v14  ;;  %v286_v13 = vmul.f32 20.0, %v1546_v62 }
  0x26   :  { %158 = vst [vmem:[#allocation2 + $0x20] sm:$0xff] %v1726_v52  ;;  %3201 = vst [vmem:[#allocation13_spill] sm:$0xff] %v2214_v6  ;;  %v1736_v1 = vpop.eup %1735  ;;  %v203_v10 = vmul.f32 %v1734_v9, %v2114_v24  ;;  %v297_v21 = vmul.f32 20.0, %v1548_v49  ;;  %v1550_v22 = vadd.f32 -1.0, %v2228_v40  ;;  %v1552_v14 = vadd.f32 -1.0, %v2233_v41 }
  0x27   :  { %3202 = vst [vmem:[#allocation14_spill] sm:$0xff] %v2217_v7  ;;  %3203 = vst [vmem:[#allocation15_spill] sm:$0xff] %v2220_v37  ;;  %v214_v28 = vmul.f32 %v1736_v1, %v2119_v25  ;;  %1747 = vpow2.f32 %v276_v12  ;;  %v287_v24 = vmul.f32 1.442695, %v286_v13  ;;  %v1554_v29 = vadd.f32 -1.0, %v2241_v8  ;;  %v2270_v25 = vld [vmem:[%s3159_s0 + $0xc0] sm:$0xff] }
  0x28   :  { %3204 = vst [vmem:[#allocation16_spill] sm:$0xff] %v2223_v39  ;;  %150 = vst [vmem:[#allocation3 + $0x18] sm:$0xff] %v148_v60  ;;  %v298_v30 = vmul.f32 1.442695, %v297_v21  ;;  %v308_v31 = vmul.f32 20.0, %v1550_v22  ;;  %v319_v43 = vmul.f32 20.0, %v1552_v14 }
  0x29   :  { %169 = vst [vmem:[#allocation2 + $0x28] sm:$0xff] %v1728_v63  ;;  %180 = vst [vmem:[#allocation2 + $0x30] sm:$0xff] %v1730_v55  ;;  %v1556_v18 = vadd.f32 -1.0, %v2247_v56  ;;  %v1738_v19 = vpop.eup %1737  ;;  %1749 = vpow2.f32 %v287_v24  ;;  %v330_v20 = vmul.f32 20.0, %v1554_v29  ;;  %v1558_v35 = vadd.f32 -1.0, %v2255_v23  ;;  %v2276_v60 = vld [vmem:[%s3159_s0 + $0xc8] sm:$0xff] }
  0x2a   :  { %191 = vst [vmem:[#allocation2 + $0x38] sm:$0xff] %v1732_v57  ;;  %161 = vst [vmem:[#allocation3 + $0x20] sm:$0xff] %v159_v58  ;;  %v1560_v36 = vadd.f32 -1.0, %v2260_v27  ;;  %v1740_v46 = vpop.eup %1739  ;;  %v225_v50 = vmul.f32 %v1738_v19, %v2124_v26  ;;  %1751 = vpow2.f32 %v298_v30  ;;  %v309_v51 = vmul.f32 1.442695, %v308_v31  ;;  %v2282_v58 = vld [vmem:[%s3159_s0 + $0xd0] sm:$0xff] }
  0x2b   :  { %172 = vst [vmem:[#allocation3 + $0x28] sm:$0xff] %v170_v59  ;;  %183 = vst [vmem:[#allocation3 + $0x30] sm:$0xff] %v181_v61  ;;  %v320_v52 = vmul.f32 1.442695, %v319_v43  ;;  %v1742_v62 = vpop.eup %1741  ;;  %v236_v49 = vmul.f32 %v1740_v46, %v2131_v34  ;;  %v331_v63 = vmul.f32 1.442695, %v330_v20 }
  0x2c   :  { %202 = vst [vmem:[#allocation2 + $0x40] sm:$0xff] %v1734_v9  ;;  %194 = vst [vmem:[#allocation3 + $0x38] sm:$0xff] %v192_v11  ;;  %v341_v55 = vmul.f32 20.0, %v1556_v18  ;;  %v352_v57 = vmul.f32 20.0, %v1558_v35  ;;  %v247_v26 = vmul.f32 %v1742_v62, %v2139_v47  ;;  %1753 = vpow2.f32 %v309_v51  ;;  %v2289_v34 = vld [vmem:[%s3159_s0 + $0xd8] sm:$0xff]  ;;  %v1744_v13 = vpop.eup %1743  ;;  %v2296_v21 = vld [vmem:[%s3159_s0 + $0xe0] sm:$0xff] }
  0x2d   :  { %213 = vst [vmem:[#allocation2 + $0x48] sm:$0xff] %v1736_v1  ;;  %205 = vst [vmem:[#allocation3 + $0x40] sm:$0xff] %v203_v10  ;;  %v363_v59 = vmul.f32 20.0, %v1560_v36  ;;  %v1562_v61 = vadd.f32 -1.0, %v2270_v25  ;;  %1755 = vpow2.f32 %v320_v52  ;;  %v1564_v12 = vadd.f32 -1.0, %v2276_v60  ;;  %v1746_v22 = vpop.eup %1745  ;;  %v2303_v29 = vld [vmem:[%s3159_s0 + $0xe8] sm:$0xff] }
  0x2e   :  { %216 = vst [vmem:[#allocation3 + $0x48] sm:$0xff] %v214_v28  ;;  %224 = vst [vmem:[#allocation2 + $0x50] sm:$0xff] %v1738_v19  ;;  %v342_v9 = vmul.f32 1.442695, %v341_v55  ;;  %v353_v11 = vmul.f32 1.442695, %v352_v57  ;;  %1757 = vpow2.f32 %v331_v63  ;;  %v258_v14 = vmul.f32 %v1744_v13, %v2145_v53 }
  0x2f   :  { %235 = vst [vmem:[#allocation2 + $0x58] sm:$0xff] %v1740_v46  ;;  %227 = vst [vmem:[#allocation3 + $0x50] sm:$0xff] %v225_v50  ;;  %v364_v1 = vmul.f32 1.442695, %v363_v59  ;;  %v374_v47 = vmul.f32 20.0, %v1562_v61  ;;  %v1566_v10 = vadd.f32 -1.0, %v2282_v58  ;;  %v269_v30 = vmul.f32 %v1746_v22, %v2150_v0 }
  0x30   :  { %246 = vst [vmem:[#allocation2 + $0x60] sm:$0xff] %v1742_v62  ;;  %238 = vst [vmem:[#allocation3 + $0x58] sm:$0xff] %v236_v49  ;;  %1759 = vpow2.f32 %v342_v9  ;;  %v385_v28 = vmul.f32 20.0, %v1564_v12  ;;  %v1568_v24 = vadd.f32 -1.0, %v2289_v34  ;;  %v2309_v18 = vld [vmem:[%s3159_s0 + $0xf0] sm:$0xff]  ;;  %v1570_v35 = vadd.f32 -1.0, %v2296_v21 }
  0x31   :  { %249 = vst [vmem:[#allocation3 + $0x60] sm:$0xff] %v247_v26  ;;  %257 = vst [vmem:[#allocation2 + $0x68] sm:$0xff] %v1744_v13  ;;  %1761 = vpow2.f32 %v353_v11  ;;  %v375_v31 = vmul.f32 1.442695, %v374_v47  ;;  %v396_v43 = vmul.f32 20.0, %v1566_v10  ;;  %v1748_v53 = vpop.eup %1747  ;;  %v2315_v36 = vld [vmem:[%s3159_s0 + $0xf8] sm:$0xff] }
  0x32   :  { %268 = vst [vmem:[#allocation2 + $0x70] sm:$0xff] %v1746_v22  ;;  %260 = vst [vmem:[#allocation3 + $0x68] sm:$0xff] %v258_v14  ;;  %1763 = vpow2.f32 %v364_v1  ;;  %v386_v19 = vmul.f32 1.442695, %v385_v28  ;;  %v407_v20 = vmul.f32 20.0, %v1568_v24  ;;  %v280_v0 = vmul.f32 %v1748_v53, %v2156_v5  ;;  %v2323_v63 = vld [vmem:[%s3159_s0 + $0x100] sm:$0xff] }
  0x33   :  { %271 = vst [vmem:[#allocation3 + $0x70] sm:$0xff] %v269_v30  ;;  %279 = vst [vmem:[#allocation2 + $0x78] sm:$0xff] %v1748_v53  ;;  %1765 = vpow2.f32 %v375_v31  ;;  %v397_v46 = vmul.f32 1.442695, %v396_v43  ;;  %v1572_v50 = vadd.f32 -1.0, %v2303_v29  ;;  %v1750_v51 = vpop.eup %1749  ;;  %v418_v62 = vmul.f32 20.0, %v1570_v35 }
  0x34   :  { %1767 = vpow2.f32 %v386_v19  ;;  %v408_v52 = vmul.f32 1.442695, %v407_v20  ;;  %v1574_v49 = vadd.f32 -1.0, %v2309_v18  ;;  %v2328_v55 = vld [vmem:[%s3159_s0 + $0x108] sm:$0xff]  ;;  %v1752_v5 = vpop.eup %1751  ;;  %282 = vst [vmem:[#allocation3 + $0x78] sm:$0xff] %v280_v0  ;;  %290 = vst [vmem:[#allocation2 + $0x80] sm:$0xff] %v1750_v51  ;;  %v291_v57 = vmul.f32 %v1750_v51, %v2189_v16 }
  0x35   :  { %1769 = vpow2.f32 %v397_v46  ;;  %v429_v26 = vmul.f32 20.0, %v1572_v50  ;;  %v1576_v59 = vadd.f32 -1.0, %v2315_v36  ;;  %v2335_v61 = vld [vmem:[%s3159_s0 + $0x110] sm:$0xff]  ;;  %301 = vst [vmem:[#allocation2 + $0x88] sm:$0xff] %v1752_v5  ;;  %v302_v9 = vmul.f32 %v1752_v5, %v2194_v17  ;;  %v2345_v24 = vld [vmem:[%s3159_s0 + $0x118] sm:$0xff] }
  0x36   :  { %1771 = vpow2.f32 %v408_v52  ;;  %v419_v11 = vmul.f32 1.442695, %v418_v62  ;;  %v440_v12 = vmul.f32 20.0, %v1574_v49  ;;  %v1754_v13 = vpop.eup %1753  ;;  %293 = vst [vmem:[#allocation3 + $0x80] sm:$0xff] %v291_v57  ;;  %v1578_v16 = vadd.f32 -1.0, %v2323_v63 }
  0x37   :  { %v430_v1 = vmul.f32 1.442695, %v429_v26  ;;  %v451_v47 = vmul.f32 20.0, %v1576_v59  ;;  %v1580_v10 = vadd.f32 -1.0, %v2328_v55  ;;  %v1756_v22 = vpop.eup %1755  ;;  %304 = vst [vmem:[#allocation3 + $0x88] sm:$0xff] %v302_v9  ;;  %312 = vst [vmem:[#allocation2 + $0x90] sm:$0xff] %v1754_v13  ;;  %v313_v14 = vmul.f32 %v1754_v13, %v2228_v40 }
  0x38   :  { %1773 = vpow2.f32 %v419_v11  ;;  %v441_v28 = vmul.f32 1.442695, %v440_v12  ;;  %v1582_v17 = vadd.f32 -1.0, %v2335_v61  ;;  %v1758_v30 = vpop.eup %1757  ;;  %323 = vst [vmem:[#allocation2 + $0x98] sm:$0xff] %v1756_v22  ;;  %v324_v31 = vmul.f32 %v1756_v22, %v2233_v41  ;;  %v2351_v40 = vld [vmem:[%s3159_s0 + $0x120] sm:$0xff]  ;;  %v2357_v41 = vld [vmem:[%s3159_s0 + $0x128] sm:$0xff] }
  0x39   :  { %1775 = vpow2.f32 %v430_v1  ;;  %v452_v43 = vmul.f32 1.442695, %v451_v47  ;;  %v462_v53 = vmul.f32 20.0, %v1578_v16  ;;  %315 = vst [vmem:[#allocation3 + $0x90] sm:$0xff] %v313_v14  ;;  %334 = vst [vmem:[#allocation2 + $0xa0] sm:$0xff] %v1758_v30  ;;  %v335_v20 = vmul.f32 %v1758_v30, %v2241_v8  ;;  %v2364_v8 = vld [vmem:[%s3159_s0 + $0x130] sm:$0xff] }
  0x3a   :  { %v1760_v19 = vpop.eup %1759  ;;  %1777 = vpow2.f32 %v441_v28  ;;  %v473_v35 = vmul.f32 20.0, %v1580_v10  ;;  %v484_v0 = vmul.f32 20.0, %v1582_v17  ;;  %326 = vst [vmem:[#allocation3 + $0x98] sm:$0xff] %v324_v31  ;;  %v1584_v52 = vadd.f32 -1.0, %v2345_v24  ;;  %v2373_v12 = vld [vmem:[%s3159_s0 + $0x138] sm:$0xff] }
  0x3b   :  { %v1762_v46 = vpop.eup %1761  ;;  %345 = vst [vmem:[#allocation2 + $0xa8] sm:$0xff] %v1760_v19  ;;  %v346_v50 = vmul.f32 %v1760_v19, %v2247_v56  ;;  %1779 = vpow2.f32 %v452_v43  ;;  %v463_v51 = vmul.f32 1.442695, %v462_v53  ;;  %337 = vst [vmem:[#allocation3 + $0xa0] sm:$0xff] %v335_v20  ;;  %v1586_v26 = vadd.f32 -1.0, %v2351_v40 }
  0x3c   :  { %v1764_v62 = vpop.eup %1763  ;;  %356 = vst [vmem:[#allocation2 + $0xb0] sm:$0xff] %v1762_v46  ;;  %v357_v49 = vmul.f32 %v1762_v46, %v2255_v23  ;;  %v474_v5 = vmul.f32 1.442695, %v473_v35  ;;  %v485_v57 = vmul.f32 1.442695, %v484_v0  ;;  %v495_v9 = vmul.f32 20.0, %v1584_v52 }
  0x3d   :  { %v1766_v59 = vpop.eup %1765  ;;  %348 = vst [vmem:[#allocation3 + $0xa8] sm:$0xff] %v346_v50  ;;  %367 = vst [vmem:[#allocation2 + $0xb8] sm:$0xff] %v1764_v62  ;;  %v368_v56 = vmul.f32 %v1764_v62, %v2260_v27  ;;  %1781 = vpow2.f32 %v463_v51  ;;  %v1588_v11 = vadd.f32 -1.0, %v2357_v41  ;;  %v506_v1 = vmul.f32 20.0, %v1586_v26  ;;  %v2380_v27 = vld [vmem:[%s3159_s0 + $0x140] sm:$0xff]  ;;  %v2401_v50 = vld [vmem:[%s3159_s0 + $0x158] sm:$0xff] }
  0x3e   :  { %v1768_v13 = vpop.eup %1767  ;;  %359 = vst [vmem:[#allocation3 + $0xb0] sm:$0xff] %v357_v49  ;;  %378 = vst [vmem:[#allocation2 + $0xc0] sm:$0xff] %v1766_v59  ;;  %v379_v23 = vmul.f32 %v1766_v59, %v2270_v25  ;;  %1783 = vpow2.f32 %v474_v5  ;;  %v1590_v47 = vadd.f32 -1.0, %v2364_v8  ;;  %v496_v22 = vmul.f32 1.442695, %v495_v9  ;;  %v2386_v25 = vld [vmem:[%s3159_s0 + $0x148] sm:$0xff] }
  0x3f   :  { %v1770_v16 = vpop.eup %1769  ;;  %370 = vst [vmem:[#allocation3 + $0xb8] sm:$0xff] %v368_v56  ;;  %389 = vst [vmem:[#allocation2 + $0xc8] sm:$0xff] %v1768_v13  ;;  %v390_v10 = vmul.f32 %v1768_v13, %v2276_v60  ;;  %1785 = vpow2.f32 %v485_v57  ;;  %v517_v14 = vmul.f32 20.0, %v1588_v11  ;;  %v507_v30 = vmul.f32 1.442695, %v506_v1  ;;  %v2393_v60 = vld [vmem:[%s3159_s0 + $0x150] sm:$0xff] }
  0x40   :  { %v1772_v28 = vpop.eup %1771  ;;  %381 = vst [vmem:[#allocation3 + $0xc0] sm:$0xff] %v379_v23  ;;  %400 = vst [vmem:[#allocation2 + $0xd0] sm:$0xff] %v1770_v16  ;;  %v401_v17 = vmul.f32 %v1770_v16, %v2282_v58  ;;  %v528_v31 = vmul.f32 20.0, %v1590_v47  ;;  %v1592_v43 = vadd.f32 -1.0, %v2373_v12  ;;  %1787 = vpow2.f32 %v496_v22  ;;  %v2408_v49 = vld [vmem:[%s3159_s0 + $0x160] sm:$0xff] }
  0x41   :  { %392 = vst [vmem:[#allocation3 + $0xc8] sm:$0xff] %v390_v10  ;;  %411 = vst [vmem:[#allocation2 + $0xd8] sm:$0xff] %v1772_v28  ;;  %v412_v53 = vmul.f32 %v1772_v28, %v2289_v34  ;;  %v518_v19 = vmul.f32 1.442695, %v517_v14  ;;  %v1594_v20 = vadd.f32 -1.0, %v2380_v27  ;;  %1789 = vpow2.f32 %v507_v30  ;;  %v2429_v28 = vld [vmem:[%s3159_s0 + $0x178] sm:$0xff] }
  0x42   :  { %v1774_v35 = vpop.eup %1773  ;;  %403 = vst [vmem:[#allocation3 + $0xd0] sm:$0xff] %v401_v17  ;;  %v529_v58 = vmul.f32 1.442695, %v528_v31  ;;  %v539_v0 = vmul.f32 20.0, %v1592_v43  ;;  %v1596_v46 = vadd.f32 -1.0, %v2386_v25  ;;  %v1598_v62 = vadd.f32 -1.0, %v2393_v60 }
  0x43   :  { %v1776_v51 = vpop.eup %1775  ;;  %414 = vst [vmem:[#allocation3 + $0xd8] sm:$0xff] %v412_v53  ;;  %422 = vst [vmem:[#allocation2 + $0xe0] sm:$0xff] %v1774_v35  ;;  %v423_v34 = vmul.f32 %v1774_v35, %v2296_v21  ;;  %1791 = vpow2.f32 %v518_v19  ;;  %v550_v52 = vmul.f32 20.0, %v1594_v20  ;;  %v2414_v21 = vld [vmem:[%s3159_s0 + $0x168] sm:$0xff]  ;;  %v1600_v23 = vadd.f32 -1.0, %v2401_v50  ;;  %v2436_v43 = vld [vmem:[%s3159_s0 + $0x180] sm:$0xff] }
  0x44   :  { %v1778_v5 = vpop.eup %1777  ;;  %433 = vst [vmem:[#allocation2 + $0xe8] sm:$0xff] %v1776_v51  ;;  %v434_v57 = vmul.f32 %v1776_v51, %v2303_v29  ;;  %1793 = vpow2.f32 %v529_v58  ;;  %v540_v26 = vmul.f32 1.442695, %v539_v0  ;;  %v561_v59 = vmul.f32 20.0, %v1596_v46  ;;  %v2421_v29 = vld [vmem:[%s3159_s0 + $0x170] sm:$0xff]  ;;  %v2441_v53 = vld [vmem:[%s3159_s0 + $0x188] sm:$0xff] }
  0x45   :  { %v1780_v56 = vpop.eup %1779  ;;  %425 = vst [vmem:[#allocation3 + $0xe0] sm:$0xff] %v423_v34  ;;  %444 = vst [vmem:[#allocation2 + $0xf0] sm:$0xff] %v1778_v5  ;;  %v445_v9 = vmul.f32 %v1778_v5, %v2309_v18  ;;  %v551_v11 = vmul.f32 1.442695, %v550_v52  ;;  %v572_v13 = vmul.f32 20.0, %v1598_v62  ;;  %v1602_v16 = vadd.f32 -1.0, %v2408_v49 }
  0x46   :  { %436 = vst [vmem:[#allocation3 + $0xe8] sm:$0xff] %v434_v57  ;;  %455 = vst [vmem:[#allocation2 + $0xf8] sm:$0xff] %v1780_v56  ;;  %v456_v1 = vmul.f32 %v1780_v56, %v2315_v36  ;;  %1795 = vpow2.f32 %v540_v26  ;;  %v562_v47 = vmul.f32 1.442695, %v561_v59  ;;  %v583_v22 = vmul.f32 20.0, %v1600_v23  ;;  %v2457_v56 = vld [vmem:[%s3159_s0 + $0x198] sm:$0xff] }
  0x47   :  { %v1782_v10 = vpop.eup %1781  ;;  %447 = vst [vmem:[#allocation3 + $0xf0] sm:$0xff] %v445_v9  ;;  %1797 = vpow2.f32 %v551_v11  ;;  %v573_v18 = vmul.f32 1.442695, %v572_v13  ;;  %v1604_v14 = vadd.f32 -1.0, %v2414_v21  ;;  %v594_v30 = vmul.f32 20.0, %v1602_v16 }
  0x48   :  { %v1784_v17 = vpop.eup %1783  ;;  %458 = vst [vmem:[#allocation3 + $0xf8] sm:$0xff] %v456_v1  ;;  %466 = vst [vmem:[#allocation2 + $0x100] sm:$0xff] %v1782_v10  ;;  %v467_v36 = vmul.f32 %v1782_v10, %v2323_v63  ;;  %1799 = vpow2.f32 %v562_v47  ;;  %v1606_v31 = vadd.f32 -1.0, %v2421_v29  ;;  %v584_v63 = vmul.f32 1.442695, %v583_v22  ;;  %v2463_v1 = vld [vmem:[%s3159_s0 + $0x1a0] sm:$0xff] }
  0x49   :  { %v1786_v19 = vpop.eup %1785  ;;  %477 = vst [vmem:[#allocation2 + $0x108] sm:$0xff] %v1784_v17  ;;  %v478_v20 = vmul.f32 %v1784_v17, %v2328_v55  ;;  %1801 = vpow2.f32 %v573_v18  ;;  %v605_v35 = vmul.f32 20.0, %v1604_v14  ;;  %v595_v0 = vmul.f32 1.442695, %v594_v30  ;;  %v2451_v55 = vld [vmem:[%s3159_s0 + $0x190] sm:$0xff] }
  0x4a   :  { %469 = vst [vmem:[#allocation3 + $0x100] sm:$0xff] %v467_v36  ;;  %488 = vst [vmem:[#allocation2 + $0x110] sm:$0xff] %v1786_v19  ;;  %v489_v58 = vmul.f32 %v1786_v19, %v2335_v61  ;;  %v616_v46 = vmul.f32 20.0, %v1606_v31  ;;  %v1608_v51 = vadd.f32 -1.0, %v2429_v28  ;;  %v1788_v34 = vpop.eup %1787  ;;  %1803 = vpow2.f32 %v584_v63  ;;  %v2475_v18 = vld [vmem:[%s3159_s0 + $0x1b0] sm:$0xff] }
  0x4b   :  { %480 = vst [vmem:[#allocation3 + $0x108] sm:$0xff] %v478_v20  ;;  %v606_v52 = vmul.f32 1.442695, %v605_v35  ;;  %v1610_v62 = vadd.f32 -1.0, %v2436_v43  ;;  %v1612_v5 = vadd.f32 -1.0, %v2441_v53  ;;  %v1790_v57 = vpop.eup %1789  ;;  %499 = vst [vmem:[#allocation2 + $0x118] sm:$0xff] %v1788_v34  ;;  %v500_v61 = vmul.f32 %v1788_v34, %v2345_v24 }
  0x4c   :  { %491 = vst [vmem:[#allocation3 + $0x110] sm:$0xff] %v489_v58  ;;  %1805 = vpow2.f32 %v595_v0  ;;  %v617_v26 = vmul.f32 1.442695, %v616_v46  ;;  %v627_v59 = vmul.f32 20.0, %v1608_v51  ;;  %510 = vst [vmem:[#allocation2 + $0x120] sm:$0xff] %v1790_v57  ;;  %v511_v11 = vmul.f32 %v1790_v57, %v2351_v40  ;;  %v2468_v24 = vld [vmem:[%s3159_s0 + $0x1a8] sm:$0xff] }
  0x4d   :  { %v1792_v9 = vpop.eup %1791  ;;  %1807 = vpow2.f32 %v606_v52  ;;  %v638_v13 = vmul.f32 20.0, %v1610_v62  ;;  %v649_v23 = vmul.f32 20.0, %v1612_v5  ;;  %502 = vst [vmem:[#allocation3 + $0x118] sm:$0xff] %v500_v61  ;;  %v1614_v10 = vadd.f32 -1.0, %v2451_v55  ;;  %v2486_v58 = vld [vmem:[%s3159_s0 + $0x1b8] sm:$0xff] }
  0x4e   :  { %v1794_v47 = vpop.eup %1793  ;;  %521 = vst [vmem:[#allocation2 + $0x128] sm:$0xff] %v1792_v9  ;;  %v522_v16 = vmul.f32 %v1792_v9, %v2357_v41  ;;  %1809 = vpow2.f32 %v617_v26  ;;  %v628_v40 = vmul.f32 1.442695, %v627_v59  ;;  %513 = vst [vmem:[#allocation3 + $0x120] sm:$0xff] %v511_v11  ;;  %v1616_v36 = vadd.f32 -1.0, %v2457_v56 }
  0x4f   :  { %532 = vst [vmem:[#allocation2 + $0x130] sm:$0xff] %v1794_v47  ;;  %v533_v22 = vmul.f32 %v1794_v47, %v2364_v8  ;;  %v639_v14 = vmul.f32 1.442695, %v638_v13  ;;  %v650_v17 = vmul.f32 1.442695, %v649_v23  ;;  %v660_v41 = vmul.f32 20.0, %v1614_v10 }
  0x50   :  { %v1796_v30 = vpop.eup %1795  ;;  %524 = vst [vmem:[#allocation3 + $0x128] sm:$0xff] %v522_v16  ;;  %1811 = vpow2.f32 %v628_v40  ;;  %v1618_v31 = vadd.f32 -1.0, %v2463_v1  ;;  %v1620_v19 = vadd.f32 -1.0, %v2468_v24  ;;  %v671_v35 = vmul.f32 20.0, %v1616_v36 }
  0x51   :  { %v1798_v20 = vpop.eup %1797  ;;  %535 = vst [vmem:[#allocation3 + $0x130] sm:$0xff] %v533_v22  ;;  %543 = vst [vmem:[#allocation2 + $0x138] sm:$0xff] %v1796_v30  ;;  %v544_v63 = vmul.f32 %v1796_v30, %v2373_v12  ;;  %1813 = vpow2.f32 %v639_v14  ;;  %v1622_v8 = vadd.f32 -1.0, %v2475_v18  ;;  %v661_v51 = vmul.f32 1.442695, %v660_v41  ;;  %v2492_v12 = vld [vmem:[%s3159_s0 + $0x1c0] sm:$0xff] }
  0x52   :  { %v1800_v0 = vpop.eup %1799  ;;  %554 = vst [vmem:[#allocation2 + $0x140] sm:$0xff] %v1798_v20  ;;  %v555_v46 = vmul.f32 %v1798_v20, %v2380_v27  ;;  %1815 = vpow2.f32 %v650_v17  ;;  %v682_v34 = vmul.f32 20.0, %v1618_v31  ;;  %v672_v5 = vmul.f32 1.442695, %v671_v35  ;;  %v2498_v27 = vld [vmem:[%s3159_s0 + $0x1c8] sm:$0xff]  ;;  %v2513_v22 = vld [vmem:[%s3159_s0 + $0x1d8] sm:$0xff] }
  0x53   :  { %v1802_v52 = vpop.eup %1801  ;;  %546 = vst [vmem:[#allocation3 + $0x138] sm:$0xff] %v544_v63  ;;  %565 = vst [vmem:[#allocation2 + $0x148] sm:$0xff] %v1800_v0  ;;  %v566_v62 = vmul.f32 %v1800_v0, %v2386_v25  ;;  %v693_v57 = vmul.f32 20.0, %v1620_v19  ;;  %v704_v61 = vmul.f32 20.0, %v1622_v8  ;;  %1817 = vpow2.f32 %v661_v51  ;;  %v2505_v25 = vld [vmem:[%s3159_s0 + $0x1d0] sm:$0xff]  ;;  %v2525_v41 = vld [vmem:[%s3159_s0 + $0x1e8] sm:$0xff] }
  0x54   :  { %557 = vst [vmem:[#allocation3 + $0x140] sm:$0xff] %v555_v46  ;;  %576 = vst [vmem:[#allocation2 + $0x150] sm:$0xff] %v1802_v52  ;;  %v577_v26 = vmul.f32 %v1802_v52, %v2393_v60  ;;  %v683_v59 = vmul.f32 1.442695, %v682_v34  ;;  %v1624_v9 = vadd.f32 -1.0, %v2486_v58  ;;  %v1804_v11 = vpop.eup %1803  ;;  %1819 = vpow2.f32 %v672_v5 }
  0x55   :  { %568 = vst [vmem:[#allocation3 + $0x148] sm:$0xff] %v566_v62  ;;  %v694_v13 = vmul.f32 1.442695, %v693_v57  ;;  %v705_v23 = vmul.f32 1.442695, %v704_v61  ;;  %v1626_v47 = vadd.f32 -1.0, %v2492_v12  ;;  %v588_v60 = vmul.f32 %v1804_v11, %v2401_v50 }
  0x56   :  { %v1806_v16 = vpop.eup %1805  ;;  %579 = vst [vmem:[#allocation3 + $0x150] sm:$0xff] %v577_v26  ;;  %587 = vst [vmem:[#allocation2 + $0x158] sm:$0xff] %v1804_v11  ;;  %1821 = vpow2.f32 %v683_v59  ;;  %v715_v40 = vmul.f32 20.0, %v1624_v9  ;;  %v1628_v10 = vadd.f32 -1.0, %v2498_v27  ;;  %v1630_v30 = vadd.f32 -1.0, %v2505_v25  ;;  %v2520_v50 = vld [vmem:[%s3159_s0 + $0x1e0] sm:$0xff] }
  0x57   :  { %v1808_v14 = vpop.eup %1807  ;;  %598 = vst [vmem:[#allocation2 + $0x160] sm:$0xff] %v1806_v16  ;;  %v599_v17 = vmul.f32 %v1806_v16, %v2408_v49  ;;  %1823 = vpow2.f32 %v694_v13  ;;  %v726_v36 = vmul.f32 20.0, %v1626_v47  ;;  %590 = vst [vmem:[#allocation3 + $0x158] sm:$0xff] %v588_v60  ;;  %v1632_v0 = vadd.f32 -1.0, %v2513_v22  ;;  %v2541_v61 = vld [vmem:[%s3159_s0 + $0x1f8] sm:$0xff] }
  0x58   :  { %v1810_v31 = vpop.eup %1809  ;;  %609 = vst [vmem:[#allocation2 + $0x168] sm:$0xff] %v1808_v14  ;;  %v610_v19 = vmul.f32 %v1808_v14, %v2414_v21  ;;  %1825 = vpow2.f32 %v705_v23  ;;  %v716_v49 = vmul.f32 1.442695, %v715_v40  ;;  %v737_v20 = vmul.f32 20.0, %v1628_v10  ;;  %v2535_v21 = vld [vmem:[%s3159_s0 + $0x1f0] sm:$0xff]  ;;  %s2577_s0 = smov 0  }
  0x59   :  { %601 = vst [vmem:[#allocation3 + $0x160] sm:$0xff] %v599_v17  ;;  %620 = vst [vmem:[#allocation2 + $0x170] sm:$0xff] %v1810_v31  ;;  %v621_v63 = vmul.f32 %v1810_v31, %v2421_v29  ;;  %v727_v35 = vmul.f32 1.442695, %v726_v36  ;;  %v748_v8 = vmul.f32 20.0, %v1630_v30  ;;  %v1634_v34 = vadd.f32 -1.0, %v2520_v50 }
  0x5a   :  { %v1812_v46 = vpop.eup %1811  ;;  %612 = vst [vmem:[#allocation3 + $0x168] sm:$0xff] %v610_v19  ;;  %1827 = vpow2.f32 %v716_v49  ;;  %v738_v51 = vmul.f32 1.442695, %v737_v20  ;;  %v1636_v52 = vadd.f32 -1.0, %v2525_v41  ;;  %v759_v57 = vmul.f32 20.0, %v1632_v0 }
  0x5b   :  { %v1814_v62 = vpop.eup %1813  ;;  %623 = vst [vmem:[#allocation3 + $0x170] sm:$0xff] %v621_v63  ;;  %631 = vst [vmem:[#allocation2 + $0x178] sm:$0xff] %v1812_v46  ;;  %v632_v29 = vmul.f32 %v1812_v46, %v2429_v28  ;;  %1829 = vpow2.f32 %v727_v35  ;;  %v749_v5 = vmul.f32 1.442695, %v748_v8  ;;  %v770_v9 = vmul.f32 20.0, %v1634_v34 }
  0x5c   :  { %v1816_v26 = vpop.eup %1815  ;;  %642 = vst [vmem:[#allocation2 + $0x180] sm:$0xff] %v1814_v62  ;;  %v643_v59 = vmul.f32 %v1814_v62, %v2436_v43  ;;  %1831 = vpow2.f32 %v738_v51  ;;  %v781_v11 = vmul.f32 20.0, %v1636_v52  ;;  %v760_v28 = vmul.f32 1.442695, %v759_v57 }
  0x5d   :  { %634 = vst [vmem:[#allocation3 + $0x178] sm:$0xff] %v632_v29  ;;  %653 = vst [vmem:[#allocation2 + $0x188] sm:$0xff] %v1816_v26  ;;  %v654_v13 = vmul.f32 %v1816_v26, %v2441_v53  ;;  %1833 = vpow2.f32 %v749_v5  ;;  %v1638_v23 = vadd.f32 -1.0, %v2535_v21  ;;  %v1818_v47 = vpop.eup %1817  ;;  %v771_v16 = vmul.f32 1.442695, %v770_v9 }
  0x5e   :  { %645 = vst [vmem:[#allocation3 + $0x180] sm:$0xff] %v643_v59  ;;  %v782_v60 = vmul.f32 1.442695, %v781_v11  ;;  %v1640_v40 = vadd.f32 -1.0, %v2541_v61  ;;  %v1820_v10 = vpop.eup %1819  ;;  %664 = vst [vmem:[#allocation2 + $0x190] sm:$0xff] %v1818_v47  ;;  %v665_v43 = vmul.f32 %v1818_v47, %v2451_v55  ;;  %1835 = vpow2.f32 %v760_v28 }
  0x5f   :  { %656 = vst [vmem:[#allocation3 + $0x188] sm:$0xff] %v654_v13  ;;  %v792_v14 = vmul.f32 20.0, %v1638_v23  ;;  %675 = vst [vmem:[#allocation2 + $0x198] sm:$0xff] %v1820_v10  ;;  %v676_v53 = vmul.f32 %v1820_v10, %v2457_v56  ;;  %1837 = vpow2.f32 %v771_v16  ;;  %v2563_v57 = vmov 1.0  }
  0x60   :  { %v1822_v17 = vpop.eup %1821  ;;  %v803_v36 = vmul.f32 20.0, %v1640_v40  ;;  %667 = vst [vmem:[#allocation3 + $0x190] sm:$0xff] %v665_v43  ;;  %1839 = vpow2.f32 %v782_v60  ;;  %v2567_v26 = vmov 1.0   ;;  %v2571_v59 = vmov 1.0  }
  0x61   :  { %v1824_v30 = vpop.eup %1823  ;;  %686 = vst [vmem:[#allocation2 + $0x1a0] sm:$0xff] %v1822_v17  ;;  %v687_v31 = vmul.f32 %v1822_v17, %v2463_v1  ;;  %v793_v19 = vmul.f32 1.442695, %v792_v14  ;;  %678 = vst [vmem:[#allocation3 + $0x198] sm:$0xff] %v676_v53  ;;  %v2573_v9 = vmov 1.0  }
  0x62   :  { %v1826_v49 = vpop.eup %1825  ;;  %697 = vst [vmem:[#allocation2 + $0x1a8] sm:$0xff] %v1824_v30  ;;  %v698_v55 = vmul.f32 %v1824_v30, %v2468_v24  ;;  %v804_v20 = vmul.f32 1.442695, %v803_v36 }
  0x63   :  { %689 = vst [vmem:[#allocation3 + $0x1a0] sm:$0xff] %v687_v31  ;;  %708 = vst [vmem:[#allocation2 + $0x1b0] sm:$0xff] %v1826_v49  ;;  %v709_v63 = vmul.f32 %v1826_v49, %v2475_v18  ;;  %1841 = vpow2.f32 %v793_v19 }
  0x64   :  { %v1828_v56 = vpop.eup %1827  ;;  %700 = vst [vmem:[#allocation3 + $0x1a8] sm:$0xff] %v698_v55  ;;  %1843 = vpow2.f32 %v804_v20 }
  0x65   :  { %v1830_v35 = vpop.eup %1829  ;;  %711 = vst [vmem:[#allocation3 + $0x1b0] sm:$0xff] %v709_v63  ;;  %719 = vst [vmem:[#allocation2 + $0x1b8] sm:$0xff] %v1828_v56  ;;  %v720_v1 = vmul.f32 %v1828_v56, %v2486_v58 }
  0x66   :  { %v1832_v8 = vpop.eup %1831  ;;  %730 = vst [vmem:[#allocation2 + $0x1c0] sm:$0xff] %v1830_v35  ;;  %v731_v0 = vmul.f32 %v1830_v35, %v2492_v12 }
  0x67   :  { %v1834_v46 = vpop.eup %1833  ;;  %722 = vst [vmem:[#allocation3 + $0x1b8] sm:$0xff] %v720_v1  ;;  %741 = vst [vmem:[#allocation2 + $0x1c8] sm:$0xff] %v1832_v8  ;;  %v742_v24 = vmul.f32 %v1832_v8, %v2498_v27 }
  0x68   :  { %733 = vst [vmem:[#allocation3 + $0x1c0] sm:$0xff] %v731_v0  ;;  %752 = vst [vmem:[#allocation2 + $0x1d0] sm:$0xff] %v1834_v46  ;;  %v753_v18 = vmul.f32 %v1834_v46, %v2505_v25  ;;  %v1836_v51 = vpop.eup %1835 }
  0x69   :  { %744 = vst [vmem:[#allocation3 + $0x1c8] sm:$0xff] %v742_v24  ;;  %v1838_v34 = vpop.eup %1837  ;;  %763 = vst [vmem:[#allocation2 + $0x1d8] sm:$0xff] %v1836_v51  ;;  %v764_v58 = vmul.f32 %v1836_v51, %v2513_v22  ;;  %v2561_v22 = vmov 1.0  }
  0x6a   :  { %755 = vst [vmem:[#allocation3 + $0x1d0] sm:$0xff] %v753_v18  ;;  %v1840_v52 = vpop.eup %1839  ;;  %774 = vst [vmem:[#allocation2 + $0x1e0] sm:$0xff] %v1838_v34  ;;  %v775_v12 = vmul.f32 %v1838_v34, %v2520_v50  ;;  %v2565_v50 = vmov 1.0  }
  0x6b   :  { %766 = vst [vmem:[#allocation3 + $0x1d8] sm:$0xff] %v764_v58  ;;  %785 = vst [vmem:[#allocation2 + $0x1e8] sm:$0xff] %v1840_v52  ;;  %v786_v62 = vmul.f32 %v1840_v52, %v2525_v41  ;;  %v2569_v41 = vmov 1.0  }
  0x6c   :  { %777 = vst [vmem:[#allocation3 + $0x1e0] sm:$0xff] %v775_v12 }
  0x6d   :  { %v1842_v27 = vpop.eup %1841  ;;  %788 = vst [vmem:[#allocation3 + $0x1e8] sm:$0xff] %v786_v62 }
  0x6e   :  { %v1844_v29 = vpop.eup %1843  ;;  %796 = vst [vmem:[#allocation2 + $0x1f0] sm:$0xff] %v1842_v27  ;;  %v797_v25 = vmul.f32 %v1842_v27, %v2535_v21  ;;  %v2575_v21 = vmov 1.0  }
  0x6f   :  { %807 = vst [vmem:[#allocation2 + $0x1f8] sm:$0xff] %v1844_v29  ;;  %v808_v5 = vmul.f32 %v1844_v29, %v2541_v61 }
  0x70   :  { %799 = vst [vmem:[#allocation3 + $0x1f0] sm:$0xff] %v797_v25 }
  0x71   :  { %810 = vst [vmem:[#allocation3 + $0x1f8] sm:$0xff] %v808_v5 }
  0x72 LB: > { %v2606_v61 = vld [vmem:[#allocation2] sm:$0xff]  ;;  %v2608_v11 = vld [vmem:[#allocation2 + $0x8] sm:$0xff]  ;;  %v2610_v13 = vld [vmem:[#allocation2 + $0x10] sm:$0xff]  ;;  %s816_s0 = sadd.s32 1, %s1947_s0   ;;  %s1947_s0 = sphi %s2577_s0, %s816_s0   ;;  %v1943_v21 = vphi %v2575_v21, %v3297_v21   ;;  %v1939_v9 = vphi %v2573_v9, %v3296_v9   ;;  %v1935_v59 = vphi %v2571_v59, %v3295_v59   ;;  %v1931_v41 = vphi %v2569_v41, %v3294_v41   ;;  %v1927_v26 = vphi %v2567_v26, %v3293_v26   ;;  %v1923_v50 = vphi %v2565_v50, %v3292_v50   ;;  %v1919_v57 = vphi %v2563_v57, %v3291_v57   ;;  %v1915_v22 = vphi %v2561_v22, %v3290_v22  }
  0x73   : > { %v2612_v28 = vld [vmem:[#allocation2 + $0x18] sm:$0xff]  ;;  %v2614_v23 = vld [vmem:[#allocation2 + $0x20] sm:$0xff]  ;;  %v2616_v47 = vld [vmem:[#allocation2 + $0x28] sm:$0xff]  ;;  %v841_v14 = vmul.f32 %v1943_v21, %v2606_v61  ;;  %v842_v17 = vmul.f32 %v1939_v9, %v2608_v11  ;;  %v843_v53 = vmul.f32 %v1935_v59, %v2610_v13  ;;  %p813_p0 = scmp.ge.s32.totalorder %s816_s0, 30  }
  0x74   : > { %v2618_v16 = vld [vmem:[#allocation2 + $0x30] sm:$0xff]  ;;  %v2620_v60 = vld [vmem:[#allocation2 + $0x38] sm:$0xff]  ;;  %v2622_v40 = vld [vmem:[#allocation2 + $0x40] sm:$0xff]  ;;  %v845_v36 = vmul.f32 %v1931_v41, %v2612_v28  ;;  %v847_v49 = vmul.f32 %v1927_v26, %v2614_v23  ;;  %v849_v55 = vmul.f32 %v1923_v50, %v2616_v47 }
  0x75   : > { %v2624_v10 = vld [vmem:[#allocation2 + $0x48] sm:$0xff]  ;;  %v2626_v43 = vld [vmem:[#allocation2 + $0x50] sm:$0xff]  ;;  %v2636_v30 = vld [vmem:[#allocation2 + $0x58] sm:$0xff]  ;;  %v851_v20 = vmul.f32 %v1919_v57, %v2618_v16  ;;  %v853_v63 = vmul.f32 %v1915_v22, %v2620_v60  ;;  %v844_v1 = vadd.f32 %v843_v53, %v841_v14  ;;  %v886_v0 = vmul.f32 %v1943_v21, %v2622_v40 }
  0x76   : > { %v2638_v31 = vld [vmem:[#allocation2 + $0x60] sm:$0xff]  ;;  %v2640_v19 = vld [vmem:[#allocation2 + $0x68] sm:$0xff]  ;;  %v2650_v56 = vld [vmem:[#allocation2 + $0x70] sm:$0xff]  ;;  %v846_v8 = vadd.f32 %v845_v36, %v842_v17  ;;  %v887_v46 = vmul.f32 %v1939_v9, %v2624_v10  ;;  %v888_v51 = vmul.f32 %v1935_v59, %v2626_v43  ;;  %v890_v34 = vmul.f32 %v1931_v41, %v2636_v30 }
  0x77   : > { %v2652_v35 = vld [vmem:[#allocation2 + $0x78] sm:$0xff]  ;;  %v2658_v24 = vld [vmem:[#allocation2 + $0x80] sm:$0xff]  ;;  %v2660_v18 = vld [vmem:[#allocation2 + $0x88] sm:$0xff]  ;;  %v892_v58 = vmul.f32 %v1927_v26, %v2638_v31  ;;  %v894_v52 = vmul.f32 %v1923_v50, %v2640_v19  ;;  %v848_v27 = vadd.f32 %v847_v49, %v844_v1  ;;  %v896_v25 = vmul.f32 %v1919_v57, %v2650_v56 }
  0x78   : > { %v2670_v12 = vld [vmem:[#allocation2 + $0x90] sm:$0xff]  ;;  %v2672_v62 = vld [vmem:[#allocation2 + $0x98] sm:$0xff]  ;;  %v850_v29 = vadd.f32 %v849_v55, %v846_v8  ;;  %v898_v5 = vmul.f32 %v1915_v22, %v2652_v35  ;;  %v2678_v14 = vld [vmem:[#allocation2 + $0xa0] sm:$0xff]  ;;  %v889_v53 = vadd.f32 %v888_v51, %v886_v0  ;;  %v891_v36 = vadd.f32 %v890_v34, %v887_v46 }
  0x79   : > { %v2680_v17 = vld [vmem:[#allocation2 + $0xa8] sm:$0xff]  ;;  %v2682_v39 = vld [vmem:[#allocation2 + $0xb0] sm:$0xff]  ;;  %v931_v37 = vmul.f32 %v1943_v21, %v2658_v24  ;;  %v932_v49 = vmul.f32 %v1939_v9, %v2660_v18  ;;  %v852_v55 = vadd.f32 %v851_v20, %v848_v27  ;;  %v2688_v8 = vld [vmem:[#allocation2 + $0xb8] sm:$0xff]  ;;  %v933_v7 = vmul.f32 %v1935_v59, %v2670_v12 }
  0x7a   : > { %3205 = vst [vmem:[#allocation17_spill] sm:$0xff] %v2682_v39  ;;  %v854_v1 = vadd.f32 %v853_v63, %v850_v29  ;;  %3206 = vst [vmem:[#allocation18_spill] sm:$0xff] %v2688_v8  ;;  %v935_v6 = vmul.f32 %v1931_v41, %v2672_v62  ;;  %v2694_v0 = vld [vmem:[#allocation2 + $0xc0] sm:$0xff]  ;;  %v893_v46 = vadd.f32 %v892_v58, %v889_v53  ;;  %v2700_v20 = vld [vmem:[#allocation2 + $0xc8] sm:$0xff] }
  0x7b   : > { %3207 = vst [vmem:[#allocation19_spill] sm:$0xff] %v2694_v0  ;;  %v895_v51 = vadd.f32 %v894_v52, %v891_v36  ;;  %v937_v34 = vmul.f32 %v1927_v26, %v2678_v14  ;;  %v939_v4 = vmul.f32 %v1923_v50, %v2680_v17  ;;  %3208 = vst [vmem:[#allocation20_spill] sm:$0xff] %v2700_v20  ;;  %v2704_v2 = vld [vmem:[#allocation2 + $0xd0] sm:$0xff]  ;;  %v2706_v54 = vld [vmem:[#allocation2 + $0xd8] sm:$0xff] }
  0x7c   : > { %v855_v63 = vadd.f32 %v854_v1, %v852_v55  ;;  %v934_v27 = vadd.f32 %v933_v7, %v931_v37  ;;  %v936_v29 = vadd.f32 %v935_v6, %v932_v49  ;;  %v941_v3 = vmul.f32 %v1919_v57, %v2682_v39  ;;  %3209 = vst [vmem:[#allocation21_spill] sm:$0xff] %v2704_v2  ;;  %v2708_v58 = vld [vmem:[#allocation2 + $0xe0] sm:$0xff]  ;;  %v2712_v15 = vld [vmem:[#allocation2 + $0xe8] sm:$0xff]  ;;  %v2718_v55 = vld [vmem:[#allocation2 + $0xf0] sm:$0xff] }
  0x7d   : > { %3210 = vst [vmem:[#allocation22_spill] sm:$0xff] %v2706_v54  ;;  %3211 = vst [vmem:[#allocation23_spill] sm:$0xff] %v2708_v58  ;;  %v897_v52 = vadd.f32 %v896_v25, %v893_v46  ;;  %v899_v53 = vadd.f32 %v898_v5, %v895_v51  ;;  %v943_v36 = vmul.f32 %v1915_v22, %v2688_v8  ;;  %v2722_v25 = vld [vmem:[#allocation2 + $0xf8] sm:$0xff] }
  0x7e   : > { %3212 = vst [vmem:[#allocation24_spill] sm:$0xff] %v2712_v15  ;;  %v976_v7 = vmul.f32 %v1943_v21, %v2694_v0  ;;  %v2716_v6 = vadd.f32 1e-12, %v855_v63  ;;  %v938_v37 = vadd.f32 %v937_v34, %v934_v27  ;;  %v940_v49 = vadd.f32 %v939_v4, %v936_v29  ;;  %3213 = vst [vmem:[#allocation25_spill] sm:$0xff] %v2718_v55  ;;  %v2730_v63 = vld [vmem:[#allocation2 + $0x100] sm:$0xff]  ;;  %v2732_v4 = vld [vmem:[#allocation2 + $0x108] sm:$0xff] }
  0x7f   : > { %v977_v1 = vmul.f32 %v1939_v9, %v2700_v20  ;;  %v900_v45 = vadd.f32 %v899_v53, %v897_v52  ;;  %3214 = vst [vmem:[#allocation26_spill] sm:$0xff] %v2722_v25  ;;  %v978_v5 = vmul.f32 %v1935_v59, %v2704_v2  ;;  %v980_v46 = vmul.f32 %v1931_v41, %v2706_v54  ;;  %v2736_v52 = vld [vmem:[#allocation2 + $0x110] sm:$0xff]  ;;  %v2742_v2 = vld [vmem:[#allocation2 + $0x118] sm:$0xff]  ;;  %v2746_v20 = vld [vmem:[#allocation2 + $0x128] sm:$0xff] }
  0x80   : > { %v982_v51 = vmul.f32 %v1927_v26, %v2708_v58  ;;  %3215 = vst [vmem:[#allocation27_spill] sm:$0xff] %v2730_v63  ;;  %3216 = vst [vmem:[#allocation28_spill] sm:$0xff] %v2732_v4  ;;  %v942_v34 = vadd.f32 %v941_v3, %v938_v37  ;;  %v944_v27 = vadd.f32 %v943_v36, %v940_v49  ;;  %v2744_v58 = vld [vmem:[#allocation2 + $0x120] sm:$0xff]  ;;  %1845 = vrcp.f32 %v2716_v6  ;;  %v2782_v0 = vld [vmem:[#allocation2 + $0x168] sm:$0xff] }
  0x81   : > { %v984_v29 = vmul.f32 %v1923_v50, %v2712_v15  ;;  %3217 = vst [vmem:[#allocation29_spill] sm:$0xff] %v2736_v52  ;;  %v2738_v53 = vadd.f32 1e-12, %v900_v45  ;;  %v979_v48 = vadd.f32 %v978_v5, %v976_v7  ;;  %v981_v44 = vadd.f32 %v980_v46, %v977_v1  ;;  %3218 = vst [vmem:[#allocation30_spill] sm:$0xff] %v2742_v2  ;;  %v2755_v1 = vld [vmem:[#allocation2 + $0x130] sm:$0xff]  ;;  %v2757_v5 = vld [vmem:[#allocation2 + $0x138] sm:$0xff] }
  0x82   : > { %v986_v54 = vmul.f32 %v1919_v57, %v2718_v55  ;;  %3219 = vst [vmem:[#allocation31_spill] sm:$0xff] %v2744_v58  ;;  %3220 = vst [vmem:[#allocation32_spill] sm:$0xff] %v2746_v20  ;;  %v988_v3 = vmul.f32 %v1915_v22, %v2722_v25  ;;  %v1021_v45 = vmul.f32 %v1943_v21, %v2730_v63  ;;  %v2761_v55 = vld [vmem:[#allocation2 + $0x140] sm:$0xff] }
  0x83   : > { %v1022_v36 = vmul.f32 %v1939_v9, %v2732_v4  ;;  %v945_v7 = vadd.f32 %v944_v27, %v942_v34  ;;  %v983_v37 = vadd.f32 %v982_v51, %v979_v48  ;;  %v985_v49 = vadd.f32 %v984_v29, %v981_v44  ;;  %3221 = vst [vmem:[#allocation33_spill] sm:$0xff] %v2755_v1  ;;  %v2770_v48 = vld [vmem:[#allocation2 + $0x148] sm:$0xff]  ;;  %v2772_v51 = vld [vmem:[#allocation2 + $0x150] sm:$0xff] }
  0x84   : > { %3222 = vst [vmem:[#allocation34_spill] sm:$0xff] %v2757_v5  ;;  %v1023_v46 = vmul.f32 %v1935_v59, %v2736_v52  ;;  %3223 = vst [vmem:[#allocation35_spill] sm:$0xff] %v2761_v55  ;;  %1847 = vrcp.f32 %v2738_v53  ;;  %v1025_v63 = vmul.f32 %v1931_v41, %v2742_v2  ;;  %v1027_v4 = vmul.f32 %v1927_v26, %v2744_v58  ;;  %v2774_v52 = vld [vmem:[#allocation2 + $0x158] sm:$0xff]  ;;  %v2780_v58 = vld [vmem:[#allocation2 + $0x160] sm:$0xff] }
  0x85   : > { %v1029_v44 = vmul.f32 %v1923_v50, %v2746_v20  ;;  %3224 = vst [vmem:[#allocation36_spill] sm:$0xff] %v2770_v48  ;;  %3225 = vst [vmem:[#allocation37_spill] sm:$0xff] %v2772_v51  ;;  %v987_v34 = vadd.f32 %v986_v54, %v983_v37  ;;  %v989_v27 = vadd.f32 %v988_v3, %v985_v49  ;;  %v946_v3 = vadd.f32 1e-12, %v945_v7  ;;  %v2792_v49 = vld [vmem:[#allocation2 + $0x180] sm:$0xff] }
  0x86   : > { %v1024_v29 = vadd.f32 %v1023_v46, %v1021_v45  ;;  %3226 = vst [vmem:[#allocation38_spill] sm:$0xff] %v2774_v52  ;;  %v1026_v25 = vadd.f32 %v1025_v63, %v1022_v36  ;;  %v1031_v15 = vmul.f32 %v1919_v57, %v2755_v1  ;;  %v1033_v2 = vmul.f32 %v1915_v22, %v2757_v5  ;;  %v2794_v46 = vld [vmem:[#allocation2 + $0x188] sm:$0xff] }
  0x87   : > { %3227 = vst [vmem:[#allocation39_spill] sm:$0xff] %v2780_v58  ;;  %3228 = vst [vmem:[#allocation40_spill] sm:$0xff] %v2782_v0  ;;  %v1066_v20 = vmul.f32 %v1943_v21, %v2761_v55  ;;  %v1067_v54 = vmul.f32 %v1939_v9, %v2770_v48  ;;  %v1068_v63 = vmul.f32 %v1935_v59, %v2772_v51  ;;  %v2800_v48 = vld [vmem:[#allocation2 + $0x190] sm:$0xff]  ;;  %v2802_v51 = vld [vmem:[#allocation2 + $0x198] sm:$0xff]  ;;  %1849 = vrcp.f32 %v946_v3 }
  0x88   : > { %v1028_v8 = vadd.f32 %v1027_v4, %v1024_v29  ;;  %v990_v45 = vadd.f32 %v989_v27, %v987_v34  ;;  %v1030_v36 = vadd.f32 %v1029_v44, %v1026_v25  ;;  %v1070_v37 = vmul.f32 %v1931_v41, %v2774_v52  ;;  %3229 = vst [vmem:[#allocation41_spill] sm:$0xff] %v2792_v49  ;;  %v2804_v44 = vld [vmem:[#allocation2 + $0x170] sm:$0xff]  ;;  %v2806_v34 = vld [vmem:[#allocation2 + $0x178] sm:$0xff]  ;;  %v2812_v52 = vld [vmem:[#allocation2 + $0x1a0] sm:$0xff] }
  0x89   : > { %3230 = vst [vmem:[#allocation42_spill] sm:$0xff] %v2794_v46  ;;  %v1069_v5 = vadd.f32 %v1068_v63, %v1066_v20  ;;  %v1072_v4 = vmul.f32 %v1927_v26, %v2780_v58  ;;  %v1074_v29 = vmul.f32 %v1923_v50, %v2782_v0  ;;  %3231 = vst [vmem:[#allocation43_spill] sm:$0xff] %v2800_v48  ;;  %v2814_v55 = vld [vmem:[#allocation2 + $0x1a8] sm:$0xff] }
  0x8a   : > { %3232 = vst [vmem:[#allocation44_spill] sm:$0xff] %v2802_v51  ;;  %v1032_v7 = vadd.f32 %v1031_v15, %v1028_v8  ;;  %v1034_v25 = vadd.f32 %v1033_v2, %v1030_v36  ;;  %3233 = vst [vmem:[#allocation45_spill] sm:$0xff] %v2804_v44  ;;  %v1071_v27 = vadd.f32 %v1070_v37, %v1067_v54  ;;  %v1846_v58 = vpop.eup %1845  ;;  %v991_v0 = vadd.f32 1e-12, %v990_v45 }
  0x8b   : > { %3234 = vst [vmem:[#allocation46_spill] sm:$0xff] %v2806_v34  ;;  %v1111_v20 = vmul.f32 %v1943_v21, %v2792_v49  ;;  %v1112_v63 = vmul.f32 %v1939_v9, %v2794_v46  ;;  %3235 = vst [vmem:[#allocation47_spill] sm:$0xff] %v2812_v52  ;;  %v1113_v15 = vmul.f32 %v1935_v59, %v2800_v48 }
  0x8c   : > { %3236 = vst [vmem:[#allocation48_spill] sm:$0xff] %v2814_v55  ;;  %v1115_v2 = vmul.f32 %v1931_v41, %v2802_v51  ;;  %v1073_v8 = vadd.f32 %v1072_v4, %v1069_v5  ;;  %v1075_v54 = vadd.f32 %v1074_v29, %v1071_v27  ;;  %v1076_v36 = vmul.f32 %v1919_v57, %v2804_v44  ;;  %v2829_v5 = vld [vmem:[#allocation2 + $0x1b0] sm:$0xff]  ;;  %v2831_v4 = vld [vmem:[#allocation2 + $0x1b8] sm:$0xff] }
  0x8d   : > { %v1078_v37 = vmul.f32 %v1915_v22, %v2806_v34  ;;  %v1035_v45 = vadd.f32 %v1034_v25, %v1032_v7  ;;  %v1114_v49 = vadd.f32 %v1113_v15, %v1111_v20  ;;  %v1117_v39 = vmul.f32 %v1927_v26, %v2812_v52 }
  0x8e   : > { %v1848_v46 = vpop.eup %1847  ;;  %v1116_v1 = vadd.f32 %v1115_v2, %v1112_v63  ;;  %v1119_v48 = vmul.f32 %v1923_v50, %v2814_v55  ;;  %v858_v51 = vmul.f32 %v1846_v58, %v2716_v6  ;;  %1851 = vrcp.f32 %v991_v0 }
  0x8f   : > { %v903_v29 = vmul.f32 %v1848_v46, %v2738_v53  ;;  %v1077_v27 = vadd.f32 %v1076_v36, %v1073_v8  ;;  %v1079_v34 = vadd.f32 %v1078_v37, %v1075_v54  ;;  %v1036_v7 = vadd.f32 1e-12, %v1035_v45  ;;  %v2838_v53 = vld [vmem:[#allocation2 + $0x1c0] sm:$0xff]  ;;  %v2840_v54 = vld [vmem:[#allocation2 + $0x1c8] sm:$0xff] }
  0x90   : > { %v1118_v25 = vadd.f32 %v1117_v39, %v1114_v49  ;;  %v1120_v20 = vadd.f32 %v1119_v48, %v1116_v1  ;;  %v1121_v63 = vmul.f32 %v1919_v57, %v2829_v5  ;;  %v1123_v15 = vmul.f32 %v1915_v22, %v2831_v4  ;;  %v2842_v39 = vld [vmem:[#allocation2 + $0x1d0] sm:$0xff]  ;;  %v2844_v1 = vld [vmem:[#allocation2 + $0x1d8] sm:$0xff]  ;;  %v2850_v45 = vld [vmem:[#allocation2 + $0x1e0] sm:$0xff] }
  0x91   : > { %v859_v2 = vsub.f32 2.0, %v858_v51  ;;  %v904_v6 = vsub.f32 2.0, %v903_v29  ;;  %v1080_v55 = vadd.f32 %v1079_v34, %v1077_v27  ;;  %v1850_v52 = vpop.eup %1849  ;;  %1853 = vrcp.f32 %v1036_v7 }
  0x92   : > { %v1122_v44 = vadd.f32 %v1121_v63, %v1118_v25  ;;  %v1124_v42 = vadd.f32 %v1123_v15, %v1120_v20  ;;  %v948_v49 = vmul.f32 %v1850_v52, %v946_v3  ;;  %v1156_v51 = vmul.f32 %v1943_v21, %v2838_v53 }
  0x93   : > { %v860_v8 = vmul.f32 %v1846_v58, %v859_v2  ;;  %v905_v48 = vmul.f32 %v1848_v46, %v904_v6  ;;  %v2846_v36 = vadd.f32 1e-12, %v1080_v55  ;;  %v1157_v58 = vmul.f32 %v1939_v9, %v2840_v54  ;;  %v2861_v55 = vld [vmem:[#allocation2 + $0x1e8] sm:$0xff]  ;;  %v2883_v6 = vld [vmem:[#allocation2 + $0x1f8] sm:$0xff] }
  0x94   : > { %v1125_v37 = vadd.f32 %v1124_v42, %v1122_v44  ;;  %v1158_v29 = vmul.f32 %v1935_v59, %v2842_v39  ;;  %v1160_v27 = vmul.f32 %v1931_v41, %v2844_v1  ;;  %v949_v42 = vsub.f32 2.0, %v948_v49  ;;  %v2871_v59 = vld [vmem:[#allocation2 + $0x1f0] sm:$0xff] }
  0x95   : > { %v2859_v3 = vmul.f32 %v860_v8, %v2163_v32  ;;  %v2864_v21 = vmul.f32 %v905_v48, %v2166_v33  ;;  %1855 = vrcp.f32 %v2846_v36  ;;  %v1162_v9 = vmul.f32 %v1927_v26, %v2850_v45  ;;  %v1266_v32 = vld [vmem:[#allocation3 + $0x40] sm:$0xff] (%p813_p0) }
  0x96   : > { %v2869_v25 = vadd.f32 1e-12, %v1125_v37  ;;  %v1159_v41 = vadd.f32 %v1158_v29, %v1156_v51  ;;  %v1161_v20 = vadd.f32 %v1160_v27, %v1157_v58  ;;  %v1164_v63 = vmul.f32 %v1923_v50, %v2861_v55 }
  0x97   : > { %v3237_v46 = vmov %v2864_v21  ;;  %v862_v15 = vmul.f32 %v2859_v3, %v2606_v61  ;;  %v864_v2 = vmul.f32 %v2859_v3, %v2608_v11  ;;  %v868_v26 = vmul.f32 %v2859_v3, %v2612_v28 }
  0x98   : > { %v1852_v34 = vpop.eup %1851  ;;  %v870_v48 = vmul.f32 %v2859_v3, %v2614_v23  ;;  %v872_v50 = vmul.f32 %v2859_v3, %v2616_v47  ;;  %v907_v61 = vmul.f32 %v3237_v46, %v2622_v40  ;;  %v950_v49 = vmul.f32 %v1850_v52, %v949_v42 }
  0x99   : > { %v993_v44 = vmul.f32 %v1852_v34, %v991_v0  ;;  %v866_v0 = vmul.f32 %v2859_v3, %v2610_v13  ;;  %v909_v11 = vmul.f32 %v3237_v46, %v2624_v10  ;;  %v911_v13 = vmul.f32 %v3237_v46, %v2626_v43 }
  0x9a   : > { %v1166_v51 = vmul.f32 %v1919_v57, %v2871_v59  ;;  %1857 = vrcp.f32 %v2869_v25  ;;  %v1163_v23 = vadd.f32 %v1162_v9, %v1159_v41  ;;  %v1165_v37 = vadd.f32 %v1164_v63, %v1161_v20 }
  0x9b   : > { %v1854_v8 = vpop.eup %1853  ;;  %v994_v28 = vsub.f32 2.0, %v993_v44  ;;  %v1168_v47 = vmul.f32 %v1915_v22, %v2883_v6  ;;  %v913_v40 = vmul.f32 %v3237_v46, %v2636_v30  ;;  %v915_v10 = vmul.f32 %v3237_v46, %v2638_v31 }
  0x9c   : > { %v917_v43 = vmul.f32 %v3237_v46, %v2640_v19  ;;  %v1038_v52 = vmul.f32 %v1854_v8, %v1036_v7  ;;  %v874_v57 = vmul.f32 %v2859_v3, %v2618_v16  ;;  %v876_v58 = vmul.f32 %v2859_v3, %v2620_v60 }
  0x9d   : > { %v2911_v29 = vmul.f32 %v950_v49, %v2169_v38  ;;  %v908_v22 = vadd.f32 %v907_v61, %v862_v15  ;;  %v919_v30 = vmul.f32 %v3237_v46, %v2650_v56  ;;  %v921_v31 = vmul.f32 %v3237_v46, %v2652_v35  ;;  %v3240_v61 = vld [vmem:[#allocation18_spill] sm:$0xff] }
  0x9e   : > { %v995_v27 = vmul.f32 %v1852_v34, %v994_v28  ;;  %v910_v19 = vadd.f32 %v909_v11, %v864_v2  ;;  %v912_v7 = vadd.f32 %v911_v13, %v866_v0  ;;  %v1167_v42 = vadd.f32 %v1166_v51, %v1163_v23  ;;  %v3238_v2 = vld [vmem:[#allocation4_spill] sm:$0xff] }
  0x9f   : > { %v1856_v21 = vpop.eup %1855  ;;  %v1169_v44 = vadd.f32 %v1168_v47, %v1165_v37  ;;  %v914_v16 = vadd.f32 %v913_v40, %v868_v26  ;;  %v916_v9 = vadd.f32 %v915_v10, %v870_v48  ;;  %v918_v41 = vadd.f32 %v917_v43, %v872_v50  ;;  %v3239_v50 = vld [vmem:[#allocation17_spill] sm:$0xff]  ;;  %v3241_v37 = vld [vmem:[#allocation19_spill] sm:$0xff]  ;;  %v3242_v40 = vld [vmem:[#allocation20_spill] sm:$0xff] }
  0xa0   : > { %v1039_v60 = vsub.f32 2.0, %v1038_v52  ;;  %v952_v20 = vmul.f32 %v2911_v29, %v2658_v24  ;;  %v954_v63 = vmul.f32 %v2911_v29, %v2660_v18  ;;  %v956_v56 = vmul.f32 %v2911_v29, %v2670_v12  ;;  %v3243_v43 = vld [vmem:[#allocation21_spill] sm:$0xff] }
  0xa1   : > { %v958_v35 = vmul.f32 %v2911_v29, %v2672_v62  ;;  %v960_v34 = vmul.f32 %v2911_v29, %v2678_v14  ;;  %v962_v15 = vmul.f32 %v2911_v29, %v2680_v17  ;;  %v2930_v0 = vmul.f32 %v995_v27, %v3238_v2 }
  0xa2   : > { %v1083_v24 = vmul.f32 %v1856_v21, %v2846_v36  ;;  %v920_v26 = vadd.f32 %v919_v30, %v874_v57  ;;  %v1170_v48 = vadd.f32 %v1169_v44, %v1167_v42  ;;  %v922_v18 = vadd.f32 %v921_v31, %v876_v58  ;;  %v3244_v57 = vld [vmem:[#allocation22_spill] sm:$0xff]  ;;  %v3246_v31 = vld [vmem:[#allocation24_spill] sm:$0xff] }
  0xa3   : > { %v964_v12 = vmul.f32 %v2911_v29, %v3239_v50  ;;  %v966_v62 = vmul.f32 %v2911_v29, %v3240_v61  ;;  %v1040_v49 = vmul.f32 %v1854_v8, %v1039_v60  ;;  %v953_v14 = vadd.f32 %v952_v20, %v908_v22  ;;  %v3245_v22 = vld [vmem:[#allocation23_spill] sm:$0xff]  ;;  %v3249_v60 = vld [vmem:[#allocation26_spill] sm:$0xff] }
  0xa4   : > { %v1858_v11 = vpop.eup %1857  ;;  %v955_v13 = vadd.f32 %v954_v63, %v910_v19  ;;  %v957_v28 = vadd.f32 %v956_v56, %v912_v7  ;;  %v959_v17 = vadd.f32 %v958_v35, %v914_v16  ;;  %v961_v51 = vadd.f32 %v960_v34, %v916_v9  ;;  %v3247_v19 = vld [vmem:[#allocation5_spill] sm:$0xff] }
  0xa5   : > { %v963_v23 = vadd.f32 %v962_v15, %v918_v41  ;;  %v997_v36 = vmul.f32 %v2930_v0, %v3241_v37  ;;  %v1084_v47 = vsub.f32 2.0, %v1083_v24  ;;  %v999_v10 = vmul.f32 %v2930_v0, %v3242_v40  ;;  %v3248_v9 = vld [vmem:[#allocation25_spill] sm:$0xff]  ;;  %v3257_v37 = vld [vmem:[#allocation6_spill] sm:$0xff] }
  0xa6   : > { %v1001_v52 = vmul.f32 %v2930_v0, %v3243_v43  ;;  %v1003_v8 = vmul.f32 %v2930_v0, %v3244_v57  ;;  %v1171_v58 = vadd.f32 1e-12, %v1170_v48  ;;  %v1005_v30 = vmul.f32 %v2930_v0, %v3245_v22  ;;  %v3250_v48 = vld [vmem:[#allocation27_spill] sm:$0xff]  ;;  %v3258_v40 = vld [vmem:[#allocation34_spill] sm:$0xff] }
  0xa7   : > { %v1007_v27 = vmul.f32 %v2930_v0, %v3246_v31  ;;  %v2950_v7 = vmul.f32 %v1040_v49, %v3247_v19  ;;  %v1128_v42 = vmul.f32 %v1858_v11, %v2869_v25  ;;  %v965_v44 = vadd.f32 %v964_v12, %v920_v26  ;;  %v3251_v26 = vld [vmem:[#allocation28_spill] sm:$0xff]  ;;  %v3252_v12 = vld [vmem:[#allocation29_spill] sm:$0xff]  ;;  %v3254_v49 = vld [vmem:[#allocation31_spill] sm:$0xff] }
  0xa8   : > { %v967_v16 = vadd.f32 %v966_v62, %v922_v18  ;;  %v1009_v41 = vmul.f32 %v2930_v0, %v3248_v9  ;;  %v1011_v20 = vmul.f32 %v2930_v0, %v3249_v60  ;;  %v1085_v63 = vmul.f32 %v1856_v21, %v1084_v47  ;;  %v3253_v62 = vld [vmem:[#allocation30_spill] sm:$0xff]  ;;  %v3259_v19 = vld [vmem:[#allocation35_spill] sm:$0xff]  ;;  %v3261_v60 = vld [vmem:[#allocation37_spill] sm:$0xff] }
  0xa9   : > { %1859 = vrcp.f32 %v1171_v58  ;;  %v998_v56 = vadd.f32 %v997_v36, %v953_v14  ;;  %v1000_v35 = vadd.f32 %v999_v10, %v955_v13  ;;  %v1002_v34 = vadd.f32 %v1001_v52, %v957_v28  ;;  %v3255_v28 = vld [vmem:[#allocation32_spill] sm:$0xff] }
  0xaa   : > { %v1004_v15 = vadd.f32 %v1003_v8, %v959_v17  ;;  %v1006_v2 = vadd.f32 %v1005_v30, %v961_v51  ;;  %v1008_v24 = vadd.f32 %v1007_v27, %v963_v23  ;;  %v1042_v50 = vmul.f32 %v2950_v7, %v3250_v48  ;;  %v3256_v51 = vld [vmem:[#allocation33_spill] sm:$0xff]  ;;  %v3266_v48 = vld [vmem:[#allocation46_spill] sm:$0xff] }
  0xab   : > { %v1129_v25 = vsub.f32 2.0, %v1128_v42  ;;  %v1044_v18 = vmul.f32 %v2950_v7, %v3251_v26  ;;  %v1046_v61 = vmul.f32 %v2950_v7, %v3252_v12  ;;  %v1048_v21 = vmul.f32 %v2950_v7, %v3253_v62 }
  0xac   : > { %v1050_v14 = vmul.f32 %v2950_v7, %v3254_v49  ;;  %v1010_v13 = vadd.f32 %v1009_v41, %v965_v44  ;;  %v1052_v17 = vmul.f32 %v2950_v7, %v3255_v28  ;;  %v1054_v23 = vmul.f32 %v2950_v7, %v3256_v51  ;;  %v3260_v44 = vld [vmem:[#allocation36_spill] sm:$0xff]  ;;  %v3269_v51 = vld [vmem:[#allocation41_spill] sm:$0xff] }
  0xad   : > { %v2972_v36 = vmul.f32 %v1085_v63, %v3257_v37  ;;  %v1012_v47 = vadd.f32 %v1011_v20, %v967_v16  ;;  %v1056_v10 = vmul.f32 %v2950_v7, %v3258_v40  ;;  %v1043_v43 = vadd.f32 %v1042_v50, %v998_v56  ;;  %v3262_v20 = vld [vmem:[#allocation38_spill] sm:$0xff]  ;;  %v3271_v40 = vld [vmem:[#allocation43_spill] sm:$0xff] }
  0xae   : > { %v1130_v52 = vmul.f32 %v1858_v11, %v1129_v25  ;;  %v1045_v57 = vadd.f32 %v1044_v18, %v1000_v35  ;;  %v1047_v8 = vadd.f32 %v1046_v61, %v1002_v34  ;;  %v1049_v22 = vadd.f32 %v1048_v21, %v1004_v15  ;;  %v3263_v11 = vld [vmem:[#allocation39_spill] sm:$0xff]  ;;  %v3264_v34 = vld [vmem:[#allocation40_spill] sm:$0xff]  ;;  %v3270_v37 = vld [vmem:[#allocation42_spill] sm:$0xff] }
  0xaf   : > { %v1051_v30 = vadd.f32 %v1050_v14, %v1006_v2  ;;  %v1053_v31 = vadd.f32 %v1052_v17, %v1008_v24  ;;  %v1055_v27 = vadd.f32 %v1054_v23, %v1010_v13  ;;  %v1087_v42 = vmul.f32 %v2972_v36, %v3259_v19  ;;  %v3265_v2 = vld [vmem:[#allocation45_spill] sm:$0xff]  ;;  %v3267_v25 = vld [vmem:[#allocation7_spill] sm:$0xff] }
  0xb0   : > { %v1089_v9 = vmul.f32 %v2972_v36, %v3260_v44  ;;  %v1057_v41 = vadd.f32 %v1056_v10, %v1012_v47  ;;  %v1091_v16 = vmul.f32 %v2972_v36, %v3261_v60  ;;  %v1093_v63 = vmul.f32 %v2972_v36, %v3262_v20  ;;  %v3275_v60 = vld [vmem:[#allocation8_spill] sm:$0xff] }
  0xb1   : > { %v1095_v56 = vmul.f32 %v2972_v36, %v3263_v11  ;;  %v1097_v15 = vmul.f32 %v2972_v36, %v3264_v34  ;;  %v1099_v24 = vmul.f32 %v2972_v36, %v3265_v2  ;;  %v1101_v50 = vmul.f32 %v2972_v36, %v3266_v48 }
  0xb2   : > { %v2993_v26 = vmul.f32 %v1130_v52, %v3267_v25  ;;  %v1088_v12 = vadd.f32 %v1087_v42, %v1043_v43  ;;  %v1090_v61 = vadd.f32 %v1089_v9, %v1045_v57  ;;  %v1092_v62 = vadd.f32 %v1091_v16, %v1047_v8  ;;  %v3272_v52 = vld [vmem:[#allocation44_spill] sm:$0xff]  ;;  %v3273_v8 = vld [vmem:[#allocation47_spill] sm:$0xff] }
  0xb3   : > { %v1860_v35 = vpop.eup %1859  ;;  %v1094_v21 = vadd.f32 %v1093_v63, %v1049_v22  ;;  %v1096_v49 = vadd.f32 %v1095_v56, %v1051_v30  ;;  %v1098_v13 = vadd.f32 %v1097_v15, %v1053_v31  ;;  %v1100_v28 = vadd.f32 %v1099_v24, %v1055_v27 }
  0xb4   : > { %v3268_v18 = vmov %v2993_v26  ;;  %v1173_v14 = vmul.f32 %v1860_v35, %v1171_v58  ;;  %v1102_v17 = vadd.f32 %v1101_v50, %v1057_v41  ;;  %v3274_v58 = vld [vmem:[#allocation48_spill] sm:$0xff] }
  0xb5   : > { %v1132_v23 = vmul.f32 %v3268_v18, %v3269_v51  ;;  %v1134_v47 = vmul.f32 %v3268_v18, %v3270_v37  ;;  %v1136_v10 = vmul.f32 %v3268_v18, %v3271_v40  ;;  %v1138_v43 = vmul.f32 %v3268_v18, %v3272_v52 }
  0xb6   : > { %v1174_v57 = vsub.f32 2.0, %v1173_v14  ;;  %v1140_v22 = vmul.f32 %v3268_v18, %v3273_v8  ;;  %v1142_v30 = vmul.f32 %v3268_v18, %v3274_v58  ;;  %v1144_v31 = vmul.f32 %v3268_v18, %v2829_v5 }
  0xb7   : > { %v1146_v27 = vmul.f32 %v3268_v18, %v2831_v4  ;;  %v1133_v42 = vadd.f32 %v1132_v23, %v1088_v12  ;;  %v1135_v44 = vadd.f32 %v1134_v47, %v1090_v61  ;;  %v1137_v9 = vadd.f32 %v1136_v10, %v1092_v62 }
  0xb8   : > { %v1175_v19 = vmul.f32 %v1860_v35, %v1174_v57  ;;  %v1139_v41 = vadd.f32 %v1138_v43, %v1094_v21  ;;  %v1141_v20 = vadd.f32 %v1140_v22, %v1096_v49  ;;  %v1143_v63 = vadd.f32 %v1142_v30, %v1098_v13 }
  0xb9   : > { %v1145_v11 = vadd.f32 %v1144_v31, %v1100_v28  ;;  %v1147_v56 = vadd.f32 %v1146_v27, %v1102_v17 }
  0xba   : > { %v3012_v16 = vmul.f32 %v1175_v19, %v3275_v60 }
  0xbc   : > { %v1177_v34 = vmul.f32 %v3012_v16, %v2838_v53  ;;  %v1179_v5 = vmul.f32 %v3012_v16, %v2840_v54  ;;  %v1181_v4 = vmul.f32 %v3012_v16, %v2842_v39  ;;  %v1183_v35 = vmul.f32 %v3012_v16, %v2844_v1 }
  0xbd   : > { %v1185_v15 = vmul.f32 %v3012_v16, %v2850_v45  ;;  %v1187_v2 = vmul.f32 %v3012_v16, %v2861_v55  ;;  %v1189_v24 = vmul.f32 %v3012_v16, %v2871_v59  ;;  %v1191_v53 = vmul.f32 %v3012_v16, %v2883_v6 }
  0xbe   : > { %v1178_v48 = vadd.f32 %v1177_v34, %v1133_v42  ;;  %v1180_v54 = vadd.f32 %v1179_v5, %v1135_v44  ;;  %v1182_v50 = vadd.f32 %v1181_v4, %v1137_v9  ;;  %v1184_v25 = vadd.f32 %v1183_v35, %v1139_v41  ;;  %v3276_v42 = vld [vmem:[#allocation9_spill] sm:$0xff]  ;;  %v3279_v5 = vld [vmem:[#allocation11_spill] sm:$0xff] }
  0xbf   : > { %v1186_v39 = vadd.f32 %v1185_v15, %v1141_v20  ;;  %v1188_v26 = vadd.f32 %v1187_v2, %v1143_v63  ;;  %v1190_v12 = vadd.f32 %v1189_v24, %v1145_v11  ;;  %v1192_v45 = vadd.f32 %v1191_v53, %v1147_v56  ;;  %v3278_v20 = vld [vmem:[#allocation10_spill] sm:$0xff]  ;;  %v3281_v2 = vld [vmem:[#allocation12_spill] sm:$0xff] }
  0xc0   : > { %v1193_v1 = vadd.f32 1e-12, %v1178_v48  ;;  %v1199_v61 = vadd.f32 1e-12, %v1180_v54  ;;  %v1205_v62 = vadd.f32 1e-12, %v1182_v50 }
  0xc1   : > { %v1211_v21 = vadd.f32 1e-12, %v1184_v25  ;;  %v1217_v55 = vadd.f32 1e-12, %v1186_v39  ;;  %v1223_v49 = vadd.f32 1e-12, %v1188_v26 }
  0xc2   : > { %1861 = vrcp.f32 %v1193_v1  ;;  %v1229_v59 = vadd.f32 1e-12, %v1190_v12  ;;  %v1235_v6 = vadd.f32 1e-12, %v1192_v45  ;;  %v3283_v54 = vld [vmem:[#allocation13_spill] sm:$0xff]  ;;  %v3285_v39 = vld [vmem:[#allocation14_spill] sm:$0xff] }
  0xc3   : > { %1863 = vrcp.f32 %v1199_v61  ;;  %v3288_v45 = vld [vmem:[#allocation16_spill] sm:$0xff] }
  0xc4   : > { %1865 = vrcp.f32 %v1205_v62 }
  0xc5   : > { %1867 = vrcp.f32 %v1211_v21 }
  0xc6   : > { %1869 = vrcp.f32 %v1217_v55 }
  0xc7   : > { %1871 = vrcp.f32 %v1223_v49 }
  0xc8   : > { %1873 = vrcp.f32 %v1229_v59 }
  0xc9   : > { %1875 = vrcp.f32 %v1235_v6 }
  0xcc   : > { %v1862_v14 = vpop.eup %1861 }
  0xcd   : > { %v1864_v13 = vpop.eup %1863  ;;  %v1195_v28 = vmul.f32 %v1862_v14, %v1193_v1 }
  0xce   : > { %v1866_v17 = vpop.eup %1865  ;;  %v1201_v51 = vmul.f32 %v1864_v13, %v1199_v61  ;;  %v3286_v61 = vld [vmem:[#allocation15_spill] sm:$0xff] }
  0xcf   : > { %v1868_v23 = vpop.eup %1867  ;;  %v1196_v37 = vsub.f32 2.0, %v1195_v28  ;;  %v1207_v47 = vmul.f32 %v1866_v17, %v1205_v62  ;;  %v1246_v28 = vld [vmem:[#allocation3 + $0x28] sm:$0xff] (%p813_p0) }
  0xd0   : > { %v1870_v40 = vpop.eup %1869  ;;  %v1202_v10 = vsub.f32 2.0, %v1201_v51  ;;  %v1213_v52 = vmul.f32 %v1868_v23, %v1211_v21 }
  0xd1   : > { %v1872_v43 = vpop.eup %1871  ;;  %v1197_v57 = vmul.f32 %v1862_v14, %v1196_v37  ;;  %v1208_v8 = vsub.f32 2.0, %v1207_v47  ;;  %v1219_v22 = vmul.f32 %v1870_v40, %v1217_v55  ;;  %v1244_v14 = vld [vmem:[#allocation3 + $0x18] sm:$0xff] (%p813_p0)  ;;  %v1247_v37 = vld [vmem:[#allocation3 + $0x30] sm:$0xff] (%p813_p0) }
  0xd2   : > { %v1874_v58 = vpop.eup %1873  ;;  %v1203_v30 = vmul.f32 %v1864_v13, %v1202_v10  ;;  %v1214_v31 = vsub.f32 2.0, %v1213_v52  ;;  %v1225_v27 = vmul.f32 %v1872_v43, %v1223_v49  ;;  %v1242_v49 = vld [vmem:[#allocation3 + $0x8] sm:$0xff] (%p813_p0)  ;;  %v1245_v13 = vld [vmem:[#allocation3 + $0x20] sm:$0xff] (%p813_p0)  ;;  %v1248_v47 = vld [vmem:[#allocation3 + $0x38] sm:$0xff] (%p813_p0) }
  0xd3   : > { %v1876_v19 = vpop.eup %1875  ;;  %v3031_v21 = vmul.f32 %v1197_v57, %v3276_v42   ;;  %v1209_v9 = vmul.f32 %v1866_v17, %v1208_v8  ;;  %v1220_v41 = vsub.f32 2.0, %v1219_v22  ;;  %v1231_v60 = vmul.f32 %v1874_v58, %v1229_v59 }
  0xd4   : > { %v3034_v63 = vmul.f32 %v1203_v30, %v3278_v20   ;;  %v1215_v11 = vmul.f32 %v1868_v23, %v1214_v31  ;;  %v1226_v56 = vsub.f32 2.0, %v1225_v27  ;;  %v1237_v34 = vmul.f32 %v1876_v19, %v1235_v6  ;;  %v1243_v6 = vld [vmem:[#allocation3 + $0x10] sm:$0xff] (%p813_p0)  ;;  %v1271_v30 = vld [vmem:[#allocation3 + $0x68] sm:$0xff] (%p813_p0) }
  0xd5   : > { %v3277_v44 = vmov %v3031_v21  ;;  %v3037_v59 = vmul.f32 %v1209_v9, %v3279_v5   ;;  %v1221_v35 = vmul.f32 %v1870_v40, %v1220_v41  ;;  %v1232_v15 = vsub.f32 2.0, %v1231_v60  ;;  %v1272_v31 = vld [vmem:[#allocation3 + $0x70] sm:$0xff] (%p813_p0) }
  0xd6   : > { %v3040_v41 = vmul.f32 %v1215_v11, %v3281_v2   ;;  %v1227_v53 = vmul.f32 %v1872_v43, %v1226_v56  ;;  %v1238_v48 = vsub.f32 2.0, %v1237_v34  ;;  %v3296_v9 = vmov %v3034_v63  ;;  %v1268_v43 = vld [vmem:[#allocation3 + $0x50] sm:$0xff] (%p813_p0)  ;;  %v1291_v56 = vld [vmem:[#allocation3 + $0x80] sm:$0xff] (%p813_p0)  ;;  %v1292_v34 = vld [vmem:[#allocation3 + $0x88] sm:$0xff] (%p813_p0) }
  0xd7   : > { %v3280_v4 = vmov %v3037_v59  ;;  %v3043_v26 = vmul.f32 %v1221_v35, %v3283_v54   ;;  %v1233_v50 = vmul.f32 %v1874_v58, %v1232_v15  ;;  %v3297_v21 = vmov %v3277_v44  ;;  %815 = sbr.rel (!%p813_p0) target bundleno = 114 (0x72), region = 242  ;;  %v1270_v58 = vld [vmem:[#allocation3 + $0x60] sm:$0xff] (%p813_p0) }
  0xd8   : > { %v3282_v24 = vmov %v3040_v41  ;;  %v3046_v12 = vmul.f32 %v1227_v53, %v3285_v39   ;;  %v1239_v1 = vmul.f32 %v1876_v19, %v1238_v48  ;;  %v3295_v59 = vmov %v3280_v4  ;;  %v1241_v21 = vld [vmem:[#allocation3] sm:$0xff] (%p813_p0)  ;;  %v1293_v53 = vld [vmem:[#allocation3 + $0x90] sm:$0xff] (%p813_p0)  ;;  %v1294_v48 = vld [vmem:[#allocation3 + $0x98] sm:$0xff] (%p813_p0) }
  0xd9   : > { %v3284_v25 = vmov %v3043_v26  ;;  %v3049_v57 = vmul.f32 %v1233_v50, %v3286_v61   ;;  %v3294_v41 = vmov %v3282_v24  ;;  %v1249_v17 = vmul.f32 (%p813_p0), %v1241_v21, %v3277_v44  ;;  %v1267_v59 = vld [vmem:[#allocation3 + $0x48] sm:$0xff] (%p813_p0)  ;;  %v1295_v54 = vld [vmem:[#allocation3 + $0xa0] sm:$0xff] (%p813_p0) }
  0xda   : > { %v3052_v22 = vmul.f32 %v1239_v1, %v3288_v45   ;;  %v3292_v50 = vmov %v3046_v12  ;;  %v3293_v26 = vmov %v3284_v25  ;;  %v1250_v51 = vmul.f32 (%p813_p0), %v1242_v49, %v3034_v63  ;;  %v1273_v41 = vld [vmem:[#allocation3 + $0x78] sm:$0xff] (%p813_p0)  ;;  %v1296_v39 = vld [vmem:[#allocation3 + $0xa8] sm:$0xff] (%p813_p0)  ;;  %v1297_v1 = vld [vmem:[#allocation3 + $0xb0] sm:$0xff] (%p813_p0) }
  0xdb   : > { %v3287_v62 = vmov %v3049_v57  ;;  %v1251_v23 = vmul.f32 (%p813_p0), %v1243_v6, %v3280_v4  ;;  %v1253_v40 = vmul.f32 (%p813_p0), %v1244_v14, %v3282_v24  ;;  %v1255_v10 = vmul.f32 (%p813_p0), %v1245_v13, %v3284_v25  ;;  %v1298_v13 = vld [vmem:[#allocation3 + $0xb8] sm:$0xff] (%p813_p0) }
  0xdc   : > { %v3289_v55 = vmov %v3052_v22  ;;  %v3291_v57 = vmov %v3287_v62  ;;  %v1257_v52 = vmul.f32 (%p813_p0), %v1246_v28, %v3046_v12  ;;  %v1259_v38 = vmul.f32 (%p813_p0), %v1247_v37, %v3287_v62 }
  0xdd   : > { %v3290_v22 = vmov %v3289_v55  ;;  %v1252_v33 = vadd.f32 (%p813_p0), %v1251_v23, %v1249_v17  ;;  %v1261_v26 = vmul.f32 (%p813_p0), %v1248_v47, %v3289_v55  ;;  %v1269_v57 = vld [vmem:[#allocation3 + $0x58] sm:$0xff] (%p813_p0)  ;;  %v1274_v8 = vmul.f32 (%p813_p0), %v1266_v32, %v3277_v44  ;;  %v1316_v17 = vld [vmem:[#allocation3 + $0xc0] sm:$0xff] (%p813_p0) }
  0xde   :  { %v1254_v22 = vadd.f32 %v1253_v40, %v1250_v51  ;;  %v1275_v27 = vmul.f32 %v1267_v59, %v3034_v63  ;;  %v1276_v19 = vmul.f32 %v1268_v43, %v3280_v4  ;;  %v1278_v42 = vmul.f32 %v1269_v57, %v3282_v24  ;;  %v1317_v51 = vld [vmem:[#allocation3 + $0xc8] sm:$0xff]  ;;  %v1320_v59 = vld [vmem:[#allocation3 + $0xe0] sm:$0xff] }
  0xdf   :  { %v1256_v9 = vadd.f32 %v1255_v10, %v1252_v33  ;;  %v1280_v60 = vmul.f32 %v1270_v58, %v3284_v25  ;;  %v1282_v20 = vmul.f32 %v1271_v30, %v3046_v12  ;;  %v1284_v11 = vmul.f32 %v1272_v31, %v3287_v62  ;;  %v1318_v10 = vld [vmem:[#allocation3 + $0xd0] sm:$0xff]  ;;  %v1321_v43 = vld [vmem:[#allocation3 + $0xe8] sm:$0xff] }
  0xe0   :  { %v1258_v5 = vadd.f32 %v1257_v52, %v1254_v22  ;;  %v1277_v35 = vadd.f32 %v1276_v19, %v1274_v8  ;;  %v1279_v15 = vadd.f32 %v1278_v42, %v1275_v27  ;;  %v1286_v2 = vmul.f32 %v1273_v41, %v3289_v55  ;;  %v1322_v22 = vld [vmem:[#allocation3 + $0xf0] sm:$0xff]  ;;  %v1323_v42 = vld [vmem:[#allocation3 + $0xf8] sm:$0xff]  ;;  %v1341_v41 = vld [vmem:[#allocation3 + $0x100] sm:$0xff] }
  0xe1   :  { %v1260_v50 = vadd.f32 %v1259_v38, %v1256_v9  ;;  %v1299_v61 = vmul.f32 %v1291_v56, %v3277_v44  ;;  %v1300_v45 = vmul.f32 %v1292_v34, %v3034_v63  ;;  %v1301_v21 = vmul.f32 %v1293_v53, %v3280_v4  ;;  %v1344_v53 = vld [vmem:[#allocation3 + $0x118] sm:$0xff] }
  0xe2   :  { %v1262_v49 = vadd.f32 %v1261_v26, %v1258_v5  ;;  %v1281_v6 = vadd.f32 %v1280_v60, %v1277_v35  ;;  %v1283_v14 = vadd.f32 %v1282_v20, %v1279_v15  ;;  %v1303_v28 = vmul.f32 %v1294_v48, %v3282_v24  ;;  %v1319_v26 = vld [vmem:[#allocation3 + $0xd8] sm:$0xff]  ;;  %v1342_v60 = vld [vmem:[#allocation3 + $0x108] sm:$0xff]  ;;  %v1343_v5 = vld [vmem:[#allocation3 + $0x110] sm:$0xff] }
  0xe3   :  { %v1302_v23 = vadd.f32 %v1301_v21, %v1299_v61  ;;  %v1305_v37 = vmul.f32 %v1295_v54, %v3284_v25  ;;  %v1307_v47 = vmul.f32 %v1296_v39, %v3046_v12  ;;  %v1309_v40 = vmul.f32 %v1297_v1, %v3287_v62  ;;  %v1345_v48 = vld [vmem:[#allocation3 + $0x120] sm:$0xff]  ;;  %v1346_v54 = vld [vmem:[#allocation3 + $0x128] sm:$0xff]  ;;  %v1347_v1 = vld [vmem:[#allocation3 + $0x130] sm:$0xff] }
  0xe4   :  { %v1263_v52 = vadd.f32 %v1262_v49, %v1260_v50  ;;  %v1285_v32 = vadd.f32 %v1284_v11, %v1281_v6  ;;  %v1287_v33 = vadd.f32 %v1286_v2, %v1283_v14  ;;  %v1304_v38 = vadd.f32 %v1303_v28, %v1300_v45  ;;  %v1348_v14 = vld [vmem:[#allocation3 + $0x138] sm:$0xff] }
  0xe5   :  { %v1306_v57 = vadd.f32 %v1305_v37, %v1302_v23  ;;  %v1311_v8 = vmul.f32 %v1298_v13, %v3289_v55  ;;  %v1324_v58 = vmul.f32 %v1316_v17, %v3277_v44  ;;  %v1325_v30 = vmul.f32 %v1317_v51, %v3034_v63  ;;  %v1366_v13 = vld [vmem:[#allocation3 + $0x140] sm:$0xff]  ;;  %v1367_v37 = vld [vmem:[#allocation3 + $0x148] sm:$0xff] }
  0xe6   :  { %v1264_v31 = vmul.f32 %v1263_v52, %v2859_v3  ;;  %v1288_v27 = vadd.f32 %v1287_v33, %v1285_v32  ;;  %v1308_v19 = vadd.f32 %v1307_v47, %v1304_v38  ;;  %v1326_v9 = vmul.f32 %v1318_v10, %v3280_v4  ;;  %v1368_v47 = vld [vmem:[#allocation3 + $0x150] sm:$0xff]  ;;  %v1369_v33 = vld [vmem:[#allocation3 + $0x158] sm:$0xff]  ;;  %v1370_v38 = vld [vmem:[#allocation3 + $0x160] sm:$0xff] }
  0xe7   :  { %v1310_v20 = vadd.f32 %v1309_v40, %v1306_v57  ;;  %v1328_v11 = vmul.f32 %v1319_v26, %v3282_v24  ;;  %v1330_v56 = vmul.f32 %v1320_v59, %v3284_v25  ;;  %v1332_v34 = vmul.f32 %v1321_v43, %v3046_v12  ;;  %v1371_v57 = vld [vmem:[#allocation3 + $0x168] sm:$0xff] }
  0xe8   :  { %v1289_v35 = vmul.f32 %v1288_v27, %v3237_v46  ;;  %v1312_v15 = vadd.f32 %v1311_v8, %v1308_v19  ;;  %v1327_v2 = vadd.f32 %v1326_v9, %v1324_v58  ;;  %v1334_v3 = vmul.f32 %v1322_v22, %v3287_v62  ;;  %v1372_v8 = vld [vmem:[#allocation3 + $0x170] sm:$0xff] }
  0xe9   :  { %v1329_v50 = vadd.f32 %v1328_v11, %v1325_v30  ;;  %v1336_v39 = vmul.f32 %v1323_v42, %v3289_v55  ;;  %v1349_v61 = vmul.f32 %v1341_v41, %v3277_v44  ;;  %v1350_v45 = vmul.f32 %v1342_v60, %v3034_v63  ;;  %v1391_v60 = vld [vmem:[#allocation3 + $0x180] sm:$0xff]  ;;  %v1393_v11 = vld [vmem:[#allocation3 + $0x190] sm:$0xff] }
  0xea   :  { %v1290_v21 = vadd.f32 %v1289_v35, %v1264_v31  ;;  %v1313_v49 = vadd.f32 %v1312_v15, %v1310_v20  ;;  %v1331_v6 = vadd.f32 %v1330_v56, %v1327_v2  ;;  %v1351_v46 = vmul.f32 %v1343_v5, %v3280_v4  ;;  %v1373_v31 = vld [vmem:[#allocation3 + $0x178] sm:$0xff]  ;;  %v1392_v20 = vld [vmem:[#allocation3 + $0x188] sm:$0xff] }
  0xeb   :  { %v1333_v28 = vadd.f32 %v1332_v34, %v1329_v50  ;;  %v1353_v17 = vmul.f32 %v1344_v53, %v3282_v24  ;;  %v1355_v51 = vmul.f32 %v1345_v48, %v3284_v25  ;;  %v1357_v23 = vmul.f32 %v1346_v54, %v3046_v12  ;;  %v1394_v15 = vld [vmem:[#allocation3 + $0x198] sm:$0xff]  ;;  %v1395_v54 = vld [vmem:[#allocation3 + $0x1a0] sm:$0xff]  ;;  %v1396_v50 = vld [vmem:[#allocation3 + $0x1a8] sm:$0xff] }
  0xec   :  { %v1314_v40 = vmul.f32 %v1313_v49, %v2911_v29  ;;  %v1335_v10 = vadd.f32 %v1334_v3, %v1331_v6  ;;  %v1352_v52 = vadd.f32 %v1351_v46, %v1349_v61  ;;  %v1359_v32 = vmul.f32 %v1347_v1, %v3287_v62  ;;  %v1397_v1 = vld [vmem:[#allocation3 + $0x1b0] sm:$0xff]  ;;  %v1398_v46 = vld [vmem:[#allocation3 + $0x1b8] sm:$0xff] }
  0xed   :  { %v1337_v26 = vadd.f32 %v1336_v39, %v1333_v28  ;;  %v1354_v59 = vadd.f32 %v1353_v17, %v1350_v45  ;;  %v1361_v43 = vmul.f32 %v1348_v14, %v3289_v55  ;;  %v1374_v22 = vmul.f32 %v1366_v13, %v3277_v44  ;;  %v1416_v13 = vld [vmem:[#allocation3 + $0x1c0] sm:$0xff]  ;;  %v1417_v28 = vld [vmem:[#allocation3 + $0x1c8] sm:$0xff] }
  0xee   :  { %v1315_v58 = vadd.f32 %v1314_v40, %v1290_v21  ;;  %v1356_v30 = vadd.f32 %v1355_v51, %v1352_v52  ;;  %v1375_v27 = vmul.f32 %v1367_v37, %v3034_v63  ;;  %v1376_v29 = vmul.f32 %v1368_v47, %v3280_v4  ;;  %v1418_v47 = vld [vmem:[#allocation3 + $0x1d0] sm:$0xff] }
  0xef   :  { %v1338_v19 = vadd.f32 %v1337_v26, %v1335_v10  ;;  %v1358_v42 = vadd.f32 %v1357_v23, %v1354_v59  ;;  %v1378_v9 = vmul.f32 %v1369_v33, %v3282_v24  ;;  %v1380_v41 = vmul.f32 %v1370_v38, %v3284_v25  ;;  %v1419_v33 = vld [vmem:[#allocation3 + $0x1d8] sm:$0xff]  ;;  %v1420_v38 = vld [vmem:[#allocation3 + $0x1e0] sm:$0xff]  ;;  %v1421_v26 = vld [vmem:[#allocation3 + $0x1e8] sm:$0xff] }
  0xf0   :  { %v1360_v56 = vadd.f32 %v1359_v32, %v1356_v30  ;;  %v1377_v34 = vadd.f32 %v1376_v29, %v1374_v22  ;;  %v1382_v5 = vmul.f32 %v1371_v57, %v3046_v12  ;;  %v1384_v35 = vmul.f32 %v1372_v8, %v3287_v62  ;;  %v1422_v57 = vld [vmem:[#allocation3 + $0x1f0] sm:$0xff] }
  0xf1   :  { %v1339_v2 = vmul.f32 %v1338_v19, %v2930_v0  ;;  %v1362_v3 = vadd.f32 %v1361_v43, %v1358_v42  ;;  %v1379_v53 = vadd.f32 %v1378_v9, %v1375_v27  ;;  %v1386_v48 = vmul.f32 %v1373_v31, %v3289_v55  ;;  %v1423_v27 = vld [vmem:[#allocation3 + $0x1f8] sm:$0xff] }
  0xf2   :  { %v1381_v39 = vadd.f32 %v1380_v41, %v1377_v34  ;;  %v1399_v61 = vmul.f32 %v1391_v60, %v3277_v44  ;;  %v1400_v45 = vmul.f32 %v1392_v20, %v3034_v63  ;;  %v1401_v21 = vmul.f32 %v1393_v11, %v3280_v4 }
  0xf3   :  { %v1340_v49 = vadd.f32 %v1339_v2, %v1315_v58  ;;  %v1363_v6 = vadd.f32 %v1362_v3, %v1360_v56  ;;  %v1383_v14 = vadd.f32 %v1382_v5, %v1379_v53  ;;  %v1403_v0 = vmul.f32 %v1394_v15, %v3282_v24 }
  0xf4   :  { %v1385_v17 = vadd.f32 %v1384_v35, %v1381_v39  ;;  %v1402_v51 = vadd.f32 %v1401_v21, %v1399_v61  ;;  %v1405_v23 = vmul.f32 %v1395_v54, %v3284_v25  ;;  %v1407_v37 = vmul.f32 %v1396_v50, %v3046_v12 }
  0xf5   :  { %v1364_v40 = vmul.f32 %v1363_v6, %v2950_v7  ;;  %v1387_v10 = vadd.f32 %v1386_v48, %v1383_v14  ;;  %v1404_v52 = vadd.f32 %v1403_v0, %v1400_v45  ;;  %v1409_v32 = vmul.f32 %v1397_v1, %v3287_v62 }
  0xf6   :  { %v1406_v59 = vadd.f32 %v1405_v23, %v1402_v51  ;;  %v1411_v43 = vmul.f32 %v1398_v46, %v3289_v55  ;;  %v1424_v8 = vmul.f32 %v1416_v13, %v3277_v44  ;;  %v1425_v22 = vmul.f32 %v1417_v28, %v3034_v63 }
  0xf7   :  { %v1365_v58 = vadd.f32 %v1364_v40, %v1340_v49  ;;  %v1388_v30 = vadd.f32 %v1387_v10, %v1385_v17  ;;  %v1408_v31 = vadd.f32 %v1407_v37, %v1404_v52  ;;  %v1426_v7 = vmul.f32 %v1418_v47, %v3280_v4 }
  0xf8   :  { %v1410_v29 = vadd.f32 %v1409_v32, %v1406_v59  ;;  %v1428_v19 = vmul.f32 %v1419_v33, %v3282_v24  ;;  %v1430_v42 = vmul.f32 %v1420_v38, %v3284_v25  ;;  %v1432_v9 = vmul.f32 %v1421_v26, %v3046_v12 }
  0xf9   :  { %v1389_v41 = vmul.f32 %v1388_v30, %v2972_v36  ;;  %v1412_v60 = vadd.f32 %v1411_v43, %v1408_v31  ;;  %v1427_v20 = vadd.f32 %v1426_v7, %v1424_v8  ;;  %v1434_v44 = vmul.f32 %v1422_v57, %v3287_v62 }
  0xfa   :  { %v1429_v63 = vadd.f32 %v1428_v19, %v1425_v22  ;;  %v1436_v11 = vmul.f32 %v1423_v27, %v3289_v55 }
  0xfb   :  { %v1413_v56 = vadd.f32 %v1412_v60, %v1410_v29  ;;  %v1431_v34 = vadd.f32 %v1430_v42, %v1427_v20  ;;  %v1390_v5 = vadd.f32 %v1389_v41, %v1365_v58 }
  0xfc   :  { %v1433_v4 = vadd.f32 %v1432_v9, %v1429_v63 }
  0xfd   :  { %v1414_v35 = vmul.f32 %v1413_v56, %v3268_v18  ;;  %v1435_v24 = vadd.f32 %v1434_v44, %v1431_v34 }
  0xfe   :  { %v1437_v15 = vadd.f32 %v1436_v11, %v1433_v4 }
  0xff   :  { %v1415_v25 = vadd.f32 %v1414_v35, %v1390_v5 }
 0x100   :  { %v1438_v2 = vadd.f32 %v1437_v15, %v1435_v24 }
 0x102   :  { %v1439_v12 = vmul.f32 %v1438_v2, %v3012_v16 }
 0x104   :  { %v1440_v36 = vadd.f32 %v1439_v12, %v1415_v25 }
 0x106   :  { %v1441_v3 = vmul.f32 1.5625, %v1440_v36 }
 0x108   :  { %1442 = vst [vmem:[%s3158_s3] sm:$0xff] %v1441_v3 }

</bundles_post_ra>
